<compile_context>
chip_gen: v7x
topology: tpu7x:2x2x1
jax: 0.10.0
libtpu: 0.0.40
codegen_flags: <defaults>
</compile_context>

<pallas_src>
import functools

import jax
import jax.numpy as jnp
from jax.experimental import pallas as pl
from jax.experimental.pallas import tpu as pltpu


# --------------------------------------------------------------------------
# Helpers
# --------------------------------------------------------------------------
def _round_up(x, m):
    return ((x + m - 1) // m) * m


def _vmem_limit_bytes():
    """~75% of physical VMEM (v5e/v6e: 128 MiB -> 96 MiB, v7x: 64 MiB -> 48 MiB)."""
    cap = 0
    try:
        cap = int(pltpu.get_tpu_info().vmem_capacity_bytes)
    except Exception:
        cap = 0
    if cap <= 0:
        cap = 64 << 20
    return (3 * cap) // 4


def _pad_gate_rows(w, H, Hp):
    """Zero-pad each PyTorch gate block (i,f,g,o): (4H, ...) -> (4Hp, ...)."""
    out = jnp.zeros((4 * Hp,) + w.shape[1:], w.dtype)
    for k in range(4):
        out = out.at[k * Hp:k * Hp + H].set(w[k * H:(k + 1) * H])
    return out


def _pad_lstm_params(w_ih, w_hh, b_ih, b_hh, Hp):
    """Gate-pad and transpose the LSTM weights for the kernels."""
    H = w_hh.shape[1]
    w_ih_p = _pad_gate_rows(w_ih, H, Hp)                       # (4Hp, E)
    w_hh_rows = _pad_gate_rows(w_hh, H, Hp)                    # (4Hp, H)
    w_hh_p = jnp.zeros((4 * Hp, Hp), w_hh.dtype).at[:, :H].set(w_hh_rows)
    bias_p = _pad_gate_rows(b_ih + b_hh, H, Hp)                # (4Hp,)
    wih_t_p = jnp.transpose(w_ih_p).astype(jnp.bfloat16)       # (E, 4Hp)
    whh_t_p = jnp.transpose(w_hh_p).astype(jnp.bfloat16)       # (Hp, 4Hp)
    return wih_t_p, whh_t_p, bias_p.reshape(1, 4 * Hp).astype(jnp.float32)


# --------------------------------------------------------------------------
# Fused embedding gather + LSTM input projection.
#   grid = (T // Gt,): each step gathers Gt*Bp table rows by manual DMA,
#   writes the batch-major embedding (module output) as one dense block and
#   the time-major bf16 input projection zin = x @ W_ih^T + (b_ih + b_hh).
# --------------------------------------------------------------------------
def _embed_proj_kernel(ids_ref, table_hbm, wih_ref, bias_ref,
                       emb_ref, zin_ref, xtm, xbt, sems, *, gt, bp):
    # ids_ref:   (T*Bp,) int32 SMEM, time-major (index = t*Bp + b)
    # table_hbm: (V, E) f32 in HBM (pl.ANY), row-gathered by manual DMA
    # wih_ref:   (E, 4Hp) bf16, resident (constant block)
    # bias_ref:  (1, 4Hp) f32 = gate-padded (b_ih + b_hh)
    # emb_ref:   (Bp, Gt, E) f32 output block  -> batch-major module output
    # zin_ref:   (Gt, Bp, 4Hp) bf16 output block -> time-major LSTM input
    # xtm:       (Gt*Bp, E) f32 VMEM scratch (time-major gathered rows)
    # xbt:       (Bp*Gt, E) f32 VMEM scratch (batch-major gathered rows)
    # sems:      (2,) DMA semaphores (shared; per-copy waits account bytes)
    c = pl.program_id(0)
    e = xtm.shape[-1]

    copies = []
    for g in range(gt):
        for b in range(bp):
            tok = ids_ref[(c * gt + g) * bp + b]
            src = table_hbm.at[pl.ds(tok, 1)]                        # (1, E)
            cp_tm = pltpu.make_async_copy(
                src, xtm.at[pl.ds(g * bp + b, 1)], sems.at[0])
            cp_bt = pltpu.make_async_copy(
                src, xbt.at[pl.ds(b * gt + g, 1)], sems.at[1])
            cp_tm.start()
            cp_bt.start()
            copies.append(cp_tm)
            copies.append(cp_bt)
    for cp in copies:
        cp.wait()

    # Batch-major embedding (module output): one dense (Bp, Gt, E) store.
    emb_ref[...] = xbt[...].reshape(bp, gt, e)

    # Fused input projection (bf16 operands, f32 accumulation + bias, then
    # cast to bf16), written time-major so the recurrence never relayouts.
    x = xtm[...].astype(jnp.bfloat16)
    z = jnp.dot(x, wih_ref[...], preferred_element_type=jnp.float32) + bias_ref[...]
    zin_ref[...] = z.reshape(gt, bp, -1).astype(jnp.bfloat16)


def embed_and_project(ids_p, table, wih_t_p, bias_p):
    """ids_p: (Bp, T) int32, table: (V, E) f32, wih_t_p: (E, 4Hp) bf16,
    bias_p: (1, 4Hp) f32.
    Returns emb_bt_p (Bp, T, E) f32 and zin_tm (T, Bp, 4Hp) bf16."""
    Bp, T = ids_p.shape
    V, E = table.shape
    H4p = wih_t_p.shape[1]

    # 8 time steps per grid step when possible (sublane-dense blocks); else
    # a single chunk so the block equals the full time dim.
    Gt = 8 if T % 8 == 0 else T
    Tc = T // Gt
    ids_tm = jnp.transpose(ids_p).reshape(T * Bp).astype(jnp.int32)

    kernel = functools.partial(_embed_proj_kernel, gt=Gt, bp=Bp)
    emb_bt_p, zin_tm = pl.pallas_call(
        kernel,
        grid_spec=pltpu.PrefetchScalarGridSpec(
            num_scalar_prefetch=1,
            grid=(Tc,),
            in_specs=[
                pl.BlockSpec(memory_space=pl.ANY),                # table (HBM)
                pl.BlockSpec((E, H4p), lambda c, ids: (0, 0)),    # W_ih^T
                pl.BlockSpec((1, H4p), lambda c, ids: (0, 0)),    # bias
            ],
            out_specs=[
                pl.BlockSpec((Bp, Gt, E), lambda c, ids: (0, c, 0)),
                pl.BlockSpec((Gt, Bp, H4p), lambda c, ids: (c, 0, 0)),
            ],
            scratch_shapes=[
                pltpu.VMEM((Gt * Bp, E), jnp.float32),
                pltpu.VMEM((Bp * Gt, E), jnp.float32),
                pltpu.SemaphoreType.DMA((2,)),
            ],
        ),
        out_shape=[
            jax.ShapeDtypeStruct((Bp, T, E), jnp.float32),
            jax.ShapeDtypeStruct((T, Bp, H4p), jnp.bfloat16),
        ],
        compiler_params=pltpu.CompilerParams(
            dimension_semantics=("parallel",),
            vmem_limit_bytes=_vmem_limit_bytes(),
        ),
    )(ids_tm, table, wih_t_p, bias_p)
    return emb_bt_p, zin_tm


# --------------------------------------------------------------------------
# LSTM recurrence: tt time steps per grid iteration, h/c carried in VMEM.
# --------------------------------------------------------------------------
def _lstm_recurrent_kernel(zin_ref, whh_ref, out_ref, cN_ref, h_scr, c_scr):
    # zin_ref: (tt, Bp, 4Hp) bf16  precomputed x@W_ih^T + (b_ih + b_hh)
    # whh_ref: (Hp, 4Hp) bf16 = W_hh^T (resident)
    # out_ref: (tt, Bp, Hp) f32    hidden states (time-major)
    # cN_ref:  (Bp, Hp) f32        final cell state
    # h_scr/c_scr: (Bp, Hp) f32    recurrent state carried across grid steps
    tb = pl.program_id(0)
    tt = zin_ref.shape[0]
    Hp = h_scr.shape[-1]

    @pl.when(tb == 0)
    def _():
        h_scr[...] = jnp.zeros_like(h_scr)
        c_scr[...] = jnp.zeros_like(c_scr)

    def step(t, carry):
        h, c = carry
        z = zin_ref[t].astype(jnp.float32) + jnp.dot(
            h.astype(jnp.bfloat16), whh_ref[...],
            preferred_element_type=jnp.float32)
        i_g = jax.nn.sigmoid(z[:, 0 * Hp:1 * Hp])
        f_g = jax.nn.sigmoid(z[:, 1 * Hp:2 * Hp])
        g_g = jnp.tanh(z[:, 2 * Hp:3 * Hp])
        o_g = jax.nn.sigmoid(z[:, 3 * Hp:4 * Hp])
        c_new = f_g * c + i_g * g_g
        h_new = o_g * jnp.tanh(c_new)
        out_ref[t] = h_new
        return h_new, c_new

    h, c = jax.lax.fori_loop(0, tt, step, (h_scr[...], c_scr[...]),
                             unroll=min(tt, 8))
    h_scr[...] = h
    c_scr[...] = c

    @pl.when(tb == pl.num_programs(0) - 1)
    def _():
        cN_ref[...] = c


def lstm_recurrence(zin_tm, whh_t_p):
    """zin_tm: (T, Bp, 4Hp) bf16, whh_t_p: (Hp, 4Hp) bf16.
    Returns out_tm (T, Bp, Hp) f32 and c_T (Bp, Hp) f32."""
    T, Bp, H4p = zin_tm.shape
    Hp = whh_t_p.shape[0]
    vmem_limit = _vmem_limit_bytes()

    # VMEM-budget-derived time tile: double-buffered bf16 zin + f32 out blocks
    # per time step, plus resident W_hh^T, h/c scratch and the c_T block.
    per_step = 2 * Bp * H4p * 2 + 2 * Bp * Hp * 4
    fixed = 2 * Hp * H4p * 2 + 2 * Bp * Hp * 4 + 2 * Bp * Hp * 4
    tt_max = max(1, (vmem_limit // 2 - fixed) // per_step)
    tt_cap = min(tt_max, T)
    tt = max(d for d in range(1, T + 1) if T % d == 0 and d <= tt_cap)

    out_tm, cN = pl.pallas_call(
        _lstm_recurrent_kernel,
        grid=(T // tt,),
        in_specs=[pl.BlockSpec((tt, Bp, H4p), lambda i: (i, 0, 0)),
                  pl.BlockSpec((Hp, H4p), lambda i: (0, 0))],
        out_specs=[pl.BlockSpec((tt, Bp, Hp), lambda i: (i, 0, 0)),
                   pl.BlockSpec((Bp, Hp), lambda i: (0, 0))],
        out_shape=[jax.ShapeDtypeStruct((T, Bp, Hp), jnp.float32),
                   jax.ShapeDtypeStruct((Bp, Hp), jnp.float32)],
        scratch_shapes=[pltpu.VMEM((Bp, Hp), jnp.float32),
                        pltpu.VMEM((Bp, Hp), jnp.float32)],
        compiler_params=pltpu.CompilerParams(
            dimension_semantics=("arbitrary",),
            vmem_limit_bytes=vmem_limit),
    )(zin_tm, whh_t_p)
    return out_tm, cN


# --------------------------------------------------------------------------
# CustomLSTM.forward equivalent.
# --------------------------------------------------------------------------
def _run_model(x, params):
    """Returns (emb (B,T,E), lstm_out (B,T,H), h_T (B,H), c_T (B,H))."""
    B, T = x.shape
    E = params["embedding"].shape[1]
    H = params["w_hh"].shape[1]
    Bp = _round_up(B, 8)           # sublane alignment
    Hp = _round_up(H, 128)         # lane alignment (per gate)

    ids_p = jnp.zeros((Bp, T), jnp.int32).at[:B].set(x.astype(jnp.int32))
    wih_t_p, whh_t_p, bias_p = _pad_lstm_params(
        params["w_ih"], params["w_hh"], params["b_ih"], params["b_hh"], Hp)

    emb_bt_p, zin_tm = embed_and_project(ids_p, params["embedding"],
                                         wih_t_p, bias_p)
    out_tm, cN_p = lstm_recurrence(zin_tm, whh_t_p)

    emb_bt = emb_bt_p[:B]                                     # (B, T, E)
    lstm_out = jnp.transpose(out_tm[:, :B, :H], (1, 0, 2))    # (B, T, H)
    hN = out_tm[T - 1, :B, :H]
    cN = cN_p[:B, :H]
    return emb_bt, lstm_out, hN, cN


def custom_lstm_forward(x, params):
    """Pallas equivalent of CustomLSTM.forward: embeds x, runs the LSTM (whose
    outputs the PyTorch module discards) and returns the embedding output.
    Executed eagerly the LSTM kernels run; under jax.jit they are dead code
    and would be DCE'd (intentional: they do not affect the return value)."""
    emb_bt, _, _, _ = _run_model(x, params)
    return emb_bt


def lstm_forward(x, params):
    """Exposes the (otherwise discarded) LSTM results for testing."""
    _, lstm_out, hN, cN = _run_model(x, params)
    return lstm_out, hN, cN


def init_params(key, vocab_size, embedding_dim, hidden_dim):
    """Deterministic PyTorch-style init (N(0,1) embedding, U(-k,k) LSTM/linear)."""
    k_emb, k_wih, k_whh, k_bih, k_bhh, k_lw, k_lb = jax.random.split(key, 7)
    k = 1.0 / jnp.sqrt(hidden_dim)
    u = lambda kk, shape: jax.random.uniform(kk, shape, jnp.float32, -k, k)
    return {
        "embedding": jax.random.normal(k_emb, (vocab_size, embedding_dim),
                                       jnp.float32),
        "w_ih": u(k_wih, (4 * hidden_dim, embedding_dim)),
        "w_hh": u(k_whh, (4 * hidden_dim, hidden_dim)),
        "b_ih": u(k_bih, (4 * hidden_dim,)),
        "b_hh": u(k_bhh, (4 * hidden_dim,)),
        # linear head (unused in forward, kept for module-shape fidelity)
        "lin_w": u(k_lw, (1, hidden_dim)),
        "lin_b": u(k_lb, (1,)),
    }


# --------------------------------------------------------------------------
# Pure-JAX reference for correctness checks.
# --------------------------------------------------------------------------
def _ref_lstm(x_emb, w_ih, w_hh, b_ih, b_hh):
    B, T, E = x_emb.shape
    H = w_hh.shape[1]
    h = jnp.zeros((B, H), jnp.float32)
    c = jnp.zeros((B, H), jnp.float32)
    outs = []
    for t in range(T):
        z = x_emb[:, t] @ w_ih.T + h @ w_hh.T + b_ih + b_hh
        i = jax.nn.sigmoid(z[:, 0 * H:1 * H])
        f = jax.nn.sigmoid(z[:, 1 * H:2 * H])
        g = jnp.tanh(z[:, 2 * H:3 * H])
        o = jax.nn.sigmoid(z[:, 3 * H:4 * H])
        c = f * c + i * g
        h = o * jnp.tanh(c)
        outs.append(h)
    return jnp.stack(outs, axis=1), h, c


if __name__ == "__main__":
    vocab_size, embedding_dim, hidden_dim = 50, 32, 32
    batch, seq = 2, 8

    key = jax.random.PRNGKey(0)
    k_params, k_x = jax.random.split(key)
    params = init_params(k_params, vocab_size, embedding_dim, hidden_dim)
    x = jax.random.randint(k_x, (batch, seq), 0, vocab_size, dtype=jnp.int32)

    # Module forward (returns the embedding output, like PyTorch).
    out = custom_lstm_forward(x, params)
    out = jax.block_until_ready(out)
    assert out.shape == (batch, seq, embedding_dim)
    assert out.dtype == jnp.float32

    # The DMA row gather is an exact copy — compare against jnp.take.
    emb_ref = jnp.take(params["embedding"], x, axis=0)
    assert jnp.allclose(out, emb_ref), "embedding mismatch"

    # Check the Pallas LSTM against a pure-f32 JAX reference.  Kernels use
    # bf16 MXU operands / bf16 zin (f32 accumulation), so allow a loose atol.
    lstm_out, hN, cN = lstm_forward(x, params)
    lstm_out, hN, cN = jax.block_until_ready((lstm_out, hN, cN))
    ref_out, ref_h, ref_c = _ref_lstm(emb_ref, params["w_ih"], params["w_hh"],
                                      params["b_ih"], params["b_hh"])
    assert jnp.allclose(lstm_out, ref_out, atol=3e-2), "lstm output mismatch"
    assert jnp.allclose(hN, ref_h, atol=3e-2), "lstm h_T mismatch"
    assert jnp.allclose(cN, ref_c, atol=3e-2), "lstm c_T mismatch"

    print("KERNEL_OK")
</pallas_src>

<mosaic_0001>
module attributes {stable_mosaic.version = 11 : i64} {
  func.func @_embed_proj_kernel(%arg0: i32, %arg1: memref<64xi32, #tpu.memory_space<smem>>, %arg2: memref<50x32xf32, #tpu.memory_space<any>>, %arg3: memref<32x512xbf16, #tpu.memory_space<vmem>>, %arg4: memref<1x512xf32, #tpu.memory_space<vmem>>, %arg5: memref<8x8x32xf32, #tpu.memory_space<vmem>>, %arg6: memref<8x8x512xbf16, #tpu.memory_space<vmem>>, %arg7: memref<64x32xf32, #tpu.memory_space<vmem>>, %arg8: memref<64x32xf32, #tpu.memory_space<vmem>>, %arg9: memref<2x!tpu.dma_semaphore, #tpu.memory_space<semaphore_mem>>) attributes {dimension_semantics = [#tpu.dimension_semantics<parallel>], iteration_bounds = array<i64: 1>, scalar_prefetch = 1 : i64, scratch_operands = 3 : i64, tpu.core_type = #tpu.core_type<tc>, window_params = [{}, {pipeline_mode = #tpu.pipeline_mode<synchronous>, transform_indices = @transform_1, window_bounds = array<i64: 32, 512>}, {pipeline_mode = #tpu.pipeline_mode<synchronous>, transform_indices = @transform_2, window_bounds = array<i64: 1, 512>}, {transform_indices = @transform_3, window_bounds = array<i64: 8, 8, 32>}, {transform_indices = @transform_4, window_bounds = array<i64: 8, 8, 512>}]} {
    %c8_i32 = arith.constant 8 : i32
    %0 = arith.muli %arg0, %c8_i32 : i32
    %c0_i32 = arith.constant 0 : i32
    %1 = arith.addi %0, %c0_i32 : i32
    %c8_i32_0 = arith.constant 8 : i32
    %2 = arith.muli %1, %c8_i32_0 : i32
    %c0_i32_1 = arith.constant 0 : i32
    %3 = arith.addi %2, %c0_i32_1 : i32
    %4 = arith.index_cast %3 : i32 to index
    %5 = memref.load %arg1[%4] : memref<64xi32, #tpu.memory_space<smem>>
    %c0_i32_2 = arith.constant 0 : i32
    %c0_i32_3 = arith.constant 0 : i32
    %6 = tpu.memref_slice %arg2[%5, %c0_i32_3] : memref<50x32xf32, #tpu.memory_space<any>> -> memref<1x32xf32, #tpu.memory_space<any>>
    %c0_i32_4 = arith.constant 0 : i32
    %c0_i32_5 = arith.constant 0 : i32
    %7 = tpu.memref_slice %arg7[%c0_i32_4, %c0_i32_5] : memref<64x32xf32, #tpu.memory_space<vmem>> -> memref<1x32xf32, #tpu.memory_space<vmem>>
    %8 = tpu.memref_slice %arg9[%c0_i32_2] : memref<2x!tpu.dma_semaphore, #tpu.memory_space<semaphore_mem>> -> memref<1x!tpu.dma_semaphore, #tpu.memory_space<semaphore_mem>>
    %9 = tpu.memref_squeeze %8 : memref<1x!tpu.dma_semaphore, #tpu.memory_space<semaphore_mem>> -> memref<!tpu.dma_semaphore, #tpu.memory_space<semaphore_mem>>
    tpu.enqueue_dma source(%6 : memref<1x32xf32, #tpu.memory_space<any>>) target(%7 : memref<1x32xf32, #tpu.memory_space<vmem>>) target_semaphore(%9 : memref<!tpu.dma_semaphore, #tpu.memory_space<semaphore_mem>>)
    %c1_i32 = arith.constant 1 : i32
    %c0_i32_6 = arith.constant 0 : i32
    %10 = tpu.memref_slice %arg2[%5, %c0_i32_6] : memref<50x32xf32, #tpu.memory_space<any>> -> memref<1x32xf32, #tpu.memory_space<any>>
    %c0_i32_7 = arith.constant 0 : i32
    %c0_i32_8 = arith.constant 0 : i32
    %11 = tpu.memref_slice %arg8[%c0_i32_7, %c0_i32_8] : memref<64x32xf32, #tpu.memory_space<vmem>> -> memref<1x32xf32, #tpu.memory_space<vmem>>
    %12 = tpu.memref_slice %arg9[%c1_i32] : memref<2x!tpu.dma_semaphore, #tpu.memory_space<semaphore_mem>> -> memref<1x!tpu.dma_semaphore, #tpu.memory_space<semaphore_mem>>
    %13 = tpu.memref_squeeze %12 : memref<1x!tpu.dma_semaphore, #tpu.memory_space<semaphore_mem>> -> memref<!tpu.dma_semaphore, #tpu.memory_space<semaphore_mem>>
    tpu.enqueue_dma source(%10 : memref<1x32xf32, #tpu.memory_space<any>>) target(%11 : memref<1x32xf32, #tpu.memory_space<vmem>>) target_semaphore(%13 : memref<!tpu.dma_semaphore, #tpu.memory_space<semaphore_mem>>)
    %c8_i32_9 = arith.constant 8 : i32
    %14 = arith.muli %arg0, %c8_i32_9 : i32
    %c0_i32_10 = arith.constant 0 : i32
    %15 = arith.addi %14, %c0_i32_10 : i32
    %c8_i32_11 = arith.constant 8 : i32
    %16 = arith.muli %15, %c8_i32_11 : i32
    %c1_i32_12 = arith.constant 1 : i32
    %17 = arith.addi %16, %c1_i32_12 : i32
    %18 = arith.index_cast %17 : i32 to index
    %19 = memref.load %arg1[%18] : memref<64xi32, #tpu.memory_space<smem>>
    %c0_i32_13 = arith.constant 0 : i32
    %c0_i32_14 = arith.constant 0 : i32
    %20 = tpu.memref_slice %arg2[%19, %c0_i32_14] : memref<50x32xf32, #tpu.memory_space<any>> -> memref<1x32xf32, #tpu.memory_space<any>>
    %c1_i32_15 = arith.constant 1 : i32
    %c0_i32_16 = arith.constant 0 : i32
    %21 = tpu.memref_slice %arg7[%c1_i32_15, %c0_i32_16] : memref<64x32xf32, #tpu.memory_space<vmem>> -> memref<1x32xf32, #tpu.memory_space<vmem>>
    %22 = tpu.memref_slice %arg9[%c0_i32_13] : memref<2x!tpu.dma_semaphore, #tpu.memory_space<semaphore_mem>> -> memref<1x!tpu.dma_semaphore, #tpu.memory_space<semaphore_mem>>
    %23 = tpu.memref_squeeze %22 : memref<1x!tpu.dma_semaphore, #tpu.memory_space<semaphore_mem>> -> memref<!tpu.dma_semaphore, #tpu.memory_space<semaphore_mem>>
    tpu.enqueue_dma source(%20 : memref<1x32xf32, #tpu.memory_space<any>>) target(%21 : memref<1x32xf32, #tpu.memory_space<vmem>>) target_semaphore(%23 : memref<!tpu.dma_semaphore, #tpu.memory_space<semaphore_mem>>)
    %c1_i32_17 = arith.constant 1 : i32
    %c0_i32_18 = arith.constant 0 : i32
    %24 = tpu.memref_slice %arg2[%19, %c0_i32_18] : memref<50x32xf32, #tpu.memory_space<any>> -> memref<1x32xf32, #tpu.memory_space<any>>
    %c8_i32_19 = arith.constant 8 : i32
    %c0_i32_20 = arith.constant 0 : i32
    %25 = tpu.memref_slice %arg8[%c8_i32_19, %c0_i32_20] : memref<64x32xf32, #tpu.memory_space<vmem>> -> memref<1x32xf32, #tpu.memory_space<vmem>>
    %26 = tpu.memref_slice %arg9[%c1_i32_17] : memref<2x!tpu.dma_semaphore, #tpu.memory_space<semaphore_mem>> -> memref<1x!tpu.dma_semaphore, #tpu.memory_space<semaphore_mem>>
    %27 = tpu.memref_squeeze %26 : memref<1x!tpu.dma_semaphore, #tpu.memory_space<semaphore_mem>> -> memref<!tpu.dma_semaphore, #tpu.memory_space<semaphore_mem>>
    tpu.enqueue_dma source(%24 : memref<1x32xf32, #tpu.memory_space<any>>) target(%25 : memref<1x32xf32, #tpu.memory_space<vmem>>) target_semaphore(%27 : memref<!tpu.dma_semaphore, #tpu.memory_space<semaphore_mem>>)
    %c8_i32_21 = arith.constant 8 : i32
    %28 = arith.muli %arg0, %c8_i32_21 : i32
    %c0_i32_22 = arith.constant 0 : i32
    %29 = arith.addi %28, %c0_i32_22 : i32
    %c8_i32_23 = arith.constant 8 : i32
    %30 = arith.muli %29, %c8_i32_23 : i32
    %c2_i32 = arith.constant 2 : i32
    %31 = arith.addi %30, %c2_i32 : i32
    %32 = arith.index_cast %31 : i32 to index
    %33 = memref.load %arg1[%32] : memref<64xi32, #tpu.memory_space<smem>>
    %c0_i32_24 = arith.constant 0 : i32
    %c0_i32_25 = arith.constant 0 : i32
    %34 = tpu.memref_slice %arg2[%33, %c0_i32_25] : memref<50x32xf32, #tpu.memory_space<any>> -> memref<1x32xf32, #tpu.memory_space<any>>
    %c2_i32_26 = arith.constant 2 : i32
    %c0_i32_27 = arith.constant 0 : i32
    %35 = tpu.memref_slice %arg7[%c2_i32_26, %c0_i32_27] : memref<64x32xf32, #tpu.memory_space<vmem>> -> memref<1x32xf32, #tpu.memory_space<vmem>>
    %36 = tpu.memref_slice %arg9[%c0_i32_24] : memref<2x!tpu.dma_semaphore, #tpu.memory_space<semaphore_mem>> -> memref<1x!tpu.dma_semaphore, #tpu.memory_space<semaphore_mem>>
    %37 = tpu.memref_squeeze %36 : memref<1x!tpu.dma_semaphore, #tpu.memory_space<semaphore_mem>> -> memref<!tpu.dma_semaphore, #tpu.memory_space<semaphore_mem>>
    tpu.enqueue_dma source(%34 : memref<1x32xf32, #tpu.memory_space<any>>) target(%35 : memref<1x32xf32, #tpu.memory_space<vmem>>) target_semaphore(%37 : memref<!tpu.dma_semaphore, #tpu.memory_space<semaphore_mem>>)
    %c1_i32_28 = arith.constant 1 : i32
    %c0_i32_29 = arith.constant 0 : i32
    %38 = tpu.memref_slice %arg2[%33, %c0_i32_29] : memref<50x32xf32, #tpu.memory_space<any>> -> memref<1x32xf32, #tpu.memory_space<any>>
    %c16_i32 = arith.constant 16 : i32
    %c0_i32_30 = arith.constant 0 : i32
    %39 = tpu.memref_slice %arg8[%c16_i32, %c0_i32_30] : memref<64x32xf32, #tpu.memory_space<vmem>> -> memref<1x32xf32, #tpu.memory_space<vmem>>
    %40 = tpu.memref_slice %arg9[%c1_i32_28] : memref<2x!tpu.dma_semaphore, #tpu.memory_space<semaphore_mem>> -> memref<1x!tpu.dma_semaphore, #tpu.memory_space<semaphore_mem>>
    %41 = tpu.memref_squeeze %40 : memref<1x!tpu.dma_semaphore, #tpu.memory_space<semaphore_mem>> -> memref<!tpu.dma_semaphore, #tpu.memory_space<semaphore_mem>>
    tpu.enqueue_dma source(%38 : memref<1x32xf32, #tpu.memory_space<any>>) target(%39 : memref<1x32xf32, #tpu.memory_space<vmem>>) target_semaphore(%41 : memref<!tpu.dma_semaphore, #tpu.memory_space<semaphore_mem>>)
    %c8_i32_31 = arith.constant 8 : i32
    %42 = arith.muli %arg0, %c8_i32_31 : i32
    %c0_i32_32 = arith.constant 0 : i32
    %43 = arith.addi %42, %c0_i32_32 : i32
    %c8_i32_33 = arith.constant 8 : i32
    %44 = arith.muli %43, %c8_i32_33 : i32
    %c3_i32 = arith.constant 3 : i32
    %45 = arith.addi %44, %c3_i32 : i32
    %46 = arith.index_cast %45 : i32 to index
    %47 = memref.load %arg1[%46] : memref<64xi32, #tpu.memory_space<smem>>
    %c0_i32_34 = arith.constant 0 : i32
    %c0_i32_35 = arith.constant 0 : i32
    %48 = tpu.memref_slice %arg2[%47, %c0_i32_35] : memref<50x32xf32, #tpu.memory_space<any>> -> memref<1x32xf32, #tpu.memory_space<any>>
    %c3_i32_36 = arith.constant 3 : i32
    %c0_i32_37 = arith.constant 0 : i32
    %49 = tpu.memref_slice %arg7[%c3_i32_36, %c0_i32_37] : memref<64x32xf32, #tpu.memory_space<vmem>> -> memref<1x32xf32, #tpu.memory_space<vmem>>
    %50 = tpu.memref_slice %arg9[%c0_i32_34] : memref<2x!tpu.dma_semaphore, #tpu.memory_space<semaphore_mem>> -> memref<1x!tpu.dma_semaphore, #tpu.memory_space<semaphore_mem>>
    %51 = tpu.memref_squeeze %50 : memref<1x!tpu.dma_semaphore, #tpu.memory_space<semaphore_mem>> -> memref<!tpu.dma_semaphore, #tpu.memory_space<semaphore_mem>>
    tpu.enqueue_dma source(%48 : memref<1x32xf32, #tpu.memory_space<any>>) target(%49 : memref<1x32xf32, #tpu.memory_space<vmem>>) target_semaphore(%51 : memref<!tpu.dma_semaphore, #tpu.memory_space<semaphore_mem>>)
    %c1_i32_38 = arith.constant 1 : i32
    %c0_i32_39 = arith.constant 0 : i32
    %52 = tpu.memref_slice %arg2[%47, %c0_i32_39] : memref<50x32xf32, #tpu.memory_space<any>> -> memref<1x32xf32, #tpu.memory_space<any>>
    %c24_i32 = arith.constant 24 : i32
    %c0_i32_40 = arith.constant 0 : i32
    %53 = tpu.memref_slice %arg8[%c24_i32, %c0_i32_40] : memref<64x32xf32, #tpu.memory_space<vmem>> -> memref<1x32xf32, #tpu.memory_space<vmem>>
    %54 = tpu.memref_slice %arg9[%c1_i32_38] : memref<2x!tpu.dma_semaphore, #tpu.memory_space<semaphore_mem>> -> memref<1x!tpu.dma_semaphore, #tpu.memory_space<semaphore_mem>>
    %55 = tpu.memref_squeeze %54 : memref<1x!tpu.dma_semaphore, #tpu.memory_space<semaphore_mem>> -> memref<!tpu.dma_semaphore, #tpu.memory_space<semaphore_mem>>
    tpu.enqueue_dma source(%52 : memref<1x32xf32, #tpu.memory_space<any>>) target(%53 : memref<1x32xf32, #tpu.memory_space<vmem>>) target_semaphore(%55 : memref<!tpu.dma_semaphore, #tpu.memory_space<semaphore_mem>>)
    %c8_i32_41 = arith.constant 8 : i32
    %56 = arith.muli %arg0, %c8_i32_41 : i32
    %c0_i32_42 = arith.constant 0 : i32
    %57 = arith.addi %56, %c0_i32_42 : i32
    %c8_i32_43 = arith.constant 8 : i32
    %58 = arith.muli %57, %c8_i32_43 : i32
    %c4_i32 = arith.constant 4 : i32
    %59 = arith.addi %58, %c4_i32 : i32
    %60 = arith.index_cast %59 : i32 to index
    %61 = memref.load %arg1[%60] : memref<64xi32, #tpu.memory_space<smem>>
    %c0_i32_44 = arith.constant 0 : i32
    %c0_i32_45 = arith.constant 0 : i32
    %62 = tpu.memref_slice %arg2[%61, %c0_i32_45] : memref<50x32xf32, #tpu.memory_space<any>> -> memref<1x32xf32, #tpu.memory_space<any>>
    %c4_i32_46 = arith.constant 4 : i32
    %c0_i32_47 = arith.constant 0 : i32
    %63 = tpu.memref_slice %arg7[%c4_i32_46, %c0_i32_47] : memref<64x32xf32, #tpu.memory_space<vmem>> -> memref<1x32xf32, #tpu.memory_space<vmem>>
    %64 = tpu.memref_slice %arg9[%c0_i32_44] : memref<2x!tpu.dma_semaphore, #tpu.memory_space<semaphore_mem>> -> memref<1x!tpu.dma_semaphore, #tpu.memory_space<semaphore_mem>>
    %65 = tpu.memref_squeeze %64 : memref<1x!tpu.dma_semaphore, #tpu.memory_space<semaphore_mem>> -> memref<!tpu.dma_semaphore, #tpu.memory_space<semaphore_mem>>
    tpu.enqueue_dma source(%62 : memref<1x32xf32, #tpu.memory_space<any>>) target(%63 : memref<1x32xf32, #tpu.memory_space<vmem>>) target_semaphore(%65 : memref<!tpu.dma_semaphore, #tpu.memory_space<semaphore_mem>>)
    %c1_i32_48 = arith.constant 1 : i32
    %c0_i32_49 = arith.constant 0 : i32
    %66 = tpu.memref_slice %arg2[%61, %c0_i32_49] : memref<50x32xf32, #tpu.memory_space<any>> -> memref<1x32xf32, #tpu.memory_space<any>>
    %c32_i32 = arith.constant 32 : i32
    %c0_i32_50 = arith.constant 0 : i32
    %67 = tpu.memref_slice %arg8[%c32_i32, %c0_i32_50] : memref<64x32xf32, #tpu.memory_space<vmem>> -> memref<1x32xf32, #tpu.memory_space<vmem>>
    %68 = tpu.memref_slice %arg9[%c1_i32_48] : memref<2x!tpu.dma_semaphore, #tpu.memory_space<semaphore_mem>> -> memref<1x!tpu.dma_semaphore, #tpu.memory_space<semaphore_mem>>
    %69 = tpu.memref_squeeze %68 : memref<1x!tpu.dma_semaphore, #tpu.memory_space<semaphore_mem>> -> memref<!tpu.dma_semaphore, #tpu.memory_space<semaphore_mem>>
    tpu.enqueue_dma source(%66 : memref<1x32xf32, #tpu.memory_space<any>>) target(%67 : memref<1x32xf32, #tpu.memory_space<vmem>>) target_semaphore(%69 : memref<!tpu.dma_semaphore, #tpu.memory_space<semaphore_mem>>)
    %c8_i32_51 = arith.constant 8 : i32
    %70 = arith.muli %arg0, %c8_i32_51 : i32
    %c0_i32_52 = arith.constant 0 : i32
    %71 = arith.addi %70, %c0_i32_52 : i32
    %c8_i32_53 = arith.constant 8 : i32
    %72 = arith.muli %71, %c8_i32_53 : i32
    %c5_i32 = arith.constant 5 : i32
    %73 = arith.addi %72, %c5_i32 : i32
    %74 = arith.index_cast %73 : i32 to index
    %75 = memref.load %arg1[%74] : memref<64xi32, #tpu.memory_space<smem>>
    %c0_i32_54 = arith.constant 0 : i32
    %c0_i32_55 = arith.constant 0 : i32
    %76 = tpu.memref_slice %arg2[%75, %c0_i32_55] : memref<50x32xf32, #tpu.memory_space<any>> -> memref<1x32xf32, #tpu.memory_space<any>>
    %c5_i32_56 = arith.constant 5 : i32
    %c0_i32_57 = arith.constant 0 : i32
    %77 = tpu.memref_slice %arg7[%c5_i32_56, %c0_i32_57] : memref<64x32xf32, #tpu.memory_space<vmem>> -> memref<1x32xf32, #tpu.memory_space<vmem>>
    %78 = tpu.memref_slice %arg9[%c0_i32_54] : memref<2x!tpu.dma_semaphore, #tpu.memory_space<semaphore_mem>> -> memref<1x!tpu.dma_semaphore, #tpu.memory_space<semaphore_mem>>
    %79 = tpu.memref_squeeze %78 : memref<1x!tpu.dma_semaphore, #tpu.memory_space<semaphore_mem>> -> memref<!tpu.dma_semaphore, #tpu.memory_space<semaphore_mem>>
    tpu.enqueue_dma source(%76 : memref<1x32xf32, #tpu.memory_space<any>>) target(%77 : memref<1x32xf32, #tpu.memory_space<vmem>>) target_semaphore(%79 : memref<!tpu.dma_semaphore, #tpu.memory_space<semaphore_mem>>)
    %c1_i32_58 = arith.constant 1 : i32
    %c0_i32_59 = arith.constant 0 : i32
    %80 = tpu.memref_slice %arg2[%75, %c0_i32_59] : memref<50x32xf32, #tpu.memory_space<any>> -> memref<1x32xf32, #tpu.memory_space<any>>
    %c40_i32 = arith.constant 40 : i32
    %c0_i32_60 = arith.constant 0 : i32
    %81 = tpu.memref_slice %arg8[%c40_i32, %c0_i32_60] : memref<64x32xf32, #tpu.memory_space<vmem>> -> memref<1x32xf32, #tpu.memory_space<vmem>>
    %82 = tpu.memref_slice %arg9[%c1_i32_58] : memref<2x!tpu.dma_semaphore, #tpu.memory_space<semaphore_mem>> -> memref<1x!tpu.dma_semaphore, #tpu.memory_space<semaphore_mem>>
    %83 = tpu.memref_squeeze %82 : memref<1x!tpu.dma_semaphore, #tpu.memory_space<semaphore_mem>> -> memref<!tpu.dma_semaphore, #tpu.memory_space<semaphore_mem>>
    tpu.enqueue_dma source(%80 : memref<1x32xf32, #tpu.memory_space<any>>) target(%81 : memref<1x32xf32, #tpu.memory_space<vmem>>) target_semaphore(%83 : memref<!tpu.dma_semaphore, #tpu.memory_space<semaphore_mem>>)
    %c8_i32_61 = arith.constant 8 : i32
    %84 = arith.muli %arg0, %c8_i32_61 : i32
    %c0_i32_62 = arith.constant 0 : i32
    %85 = arith.addi %84, %c0_i32_62 : i32
    %c8_i32_63 = arith.constant 8 : i32
    %86 = arith.muli %85, %c8_i32_63 : i32
    %c6_i32 = arith.constant 6 : i32
    %87 = arith.addi %86, %c6_i32 : i32
    %88 = arith.index_cast %87 : i32 to index
    %89 = memref.load %arg1[%88] : memref<64xi32, #tpu.memory_space<smem>>
    %c0_i32_64 = arith.constant 0 : i32
    %c0_i32_65 = arith.constant 0 : i32
    %90 = tpu.memref_slice %arg2[%89, %c0_i32_65] : memref<50x32xf32, #tpu.memory_space<any>> -> memref<1x32xf32, #tpu.memory_space<any>>
    %c6_i32_66 = arith.constant 6 : i32
    %c0_i32_67 = arith.constant 0 : i32
    %91 = tpu.memref_slice %arg7[%c6_i32_66, %c0_i32_67] : memref<64x32xf32, #tpu.memory_space<vmem>> -> memref<1x32xf32, #tpu.memory_space<vmem>>
    %92 = tpu.memref_slice %arg9[%c0_i32_64] : memref<2x!tpu.dma_semaphore, #tpu.memory_space<semaphore_mem>> -> memref<1x!tpu.dma_semaphore, #tpu.memory_space<semaphore_mem>>
    %93 = tpu.memref_squeeze %92 : memref<1x!tpu.dma_semaphore, #tpu.memory_space<semaphore_mem>> -> memref<!tpu.dma_semaphore, #tpu.memory_space<semaphore_mem>>
    tpu.enqueue_dma source(%90 : memref<1x32xf32, #tpu.memory_space<any>>) target(%91 : memref<1x32xf32, #tpu.memory_space<vmem>>) target_semaphore(%93 : memref<!tpu.dma_semaphore, #tpu.memory_space<semaphore_mem>>)
    %c1_i32_68 = arith.constant 1 : i32
    %c0_i32_69 = arith.constant 0 : i32
    %94 = tpu.memref_slice %arg2[%89, %c0_i32_69] : memref<50x32xf32, #tpu.memory_space<any>> -> memref<1x32xf32, #tpu.memory_space<any>>
    %c48_i32 = arith.constant 48 : i32
    %c0_i32_70 = arith.constant 0 : i32
    %95 = tpu.memref_slice %arg8[%c48_i32, %c0_i32_70] : memref<64x32xf32, #tpu.memory_space<vmem>> -> memref<1x32xf32, #tpu.memory_space<vmem>>
    %96 = tpu.memref_slice %arg9[%c1_i32_68] : memref<2x!tpu.dma_semaphore, #tpu.memory_space<semaphore_mem>> -> memref<1x!tpu.dma_semaphore, #tpu.memory_space<semaphore_mem>>
    %97 = tpu.memref_squeeze %96 : memref<1x!tpu.dma_semaphore, #tpu.memory_space<semaphore_mem>> -> memref<!tpu.dma_semaphore, #tpu.memory_space<semaphore_mem>>
    tpu.enqueue_dma source(%94 : memref<1x32xf32, #tpu.memory_space<any>>) target(%95 : memref<1x32xf32, #tpu.memory_space<vmem>>) target_semaphore(%97 : memref<!tpu.dma_semaphore, #tpu.memory_space<semaphore_mem>>)
    %c8_i32_71 = arith.constant 8 : i32
    %98 = arith.muli %arg0, %c8_i32_71 : i32
    %c0_i32_72 = arith.constant 0 : i32
    %99 = arith.addi %98, %c0_i32_72 : i32
    %c8_i32_73 = arith.constant 8 : i32
    %100 = arith.muli %99, %c8_i32_73 : i32
    %c7_i32 = arith.constant 7 : i32
    %101 = arith.addi %100, %c7_i32 : i32
    %102 = arith.index_cast %101 : i32 to index
    %103 = memref.load %arg1[%102] : memref<64xi32, #tpu.memory_space<smem>>
    %c0_i32_74 = arith.constant 0 : i32
    %c0_i32_75 = arith.constant 0 : i32
    %104 = tpu.memref_slice %arg2[%103, %c0_i32_75] : memref<50x32xf32, #tpu.memory_space<any>> -> memref<1x32xf32, #tpu.memory_space<any>>
    %c7_i32_76 = arith.constant 7 : i32
    %c0_i32_77 = arith.constant 0 : i32
    %105 = tpu.memref_slice %arg7[%c7_i32_76, %c0_i32_77] : memref<64x32xf32, #tpu.memory_space<vmem>> -> memref<1x32xf32, #tpu.memory_space<vmem>>
    %106 = tpu.memref_slice %arg9[%c0_i32_74] : memref<2x!tpu.dma_semaphore, #tpu.memory_space<semaphore_mem>> -> memref<1x!tpu.dma_semaphore, #tpu.memory_space<semaphore_mem>>
    %107 = tpu.memref_squeeze %106 : memref<1x!tpu.dma_semaphore, #tpu.memory_space<semaphore_mem>> -> memref<!tpu.dma_semaphore, #tpu.memory_space<semaphore_mem>>
    tpu.enqueue_dma source(%104 : memref<1x32xf32, #tpu.memory_space<any>>) target(%105 : memref<1x32xf32, #tpu.memory_space<vmem>>) target_semaphore(%107 : memref<!tpu.dma_semaphore, #tpu.memory_space<semaphore_mem>>)
    %c1_i32_78 = arith.constant 1 : i32
    %c0_i32_79 = arith.constant 0 : i32
    %108 = tpu.memref_slice %arg2[%103, %c0_i32_79] : memref<50x32xf32, #tpu.memory_space<any>> -> memref<1x32xf32, #tpu.memory_space<any>>
    %c56_i32 = arith.constant 56 : i32
    %c0_i32_80 = arith.constant 0 : i32
    %109 = tpu.memref_slice %arg8[%c56_i32, %c0_i32_80] : memref<64x32xf32, #tpu.memory_space<vmem>> -> memref<1x32xf32, #tpu.memory_space<vmem>>
    %110 = tpu.memref_slice %arg9[%c1_i32_78] : memref<2x!tpu.dma_semaphore, #tpu.memory_space<semaphore_mem>> -> memref<1x!tpu.dma_semaphore, #tpu.memory_space<semaphore_mem>>
    %111 = tpu.memref_squeeze %110 : memref<1x!tpu.dma_semaphore, #tpu.memory_space<semaphore_mem>> -> memref<!tpu.dma_semaphore, #tpu.memory_space<semaphore_mem>>
    tpu.enqueue_dma source(%108 : memref<1x32xf32, #tpu.memory_space<any>>) target(%109 : memref<1x32xf32, #tpu.memory_space<vmem>>) target_semaphore(%111 : memref<!tpu.dma_semaphore, #tpu.memory_space<semaphore_mem>>)
    %c8_i32_81 = arith.constant 8 : i32
    %112 = arith.muli %arg0, %c8_i32_81 : i32
    %c1_i32_82 = arith.constant 1 : i32
    %113 = arith.addi %112, %c1_i32_82 : i32
    %c8_i32_83 = arith.constant 8 : i32
    %114 = arith.muli %113, %c8_i32_83 : i32
    %c0_i32_84 = arith.constant 0 : i32
    %115 = arith.addi %114, %c0_i32_84 : i32
    %116 = arith.index_cast %115 : i32 to index
    %117 = memref.load %arg1[%116] : memref<64xi32, #tpu.memory_space<smem>>
    %c0_i32_85 = arith.constant 0 : i32
    %c0_i32_86 = arith.constant 0 : i32
    %118 = tpu.memref_slice %arg2[%117, %c0_i32_86] : memref<50x32xf32, #tpu.memory_space<any>> -> memref<1x32xf32, #tpu.memory_space<any>>
    %c8_i32_87 = arith.constant 8 : i32
    %c0_i32_88 = arith.constant 0 : i32
    %119 = tpu.memref_slice %arg7[%c8_i32_87, %c0_i32_88] : memref<64x32xf32, #tpu.memory_space<vmem>> -> memref<1x32xf32, #tpu.memory_space<vmem>>
    %120 = tpu.memref_slice %arg9[%c0_i32_85] : memref<2x!tpu.dma_semaphore, #tpu.memory_space<semaphore_mem>> -> memref<1x!tpu.dma_semaphore, #tpu.memory_space<semaphore_mem>>
    %121 = tpu.memref_squeeze %120 : memref<1x!tpu.dma_semaphore, #tpu.memory_space<semaphore_mem>> -> memref<!tpu.dma_semaphore, #tpu.memory_space<semaphore_mem>>
    tpu.enqueue_dma source(%118 : memref<1x32xf32, #tpu.memory_space<any>>) target(%119 : memref<1x32xf32, #tpu.memory_space<vmem>>) target_semaphore(%121 : memref<!tpu.dma_semaphore, #tpu.memory_space<semaphore_mem>>)
    %c1_i32_89 = arith.constant 1 : i32
    %c0_i32_90 = arith.constant 0 : i32
    %122 = tpu.memref_slice %arg2[%117, %c0_i32_90] : memref<50x32xf32, #tpu.memory_space<any>> -> memref<1x32xf32, #tpu.memory_space<any>>
    %c1_i32_91 = arith.constant 1 : i32
    %c0_i32_92 = arith.constant 0 : i32
    %123 = tpu.memref_slice %arg8[%c1_i32_91, %c0_i32_92] : memref<64x32xf32, #tpu.memory_space<vmem>> -> memref<1x32xf32, #tpu.memory_space<vmem>>
    %124 = tpu.memref_slice %arg9[%c1_i32_89] : memref<2x!tpu.dma_semaphore, #tpu.memory_space<semaphore_mem>> -> memref<1x!tpu.dma_semaphore, #tpu.memory_space<semaphore_mem>>
    %125 = tpu.memref_squeeze %124 : memref<1x!tpu.dma_semaphore, #tpu.memory_space<semaphore_mem>> -> memref<!tpu.dma_semaphore, #tpu.memory_space<semaphore_mem>>
    tpu.enqueue_dma source(%122 : memref<1x32xf32, #tpu.memory_space<any>>) target(%123 : memref<1x32xf32, #tpu.memory_space<vmem>>) target_semaphore(%125 : memref<!tpu.dma_semaphore, #tpu.memory_space<semaphore_mem>>)
    %c8_i32_93 = arith.constant 8 : i32
    %126 = arith.muli %arg0, %c8_i32_93 : i32
    %c1_i32_94 = arith.constant 1 : i32
    %127 = arith.addi %126, %c1_i32_94 : i32
    %c8_i32_95 = arith.constant 8 : i32
    %128 = arith.muli %127, %c8_i32_95 : i32
    %c1_i32_96 = arith.constant 1 : i32
    %129 = arith.addi %128, %c1_i32_96 : i32
    %130 = arith.index_cast %129 : i32 to index
    %131 = memref.load %arg1[%130] : memref<64xi32, #tpu.memory_space<smem>>
    %c0_i32_97 = arith.constant 0 : i32
    %c0_i32_98 = arith.constant 0 : i32
    %132 = tpu.memref_slice %arg2[%131, %c0_i32_98] : memref<50x32xf32, #tpu.memory_space<any>> -> memref<1x32xf32, #tpu.memory_space<any>>
    %c9_i32 = arith.constant 9 : i32
    %c0_i32_99 = arith.constant 0 : i32
    %133 = tpu.memref_slice %arg7[%c9_i32, %c0_i32_99] : memref<64x32xf32, #tpu.memory_space<vmem>> -> memref<1x32xf32, #tpu.memory_space<vmem>>
    %134 = tpu.memref_slice %arg9[%c0_i32_97] : memref<2x!tpu.dma_semaphore, #tpu.memory_space<semaphore_mem>> -> memref<1x!tpu.dma_semaphore, #tpu.memory_space<semaphore_mem>>
    %135 = tpu.memref_squeeze %134 : memref<1x!tpu.dma_semaphore, #tpu.memory_space<semaphore_mem>> -> memref<!tpu.dma_semaphore, #tpu.memory_space<semaphore_mem>>
    tpu.enqueue_dma source(%132 : memref<1x32xf32, #tpu.memory_space<any>>) target(%133 : memref<1x32xf32, #tpu.memory_space<vmem>>) target_semaphore(%135 : memref<!tpu.dma_semaphore, #tpu.memory_space<semaphore_mem>>)
    %c1_i32_100 = arith.constant 1 : i32
    %c0_i32_101 = arith.constant 0 : i32
    %136 = tpu.memref_slice %arg2[%131, %c0_i32_101] : memref<50x32xf32, #tpu.memory_space<any>> -> memref<1x32xf32, #tpu.memory_space<any>>
    %c9_i32_102 = arith.constant 9 : i32
    %c0_i32_103 = arith.constant 0 : i32
    %137 = tpu.memref_slice %arg8[%c9_i32_102, %c0_i32_103] : memref<64x32xf32, #tpu.memory_space<vmem>> -> memref<1x32xf32, #tpu.memory_space<vmem>>
    %138 = tpu.memref_slice %arg9[%c1_i32_100] : memref<2x!tpu.dma_semaphore, #tpu.memory_space<semaphore_mem>> -> memref<1x!tpu.dma_semaphore, #tpu.memory_space<semaphore_mem>>
    %139 = tpu.memref_squeeze %138 : memref<1x!tpu.dma_semaphore, #tpu.memory_space<semaphore_mem>> -> memref<!tpu.dma_semaphore, #tpu.memory_space<semaphore_mem>>
    tpu.enqueue_dma source(%136 : memref<1x32xf32, #tpu.memory_space<any>>) target(%137 : memref<1x32xf32, #tpu.memory_space<vmem>>) target_semaphore(%139 : memref<!tpu.dma_semaphore, #tpu.memory_space<semaphore_mem>>)
    %c8_i32_104 = arith.constant 8 : i32
    %140 = arith.muli %arg0, %c8_i32_104 : i32
    %c1_i32_105 = arith.constant 1 : i32
    %141 = arith.addi %140, %c1_i32_105 : i32
    %c8_i32_106 = arith.constant 8 : i32
    %142 = arith.muli %141, %c8_i32_106 : i32
    %c2_i32_107 = arith.constant 2 : i32
    %143 = arith.addi %142, %c2_i32_107 : i32
    %144 = arith.index_cast %143 : i32 to index
    %145 = memref.load %arg1[%144] : memref<64xi32, #tpu.memory_space<smem>>
    %c0_i32_108 = arith.constant 0 : i32
    %c0_i32_109 = arith.constant 0 : i32
    %146 = tpu.memref_slice %arg2[%145, %c0_i32_109] : memref<50x32xf32, #tpu.memory_space<any>> -> memref<1x32xf32, #tpu.memory_space<any>>
    %c10_i32 = arith.constant 10 : i32
    %c0_i32_110 = arith.constant 0 : i32
    %147 = tpu.memref_slice %arg7[%c10_i32, %c0_i32_110] : memref<64x32xf32, #tpu.memory_space<vmem>> -> memref<1x32xf32, #tpu.memory_space<vmem>>
    %148 = tpu.memref_slice %arg9[%c0_i32_108] : memref<2x!tpu.dma_semaphore, #tpu.memory_space<semaphore_mem>> -> memref<1x!tpu.dma_semaphore, #tpu.memory_space<semaphore_mem>>
    %149 = tpu.memref_squeeze %148 : memref<1x!tpu.dma_semaphore, #tpu.memory_space<semaphore_mem>> -> memref<!tpu.dma_semaphore, #tpu.memory_space<semaphore_mem>>
    tpu.enqueue_dma source(%146 : memref<1x32xf32, #tpu.memory_space<any>>) target(%147 : memref<1x32xf32, #tpu.memory_space<vmem>>) target_semaphore(%149 : memref<!tpu.dma_semaphore, #tpu.memory_space<semaphore_mem>>)
    %c1_i32_111 = arith.constant 1 : i32
    %c0_i32_112 = arith.constant 0 : i32
    %150 = tpu.memref_slice %arg2[%145, %c0_i32_112] : memref<50x32xf32, #tpu.memory_space<any>> -> memref<1x32xf32, #tpu.memory_space<any>>
    %c17_i32 = arith.constant 17 : i32
    %c0_i32_113 = arith.constant 0 : i32
    %151 = tpu.memref_slice %arg8[%c17_i32, %c0_i32_113] : memref<64x32xf32, #tpu.memory_space<vmem>> -> memref<1x32xf32, #tpu.memory_space<vmem>>
    %152 = tpu.memref_slice %arg9[%c1_i32_111] : memref<2x!tpu.dma_semaphore, #tpu.memory_space<semaphore_mem>> -> memref<1x!tpu.dma_semaphore, #tpu.memory_space<semaphore_mem>>
    %153 = tpu.memref_squeeze %152 : memref<1x!tpu.dma_semaphore, #tpu.memory_space<semaphore_mem>> -> memref<!tpu.dma_semaphore, #tpu.memory_space<semaphore_mem>>
    tpu.enqueue_dma source(%150 : memref<1x32xf32, #tpu.memory_space<any>>) target(%151 : memref<1x32xf32, #tpu.memory_space<vmem>>) target_semaphore(%153 : memref<!tpu.dma_semaphore, #tpu.memory_space<semaphore_mem>>)
    %c8_i32_114 = arith.constant 8 : i32
    %154 = arith.muli %arg0, %c8_i32_114 : i32
    %c1_i32_115 = arith.constant 1 : i32
    %155 = arith.addi %154, %c1_i32_115 : i32
    %c8_i32_116 = arith.constant 8 : i32
    %156 = arith.muli %155, %c8_i32_116 : i32
    %c3_i32_117 = arith.constant 3 : i32
    %157 = arith.addi %156, %c3_i32_117 : i32
    %158 = arith.index_cast %157 : i32 to index
    %159 = memref.load %arg1[%158] : memref<64xi32, #tpu.memory_space<smem>>
    %c0_i32_118 = arith.constant 0 : i32
    %c0_i32_119 = arith.constant 0 : i32
    %160 = tpu.memref_slice %arg2[%159, %c0_i32_119] : memref<50x32xf32, #tpu.memory_space<any>> -> memref<1x32xf32, #tpu.memory_space<any>>
    %c11_i32 = arith.constant 11 : i32
    %c0_i32_120 = arith.constant 0 : i32
    %161 = tpu.memref_slice %arg7[%c11_i32, %c0_i32_120] : memref<64x32xf32, #tpu.memory_space<vmem>> -> memref<1x32xf32, #tpu.memory_space<vmem>>
    %162 = tpu.memref_slice %arg9[%c0_i32_118] : memref<2x!tpu.dma_semaphore, #tpu.memory_space<semaphore_mem>> -> memref<1x!tpu.dma_semaphore, #tpu.memory_space<semaphore_mem>>
    %163 = tpu.memref_squeeze %162 : memref<1x!tpu.dma_semaphore, #tpu.memory_space<semaphore_mem>> -> memref<!tpu.dma_semaphore, #tpu.memory_space<semaphore_mem>>
    tpu.enqueue_dma source(%160 : memref<1x32xf32, #tpu.memory_space<any>>) target(%161 : memref<1x32xf32, #tpu.memory_space<vmem>>) target_semaphore(%163 : memref<!tpu.dma_semaphore, #tpu.memory_space<semaphore_mem>>)
    %c1_i32_121 = arith.constant 1 : i32
    %c0_i32_122 = arith.constant 0 : i32
    %164 = tpu.memref_slice %arg2[%159, %c0_i32_122] : memref<50x32xf32, #tpu.memory_space<any>> -> memref<1x32xf32, #tpu.memory_space<any>>
    %c25_i32 = arith.constant 25 : i32
    %c0_i32_123 = arith.constant 0 : i32
    %165 = tpu.memref_slice %arg8[%c25_i32, %c0_i32_123] : memref<64x32xf32, #tpu.memory_space<vmem>> -> memref<1x32xf32, #tpu.memory_space<vmem>>
    %166 = tpu.memref_slice %arg9[%c1_i32_121] : memref<2x!tpu.dma_semaphore, #tpu.memory_space<semaphore_mem>> -> memref<1x!tpu.dma_semaphore, #tpu.memory_space<semaphore_mem>>
    %167 = tpu.memref_squeeze %166 : memref<1x!tpu.dma_semaphore, #tpu.memory_space<semaphore_mem>> -> memref<!tpu.dma_semaphore, #tpu.memory_space<semaphore_mem>>
    tpu.enqueue_dma source(%164 : memref<1x32xf32, #tpu.memory_space<any>>) target(%165 : memref<1x32xf32, #tpu.memory_space<vmem>>) target_semaphore(%167 : memref<!tpu.dma_semaphore, #tpu.memory_space<semaphore_mem>>)
    %c8_i32_124 = arith.constant 8 : i32
    %168 = arith.muli %arg0, %c8_i32_124 : i32
    %c1_i32_125 = arith.constant 1 : i32
    %169 = arith.addi %168, %c1_i32_125 : i32
    %c8_i32_126 = arith.constant 8 : i32
    %170 = arith.muli %169, %c8_i32_126 : i32
    %c4_i32_127 = arith.constant 4 : i32
    %171 = arith.addi %170, %c4_i32_127 : i32
    %172 = arith.index_cast %171 : i32 to index
    %173 = memref.load %arg1[%172] : memref<64xi32, #tpu.memory_space<smem>>
    %c0_i32_128 = arith.constant 0 : i32
    %c0_i32_129 = arith.constant 0 : i32
    %174 = tpu.memref_slice %arg2[%173, %c0_i32_129] : memref<50x32xf32, #tpu.memory_space<any>> -> memref<1x32xf32, #tpu.memory_space<any>>
    %c12_i32 = arith.constant 12 : i32
    %c0_i32_130 = arith.constant 0 : i32
    %175 = tpu.memref_slice %arg7[%c12_i32, %c0_i32_130] : memref<64x32xf32, #tpu.memory_space<vmem>> -> memref<1x32xf32, #tpu.memory_space<vmem>>
    %176 = tpu.memref_slice %arg9[%c0_i32_128] : memref<2x!tpu.dma_semaphore, #tpu.memory_space<semaphore_mem>> -> memref<1x!tpu.dma_semaphore, #tpu.memory_space<semaphore_mem>>
    %177 = tpu.memref_squeeze %176 : memref<1x!tpu.dma_semaphore, #tpu.memory_space<semaphore_mem>> -> memref<!tpu.dma_semaphore, #tpu.memory_space<semaphore_mem>>
    tpu.enqueue_dma source(%174 : memref<1x32xf32, #tpu.memory_space<any>>) target(%175 : memref<1x32xf32, #tpu.memory_space<vmem>>) target_semaphore(%177 : memref<!tpu.dma_semaphore, #tpu.memory_space<semaphore_mem>>)
    %c1_i32_131 = arith.constant 1 : i32
    %c0_i32_132 = arith.constant 0 : i32
    %178 = tpu.memref_slice %arg2[%173, %c0_i32_132] : memref<50x32xf32, #tpu.memory_space<any>> -> memref<1x32xf32, #tpu.memory_space<any>>
    %c33_i32 = arith.constant 33 : i32
    %c0_i32_133 = arith.constant 0 : i32
    %179 = tpu.memref_slice %arg8[%c33_i32, %c0_i32_133] : memref<64x32xf32, #tpu.memory_space<vmem>> -> memref<1x32xf32, #tpu.memory_space<vmem>>
    %180 = tpu.memref_slice %arg9[%c1_i32_131] : memref<2x!tpu.dma_semaphore, #tpu.memory_space<semaphore_mem>> -> memref<1x!tpu.dma_semaphore, #tpu.memory_space<semaphore_mem>>
    %181 = tpu.memref_squeeze %180 : memref<1x!tpu.dma_semaphore, #tpu.memory_space<semaphore_mem>> -> memref<!tpu.dma_semaphore, #tpu.memory_space<semaphore_mem>>
    tpu.enqueue_dma source(%178 : memref<1x32xf32, #tpu.memory_space<any>>) target(%179 : memref<1x32xf32, #tpu.memory_space<vmem>>) target_semaphore(%181 : memref<!tpu.dma_semaphore, #tpu.memory_space<semaphore_mem>>)
    %c8_i32_134 = arith.constant 8 : i32
    %182 = arith.muli %arg0, %c8_i32_134 : i32
    %c1_i32_135 = arith.constant 1 : i32
    %183 = arith.addi %182, %c1_i32_135 : i32
    %c8_i32_136 = arith.constant 8 : i32
    %184 = arith.muli %183, %c8_i32_136 : i32
    %c5_i32_137 = arith.constant 5 : i32
    %185 = arith.addi %184, %c5_i32_137 : i32
    %186 = arith.index_cast %185 : i32 to index
    %187 = memref.load %arg1[%186] : memref<64xi32, #tpu.memory_space<smem>>
    %c0_i32_138 = arith.constant 0 : i32
    %c0_i32_139 = arith.constant 0 : i32
    %188 = tpu.memref_slice %arg2[%187, %c0_i32_139] : memref<50x32xf32, #tpu.memory_space<any>> -> memref<1x32xf32, #tpu.memory_space<any>>
    %c13_i32 = arith.constant 13 : i32
    %c0_i32_140 = arith.constant 0 : i32
    %189 = tpu.memref_slice %arg7[%c13_i32, %c0_i32_140] : memref<64x32xf32, #tpu.memory_space<vmem>> -> memref<1x32xf32, #tpu.memory_space<vmem>>
    %190 = tpu.memref_slice %arg9[%c0_i32_138] : memref<2x!tpu.dma_semaphore, #tpu.memory_space<semaphore_mem>> -> memref<1x!tpu.dma_semaphore, #tpu.memory_space<semaphore_mem>>
    %191 = tpu.memref_squeeze %190 : memref<1x!tpu.dma_semaphore, #tpu.memory_space<semaphore_mem>> -> memref<!tpu.dma_semaphore, #tpu.memory_space<semaphore_mem>>
    tpu.enqueue_dma source(%188 : memref<1x32xf32, #tpu.memory_space<any>>) target(%189 : memref<1x32xf32, #tpu.memory_space<vmem>>) target_semaphore(%191 : memref<!tpu.dma_semaphore, #tpu.memory_space<semaphore_mem>>)
    %c1_i32_141 = arith.constant 1 : i32
    %c0_i32_142 = arith.constant 0 : i32
    %192 = tpu.memref_slice %arg2[%187, %c0_i32_142] : memref<50x32xf32, #tpu.memory_space<any>> -> memref<1x32xf32, #tpu.memory_space<any>>
    %c41_i32 = arith.constant 41 : i32
    %c0_i32_143 = arith.constant 0 : i32
    %193 = tpu.memref_slice %arg8[%c41_i32, %c0_i32_143] : memref<64x32xf32, #tpu.memory_space<vmem>> -> memref<1x32xf32, #tpu.memory_space<vmem>>
    %194 = tpu.memref_slice %arg9[%c1_i32_141] : memref<2x!tpu.dma_semaphore, #tpu.memory_space<semaphore_mem>> -> memref<1x!tpu.dma_semaphore, #tpu.memory_space<semaphore_mem>>
    %195 = tpu.memref_squeeze %194 : memref<1x!tpu.dma_semaphore, #tpu.memory_space<semaphore_mem>> -> memref<!tpu.dma_semaphore, #tpu.memory_space<semaphore_mem>>
    tpu.enqueue_dma source(%192 : memref<1x32xf32, #tpu.memory_space<any>>) target(%193 : memref<1x32xf32, #tpu.memory_space<vmem>>) target_semaphore(%195 : memref<!tpu.dma_semaphore, #tpu.memory_space<semaphore_mem>>)
    %c8_i32_144 = arith.constant 8 : i32
    %196 = arith.muli %arg0, %c8_i32_144 : i32
    %c1_i32_145 = arith.constant 1 : i32
    %197 = arith.addi %196, %c1_i32_145 : i32
    %c8_i32_146 = arith.constant 8 : i32
    %198 = arith.muli %197, %c8_i32_146 : i32
    %c6_i32_147 = arith.constant 6 : i32
    %199 = arith.addi %198, %c6_i32_147 : i32
    %200 = arith.index_cast %199 : i32 to index
    %201 = memref.load %arg1[%200] : memref<64xi32, #tpu.memory_space<smem>>
    %c0_i32_148 = arith.constant 0 : i32
    %c0_i32_149 = arith.constant 0 : i32
    %202 = tpu.memref_slice %arg2[%201, %c0_i32_149] : memref<50x32xf32, #tpu.memory_space<any>> -> memref<1x32xf32, #tpu.memory_space<any>>
    %c14_i32 = arith.constant 14 : i32
    %c0_i32_150 = arith.constant 0 : i32
    %203 = tpu.memref_slice %arg7[%c14_i32, %c0_i32_150] : memref<64x32xf32, #tpu.memory_space<vmem>> -> memref<1x32xf32, #tpu.memory_space<vmem>>
    %204 = tpu.memref_slice %arg9[%c0_i32_148] : memref<2x!tpu.dma_semaphore, #tpu.memory_space<semaphore_mem>> -> memref<1x!tpu.dma_semaphore, #tpu.memory_space<semaphore_mem>>
    %205 = tpu.memref_squeeze %204 : memref<1x!tpu.dma_semaphore, #tpu.memory_space<semaphore_mem>> -> memref<!tpu.dma_semaphore, #tpu.memory_space<semaphore_mem>>
    tpu.enqueue_dma source(%202 : memref<1x32xf32, #tpu.memory_space<any>>) target(%203 : memref<1x32xf32, #tpu.memory_space<vmem>>) target_semaphore(%205 : memref<!tpu.dma_semaphore, #tpu.memory_space<semaphore_mem>>)
    %c1_i32_151 = arith.constant 1 : i32
    %c0_i32_152 = arith.constant 0 : i32
    %206 = tpu.memref_slice %arg2[%201, %c0_i32_152] : memref<50x32xf32, #tpu.memory_space<any>> -> memref<1x32xf32, #tpu.memory_space<any>>
    %c49_i32 = arith.constant 49 : i32
    %c0_i32_153 = arith.constant 0 : i32
    %207 = tpu.memref_slice %arg8[%c49_i32, %c0_i32_153] : memref<64x32xf32, #tpu.memory_space<vmem>> -> memref<1x32xf32, #tpu.memory_space<vmem>>
    %208 = tpu.memref_slice %arg9[%c1_i32_151] : memref<2x!tpu.dma_semaphore, #tpu.memory_space<semaphore_mem>> -> memref<1x!tpu.dma_semaphore, #tpu.memory_space<semaphore_mem>>
    %209 = tpu.memref_squeeze %208 : memref<1x!tpu.dma_semaphore, #tpu.memory_space<semaphore_mem>> -> memref<!tpu.dma_semaphore, #tpu.memory_space<semaphore_mem>>
    tpu.enqueue_dma source(%206 : memref<1x32xf32, #tpu.memory_space<any>>) target(%207 : memref<1x32xf32, #tpu.memory_space<vmem>>) target_semaphore(%209 : memref<!tpu.dma_semaphore, #tpu.memory_space<semaphore_mem>>)
    %c8_i32_154 = arith.constant 8 : i32
    %210 = arith.muli %arg0, %c8_i32_154 : i32
    %c1_i32_155 = arith.constant 1 : i32
    %211 = arith.addi %210, %c1_i32_155 : i32
    %c8_i32_156 = arith.constant 8 : i32
    %212 = arith.muli %211, %c8_i32_156 : i32
    %c7_i32_157 = arith.constant 7 : i32
    %213 = arith.addi %212, %c7_i32_157 : i32
    %214 = arith.index_cast %213 : i32 to index
    %215 = memref.load %arg1[%214] : memref<64xi32, #tpu.memory_space<smem>>
    %c0_i32_158 = arith.constant 0 : i32
    %c0_i32_159 = arith.constant 0 : i32
    %216 = tpu.memref_slice %arg2[%215, %c0_i32_159] : memref<50x32xf32, #tpu.memory_space<any>> -> memref<1x32xf32, #tpu.memory_space<any>>
    %c15_i32 = arith.constant 15 : i32
    %c0_i32_160 = arith.constant 0 : i32
    %217 = tpu.memref_slice %arg7[%c15_i32, %c0_i32_160] : memref<64x32xf32, #tpu.memory_space<vmem>> -> memref<1x32xf32, #tpu.memory_space<vmem>>
    %218 = tpu.memref_slice %arg9[%c0_i32_158] : memref<2x!tpu.dma_semaphore, #tpu.memory_space<semaphore_mem>> -> memref<1x!tpu.dma_semaphore, #tpu.memory_space<semaphore_mem>>
    %219 = tpu.memref_squeeze %218 : memref<1x!tpu.dma_semaphore, #tpu.memory_space<semaphore_mem>> -> memref<!tpu.dma_semaphore, #tpu.memory_space<semaphore_mem>>
    tpu.enqueue_dma source(%216 : memref<1x32xf32, #tpu.memory_space<any>>) target(%217 : memref<1x32xf32, #tpu.memory_space<vmem>>) target_semaphore(%219 : memref<!tpu.dma_semaphore, #tpu.memory_space<semaphore_mem>>)
    %c1_i32_161 = arith.constant 1 : i32
    %c0_i32_162 = arith.constant 0 : i32
    %220 = tpu.memref_slice %arg2[%215, %c0_i32_162] : memref<50x32xf32, #tpu.memory_space<any>> -> memref<1x32xf32, #tpu.memory_space<any>>
    %c57_i32 = arith.constant 57 : i32
    %c0_i32_163 = arith.constant 0 : i32
    %221 = tpu.memref_slice %arg8[%c57_i32, %c0_i32_163] : memref<64x32xf32, #tpu.memory_space<vmem>> -> memref<1x32xf32, #tpu.memory_space<vmem>>
    %222 = tpu.memref_slice %arg9[%c1_i32_161] : memref<2x!tpu.dma_semaphore, #tpu.memory_space<semaphore_mem>> -> memref<1x!tpu.dma_semaphore, #tpu.memory_space<semaphore_mem>>
    %223 = tpu.memref_squeeze %222 : memref<1x!tpu.dma_semaphore, #tpu.memory_space<semaphore_mem>> -> memref<!tpu.dma_semaphore, #tpu.memory_space<semaphore_mem>>
    tpu.enqueue_dma source(%220 : memref<1x32xf32, #tpu.memory_space<any>>) target(%221 : memref<1x32xf32, #tpu.memory_space<vmem>>) target_semaphore(%223 : memref<!tpu.dma_semaphore, #tpu.memory_space<semaphore_mem>>)
    %c8_i32_164 = arith.constant 8 : i32
    %224 = arith.muli %arg0, %c8_i32_164 : i32
    %c2_i32_165 = arith.constant 2 : i32
    %225 = arith.addi %224, %c2_i32_165 : i32
    %c8_i32_166 = arith.constant 8 : i32
    %226 = arith.muli %225, %c8_i32_166 : i32
    %c0_i32_167 = arith.constant 0 : i32
    %227 = arith.addi %226, %c0_i32_167 : i32
    %228 = arith.index_cast %227 : i32 to index
    %229 = memref.load %arg1[%228] : memref<64xi32, #tpu.memory_space<smem>>
    %c0_i32_168 = arith.constant 0 : i32
    %c0_i32_169 = arith.constant 0 : i32
    %230 = tpu.memref_slice %arg2[%229, %c0_i32_169] : memref<50x32xf32, #tpu.memory_space<any>> -> memref<1x32xf32, #tpu.memory_space<any>>
    %c16_i32_170 = arith.constant 16 : i32
    %c0_i32_171 = arith.constant 0 : i32
    %231 = tpu.memref_slice %arg7[%c16_i32_170, %c0_i32_171] : memref<64x32xf32, #tpu.memory_space<vmem>> -> memref<1x32xf32, #tpu.memory_space<vmem>>
    %232 = tpu.memref_slice %arg9[%c0_i32_168] : memref<2x!tpu.dma_semaphore, #tpu.memory_space<semaphore_mem>> -> memref<1x!tpu.dma_semaphore, #tpu.memory_space<semaphore_mem>>
    %233 = tpu.memref_squeeze %232 : memref<1x!tpu.dma_semaphore, #tpu.memory_space<semaphore_mem>> -> memref<!tpu.dma_semaphore, #tpu.memory_space<semaphore_mem>>
    tpu.enqueue_dma source(%230 : memref<1x32xf32, #tpu.memory_space<any>>) target(%231 : memref<1x32xf32, #tpu.memory_space<vmem>>) target_semaphore(%233 : memref<!tpu.dma_semaphore, #tpu.memory_space<semaphore_mem>>)
    %c1_i32_172 = arith.constant 1 : i32
    %c0_i32_173 = arith.constant 0 : i32
    %234 = tpu.memref_slice %arg2[%229, %c0_i32_173] : memref<50x32xf32, #tpu.memory_space<any>> -> memref<1x32xf32, #tpu.memory_space<any>>
    %c2_i32_174 = arith.constant 2 : i32
    %c0_i32_175 = arith.constant 0 : i32
    %235 = tpu.memref_slice %arg8[%c2_i32_174, %c0_i32_175] : memref<64x32xf32, #tpu.memory_space<vmem>> -> memref<1x32xf32, #tpu.memory_space<vmem>>
    %236 = tpu.memref_slice %arg9[%c1_i32_172] : memref<2x!tpu.dma_semaphore, #tpu.memory_space<semaphore_mem>> -> memref<1x!tpu.dma_semaphore, #tpu.memory_space<semaphore_mem>>
    %237 = tpu.memref_squeeze %236 : memref<1x!tpu.dma_semaphore, #tpu.memory_space<semaphore_mem>> -> memref<!tpu.dma_semaphore, #tpu.memory_space<semaphore_mem>>
    tpu.enqueue_dma source(%234 : memref<1x32xf32, #tpu.memory_space<any>>) target(%235 : memref<1x32xf32, #tpu.memory_space<vmem>>) target_semaphore(%237 : memref<!tpu.dma_semaphore, #tpu.memory_space<semaphore_mem>>)
    %c8_i32_176 = arith.constant 8 : i32
    %238 = arith.muli %arg0, %c8_i32_176 : i32
    %c2_i32_177 = arith.constant 2 : i32
    %239 = arith.addi %238, %c2_i32_177 : i32
    %c8_i32_178 = arith.constant 8 : i32
    %240 = arith.muli %239, %c8_i32_178 : i32
    %c1_i32_179 = arith.constant 1 : i32
    %241 = arith.addi %240, %c1_i32_179 : i32
    %242 = arith.index_cast %241 : i32 to index
    %243 = memref.load %arg1[%242] : memref<64xi32, #tpu.memory_space<smem>>
    %c0_i32_180 = arith.constant 0 : i32
    %c0_i32_181 = arith.constant 0 : i32
    %244 = tpu.memref_slice %arg2[%243, %c0_i32_181] : memref<50x32xf32, #tpu.memory_space<any>> -> memref<1x32xf32, #tpu.memory_space<any>>
    %c17_i32_182 = arith.constant 17 : i32
    %c0_i32_183 = arith.constant 0 : i32
    %245 = tpu.memref_slice %arg7[%c17_i32_182, %c0_i32_183] : memref<64x32xf32, #tpu.memory_space<vmem>> -> memref<1x32xf32, #tpu.memory_space<vmem>>
    %246 = tpu.memref_slice %arg9[%c0_i32_180] : memref<2x!tpu.dma_semaphore, #tpu.memory_space<semaphore_mem>> -> memref<1x!tpu.dma_semaphore, #tpu.memory_space<semaphore_mem>>
    %247 = tpu.memref_squeeze %246 : memref<1x!tpu.dma_semaphore, #tpu.memory_space<semaphore_mem>> -> memref<!tpu.dma_semaphore, #tpu.memory_space<semaphore_mem>>
    tpu.enqueue_dma source(%244 : memref<1x32xf32, #tpu.memory_space<any>>) target(%245 : memref<1x32xf32, #tpu.memory_space<vmem>>) target_semaphore(%247 : memref<!tpu.dma_semaphore, #tpu.memory_space<semaphore_mem>>)
    %c1_i32_184 = arith.constant 1 : i32
    %c0_i32_185 = arith.constant 0 : i32
    %248 = tpu.memref_slice %arg2[%243, %c0_i32_185] : memref<50x32xf32, #tpu.memory_space<any>> -> memref<1x32xf32, #tpu.memory_space<any>>
    %c10_i32_186 = arith.constant 10 : i32
    %c0_i32_187 = arith.constant 0 : i32
    %249 = tpu.memref_slice %arg8[%c10_i32_186, %c0_i32_187] : memref<64x32xf32, #tpu.memory_space<vmem>> -> memref<1x32xf32, #tpu.memory_space<vmem>>
    %250 = tpu.memref_slice %arg9[%c1_i32_184] : memref<2x!tpu.dma_semaphore, #tpu.memory_space<semaphore_mem>> -> memref<1x!tpu.dma_semaphore, #tpu.memory_space<semaphore_mem>>
    %251 = tpu.memref_squeeze %250 : memref<1x!tpu.dma_semaphore, #tpu.memory_space<semaphore_mem>> -> memref<!tpu.dma_semaphore, #tpu.memory_space<semaphore_mem>>
    tpu.enqueue_dma source(%248 : memref<1x32xf32, #tpu.memory_space<any>>) target(%249 : memref<1x32xf32, #tpu.memory_space<vmem>>) target_semaphore(%251 : memref<!tpu.dma_semaphore, #tpu.memory_space<semaphore_mem>>)
    %c8_i32_188 = arith.constant 8 : i32
    %252 = arith.muli %arg0, %c8_i32_188 : i32
    %c2_i32_189 = arith.constant 2 : i32
    %253 = arith.addi %252, %c2_i32_189 : i32
    %c8_i32_190 = arith.constant 8 : i32
    %254 = arith.muli %253, %c8_i32_190 : i32
    %c2_i32_191 = arith.constant 2 : i32
    %255 = arith.addi %254, %c2_i32_191 : i32
    %256 = arith.index_cast %255 : i32 to index
    %257 = memref.load %arg1[%256] : memref<64xi32, #tpu.memory_space<smem>>
    %c0_i32_192 = arith.constant 0 : i32
    %c0_i32_193 = arith.constant 0 : i32
    %258 = tpu.memref_slice %arg2[%257, %c0_i32_193] : memref<50x32xf32, #tpu.memory_space<any>> -> memref<1x32xf32, #tpu.memory_space<any>>
    %c18_i32 = arith.constant 18 : i32
    %c0_i32_194 = arith.constant 0 : i32
    %259 = tpu.memref_slice %arg7[%c18_i32, %c0_i32_194] : memref<64x32xf32, #tpu.memory_space<vmem>> -> memref<1x32xf32, #tpu.memory_space<vmem>>
    %260 = tpu.memref_slice %arg9[%c0_i32_192] : memref<2x!tpu.dma_semaphore, #tpu.memory_space<semaphore_mem>> -> memref<1x!tpu.dma_semaphore, #tpu.memory_space<semaphore_mem>>
    %261 = tpu.memref_squeeze %260 : memref<1x!tpu.dma_semaphore, #tpu.memory_space<semaphore_mem>> -> memref<!tpu.dma_semaphore, #tpu.memory_space<semaphore_mem>>
    tpu.enqueue_dma source(%258 : memref<1x32xf32, #tpu.memory_space<any>>) target(%259 : memref<1x32xf32, #tpu.memory_space<vmem>>) target_semaphore(%261 : memref<!tpu.dma_semaphore, #tpu.memory_space<semaphore_mem>>)
    %c1_i32_195 = arith.constant 1 : i32
    %c0_i32_196 = arith.constant 0 : i32
    %262 = tpu.memref_slice %arg2[%257, %c0_i32_196] : memref<50x32xf32, #tpu.memory_space<any>> -> memref<1x32xf32, #tpu.memory_space<any>>
    %c18_i32_197 = arith.constant 18 : i32
    %c0_i32_198 = arith.constant 0 : i32
    %263 = tpu.memref_slice %arg8[%c18_i32_197, %c0_i32_198] : memref<64x32xf32, #tpu.memory_space<vmem>> -> memref<1x32xf32, #tpu.memory_space<vmem>>
    %264 = tpu.memref_slice %arg9[%c1_i32_195] : memref<2x!tpu.dma_semaphore, #tpu.memory_space<semaphore_mem>> -> memref<1x!tpu.dma_semaphore, #tpu.memory_space<semaphore_mem>>
    %265 = tpu.memref_squeeze %264 : memref<1x!tpu.dma_semaphore, #tpu.memory_space<semaphore_mem>> -> memref<!tpu.dma_semaphore, #tpu.memory_space<semaphore_mem>>
    tpu.enqueue_dma source(%262 : memref<1x32xf32, #tpu.memory_space<any>>) target(%263 : memref<1x32xf32, #tpu.memory_space<vmem>>) target_semaphore(%265 : memref<!tpu.dma_semaphore, #tpu.memory_space<semaphore_mem>>)
    %c8_i32_199 = arith.constant 8 : i32
    %266 = arith.muli %arg0, %c8_i32_199 : i32
    %c2_i32_200 = arith.constant 2 : i32
    %267 = arith.addi %266, %c2_i32_200 : i32
    %c8_i32_201 = arith.constant 8 : i32
    %268 = arith.muli %267, %c8_i32_201 : i32
    %c3_i32_202 = arith.constant 3 : i32
    %269 = arith.addi %268, %c3_i32_202 : i32
    %270 = arith.index_cast %269 : i32 to index
    %271 = memref.load %arg1[%270] : memref<64xi32, #tpu.memory_space<smem>>
    %c0_i32_203 = arith.constant 0 : i32
    %c0_i32_204 = arith.constant 0 : i32
    %272 = tpu.memref_slice %arg2[%271, %c0_i32_204] : memref<50x32xf32, #tpu.memory_space<any>> -> memref<1x32xf32, #tpu.memory_space<any>>
    %c19_i32 = arith.constant 19 : i32
    %c0_i32_205 = arith.constant 0 : i32
    %273 = tpu.memref_slice %arg7[%c19_i32, %c0_i32_205] : memref<64x32xf32, #tpu.memory_space<vmem>> -> memref<1x32xf32, #tpu.memory_space<vmem>>
    %274 = tpu.memref_slice %arg9[%c0_i32_203] : memref<2x!tpu.dma_semaphore, #tpu.memory_space<semaphore_mem>> -> memref<1x!tpu.dma_semaphore, #tpu.memory_space<semaphore_mem>>
    %275 = tpu.memref_squeeze %274 : memref<1x!tpu.dma_semaphore, #tpu.memory_space<semaphore_mem>> -> memref<!tpu.dma_semaphore, #tpu.memory_space<semaphore_mem>>
    tpu.enqueue_dma source(%272 : memref<1x32xf32, #tpu.memory_space<any>>) target(%273 : memref<1x32xf32, #tpu.memory_space<vmem>>) target_semaphore(%275 : memref<!tpu.dma_semaphore, #tpu.memory_space<semaphore_mem>>)
    %c1_i32_206 = arith.constant 1 : i32
    %c0_i32_207 = arith.constant 0 : i32
    %276 = tpu.memref_slice %arg2[%271, %c0_i32_207] : memref<50x32xf32, #tpu.memory_space<any>> -> memref<1x32xf32, #tpu.memory_space<any>>
    %c26_i32 = arith.constant 26 : i32
    %c0_i32_208 = arith.constant 0 : i32
    %277 = tpu.memref_slice %arg8[%c26_i32, %c0_i32_208] : memref<64x32xf32, #tpu.memory_space<vmem>> -> memref<1x32xf32, #tpu.memory_space<vmem>>
    %278 = tpu.memref_slice %arg9[%c1_i32_206] : memref<2x!tpu.dma_semaphore, #tpu.memory_space<semaphore_mem>> -> memref<1x!tpu.dma_semaphore, #tpu.memory_space<semaphore_mem>>
    %279 = tpu.memref_squeeze %278 : memref<1x!tpu.dma_semaphore, #tpu.memory_space<semaphore_mem>> -> memref<!tpu.dma_semaphore, #tpu.memory_space<semaphore_mem>>
    tpu.enqueue_dma source(%276 : memref<1x32xf32, #tpu.memory_space<any>>) target(%277 : memref<1x32xf32, #tpu.memory_space<vmem>>) target_semaphore(%279 : memref<!tpu.dma_semaphore, #tpu.memory_space<semaphore_mem>>)
    %c8_i32_209 = arith.constant 8 : i32
    %280 = arith.muli %arg0, %c8_i32_209 : i32
    %c2_i32_210 = arith.constant 2 : i32
    %281 = arith.addi %280, %c2_i32_210 : i32
    %c8_i32_211 = arith.constant 8 : i32
    %282 = arith.muli %281, %c8_i32_211 : i32
    %c4_i32_212 = arith.constant 4 : i32
    %283 = arith.addi %282, %c4_i32_212 : i32
    %284 = arith.index_cast %283 : i32 to index
    %285 = memref.load %arg1[%284] : memref<64xi32, #tpu.memory_space<smem>>
    %c0_i32_213 = arith.constant 0 : i32
    %c0_i32_214 = arith.constant 0 : i32
    %286 = tpu.memref_slice %arg2[%285, %c0_i32_214] : memref<50x32xf32, #tpu.memory_space<any>> -> memref<1x32xf32, #tpu.memory_space<any>>
    %c20_i32 = arith.constant 20 : i32
    %c0_i32_215 = arith.constant 0 : i32
    %287 = tpu.memref_slice %arg7[%c20_i32, %c0_i32_215] : memref<64x32xf32, #tpu.memory_space<vmem>> -> memref<1x32xf32, #tpu.memory_space<vmem>>
    %288 = tpu.memref_slice %arg9[%c0_i32_213] : memref<2x!tpu.dma_semaphore, #tpu.memory_space<semaphore_mem>> -> memref<1x!tpu.dma_semaphore, #tpu.memory_space<semaphore_mem>>
    %289 = tpu.memref_squeeze %288 : memref<1x!tpu.dma_semaphore, #tpu.memory_space<semaphore_mem>> -> memref<!tpu.dma_semaphore, #tpu.memory_space<semaphore_mem>>
    tpu.enqueue_dma source(%286 : memref<1x32xf32, #tpu.memory_space<any>>) target(%287 : memref<1x32xf32, #tpu.memory_space<vmem>>) target_semaphore(%289 : memref<!tpu.dma_semaphore, #tpu.memory_space<semaphore_mem>>)
    %c1_i32_216 = arith.constant 1 : i32
    %c0_i32_217 = arith.constant 0 : i32
    %290 = tpu.memref_slice %arg2[%285, %c0_i32_217] : memref<50x32xf32, #tpu.memory_space<any>> -> memref<1x32xf32, #tpu.memory_space<any>>
    %c34_i32 = arith.constant 34 : i32
    %c0_i32_218 = arith.constant 0 : i32
    %291 = tpu.memref_slice %arg8[%c34_i32, %c0_i32_218] : memref<64x32xf32, #tpu.memory_space<vmem>> -> memref<1x32xf32, #tpu.memory_space<vmem>>
    %292 = tpu.memref_slice %arg9[%c1_i32_216] : memref<2x!tpu.dma_semaphore, #tpu.memory_space<semaphore_mem>> -> memref<1x!tpu.dma_semaphore, #tpu.memory_space<semaphore_mem>>
    %293 = tpu.memref_squeeze %292 : memref<1x!tpu.dma_semaphore, #tpu.memory_space<semaphore_mem>> -> memref<!tpu.dma_semaphore, #tpu.memory_space<semaphore_mem>>
    tpu.enqueue_dma source(%290 : memref<1x32xf32, #tpu.memory_space<any>>) target(%291 : memref<1x32xf32, #tpu.memory_space<vmem>>) target_semaphore(%293 : memref<!tpu.dma_semaphore, #tpu.memory_space<semaphore_mem>>)
    %c8_i32_219 = arith.constant 8 : i32
    %294 = arith.muli %arg0, %c8_i32_219 : i32
    %c2_i32_220 = arith.constant 2 : i32
    %295 = arith.addi %294, %c2_i32_220 : i32
    %c8_i32_221 = arith.constant 8 : i32
    %296 = arith.muli %295, %c8_i32_221 : i32
    %c5_i32_222 = arith.constant 5 : i32
    %297 = arith.addi %296, %c5_i32_222 : i32
    %298 = arith.index_cast %297 : i32 to index
    %299 = memref.load %arg1[%298] : memref<64xi32, #tpu.memory_space<smem>>
    %c0_i32_223 = arith.constant 0 : i32
    %c0_i32_224 = arith.constant 0 : i32
    %300 = tpu.memref_slice %arg2[%299, %c0_i32_224] : memref<50x32xf32, #tpu.memory_space<any>> -> memref<1x32xf32, #tpu.memory_space<any>>
    %c21_i32 = arith.constant 21 : i32
    %c0_i32_225 = arith.constant 0 : i32
    %301 = tpu.memref_slice %arg7[%c21_i32, %c0_i32_225] : memref<64x32xf32, #tpu.memory_space<vmem>> -> memref<1x32xf32, #tpu.memory_space<vmem>>
    %302 = tpu.memref_slice %arg9[%c0_i32_223] : memref<2x!tpu.dma_semaphore, #tpu.memory_space<semaphore_mem>> -> memref<1x!tpu.dma_semaphore, #tpu.memory_space<semaphore_mem>>
    %303 = tpu.memref_squeeze %302 : memref<1x!tpu.dma_semaphore, #tpu.memory_space<semaphore_mem>> -> memref<!tpu.dma_semaphore, #tpu.memory_space<semaphore_mem>>
    tpu.enqueue_dma source(%300 : memref<1x32xf32, #tpu.memory_space<any>>) target(%301 : memref<1x32xf32, #tpu.memory_space<vmem>>) target_semaphore(%303 : memref<!tpu.dma_semaphore, #tpu.memory_space<semaphore_mem>>)
    %c1_i32_226 = arith.constant 1 : i32
    %c0_i32_227 = arith.constant 0 : i32
    %304 = tpu.memref_slice %arg2[%299, %c0_i32_227] : memref<50x32xf32, #tpu.memory_space<any>> -> memref<1x32xf32, #tpu.memory_space<any>>
    %c42_i32 = arith.constant 42 : i32
    %c0_i32_228 = arith.constant 0 : i32
    %305 = tpu.memref_slice %arg8[%c42_i32, %c0_i32_228] : memref<64x32xf32, #tpu.memory_space<vmem>> -> memref<1x32xf32, #tpu.memory_space<vmem>>
    %306 = tpu.memref_slice %arg9[%c1_i32_226] : memref<2x!tpu.dma_semaphore, #tpu.memory_space<semaphore_mem>> -> memref<1x!tpu.dma_semaphore, #tpu.memory_space<semaphore_mem>>
    %307 = tpu.memref_squeeze %306 : memref<1x!tpu.dma_semaphore, #tpu.memory_space<semaphore_mem>> -> memref<!tpu.dma_semaphore, #tpu.memory_space<semaphore_mem>>
    tpu.enqueue_dma source(%304 : memref<1x32xf32, #tpu.memory_space<any>>) target(%305 : memref<1x32xf32, #tpu.memory_space<vmem>>) target_semaphore(%307 : memref<!tpu.dma_semaphore, #tpu.memory_space<semaphore_mem>>)
    %c8_i32_229 = arith.constant 8 : i32
    %308 = arith.muli %arg0, %c8_i32_229 : i32
    %c2_i32_230 = arith.constant 2 : i32
    %309 = arith.addi %308, %c2_i32_230 : i32
    %c8_i32_231 = arith.constant 8 : i32
    %310 = arith.muli %309, %c8_i32_231 : i32
    %c6_i32_232 = arith.constant 6 : i32
    %311 = arith.addi %310, %c6_i32_232 : i32
    %312 = arith.index_cast %311 : i32 to index
    %313 = memref.load %arg1[%312] : memref<64xi32, #tpu.memory_space<smem>>
    %c0_i32_233 = arith.constant 0 : i32
    %c0_i32_234 = arith.constant 0 : i32
    %314 = tpu.memref_slice %arg2[%313, %c0_i32_234] : memref<50x32xf32, #tpu.memory_space<any>> -> memref<1x32xf32, #tpu.memory_space<any>>
    %c22_i32 = arith.constant 22 : i32
    %c0_i32_235 = arith.constant 0 : i32
    %315 = tpu.memref_slice %arg7[%c22_i32, %c0_i32_235] : memref<64x32xf32, #tpu.memory_space<vmem>> -> memref<1x32xf32, #tpu.memory_space<vmem>>
    %316 = tpu.memref_slice %arg9[%c0_i32_233] : memref<2x!tpu.dma_semaphore, #tpu.memory_space<semaphore_mem>> -> memref<1x!tpu.dma_semaphore, #tpu.memory_space<semaphore_mem>>
    %317 = tpu.memref_squeeze %316 : memref<1x!tpu.dma_semaphore, #tpu.memory_space<semaphore_mem>> -> memref<!tpu.dma_semaphore, #tpu.memory_space<semaphore_mem>>
    tpu.enqueue_dma source(%314 : memref<1x32xf32, #tpu.memory_space<any>>) target(%315 : memref<1x32xf32, #tpu.memory_space<vmem>>) target_semaphore(%317 : memref<!tpu.dma_semaphore, #tpu.memory_space<semaphore_mem>>)
    %c1_i32_236 = arith.constant 1 : i32
    %c0_i32_237 = arith.constant 0 : i32
    %318 = tpu.memref_slice %arg2[%313, %c0_i32_237] : memref<50x32xf32, #tpu.memory_space<any>> -> memref<1x32xf32, #tpu.memory_space<any>>
    %c50_i32 = arith.constant 50 : i32
    %c0_i32_238 = arith.constant 0 : i32
    %319 = tpu.memref_slice %arg8[%c50_i32, %c0_i32_238] : memref<64x32xf32, #tpu.memory_space<vmem>> -> memref<1x32xf32, #tpu.memory_space<vmem>>
    %320 = tpu.memref_slice %arg9[%c1_i32_236] : memref<2x!tpu.dma_semaphore, #tpu.memory_space<semaphore_mem>> -> memref<1x!tpu.dma_semaphore, #tpu.memory_space<semaphore_mem>>
    %321 = tpu.memref_squeeze %320 : memref<1x!tpu.dma_semaphore, #tpu.memory_space<semaphore_mem>> -> memref<!tpu.dma_semaphore, #tpu.memory_space<semaphore_mem>>
    tpu.enqueue_dma source(%318 : memref<1x32xf32, #tpu.memory_space<any>>) target(%319 : memref<1x32xf32, #tpu.memory_space<vmem>>) target_semaphore(%321 : memref<!tpu.dma_semaphore, #tpu.memory_space<semaphore_mem>>)
    %c8_i32_239 = arith.constant 8 : i32
    %322 = arith.muli %arg0, %c8_i32_239 : i32
    %c2_i32_240 = arith.constant 2 : i32
    %323 = arith.addi %322, %c2_i32_240 : i32
    %c8_i32_241 = arith.constant 8 : i32
    %324 = arith.muli %323, %c8_i32_241 : i32
    %c7_i32_242 = arith.constant 7 : i32
    %325 = arith.addi %324, %c7_i32_242 : i32
    %326 = arith.index_cast %325 : i32 to index
    %327 = memref.load %arg1[%326] : memref<64xi32, #tpu.memory_space<smem>>
    %c0_i32_243 = arith.constant 0 : i32
    %c0_i32_244 = arith.constant 0 : i32
    %328 = tpu.memref_slice %arg2[%327, %c0_i32_244] : memref<50x32xf32, #tpu.memory_space<any>> -> memref<1x32xf32, #tpu.memory_space<any>>
    %c23_i32 = arith.constant 23 : i32
    %c0_i32_245 = arith.constant 0 : i32
    %329 = tpu.memref_slice %arg7[%c23_i32, %c0_i32_245] : memref<64x32xf32, #tpu.memory_space<vmem>> -> memref<1x32xf32, #tpu.memory_space<vmem>>
    %330 = tpu.memref_slice %arg9[%c0_i32_243] : memref<2x!tpu.dma_semaphore, #tpu.memory_space<semaphore_mem>> -> memref<1x!tpu.dma_semaphore, #tpu.memory_space<semaphore_mem>>
    %331 = tpu.memref_squeeze %330 : memref<1x!tpu.dma_semaphore, #tpu.memory_space<semaphore_mem>> -> memref<!tpu.dma_semaphore, #tpu.memory_space<semaphore_mem>>
    tpu.enqueue_dma source(%328 : memref<1x32xf32, #tpu.memory_space<any>>) target(%329 : memref<1x32xf32, #tpu.memory_space<vmem>>) target_semaphore(%331 : memref<!tpu.dma_semaphore, #tpu.memory_space<semaphore_mem>>)
    %c1_i32_246 = arith.constant 1 : i32
    %c0_i32_247 = arith.constant 0 : i32
    %332 = tpu.memref_slice %arg2[%327, %c0_i32_247] : memref<50x32xf32, #tpu.memory_space<any>> -> memref<1x32xf32, #tpu.memory_space<any>>
    %c58_i32 = arith.constant 58 : i32
    %c0_i32_248 = arith.constant 0 : i32
    %333 = tpu.memref_slice %arg8[%c58_i32, %c0_i32_248] : memref<64x32xf32, #tpu.memory_space<vmem>> -> memref<1x32xf32, #tpu.memory_space<vmem>>
    %334 = tpu.memref_slice %arg9[%c1_i32_246] : memref<2x!tpu.dma_semaphore, #tpu.memory_space<semaphore_mem>> -> memref<1x!tpu.dma_semaphore, #tpu.memory_space<semaphore_mem>>
    %335 = tpu.memref_squeeze %334 : memref<1x!tpu.dma_semaphore, #tpu.memory_space<semaphore_mem>> -> memref<!tpu.dma_semaphore, #tpu.memory_space<semaphore_mem>>
    tpu.enqueue_dma source(%332 : memref<1x32xf32, #tpu.memory_space<any>>) target(%333 : memref<1x32xf32, #tpu.memory_space<vmem>>) target_semaphore(%335 : memref<!tpu.dma_semaphore, #tpu.memory_space<semaphore_mem>>)
    %c8_i32_249 = arith.constant 8 : i32
    %336 = arith.muli %arg0, %c8_i32_249 : i32
    %c3_i32_250 = arith.constant 3 : i32
    %337 = arith.addi %336, %c3_i32_250 : i32
    %c8_i32_251 = arith.constant 8 : i32
    %338 = arith.muli %337, %c8_i32_251 : i32
    %c0_i32_252 = arith.constant 0 : i32
    %339 = arith.addi %338, %c0_i32_252 : i32
    %340 = arith.index_cast %339 : i32 to index
    %341 = memref.load %arg1[%340] : memref<64xi32, #tpu.memory_space<smem>>
    %c0_i32_253 = arith.constant 0 : i32
    %c0_i32_254 = arith.constant 0 : i32
    %342 = tpu.memref_slice %arg2[%341, %c0_i32_254] : memref<50x32xf32, #tpu.memory_space<any>> -> memref<1x32xf32, #tpu.memory_space<any>>
    %c24_i32_255 = arith.constant 24 : i32
    %c0_i32_256 = arith.constant 0 : i32
    %343 = tpu.memref_slice %arg7[%c24_i32_255, %c0_i32_256] : memref<64x32xf32, #tpu.memory_space<vmem>> -> memref<1x32xf32, #tpu.memory_space<vmem>>
    %344 = tpu.memref_slice %arg9[%c0_i32_253] : memref<2x!tpu.dma_semaphore, #tpu.memory_space<semaphore_mem>> -> memref<1x!tpu.dma_semaphore, #tpu.memory_space<semaphore_mem>>
    %345 = tpu.memref_squeeze %344 : memref<1x!tpu.dma_semaphore, #tpu.memory_space<semaphore_mem>> -> memref<!tpu.dma_semaphore, #tpu.memory_space<semaphore_mem>>
    tpu.enqueue_dma source(%342 : memref<1x32xf32, #tpu.memory_space<any>>) target(%343 : memref<1x32xf32, #tpu.memory_space<vmem>>) target_semaphore(%345 : memref<!tpu.dma_semaphore, #tpu.memory_space<semaphore_mem>>)
    %c1_i32_257 = arith.constant 1 : i32
    %c0_i32_258 = arith.constant 0 : i32
    %346 = tpu.memref_slice %arg2[%341, %c0_i32_258] : memref<50x32xf32, #tpu.memory_space<any>> -> memref<1x32xf32, #tpu.memory_space<any>>
    %c3_i32_259 = arith.constant 3 : i32
    %c0_i32_260 = arith.constant 0 : i32
    %347 = tpu.memref_slice %arg8[%c3_i32_259, %c0_i32_260] : memref<64x32xf32, #tpu.memory_space<vmem>> -> memref<1x32xf32, #tpu.memory_space<vmem>>
    %348 = tpu.memref_slice %arg9[%c1_i32_257] : memref<2x!tpu.dma_semaphore, #tpu.memory_space<semaphore_mem>> -> memref<1x!tpu.dma_semaphore, #tpu.memory_space<semaphore_mem>>
    %349 = tpu.memref_squeeze %348 : memref<1x!tpu.dma_semaphore, #tpu.memory_space<semaphore_mem>> -> memref<!tpu.dma_semaphore, #tpu.memory_space<semaphore_mem>>
    tpu.enqueue_dma source(%346 : memref<1x32xf32, #tpu.memory_space<any>>) target(%347 : memref<1x32xf32, #tpu.memory_space<vmem>>) target_semaphore(%349 : memref<!tpu.dma_semaphore, #tpu.memory_space<semaphore_mem>>)
    %c8_i32_261 = arith.constant 8 : i32
    %350 = arith.muli %arg0, %c8_i32_261 : i32
    %c3_i32_262 = arith.constant 3 : i32
    %351 = arith.addi %350, %c3_i32_262 : i32
    %c8_i32_263 = arith.constant 8 : i32
    %352 = arith.muli %351, %c8_i32_263 : i32
    %c1_i32_264 = arith.constant 1 : i32
    %353 = arith.addi %352, %c1_i32_264 : i32
    %354 = arith.index_cast %353 : i32 to index
    %355 = memref.load %arg1[%354] : memref<64xi32, #tpu.memory_space<smem>>
    %c0_i32_265 = arith.constant 0 : i32
    %c0_i32_266 = arith.constant 0 : i32
    %356 = tpu.memref_slice %arg2[%355, %c0_i32_266] : memref<50x32xf32, #tpu.memory_space<any>> -> memref<1x32xf32, #tpu.memory_space<any>>
    %c25_i32_267 = arith.constant 25 : i32
    %c0_i32_268 = arith.constant 0 : i32
    %357 = tpu.memref_slice %arg7[%c25_i32_267, %c0_i32_268] : memref<64x32xf32, #tpu.memory_space<vmem>> -> memref<1x32xf32, #tpu.memory_space<vmem>>
    %358 = tpu.memref_slice %arg9[%c0_i32_265] : memref<2x!tpu.dma_semaphore, #tpu.memory_space<semaphore_mem>> -> memref<1x!tpu.dma_semaphore, #tpu.memory_space<semaphore_mem>>
    %359 = tpu.memref_squeeze %358 : memref<1x!tpu.dma_semaphore, #tpu.memory_space<semaphore_mem>> -> memref<!tpu.dma_semaphore, #tpu.memory_space<semaphore_mem>>
    tpu.enqueue_dma source(%356 : memref<1x32xf32, #tpu.memory_space<any>>) target(%357 : memref<1x32xf32, #tpu.memory_space<vmem>>) target_semaphore(%359 : memref<!tpu.dma_semaphore, #tpu.memory_space<semaphore_mem>>)
    %c1_i32_269 = arith.constant 1 : i32
    %c0_i32_270 = arith.constant 0 : i32
    %360 = tpu.memref_slice %arg2[%355, %c0_i32_270] : memref<50x32xf32, #tpu.memory_space<any>> -> memref<1x32xf32, #tpu.memory_space<any>>
    %c11_i32_271 = arith.constant 11 : i32
    %c0_i32_272 = arith.constant 0 : i32
    %361 = tpu.memref_slice %arg8[%c11_i32_271, %c0_i32_272] : memref<64x32xf32, #tpu.memory_space<vmem>> -> memref<1x32xf32, #tpu.memory_space<vmem>>
    %362 = tpu.memref_slice %arg9[%c1_i32_269] : memref<2x!tpu.dma_semaphore, #tpu.memory_space<semaphore_mem>> -> memref<1x!tpu.dma_semaphore, #tpu.memory_space<semaphore_mem>>
    %363 = tpu.memref_squeeze %362 : memref<1x!tpu.dma_semaphore, #tpu.memory_space<semaphore_mem>> -> memref<!tpu.dma_semaphore, #tpu.memory_space<semaphore_mem>>
    tpu.enqueue_dma source(%360 : memref<1x32xf32, #tpu.memory_space<any>>) target(%361 : memref<1x32xf32, #tpu.memory_space<vmem>>) target_semaphore(%363 : memref<!tpu.dma_semaphore, #tpu.memory_space<semaphore_mem>>)
    %c8_i32_273 = arith.constant 8 : i32
    %364 = arith.muli %arg0, %c8_i32_273 : i32
    %c3_i32_274 = arith.constant 3 : i32
    %365 = arith.addi %364, %c3_i32_274 : i32
    %c8_i32_275 = arith.constant 8 : i32
    %366 = arith.muli %365, %c8_i32_275 : i32
    %c2_i32_276 = arith.constant 2 : i32
    %367 = arith.addi %366, %c2_i32_276 : i32
    %368 = arith.index_cast %367 : i32 to index
    %369 = memref.load %arg1[%368] : memref<64xi32, #tpu.memory_space<smem>>
    %c0_i32_277 = arith.constant 0 : i32
    %c0_i32_278 = arith.constant 0 : i32
    %370 = tpu.memref_slice %arg2[%369, %c0_i32_278] : memref<50x32xf32, #tpu.memory_space<any>> -> memref<1x32xf32, #tpu.memory_space<any>>
    %c26_i32_279 = arith.constant 26 : i32
    %c0_i32_280 = arith.constant 0 : i32
    %371 = tpu.memref_slice %arg7[%c26_i32_279, %c0_i32_280] : memref<64x32xf32, #tpu.memory_space<vmem>> -> memref<1x32xf32, #tpu.memory_space<vmem>>
    %372 = tpu.memref_slice %arg9[%c0_i32_277] : memref<2x!tpu.dma_semaphore, #tpu.memory_space<semaphore_mem>> -> memref<1x!tpu.dma_semaphore, #tpu.memory_space<semaphore_mem>>
    %373 = tpu.memref_squeeze %372 : memref<1x!tpu.dma_semaphore, #tpu.memory_space<semaphore_mem>> -> memref<!tpu.dma_semaphore, #tpu.memory_space<semaphore_mem>>
    tpu.enqueue_dma source(%370 : memref<1x32xf32, #tpu.memory_space<any>>) target(%371 : memref<1x32xf32, #tpu.memory_space<vmem>>) target_semaphore(%373 : memref<!tpu.dma_semaphore, #tpu.memory_space<semaphore_mem>>)
    %c1_i32_281 = arith.constant 1 : i32
    %c0_i32_282 = arith.constant 0 : i32
    %374 = tpu.memref_slice %arg2[%369, %c0_i32_282] : memref<50x32xf32, #tpu.memory_space<any>> -> memref<1x32xf32, #tpu.memory_space<any>>
    %c19_i32_283 = arith.constant 19 : i32
    %c0_i32_284 = arith.constant 0 : i32
    %375 = tpu.memref_slice %arg8[%c19_i32_283, %c0_i32_284] : memref<64x32xf32, #tpu.memory_space<vmem>> -> memref<1x32xf32, #tpu.memory_space<vmem>>
    %376 = tpu.memref_slice %arg9[%c1_i32_281] : memref<2x!tpu.dma_semaphore, #tpu.memory_space<semaphore_mem>> -> memref<1x!tpu.dma_semaphore, #tpu.memory_space<semaphore_mem>>
    %377 = tpu.memref_squeeze %376 : memref<1x!tpu.dma_semaphore, #tpu.memory_space<semaphore_mem>> -> memref<!tpu.dma_semaphore, #tpu.memory_space<semaphore_mem>>
    tpu.enqueue_dma source(%374 : memref<1x32xf32, #tpu.memory_space<any>>) target(%375 : memref<1x32xf32, #tpu.memory_space<vmem>>) target_semaphore(%377 : memref<!tpu.dma_semaphore, #tpu.memory_space<semaphore_mem>>)
    %c8_i32_285 = arith.constant 8 : i32
    %378 = arith.muli %arg0, %c8_i32_285 : i32
    %c3_i32_286 = arith.constant 3 : i32
    %379 = arith.addi %378, %c3_i32_286 : i32
    %c8_i32_287 = arith.constant 8 : i32
    %380 = arith.muli %379, %c8_i32_287 : i32
    %c3_i32_288 = arith.constant 3 : i32
    %381 = arith.addi %380, %c3_i32_288 : i32
    %382 = arith.index_cast %381 : i32 to index
    %383 = memref.load %arg1[%382] : memref<64xi32, #tpu.memory_space<smem>>
    %c0_i32_289 = arith.constant 0 : i32
    %c0_i32_290 = arith.constant 0 : i32
    %384 = tpu.memref_slice %arg2[%383, %c0_i32_290] : memref<50x32xf32, #tpu.memory_space<any>> -> memref<1x32xf32, #tpu.memory_space<any>>
    %c27_i32 = arith.constant 27 : i32
    %c0_i32_291 = arith.constant 0 : i32
    %385 = tpu.memref_slice %arg7[%c27_i32, %c0_i32_291] : memref<64x32xf32, #tpu.memory_space<vmem>> -> memref<1x32xf32, #tpu.memory_space<vmem>>
    %386 = tpu.memref_slice %arg9[%c0_i32_289] : memref<2x!tpu.dma_semaphore, #tpu.memory_space<semaphore_mem>> -> memref<1x!tpu.dma_semaphore, #tpu.memory_space<semaphore_mem>>
    %387 = tpu.memref_squeeze %386 : memref<1x!tpu.dma_semaphore, #tpu.memory_space<semaphore_mem>> -> memref<!tpu.dma_semaphore, #tpu.memory_space<semaphore_mem>>
    tpu.enqueue_dma source(%384 : memref<1x32xf32, #tpu.memory_space<any>>) target(%385 : memref<1x32xf32, #tpu.memory_space<vmem>>) target_semaphore(%387 : memref<!tpu.dma_semaphore, #tpu.memory_space<semaphore_mem>>)
    %c1_i32_292 = arith.constant 1 : i32
    %c0_i32_293 = arith.constant 0 : i32
    %388 = tpu.memref_slice %arg2[%383, %c0_i32_293] : memref<50x32xf32, #tpu.memory_space<any>> -> memref<1x32xf32, #tpu.memory_space<any>>
    %c27_i32_294 = arith.constant 27 : i32
    %c0_i32_295 = arith.constant 0 : i32
    %389 = tpu.memref_slice %arg8[%c27_i32_294, %c0_i32_295] : memref<64x32xf32, #tpu.memory_space<vmem>> -> memref<1x32xf32, #tpu.memory_space<vmem>>
    %390 = tpu.memref_slice %arg9[%c1_i32_292] : memref<2x!tpu.dma_semaphore, #tpu.memory_space<semaphore_mem>> -> memref<1x!tpu.dma_semaphore, #tpu.memory_space<semaphore_mem>>
    %391 = tpu.memref_squeeze %390 : memref<1x!tpu.dma_semaphore, #tpu.memory_space<semaphore_mem>> -> memref<!tpu.dma_semaphore, #tpu.memory_space<semaphore_mem>>
    tpu.enqueue_dma source(%388 : memref<1x32xf32, #tpu.memory_space<any>>) target(%389 : memref<1x32xf32, #tpu.memory_space<vmem>>) target_semaphore(%391 : memref<!tpu.dma_semaphore, #tpu.memory_space<semaphore_mem>>)
    %c8_i32_296 = arith.constant 8 : i32
    %392 = arith.muli %arg0, %c8_i32_296 : i32
    %c3_i32_297 = arith.constant 3 : i32
    %393 = arith.addi %392, %c3_i32_297 : i32
    %c8_i32_298 = arith.constant 8 : i32
    %394 = arith.muli %393, %c8_i32_298 : i32
    %c4_i32_299 = arith.constant 4 : i32
    %395 = arith.addi %394, %c4_i32_299 : i32
    %396 = arith.index_cast %395 : i32 to index
    %397 = memref.load %arg1[%396] : memref<64xi32, #tpu.memory_space<smem>>
    %c0_i32_300 = arith.constant 0 : i32
    %c0_i32_301 = arith.constant 0 : i32
    %398 = tpu.memref_slice %arg2[%397, %c0_i32_301] : memref<50x32xf32, #tpu.memory_space<any>> -> memref<1x32xf32, #tpu.memory_space<any>>
    %c28_i32 = arith.constant 28 : i32
    %c0_i32_302 = arith.constant 0 : i32
    %399 = tpu.memref_slice %arg7[%c28_i32, %c0_i32_302] : memref<64x32xf32, #tpu.memory_space<vmem>> -> memref<1x32xf32, #tpu.memory_space<vmem>>
    %400 = tpu.memref_slice %arg9[%c0_i32_300] : memref<2x!tpu.dma_semaphore, #tpu.memory_space<semaphore_mem>> -> memref<1x!tpu.dma_semaphore, #tpu.memory_space<semaphore_mem>>
    %401 = tpu.memref_squeeze %400 : memref<1x!tpu.dma_semaphore, #tpu.memory_space<semaphore_mem>> -> memref<!tpu.dma_semaphore, #tpu.memory_space<semaphore_mem>>
    tpu.enqueue_dma source(%398 : memref<1x32xf32, #tpu.memory_space<any>>) target(%399 : memref<1x32xf32, #tpu.memory_space<vmem>>) target_semaphore(%401 : memref<!tpu.dma_semaphore, #tpu.memory_space<semaphore_mem>>)
    %c1_i32_303 = arith.constant 1 : i32
    %c0_i32_304 = arith.constant 0 : i32
    %402 = tpu.memref_slice %arg2[%397, %c0_i32_304] : memref<50x32xf32, #tpu.memory_space<any>> -> memref<1x32xf32, #tpu.memory_space<any>>
    %c35_i32 = arith.constant 35 : i32
    %c0_i32_305 = arith.constant 0 : i32
    %403 = tpu.memref_slice %arg8[%c35_i32, %c0_i32_305] : memref<64x32xf32, #tpu.memory_space<vmem>> -> memref<1x32xf32, #tpu.memory_space<vmem>>
    %404 = tpu.memref_slice %arg9[%c1_i32_303] : memref<2x!tpu.dma_semaphore, #tpu.memory_space<semaphore_mem>> -> memref<1x!tpu.dma_semaphore, #tpu.memory_space<semaphore_mem>>
    %405 = tpu.memref_squeeze %404 : memref<1x!tpu.dma_semaphore, #tpu.memory_space<semaphore_mem>> -> memref<!tpu.dma_semaphore, #tpu.memory_space<semaphore_mem>>
    tpu.enqueue_dma source(%402 : memref<1x32xf32, #tpu.memory_space<any>>) target(%403 : memref<1x32xf32, #tpu.memory_space<vmem>>) target_semaphore(%405 : memref<!tpu.dma_semaphore, #tpu.memory_space<semaphore_mem>>)
    %c8_i32_306 = arith.constant 8 : i32
    %406 = arith.muli %arg0, %c8_i32_306 : i32
    %c3_i32_307 = arith.constant 3 : i32
    %407 = arith.addi %406, %c3_i32_307 : i32
    %c8_i32_308 = arith.constant 8 : i32
    %408 = arith.muli %407, %c8_i32_308 : i32
    %c5_i32_309 = arith.constant 5 : i32
    %409 = arith.addi %408, %c5_i32_309 : i32
    %410 = arith.index_cast %409 : i32 to index
    %411 = memref.load %arg1[%410] : memref<64xi32, #tpu.memory_space<smem>>
    %c0_i32_310 = arith.constant 0 : i32
    %c0_i32_311 = arith.constant 0 : i32
    %412 = tpu.memref_slice %arg2[%411, %c0_i32_311] : memref<50x32xf32, #tpu.memory_space<any>> -> memref<1x32xf32, #tpu.memory_space<any>>
    %c29_i32 = arith.constant 29 : i32
    %c0_i32_312 = arith.constant 0 : i32
    %413 = tpu.memref_slice %arg7[%c29_i32, %c0_i32_312] : memref<64x32xf32, #tpu.memory_space<vmem>> -> memref<1x32xf32, #tpu.memory_space<vmem>>
    %414 = tpu.memref_slice %arg9[%c0_i32_310] : memref<2x!tpu.dma_semaphore, #tpu.memory_space<semaphore_mem>> -> memref<1x!tpu.dma_semaphore, #tpu.memory_space<semaphore_mem>>
    %415 = tpu.memref_squeeze %414 : memref<1x!tpu.dma_semaphore, #tpu.memory_space<semaphore_mem>> -> memref<!tpu.dma_semaphore, #tpu.memory_space<semaphore_mem>>
    tpu.enqueue_dma source(%412 : memref<1x32xf32, #tpu.memory_space<any>>) target(%413 : memref<1x32xf32, #tpu.memory_space<vmem>>) target_semaphore(%415 : memref<!tpu.dma_semaphore, #tpu.memory_space<semaphore_mem>>)
    %c1_i32_313 = arith.constant 1 : i32
    %c0_i32_314 = arith.constant 0 : i32
    %416 = tpu.memref_slice %arg2[%411, %c0_i32_314] : memref<50x32xf32, #tpu.memory_space<any>> -> memref<1x32xf32, #tpu.memory_space<any>>
    %c43_i32 = arith.constant 43 : i32
    %c0_i32_315 = arith.constant 0 : i32
    %417 = tpu.memref_slice %arg8[%c43_i32, %c0_i32_315] : memref<64x32xf32, #tpu.memory_space<vmem>> -> memref<1x32xf32, #tpu.memory_space<vmem>>
    %418 = tpu.memref_slice %arg9[%c1_i32_313] : memref<2x!tpu.dma_semaphore, #tpu.memory_space<semaphore_mem>> -> memref<1x!tpu.dma_semaphore, #tpu.memory_space<semaphore_mem>>
    %419 = tpu.memref_squeeze %418 : memref<1x!tpu.dma_semaphore, #tpu.memory_space<semaphore_mem>> -> memref<!tpu.dma_semaphore, #tpu.memory_space<semaphore_mem>>
    tpu.enqueue_dma source(%416 : memref<1x32xf32, #tpu.memory_space<any>>) target(%417 : memref<1x32xf32, #tpu.memory_space<vmem>>) target_semaphore(%419 : memref<!tpu.dma_semaphore, #tpu.memory_space<semaphore_mem>>)
    %c8_i32_316 = arith.constant 8 : i32
    %420 = arith.muli %arg0, %c8_i32_316 : i32
    %c3_i32_317 = arith.constant 3 : i32
    %421 = arith.addi %420, %c3_i32_317 : i32
    %c8_i32_318 = arith.constant 8 : i32
    %422 = arith.muli %421, %c8_i32_318 : i32
    %c6_i32_319 = arith.constant 6 : i32
    %423 = arith.addi %422, %c6_i32_319 : i32
    %424 = arith.index_cast %423 : i32 to index
    %425 = memref.load %arg1[%424] : memref<64xi32, #tpu.memory_space<smem>>
    %c0_i32_320 = arith.constant 0 : i32
    %c0_i32_321 = arith.constant 0 : i32
    %426 = tpu.memref_slice %arg2[%425, %c0_i32_321] : memref<50x32xf32, #tpu.memory_space<any>> -> memref<1x32xf32, #tpu.memory_space<any>>
    %c30_i32 = arith.constant 30 : i32
    %c0_i32_322 = arith.constant 0 : i32
    %427 = tpu.memref_slice %arg7[%c30_i32, %c0_i32_322] : memref<64x32xf32, #tpu.memory_space<vmem>> -> memref<1x32xf32, #tpu.memory_space<vmem>>
    %428 = tpu.memref_slice %arg9[%c0_i32_320] : memref<2x!tpu.dma_semaphore, #tpu.memory_space<semaphore_mem>> -> memref<1x!tpu.dma_semaphore, #tpu.memory_space<semaphore_mem>>
    %429 = tpu.memref_squeeze %428 : memref<1x!tpu.dma_semaphore, #tpu.memory_space<semaphore_mem>> -> memref<!tpu.dma_semaphore, #tpu.memory_space<semaphore_mem>>
    tpu.enqueue_dma source(%426 : memref<1x32xf32, #tpu.memory_space<any>>) target(%427 : memref<1x32xf32, #tpu.memory_space<vmem>>) target_semaphore(%429 : memref<!tpu.dma_semaphore, #tpu.memory_space<semaphore_mem>>)
    %c1_i32_323 = arith.constant 1 : i32
    %c0_i32_324 = arith.constant 0 : i32
    %430 = tpu.memref_slice %arg2[%425, %c0_i32_324] : memref<50x32xf32, #tpu.memory_space<any>> -> memref<1x32xf32, #tpu.memory_space<any>>
    %c51_i32 = arith.constant 51 : i32
    %c0_i32_325 = arith.constant 0 : i32
    %431 = tpu.memref_slice %arg8[%c51_i32, %c0_i32_325] : memref<64x32xf32, #tpu.memory_space<vmem>> -> memref<1x32xf32, #tpu.memory_space<vmem>>
    %432 = tpu.memref_slice %arg9[%c1_i32_323] : memref<2x!tpu.dma_semaphore, #tpu.memory_space<semaphore_mem>> -> memref<1x!tpu.dma_semaphore, #tpu.memory_space<semaphore_mem>>
    %433 = tpu.memref_squeeze %432 : memref<1x!tpu.dma_semaphore, #tpu.memory_space<semaphore_mem>> -> memref<!tpu.dma_semaphore, #tpu.memory_space<semaphore_mem>>
    tpu.enqueue_dma source(%430 : memref<1x32xf32, #tpu.memory_space<any>>) target(%431 : memref<1x32xf32, #tpu.memory_space<vmem>>) target_semaphore(%433 : memref<!tpu.dma_semaphore, #tpu.memory_space<semaphore_mem>>)
    %c8_i32_326 = arith.constant 8 : i32
    %434 = arith.muli %arg0, %c8_i32_326 : i32
    %c3_i32_327 = arith.constant 3 : i32
    %435 = arith.addi %434, %c3_i32_327 : i32
    %c8_i32_328 = arith.constant 8 : i32
    %436 = arith.muli %435, %c8_i32_328 : i32
    %c7_i32_329 = arith.constant 7 : i32
    %437 = arith.addi %436, %c7_i32_329 : i32
    %438 = arith.index_cast %437 : i32 to index
    %439 = memref.load %arg1[%438] : memref<64xi32, #tpu.memory_space<smem>>
    %c0_i32_330 = arith.constant 0 : i32
    %c0_i32_331 = arith.constant 0 : i32
    %440 = tpu.memref_slice %arg2[%439, %c0_i32_331] : memref<50x32xf32, #tpu.memory_space<any>> -> memref<1x32xf32, #tpu.memory_space<any>>
    %c31_i32 = arith.constant 31 : i32
    %c0_i32_332 = arith.constant 0 : i32
    %441 = tpu.memref_slice %arg7[%c31_i32, %c0_i32_332] : memref<64x32xf32, #tpu.memory_space<vmem>> -> memref<1x32xf32, #tpu.memory_space<vmem>>
    %442 = tpu.memref_slice %arg9[%c0_i32_330] : memref<2x!tpu.dma_semaphore, #tpu.memory_space<semaphore_mem>> -> memref<1x!tpu.dma_semaphore, #tpu.memory_space<semaphore_mem>>
    %443 = tpu.memref_squeeze %442 : memref<1x!tpu.dma_semaphore, #tpu.memory_space<semaphore_mem>> -> memref<!tpu.dma_semaphore, #tpu.memory_space<semaphore_mem>>
    tpu.enqueue_dma source(%440 : memref<1x32xf32, #tpu.memory_space<any>>) target(%441 : memref<1x32xf32, #tpu.memory_space<vmem>>) target_semaphore(%443 : memref<!tpu.dma_semaphore, #tpu.memory_space<semaphore_mem>>)
    %c1_i32_333 = arith.constant 1 : i32
    %c0_i32_334 = arith.constant 0 : i32
    %444 = tpu.memref_slice %arg2[%439, %c0_i32_334] : memref<50x32xf32, #tpu.memory_space<any>> -> memref<1x32xf32, #tpu.memory_space<any>>
    %c59_i32 = arith.constant 59 : i32
    %c0_i32_335 = arith.constant 0 : i32
    %445 = tpu.memref_slice %arg8[%c59_i32, %c0_i32_335] : memref<64x32xf32, #tpu.memory_space<vmem>> -> memref<1x32xf32, #tpu.memory_space<vmem>>
    %446 = tpu.memref_slice %arg9[%c1_i32_333] : memref<2x!tpu.dma_semaphore, #tpu.memory_space<semaphore_mem>> -> memref<1x!tpu.dma_semaphore, #tpu.memory_space<semaphore_mem>>
    %447 = tpu.memref_squeeze %446 : memref<1x!tpu.dma_semaphore, #tpu.memory_space<semaphore_mem>> -> memref<!tpu.dma_semaphore, #tpu.memory_space<semaphore_mem>>
    tpu.enqueue_dma source(%444 : memref<1x32xf32, #tpu.memory_space<any>>) target(%445 : memref<1x32xf32, #tpu.memory_space<vmem>>) target_semaphore(%447 : memref<!tpu.dma_semaphore, #tpu.memory_space<semaphore_mem>>)
    %c8_i32_336 = arith.constant 8 : i32
    %448 = arith.muli %arg0, %c8_i32_336 : i32
    %c4_i32_337 = arith.constant 4 : i32
    %449 = arith.addi %448, %c4_i32_337 : i32
    %c8_i32_338 = arith.constant 8 : i32
    %450 = arith.muli %449, %c8_i32_338 : i32
    %c0_i32_339 = arith.constant 0 : i32
    %451 = arith.addi %450, %c0_i32_339 : i32
    %452 = arith.index_cast %451 : i32 to index
    %453 = memref.load %arg1[%452] : memref<64xi32, #tpu.memory_space<smem>>
    %c0_i32_340 = arith.constant 0 : i32
    %c0_i32_341 = arith.constant 0 : i32
    %454 = tpu.memref_slice %arg2[%453, %c0_i32_341] : memref<50x32xf32, #tpu.memory_space<any>> -> memref<1x32xf32, #tpu.memory_space<any>>
    %c32_i32_342 = arith.constant 32 : i32
    %c0_i32_343 = arith.constant 0 : i32
    %455 = tpu.memref_slice %arg7[%c32_i32_342, %c0_i32_343] : memref<64x32xf32, #tpu.memory_space<vmem>> -> memref<1x32xf32, #tpu.memory_space<vmem>>
    %456 = tpu.memref_slice %arg9[%c0_i32_340] : memref<2x!tpu.dma_semaphore, #tpu.memory_space<semaphore_mem>> -> memref<1x!tpu.dma_semaphore, #tpu.memory_space<semaphore_mem>>
    %457 = tpu.memref_squeeze %456 : memref<1x!tpu.dma_semaphore, #tpu.memory_space<semaphore_mem>> -> memref<!tpu.dma_semaphore, #tpu.memory_space<semaphore_mem>>
    tpu.enqueue_dma source(%454 : memref<1x32xf32, #tpu.memory_space<any>>) target(%455 : memref<1x32xf32, #tpu.memory_space<vmem>>) target_semaphore(%457 : memref<!tpu.dma_semaphore, #tpu.memory_space<semaphore_mem>>)
    %c1_i32_344 = arith.constant 1 : i32
    %c0_i32_345 = arith.constant 0 : i32
    %458 = tpu.memref_slice %arg2[%453, %c0_i32_345] : memref<50x32xf32, #tpu.memory_space<any>> -> memref<1x32xf32, #tpu.memory_space<any>>
    %c4_i32_346 = arith.constant 4 : i32
    %c0_i32_347 = arith.constant 0 : i32
    %459 = tpu.memref_slice %arg8[%c4_i32_346, %c0_i32_347] : memref<64x32xf32, #tpu.memory_space<vmem>> -> memref<1x32xf32, #tpu.memory_space<vmem>>
    %460 = tpu.memref_slice %arg9[%c1_i32_344] : memref<2x!tpu.dma_semaphore, #tpu.memory_space<semaphore_mem>> -> memref<1x!tpu.dma_semaphore, #tpu.memory_space<semaphore_mem>>
    %461 = tpu.memref_squeeze %460 : memref<1x!tpu.dma_semaphore, #tpu.memory_space<semaphore_mem>> -> memref<!tpu.dma_semaphore, #tpu.memory_space<semaphore_mem>>
    tpu.enqueue_dma source(%458 : memref<1x32xf32, #tpu.memory_space<any>>) target(%459 : memref<1x32xf32, #tpu.memory_space<vmem>>) target_semaphore(%461 : memref<!tpu.dma_semaphore, #tpu.memory_space<semaphore_mem>>)
    %c8_i32_348 = arith.constant 8 : i32
    %462 = arith.muli %arg0, %c8_i32_348 : i32
    %c4_i32_349 = arith.constant 4 : i32
    %463 = arith.addi %462, %c4_i32_349 : i32
    %c8_i32_350 = arith.constant 8 : i32
    %464 = arith.muli %463, %c8_i32_350 : i32
    %c1_i32_351 = arith.constant 1 : i32
    %465 = arith.addi %464, %c1_i32_351 : i32
    %466 = arith.index_cast %465 : i32 to index
    %467 = memref.load %arg1[%466] : memref<64xi32, #tpu.memory_space<smem>>
    %c0_i32_352 = arith.constant 0 : i32
    %c0_i32_353 = arith.constant 0 : i32
    %468 = tpu.memref_slice %arg2[%467, %c0_i32_353] : memref<50x32xf32, #tpu.memory_space<any>> -> memref<1x32xf32, #tpu.memory_space<any>>
    %c33_i32_354 = arith.constant 33 : i32
    %c0_i32_355 = arith.constant 0 : i32
    %469 = tpu.memref_slice %arg7[%c33_i32_354, %c0_i32_355] : memref<64x32xf32, #tpu.memory_space<vmem>> -> memref<1x32xf32, #tpu.memory_space<vmem>>
    %470 = tpu.memref_slice %arg9[%c0_i32_352] : memref<2x!tpu.dma_semaphore, #tpu.memory_space<semaphore_mem>> -> memref<1x!tpu.dma_semaphore, #tpu.memory_space<semaphore_mem>>
    %471 = tpu.memref_squeeze %470 : memref<1x!tpu.dma_semaphore, #tpu.memory_space<semaphore_mem>> -> memref<!tpu.dma_semaphore, #tpu.memory_space<semaphore_mem>>
    tpu.enqueue_dma source(%468 : memref<1x32xf32, #tpu.memory_space<any>>) target(%469 : memref<1x32xf32, #tpu.memory_space<vmem>>) target_semaphore(%471 : memref<!tpu.dma_semaphore, #tpu.memory_space<semaphore_mem>>)
    %c1_i32_356 = arith.constant 1 : i32
    %c0_i32_357 = arith.constant 0 : i32
    %472 = tpu.memref_slice %arg2[%467, %c0_i32_357] : memref<50x32xf32, #tpu.memory_space<any>> -> memref<1x32xf32, #tpu.memory_space<any>>
    %c12_i32_358 = arith.constant 12 : i32
    %c0_i32_359 = arith.constant 0 : i32
    %473 = tpu.memref_slice %arg8[%c12_i32_358, %c0_i32_359] : memref<64x32xf32, #tpu.memory_space<vmem>> -> memref<1x32xf32, #tpu.memory_space<vmem>>
    %474 = tpu.memref_slice %arg9[%c1_i32_356] : memref<2x!tpu.dma_semaphore, #tpu.memory_space<semaphore_mem>> -> memref<1x!tpu.dma_semaphore, #tpu.memory_space<semaphore_mem>>
    %475 = tpu.memref_squeeze %474 : memref<1x!tpu.dma_semaphore, #tpu.memory_space<semaphore_mem>> -> memref<!tpu.dma_semaphore, #tpu.memory_space<semaphore_mem>>
    tpu.enqueue_dma source(%472 : memref<1x32xf32, #tpu.memory_space<any>>) target(%473 : memref<1x32xf32, #tpu.memory_space<vmem>>) target_semaphore(%475 : memref<!tpu.dma_semaphore, #tpu.memory_space<semaphore_mem>>)
    %c8_i32_360 = arith.constant 8 : i32
    %476 = arith.muli %arg0, %c8_i32_360 : i32
    %c4_i32_361 = arith.constant 4 : i32
    %477 = arith.addi %476, %c4_i32_361 : i32
    %c8_i32_362 = arith.constant 8 : i32
    %478 = arith.muli %477, %c8_i32_362 : i32
    %c2_i32_363 = arith.constant 2 : i32
    %479 = arith.addi %478, %c2_i32_363 : i32
    %480 = arith.index_cast %479 : i32 to index
    %481 = memref.load %arg1[%480] : memref<64xi32, #tpu.memory_space<smem>>
    %c0_i32_364 = arith.constant 0 : i32
    %c0_i32_365 = arith.constant 0 : i32
    %482 = tpu.memref_slice %arg2[%481, %c0_i32_365] : memref<50x32xf32, #tpu.memory_space<any>> -> memref<1x32xf32, #tpu.memory_space<any>>
    %c34_i32_366 = arith.constant 34 : i32
    %c0_i32_367 = arith.constant 0 : i32
    %483 = tpu.memref_slice %arg7[%c34_i32_366, %c0_i32_367] : memref<64x32xf32, #tpu.memory_space<vmem>> -> memref<1x32xf32, #tpu.memory_space<vmem>>
    %484 = tpu.memref_slice %arg9[%c0_i32_364] : memref<2x!tpu.dma_semaphore, #tpu.memory_space<semaphore_mem>> -> memref<1x!tpu.dma_semaphore, #tpu.memory_space<semaphore_mem>>
    %485 = tpu.memref_squeeze %484 : memref<1x!tpu.dma_semaphore, #tpu.memory_space<semaphore_mem>> -> memref<!tpu.dma_semaphore, #tpu.memory_space<semaphore_mem>>
    tpu.enqueue_dma source(%482 : memref<1x32xf32, #tpu.memory_space<any>>) target(%483 : memref<1x32xf32, #tpu.memory_space<vmem>>) target_semaphore(%485 : memref<!tpu.dma_semaphore, #tpu.memory_space<semaphore_mem>>)
    %c1_i32_368 = arith.constant 1 : i32
    %c0_i32_369 = arith.constant 0 : i32
    %486 = tpu.memref_slice %arg2[%481, %c0_i32_369] : memref<50x32xf32, #tpu.memory_space<any>> -> memref<1x32xf32, #tpu.memory_space<any>>
    %c20_i32_370 = arith.constant 20 : i32
    %c0_i32_371 = arith.constant 0 : i32
    %487 = tpu.memref_slice %arg8[%c20_i32_370, %c0_i32_371] : memref<64x32xf32, #tpu.memory_space<vmem>> -> memref<1x32xf32, #tpu.memory_space<vmem>>
    %488 = tpu.memref_slice %arg9[%c1_i32_368] : memref<2x!tpu.dma_semaphore, #tpu.memory_space<semaphore_mem>> -> memref<1x!tpu.dma_semaphore, #tpu.memory_space<semaphore_mem>>
    %489 = tpu.memref_squeeze %488 : memref<1x!tpu.dma_semaphore, #tpu.memory_space<semaphore_mem>> -> memref<!tpu.dma_semaphore, #tpu.memory_space<semaphore_mem>>
    tpu.enqueue_dma source(%486 : memref<1x32xf32, #tpu.memory_space<any>>) target(%487 : memref<1x32xf32, #tpu.memory_space<vmem>>) target_semaphore(%489 : memref<!tpu.dma_semaphore, #tpu.memory_space<semaphore_mem>>)
    %c8_i32_372 = arith.constant 8 : i32
    %490 = arith.muli %arg0, %c8_i32_372 : i32
    %c4_i32_373 = arith.constant 4 : i32
    %491 = arith.addi %490, %c4_i32_373 : i32
    %c8_i32_374 = arith.constant 8 : i32
    %492 = arith.muli %491, %c8_i32_374 : i32
    %c3_i32_375 = arith.constant 3 : i32
    %493 = arith.addi %492, %c3_i32_375 : i32
    %494 = arith.index_cast %493 : i32 to index
    %495 = memref.load %arg1[%494] : memref<64xi32, #tpu.memory_space<smem>>
    %c0_i32_376 = arith.constant 0 : i32
    %c0_i32_377 = arith.constant 0 : i32
    %496 = tpu.memref_slice %arg2[%495, %c0_i32_377] : memref<50x32xf32, #tpu.memory_space<any>> -> memref<1x32xf32, #tpu.memory_space<any>>
    %c35_i32_378 = arith.constant 35 : i32
    %c0_i32_379 = arith.constant 0 : i32
    %497 = tpu.memref_slice %arg7[%c35_i32_378, %c0_i32_379] : memref<64x32xf32, #tpu.memory_space<vmem>> -> memref<1x32xf32, #tpu.memory_space<vmem>>
    %498 = tpu.memref_slice %arg9[%c0_i32_376] : memref<2x!tpu.dma_semaphore, #tpu.memory_space<semaphore_mem>> -> memref<1x!tpu.dma_semaphore, #tpu.memory_space<semaphore_mem>>
    %499 = tpu.memref_squeeze %498 : memref<1x!tpu.dma_semaphore, #tpu.memory_space<semaphore_mem>> -> memref<!tpu.dma_semaphore, #tpu.memory_space<semaphore_mem>>
    tpu.enqueue_dma source(%496 : memref<1x32xf32, #tpu.memory_space<any>>) target(%497 : memref<1x32xf32, #tpu.memory_space<vmem>>) target_semaphore(%499 : memref<!tpu.dma_semaphore, #tpu.memory_space<semaphore_mem>>)
    %c1_i32_380 = arith.constant 1 : i32
    %c0_i32_381 = arith.constant 0 : i32
    %500 = tpu.memref_slice %arg2[%495, %c0_i32_381] : memref<50x32xf32, #tpu.memory_space<any>> -> memref<1x32xf32, #tpu.memory_space<any>>
    %c28_i32_382 = arith.constant 28 : i32
    %c0_i32_383 = arith.constant 0 : i32
    %501 = tpu.memref_slice %arg8[%c28_i32_382, %c0_i32_383] : memref<64x32xf32, #tpu.memory_space<vmem>> -> memref<1x32xf32, #tpu.memory_space<vmem>>
    %502 = tpu.memref_slice %arg9[%c1_i32_380] : memref<2x!tpu.dma_semaphore, #tpu.memory_space<semaphore_mem>> -> memref<1x!tpu.dma_semaphore, #tpu.memory_space<semaphore_mem>>
    %503 = tpu.memref_squeeze %502 : memref<1x!tpu.dma_semaphore, #tpu.memory_space<semaphore_mem>> -> memref<!tpu.dma_semaphore, #tpu.memory_space<semaphore_mem>>
    tpu.enqueue_dma source(%500 : memref<1x32xf32, #tpu.memory_space<any>>) target(%501 : memref<1x32xf32, #tpu.memory_space<vmem>>) target_semaphore(%503 : memref<!tpu.dma_semaphore, #tpu.memory_space<semaphore_mem>>)
    %c8_i32_384 = arith.constant 8 : i32
    %504 = arith.muli %arg0, %c8_i32_384 : i32
    %c4_i32_385 = arith.constant 4 : i32
    %505 = arith.addi %504, %c4_i32_385 : i32
    %c8_i32_386 = arith.constant 8 : i32
    %506 = arith.muli %505, %c8_i32_386 : i32
    %c4_i32_387 = arith.constant 4 : i32
    %507 = arith.addi %506, %c4_i32_387 : i32
    %508 = arith.index_cast %507 : i32 to index
    %509 = memref.load %arg1[%508] : memref<64xi32, #tpu.memory_space<smem>>
    %c0_i32_388 = arith.constant 0 : i32
    %c0_i32_389 = arith.constant 0 : i32
    %510 = tpu.memref_slice %arg2[%509, %c0_i32_389] : memref<50x32xf32, #tpu.memory_space<any>> -> memref<1x32xf32, #tpu.memory_space<any>>
    %c36_i32 = arith.constant 36 : i32
    %c0_i32_390 = arith.constant 0 : i32
    %511 = tpu.memref_slice %arg7[%c36_i32, %c0_i32_390] : memref<64x32xf32, #tpu.memory_space<vmem>> -> memref<1x32xf32, #tpu.memory_space<vmem>>
    %512 = tpu.memref_slice %arg9[%c0_i32_388] : memref<2x!tpu.dma_semaphore, #tpu.memory_space<semaphore_mem>> -> memref<1x!tpu.dma_semaphore, #tpu.memory_space<semaphore_mem>>
    %513 = tpu.memref_squeeze %512 : memref<1x!tpu.dma_semaphore, #tpu.memory_space<semaphore_mem>> -> memref<!tpu.dma_semaphore, #tpu.memory_space<semaphore_mem>>
    tpu.enqueue_dma source(%510 : memref<1x32xf32, #tpu.memory_space<any>>) target(%511 : memref<1x32xf32, #tpu.memory_space<vmem>>) target_semaphore(%513 : memref<!tpu.dma_semaphore, #tpu.memory_space<semaphore_mem>>)
    %c1_i32_391 = arith.constant 1 : i32
    %c0_i32_392 = arith.constant 0 : i32
    %514 = tpu.memref_slice %arg2[%509, %c0_i32_392] : memref<50x32xf32, #tpu.memory_space<any>> -> memref<1x32xf32, #tpu.memory_space<any>>
    %c36_i32_393 = arith.constant 36 : i32
    %c0_i32_394 = arith.constant 0 : i32
    %515 = tpu.memref_slice %arg8[%c36_i32_393, %c0_i32_394] : memref<64x32xf32, #tpu.memory_space<vmem>> -> memref<1x32xf32, #tpu.memory_space<vmem>>
    %516 = tpu.memref_slice %arg9[%c1_i32_391] : memref<2x!tpu.dma_semaphore, #tpu.memory_space<semaphore_mem>> -> memref<1x!tpu.dma_semaphore, #tpu.memory_space<semaphore_mem>>
    %517 = tpu.memref_squeeze %516 : memref<1x!tpu.dma_semaphore, #tpu.memory_space<semaphore_mem>> -> memref<!tpu.dma_semaphore, #tpu.memory_space<semaphore_mem>>
    tpu.enqueue_dma source(%514 : memref<1x32xf32, #tpu.memory_space<any>>) target(%515 : memref<1x32xf32, #tpu.memory_space<vmem>>) target_semaphore(%517 : memref<!tpu.dma_semaphore, #tpu.memory_space<semaphore_mem>>)
    %c8_i32_395 = arith.constant 8 : i32
    %518 = arith.muli %arg0, %c8_i32_395 : i32
    %c4_i32_396 = arith.constant 4 : i32
    %519 = arith.addi %518, %c4_i32_396 : i32
    %c8_i32_397 = arith.constant 8 : i32
    %520 = arith.muli %519, %c8_i32_397 : i32
    %c5_i32_398 = arith.constant 5 : i32
    %521 = arith.addi %520, %c5_i32_398 : i32
    %522 = arith.index_cast %521 : i32 to index
    %523 = memref.load %arg1[%522] : memref<64xi32, #tpu.memory_space<smem>>
    %c0_i32_399 = arith.constant 0 : i32
    %c0_i32_400 = arith.constant 0 : i32
    %524 = tpu.memref_slice %arg2[%523, %c0_i32_400] : memref<50x32xf32, #tpu.memory_space<any>> -> memref<1x32xf32, #tpu.memory_space<any>>
    %c37_i32 = arith.constant 37 : i32
    %c0_i32_401 = arith.constant 0 : i32
    %525 = tpu.memref_slice %arg7[%c37_i32, %c0_i32_401] : memref<64x32xf32, #tpu.memory_space<vmem>> -> memref<1x32xf32, #tpu.memory_space<vmem>>
    %526 = tpu.memref_slice %arg9[%c0_i32_399] : memref<2x!tpu.dma_semaphore, #tpu.memory_space<semaphore_mem>> -> memref<1x!tpu.dma_semaphore, #tpu.memory_space<semaphore_mem>>
    %527 = tpu.memref_squeeze %526 : memref<1x!tpu.dma_semaphore, #tpu.memory_space<semaphore_mem>> -> memref<!tpu.dma_semaphore, #tpu.memory_space<semaphore_mem>>
    tpu.enqueue_dma source(%524 : memref<1x32xf32, #tpu.memory_space<any>>) target(%525 : memref<1x32xf32, #tpu.memory_space<vmem>>) target_semaphore(%527 : memref<!tpu.dma_semaphore, #tpu.memory_space<semaphore_mem>>)
    %c1_i32_402 = arith.constant 1 : i32
    %c0_i32_403 = arith.constant 0 : i32
    %528 = tpu.memref_slice %arg2[%523, %c0_i32_403] : memref<50x32xf32, #tpu.memory_space<any>> -> memref<1x32xf32, #tpu.memory_space<any>>
    %c44_i32 = arith.constant 44 : i32
    %c0_i32_404 = arith.constant 0 : i32
    %529 = tpu.memref_slice %arg8[%c44_i32, %c0_i32_404] : memref<64x32xf32, #tpu.memory_space<vmem>> -> memref<1x32xf32, #tpu.memory_space<vmem>>
    %530 = tpu.memref_slice %arg9[%c1_i32_402] : memref<2x!tpu.dma_semaphore, #tpu.memory_space<semaphore_mem>> -> memref<1x!tpu.dma_semaphore, #tpu.memory_space<semaphore_mem>>
    %531 = tpu.memref_squeeze %530 : memref<1x!tpu.dma_semaphore, #tpu.memory_space<semaphore_mem>> -> memref<!tpu.dma_semaphore, #tpu.memory_space<semaphore_mem>>
    tpu.enqueue_dma source(%528 : memref<1x32xf32, #tpu.memory_space<any>>) target(%529 : memref<1x32xf32, #tpu.memory_space<vmem>>) target_semaphore(%531 : memref<!tpu.dma_semaphore, #tpu.memory_space<semaphore_mem>>)
    %c8_i32_405 = arith.constant 8 : i32
    %532 = arith.muli %arg0, %c8_i32_405 : i32
    %c4_i32_406 = arith.constant 4 : i32
    %533 = arith.addi %532, %c4_i32_406 : i32
    %c8_i32_407 = arith.constant 8 : i32
    %534 = arith.muli %533, %c8_i32_407 : i32
    %c6_i32_408 = arith.constant 6 : i32
    %535 = arith.addi %534, %c6_i32_408 : i32
    %536 = arith.index_cast %535 : i32 to index
    %537 = memref.load %arg1[%536] : memref<64xi32, #tpu.memory_space<smem>>
    %c0_i32_409 = arith.constant 0 : i32
    %c0_i32_410 = arith.constant 0 : i32
    %538 = tpu.memref_slice %arg2[%537, %c0_i32_410] : memref<50x32xf32, #tpu.memory_space<any>> -> memref<1x32xf32, #tpu.memory_space<any>>
    %c38_i32 = arith.constant 38 : i32
    %c0_i32_411 = arith.constant 0 : i32
    %539 = tpu.memref_slice %arg7[%c38_i32, %c0_i32_411] : memref<64x32xf32, #tpu.memory_space<vmem>> -> memref<1x32xf32, #tpu.memory_space<vmem>>
    %540 = tpu.memref_slice %arg9[%c0_i32_409] : memref<2x!tpu.dma_semaphore, #tpu.memory_space<semaphore_mem>> -> memref<1x!tpu.dma_semaphore, #tpu.memory_space<semaphore_mem>>
    %541 = tpu.memref_squeeze %540 : memref<1x!tpu.dma_semaphore, #tpu.memory_space<semaphore_mem>> -> memref<!tpu.dma_semaphore, #tpu.memory_space<semaphore_mem>>
    tpu.enqueue_dma source(%538 : memref<1x32xf32, #tpu.memory_space<any>>) target(%539 : memref<1x32xf32, #tpu.memory_space<vmem>>) target_semaphore(%541 : memref<!tpu.dma_semaphore, #tpu.memory_space<semaphore_mem>>)
    %c1_i32_412 = arith.constant 1 : i32
    %c0_i32_413 = arith.constant 0 : i32
    %542 = tpu.memref_slice %arg2[%537, %c0_i32_413] : memref<50x32xf32, #tpu.memory_space<any>> -> memref<1x32xf32, #tpu.memory_space<any>>
    %c52_i32 = arith.constant 52 : i32
    %c0_i32_414 = arith.constant 0 : i32
    %543 = tpu.memref_slice %arg8[%c52_i32, %c0_i32_414] : memref<64x32xf32, #tpu.memory_space<vmem>> -> memref<1x32xf32, #tpu.memory_space<vmem>>
    %544 = tpu.memref_slice %arg9[%c1_i32_412] : memref<2x!tpu.dma_semaphore, #tpu.memory_space<semaphore_mem>> -> memref<1x!tpu.dma_semaphore, #tpu.memory_space<semaphore_mem>>
    %545 = tpu.memref_squeeze %544 : memref<1x!tpu.dma_semaphore, #tpu.memory_space<semaphore_mem>> -> memref<!tpu.dma_semaphore, #tpu.memory_space<semaphore_mem>>
    tpu.enqueue_dma source(%542 : memref<1x32xf32, #tpu.memory_space<any>>) target(%543 : memref<1x32xf32, #tpu.memory_space<vmem>>) target_semaphore(%545 : memref<!tpu.dma_semaphore, #tpu.memory_space<semaphore_mem>>)
    %c8_i32_415 = arith.constant 8 : i32
    %546 = arith.muli %arg0, %c8_i32_415 : i32
    %c4_i32_416 = arith.constant 4 : i32
    %547 = arith.addi %546, %c4_i32_416 : i32
    %c8_i32_417 = arith.constant 8 : i32
    %548 = arith.muli %547, %c8_i32_417 : i32
    %c7_i32_418 = arith.constant 7 : i32
    %549 = arith.addi %548, %c7_i32_418 : i32
    %550 = arith.index_cast %549 : i32 to index
    %551 = memref.load %arg1[%550] : memref<64xi32, #tpu.memory_space<smem>>
    %c0_i32_419 = arith.constant 0 : i32
    %c0_i32_420 = arith.constant 0 : i32
    %552 = tpu.memref_slice %arg2[%551, %c0_i32_420] : memref<50x32xf32, #tpu.memory_space<any>> -> memref<1x32xf32, #tpu.memory_space<any>>
    %c39_i32 = arith.constant 39 : i32
    %c0_i32_421 = arith.constant 0 : i32
    %553 = tpu.memref_slice %arg7[%c39_i32, %c0_i32_421] : memref<64x32xf32, #tpu.memory_space<vmem>> -> memref<1x32xf32, #tpu.memory_space<vmem>>
    %554 = tpu.memref_slice %arg9[%c0_i32_419] : memref<2x!tpu.dma_semaphore, #tpu.memory_space<semaphore_mem>> -> memref<1x!tpu.dma_semaphore, #tpu.memory_space<semaphore_mem>>
    %555 = tpu.memref_squeeze %554 : memref<1x!tpu.dma_semaphore, #tpu.memory_space<semaphore_mem>> -> memref<!tpu.dma_semaphore, #tpu.memory_space<semaphore_mem>>
    tpu.enqueue_dma source(%552 : memref<1x32xf32, #tpu.memory_space<any>>) target(%553 : memref<1x32xf32, #tpu.memory_space<vmem>>) target_semaphore(%555 : memref<!tpu.dma_semaphore, #tpu.memory_space<semaphore_mem>>)
    %c1_i32_422 = arith.constant 1 : i32
    %c0_i32_423 = arith.constant 0 : i32
    %556 = tpu.memref_slice %arg2[%551, %c0_i32_423] : memref<50x32xf32, #tpu.memory_space<any>> -> memref<1x32xf32, #tpu.memory_space<any>>
    %c60_i32 = arith.constant 60 : i32
    %c0_i32_424 = arith.constant 0 : i32
    %557 = tpu.memref_slice %arg8[%c60_i32, %c0_i32_424] : memref<64x32xf32, #tpu.memory_space<vmem>> -> memref<1x32xf32, #tpu.memory_space<vmem>>
    %558 = tpu.memref_slice %arg9[%c1_i32_422] : memref<2x!tpu.dma_semaphore, #tpu.memory_space<semaphore_mem>> -> memref<1x!tpu.dma_semaphore, #tpu.memory_space<semaphore_mem>>
    %559 = tpu.memref_squeeze %558 : memref<1x!tpu.dma_semaphore, #tpu.memory_space<semaphore_mem>> -> memref<!tpu.dma_semaphore, #tpu.memory_space<semaphore_mem>>
    tpu.enqueue_dma source(%556 : memref<1x32xf32, #tpu.memory_space<any>>) target(%557 : memref<1x32xf32, #tpu.memory_space<vmem>>) target_semaphore(%559 : memref<!tpu.dma_semaphore, #tpu.memory_space<semaphore_mem>>)
    %c8_i32_425 = arith.constant 8 : i32
    %560 = arith.muli %arg0, %c8_i32_425 : i32
    %c5_i32_426 = arith.constant 5 : i32
    %561 = arith.addi %560, %c5_i32_426 : i32
    %c8_i32_427 = arith.constant 8 : i32
    %562 = arith.muli %561, %c8_i32_427 : i32
    %c0_i32_428 = arith.constant 0 : i32
    %563 = arith.addi %562, %c0_i32_428 : i32
    %564 = arith.index_cast %563 : i32 to index
    %565 = memref.load %arg1[%564] : memref<64xi32, #tpu.memory_space<smem>>
    %c0_i32_429 = arith.constant 0 : i32
    %c0_i32_430 = arith.constant 0 : i32
    %566 = tpu.memref_slice %arg2[%565, %c0_i32_430] : memref<50x32xf32, #tpu.memory_space<any>> -> memref<1x32xf32, #tpu.memory_space<any>>
    %c40_i32_431 = arith.constant 40 : i32
    %c0_i32_432 = arith.constant 0 : i32
    %567 = tpu.memref_slice %arg7[%c40_i32_431, %c0_i32_432] : memref<64x32xf32, #tpu.memory_space<vmem>> -> memref<1x32xf32, #tpu.memory_space<vmem>>
    %568 = tpu.memref_slice %arg9[%c0_i32_429] : memref<2x!tpu.dma_semaphore, #tpu.memory_space<semaphore_mem>> -> memref<1x!tpu.dma_semaphore, #tpu.memory_space<semaphore_mem>>
    %569 = tpu.memref_squeeze %568 : memref<1x!tpu.dma_semaphore, #tpu.memory_space<semaphore_mem>> -> memref<!tpu.dma_semaphore, #tpu.memory_space<semaphore_mem>>
    tpu.enqueue_dma source(%566 : memref<1x32xf32, #tpu.memory_space<any>>) target(%567 : memref<1x32xf32, #tpu.memory_space<vmem>>) target_semaphore(%569 : memref<!tpu.dma_semaphore, #tpu.memory_space<semaphore_mem>>)
    %c1_i32_433 = arith.constant 1 : i32
    %c0_i32_434 = arith.constant 0 : i32
    %570 = tpu.memref_slice %arg2[%565, %c0_i32_434] : memref<50x32xf32, #tpu.memory_space<any>> -> memref<1x32xf32, #tpu.memory_space<any>>
    %c5_i32_435 = arith.constant 5 : i32
    %c0_i32_436 = arith.constant 0 : i32
    %571 = tpu.memref_slice %arg8[%c5_i32_435, %c0_i32_436] : memref<64x32xf32, #tpu.memory_space<vmem>> -> memref<1x32xf32, #tpu.memory_space<vmem>>
    %572 = tpu.memref_slice %arg9[%c1_i32_433] : memref<2x!tpu.dma_semaphore, #tpu.memory_space<semaphore_mem>> -> memref<1x!tpu.dma_semaphore, #tpu.memory_space<semaphore_mem>>
    %573 = tpu.memref_squeeze %572 : memref<1x!tpu.dma_semaphore, #tpu.memory_space<semaphore_mem>> -> memref<!tpu.dma_semaphore, #tpu.memory_space<semaphore_mem>>
    tpu.enqueue_dma source(%570 : memref<1x32xf32, #tpu.memory_space<any>>) target(%571 : memref<1x32xf32, #tpu.memory_space<vmem>>) target_semaphore(%573 : memref<!tpu.dma_semaphore, #tpu.memory_space<semaphore_mem>>)
    %c8_i32_437 = arith.constant 8 : i32
    %574 = arith.muli %arg0, %c8_i32_437 : i32
    %c5_i32_438 = arith.constant 5 : i32
    %575 = arith.addi %574, %c5_i32_438 : i32
    %c8_i32_439 = arith.constant 8 : i32
    %576 = arith.muli %575, %c8_i32_439 : i32
    %c1_i32_440 = arith.constant 1 : i32
    %577 = arith.addi %576, %c1_i32_440 : i32
    %578 = arith.index_cast %577 : i32 to index
    %579 = memref.load %arg1[%578] : memref<64xi32, #tpu.memory_space<smem>>
    %c0_i32_441 = arith.constant 0 : i32
    %c0_i32_442 = arith.constant 0 : i32
    %580 = tpu.memref_slice %arg2[%579, %c0_i32_442] : memref<50x32xf32, #tpu.memory_space<any>> -> memref<1x32xf32, #tpu.memory_space<any>>
    %c41_i32_443 = arith.constant 41 : i32
    %c0_i32_444 = arith.constant 0 : i32
    %581 = tpu.memref_slice %arg7[%c41_i32_443, %c0_i32_444] : memref<64x32xf32, #tpu.memory_space<vmem>> -> memref<1x32xf32, #tpu.memory_space<vmem>>
    %582 = tpu.memref_slice %arg9[%c0_i32_441] : memref<2x!tpu.dma_semaphore, #tpu.memory_space<semaphore_mem>> -> memref<1x!tpu.dma_semaphore, #tpu.memory_space<semaphore_mem>>
    %583 = tpu.memref_squeeze %582 : memref<1x!tpu.dma_semaphore, #tpu.memory_space<semaphore_mem>> -> memref<!tpu.dma_semaphore, #tpu.memory_space<semaphore_mem>>
    tpu.enqueue_dma source(%580 : memref<1x32xf32, #tpu.memory_space<any>>) target(%581 : memref<1x32xf32, #tpu.memory_space<vmem>>) target_semaphore(%583 : memref<!tpu.dma_semaphore, #tpu.memory_space<semaphore_mem>>)
    %c1_i32_445 = arith.constant 1 : i32
    %c0_i32_446 = arith.constant 0 : i32
    %584 = tpu.memref_slice %arg2[%579, %c0_i32_446] : memref<50x32xf32, #tpu.memory_space<any>> -> memref<1x32xf32, #tpu.memory_space<any>>
    %c13_i32_447 = arith.constant 13 : i32
    %c0_i32_448 = arith.constant 0 : i32
    %585 = tpu.memref_slice %arg8[%c13_i32_447, %c0_i32_448] : memref<64x32xf32, #tpu.memory_space<vmem>> -> memref<1x32xf32, #tpu.memory_space<vmem>>
    %586 = tpu.memref_slice %arg9[%c1_i32_445] : memref<2x!tpu.dma_semaphore, #tpu.memory_space<semaphore_mem>> -> memref<1x!tpu.dma_semaphore, #tpu.memory_space<semaphore_mem>>
    %587 = tpu.memref_squeeze %586 : memref<1x!tpu.dma_semaphore, #tpu.memory_space<semaphore_mem>> -> memref<!tpu.dma_semaphore, #tpu.memory_space<semaphore_mem>>
    tpu.enqueue_dma source(%584 : memref<1x32xf32, #tpu.memory_space<any>>) target(%585 : memref<1x32xf32, #tpu.memory_space<vmem>>) target_semaphore(%587 : memref<!tpu.dma_semaphore, #tpu.memory_space<semaphore_mem>>)
    %c8_i32_449 = arith.constant 8 : i32
    %588 = arith.muli %arg0, %c8_i32_449 : i32
    %c5_i32_450 = arith.constant 5 : i32
    %589 = arith.addi %588, %c5_i32_450 : i32
    %c8_i32_451 = arith.constant 8 : i32
    %590 = arith.muli %589, %c8_i32_451 : i32
    %c2_i32_452 = arith.constant 2 : i32
    %591 = arith.addi %590, %c2_i32_452 : i32
    %592 = arith.index_cast %591 : i32 to index
    %593 = memref.load %arg1[%592] : memref<64xi32, #tpu.memory_space<smem>>
    %c0_i32_453 = arith.constant 0 : i32
    %c0_i32_454 = arith.constant 0 : i32
    %594 = tpu.memref_slice %arg2[%593, %c0_i32_454] : memref<50x32xf32, #tpu.memory_space<any>> -> memref<1x32xf32, #tpu.memory_space<any>>
    %c42_i32_455 = arith.constant 42 : i32
    %c0_i32_456 = arith.constant 0 : i32
    %595 = tpu.memref_slice %arg7[%c42_i32_455, %c0_i32_456] : memref<64x32xf32, #tpu.memory_space<vmem>> -> memref<1x32xf32, #tpu.memory_space<vmem>>
    %596 = tpu.memref_slice %arg9[%c0_i32_453] : memref<2x!tpu.dma_semaphore, #tpu.memory_space<semaphore_mem>> -> memref<1x!tpu.dma_semaphore, #tpu.memory_space<semaphore_mem>>
    %597 = tpu.memref_squeeze %596 : memref<1x!tpu.dma_semaphore, #tpu.memory_space<semaphore_mem>> -> memref<!tpu.dma_semaphore, #tpu.memory_space<semaphore_mem>>
    tpu.enqueue_dma source(%594 : memref<1x32xf32, #tpu.memory_space<any>>) target(%595 : memref<1x32xf32, #tpu.memory_space<vmem>>) target_semaphore(%597 : memref<!tpu.dma_semaphore, #tpu.memory_space<semaphore_mem>>)
    %c1_i32_457 = arith.constant 1 : i32
    %c0_i32_458 = arith.constant 0 : i32
    %598 = tpu.memref_slice %arg2[%593, %c0_i32_458] : memref<50x32xf32, #tpu.memory_space<any>> -> memref<1x32xf32, #tpu.memory_space<any>>
    %c21_i32_459 = arith.constant 21 : i32
    %c0_i32_460 = arith.constant 0 : i32
    %599 = tpu.memref_slice %arg8[%c21_i32_459, %c0_i32_460] : memref<64x32xf32, #tpu.memory_space<vmem>> -> memref<1x32xf32, #tpu.memory_space<vmem>>
    %600 = tpu.memref_slice %arg9[%c1_i32_457] : memref<2x!tpu.dma_semaphore, #tpu.memory_space<semaphore_mem>> -> memref<1x!tpu.dma_semaphore, #tpu.memory_space<semaphore_mem>>
    %601 = tpu.memref_squeeze %600 : memref<1x!tpu.dma_semaphore, #tpu.memory_space<semaphore_mem>> -> memref<!tpu.dma_semaphore, #tpu.memory_space<semaphore_mem>>
    tpu.enqueue_dma source(%598 : memref<1x32xf32, #tpu.memory_space<any>>) target(%599 : memref<1x32xf32, #tpu.memory_space<vmem>>) target_semaphore(%601 : memref<!tpu.dma_semaphore, #tpu.memory_space<semaphore_mem>>)
    %c8_i32_461 = arith.constant 8 : i32
    %602 = arith.muli %arg0, %c8_i32_461 : i32
    %c5_i32_462 = arith.constant 5 : i32
    %603 = arith.addi %602, %c5_i32_462 : i32
    %c8_i32_463 = arith.constant 8 : i32
    %604 = arith.muli %603, %c8_i32_463 : i32
    %c3_i32_464 = arith.constant 3 : i32
    %605 = arith.addi %604, %c3_i32_464 : i32
    %606 = arith.index_cast %605 : i32 to index
    %607 = memref.load %arg1[%606] : memref<64xi32, #tpu.memory_space<smem>>
    %c0_i32_465 = arith.constant 0 : i32
    %c0_i32_466 = arith.constant 0 : i32
    %608 = tpu.memref_slice %arg2[%607, %c0_i32_466] : memref<50x32xf32, #tpu.memory_space<any>> -> memref<1x32xf32, #tpu.memory_space<any>>
    %c43_i32_467 = arith.constant 43 : i32
    %c0_i32_468 = arith.constant 0 : i32
    %609 = tpu.memref_slice %arg7[%c43_i32_467, %c0_i32_468] : memref<64x32xf32, #tpu.memory_space<vmem>> -> memref<1x32xf32, #tpu.memory_space<vmem>>
    %610 = tpu.memref_slice %arg9[%c0_i32_465] : memref<2x!tpu.dma_semaphore, #tpu.memory_space<semaphore_mem>> -> memref<1x!tpu.dma_semaphore, #tpu.memory_space<semaphore_mem>>
    %611 = tpu.memref_squeeze %610 : memref<1x!tpu.dma_semaphore, #tpu.memory_space<semaphore_mem>> -> memref<!tpu.dma_semaphore, #tpu.memory_space<semaphore_mem>>
    tpu.enqueue_dma source(%608 : memref<1x32xf32, #tpu.memory_space<any>>) target(%609 : memref<1x32xf32, #tpu.memory_space<vmem>>) target_semaphore(%611 : memref<!tpu.dma_semaphore, #tpu.memory_space<semaphore_mem>>)
    %c1_i32_469 = arith.constant 1 : i32
    %c0_i32_470 = arith.constant 0 : i32
    %612 = tpu.memref_slice %arg2[%607, %c0_i32_470] : memref<50x32xf32, #tpu.memory_space<any>> -> memref<1x32xf32, #tpu.memory_space<any>>
    %c29_i32_471 = arith.constant 29 : i32
    %c0_i32_472 = arith.constant 0 : i32
    %613 = tpu.memref_slice %arg8[%c29_i32_471, %c0_i32_472] : memref<64x32xf32, #tpu.memory_space<vmem>> -> memref<1x32xf32, #tpu.memory_space<vmem>>
    %614 = tpu.memref_slice %arg9[%c1_i32_469] : memref<2x!tpu.dma_semaphore, #tpu.memory_space<semaphore_mem>> -> memref<1x!tpu.dma_semaphore, #tpu.memory_space<semaphore_mem>>
    %615 = tpu.memref_squeeze %614 : memref<1x!tpu.dma_semaphore, #tpu.memory_space<semaphore_mem>> -> memref<!tpu.dma_semaphore, #tpu.memory_space<semaphore_mem>>
    tpu.enqueue_dma source(%612 : memref<1x32xf32, #tpu.memory_space<any>>) target(%613 : memref<1x32xf32, #tpu.memory_space<vmem>>) target_semaphore(%615 : memref<!tpu.dma_semaphore, #tpu.memory_space<semaphore_mem>>)
    %c8_i32_473 = arith.constant 8 : i32
    %616 = arith.muli %arg0, %c8_i32_473 : i32
    %c5_i32_474 = arith.constant 5 : i32
    %617 = arith.addi %616, %c5_i32_474 : i32
    %c8_i32_475 = arith.constant 8 : i32
    %618 = arith.muli %617, %c8_i32_475 : i32
    %c4_i32_476 = arith.constant 4 : i32
    %619 = arith.addi %618, %c4_i32_476 : i32
    %620 = arith.index_cast %619 : i32 to index
    %621 = memref.load %arg1[%620] : memref<64xi32, #tpu.memory_space<smem>>
    %c0_i32_477 = arith.constant 0 : i32
    %c0_i32_478 = arith.constant 0 : i32
    %622 = tpu.memref_slice %arg2[%621, %c0_i32_478] : memref<50x32xf32, #tpu.memory_space<any>> -> memref<1x32xf32, #tpu.memory_space<any>>
    %c44_i32_479 = arith.constant 44 : i32
    %c0_i32_480 = arith.constant 0 : i32
    %623 = tpu.memref_slice %arg7[%c44_i32_479, %c0_i32_480] : memref<64x32xf32, #tpu.memory_space<vmem>> -> memref<1x32xf32, #tpu.memory_space<vmem>>
    %624 = tpu.memref_slice %arg9[%c0_i32_477] : memref<2x!tpu.dma_semaphore, #tpu.memory_space<semaphore_mem>> -> memref<1x!tpu.dma_semaphore, #tpu.memory_space<semaphore_mem>>
    %625 = tpu.memref_squeeze %624 : memref<1x!tpu.dma_semaphore, #tpu.memory_space<semaphore_mem>> -> memref<!tpu.dma_semaphore, #tpu.memory_space<semaphore_mem>>
    tpu.enqueue_dma source(%622 : memref<1x32xf32, #tpu.memory_space<any>>) target(%623 : memref<1x32xf32, #tpu.memory_space<vmem>>) target_semaphore(%625 : memref<!tpu.dma_semaphore, #tpu.memory_space<semaphore_mem>>)
    %c1_i32_481 = arith.constant 1 : i32
    %c0_i32_482 = arith.constant 0 : i32
    %626 = tpu.memref_slice %arg2[%621, %c0_i32_482] : memref<50x32xf32, #tpu.memory_space<any>> -> memref<1x32xf32, #tpu.memory_space<any>>
    %c37_i32_483 = arith.constant 37 : i32
    %c0_i32_484 = arith.constant 0 : i32
    %627 = tpu.memref_slice %arg8[%c37_i32_483, %c0_i32_484] : memref<64x32xf32, #tpu.memory_space<vmem>> -> memref<1x32xf32, #tpu.memory_space<vmem>>
    %628 = tpu.memref_slice %arg9[%c1_i32_481] : memref<2x!tpu.dma_semaphore, #tpu.memory_space<semaphore_mem>> -> memref<1x!tpu.dma_semaphore, #tpu.memory_space<semaphore_mem>>
    %629 = tpu.memref_squeeze %628 : memref<1x!tpu.dma_semaphore, #tpu.memory_space<semaphore_mem>> -> memref<!tpu.dma_semaphore, #tpu.memory_space<semaphore_mem>>
    tpu.enqueue_dma source(%626 : memref<1x32xf32, #tpu.memory_space<any>>) target(%627 : memref<1x32xf32, #tpu.memory_space<vmem>>) target_semaphore(%629 : memref<!tpu.dma_semaphore, #tpu.memory_space<semaphore_mem>>)
    %c8_i32_485 = arith.constant 8 : i32
    %630 = arith.muli %arg0, %c8_i32_485 : i32
    %c5_i32_486 = arith.constant 5 : i32
    %631 = arith.addi %630, %c5_i32_486 : i32
    %c8_i32_487 = arith.constant 8 : i32
    %632 = arith.muli %631, %c8_i32_487 : i32
    %c5_i32_488 = arith.constant 5 : i32
    %633 = arith.addi %632, %c5_i32_488 : i32
    %634 = arith.index_cast %633 : i32 to index
    %635 = memref.load %arg1[%634] : memref<64xi32, #tpu.memory_space<smem>>
    %c0_i32_489 = arith.constant 0 : i32
    %c0_i32_490 = arith.constant 0 : i32
    %636 = tpu.memref_slice %arg2[%635, %c0_i32_490] : memref<50x32xf32, #tpu.memory_space<any>> -> memref<1x32xf32, #tpu.memory_space<any>>
    %c45_i32 = arith.constant 45 : i32
    %c0_i32_491 = arith.constant 0 : i32
    %637 = tpu.memref_slice %arg7[%c45_i32, %c0_i32_491] : memref<64x32xf32, #tpu.memory_space<vmem>> -> memref<1x32xf32, #tpu.memory_space<vmem>>
    %638 = tpu.memref_slice %arg9[%c0_i32_489] : memref<2x!tpu.dma_semaphore, #tpu.memory_space<semaphore_mem>> -> memref<1x!tpu.dma_semaphore, #tpu.memory_space<semaphore_mem>>
    %639 = tpu.memref_squeeze %638 : memref<1x!tpu.dma_semaphore, #tpu.memory_space<semaphore_mem>> -> memref<!tpu.dma_semaphore, #tpu.memory_space<semaphore_mem>>
    tpu.enqueue_dma source(%636 : memref<1x32xf32, #tpu.memory_space<any>>) target(%637 : memref<1x32xf32, #tpu.memory_space<vmem>>) target_semaphore(%639 : memref<!tpu.dma_semaphore, #tpu.memory_space<semaphore_mem>>)
    %c1_i32_492 = arith.constant 1 : i32
    %c0_i32_493 = arith.constant 0 : i32
    %640 = tpu.memref_slice %arg2[%635, %c0_i32_493] : memref<50x32xf32, #tpu.memory_space<any>> -> memref<1x32xf32, #tpu.memory_space<any>>
    %c45_i32_494 = arith.constant 45 : i32
    %c0_i32_495 = arith.constant 0 : i32
    %641 = tpu.memref_slice %arg8[%c45_i32_494, %c0_i32_495] : memref<64x32xf32, #tpu.memory_space<vmem>> -> memref<1x32xf32, #tpu.memory_space<vmem>>
    %642 = tpu.memref_slice %arg9[%c1_i32_492] : memref<2x!tpu.dma_semaphore, #tpu.memory_space<semaphore_mem>> -> memref<1x!tpu.dma_semaphore, #tpu.memory_space<semaphore_mem>>
    %643 = tpu.memref_squeeze %642 : memref<1x!tpu.dma_semaphore, #tpu.memory_space<semaphore_mem>> -> memref<!tpu.dma_semaphore, #tpu.memory_space<semaphore_mem>>
    tpu.enqueue_dma source(%640 : memref<1x32xf32, #tpu.memory_space<any>>) target(%641 : memref<1x32xf32, #tpu.memory_space<vmem>>) target_semaphore(%643 : memref<!tpu.dma_semaphore, #tpu.memory_space<semaphore_mem>>)
    %c8_i32_496 = arith.constant 8 : i32
    %644 = arith.muli %arg0, %c8_i32_496 : i32
    %c5_i32_497 = arith.constant 5 : i32
    %645 = arith.addi %644, %c5_i32_497 : i32
    %c8_i32_498 = arith.constant 8 : i32
    %646 = arith.muli %645, %c8_i32_498 : i32
    %c6_i32_499 = arith.constant 6 : i32
    %647 = arith.addi %646, %c6_i32_499 : i32
    %648 = arith.index_cast %647 : i32 to index
    %649 = memref.load %arg1[%648] : memref<64xi32, #tpu.memory_space<smem>>
    %c0_i32_500 = arith.constant 0 : i32
    %c0_i32_501 = arith.constant 0 : i32
    %650 = tpu.memref_slice %arg2[%649, %c0_i32_501] : memref<50x32xf32, #tpu.memory_space<any>> -> memref<1x32xf32, #tpu.memory_space<any>>
    %c46_i32 = arith.constant 46 : i32
    %c0_i32_502 = arith.constant 0 : i32
    %651 = tpu.memref_slice %arg7[%c46_i32, %c0_i32_502] : memref<64x32xf32, #tpu.memory_space<vmem>> -> memref<1x32xf32, #tpu.memory_space<vmem>>
    %652 = tpu.memref_slice %arg9[%c0_i32_500] : memref<2x!tpu.dma_semaphore, #tpu.memory_space<semaphore_mem>> -> memref<1x!tpu.dma_semaphore, #tpu.memory_space<semaphore_mem>>
    %653 = tpu.memref_squeeze %652 : memref<1x!tpu.dma_semaphore, #tpu.memory_space<semaphore_mem>> -> memref<!tpu.dma_semaphore, #tpu.memory_space<semaphore_mem>>
    tpu.enqueue_dma source(%650 : memref<1x32xf32, #tpu.memory_space<any>>) target(%651 : memref<1x32xf32, #tpu.memory_space<vmem>>) target_semaphore(%653 : memref<!tpu.dma_semaphore, #tpu.memory_space<semaphore_mem>>)
    %c1_i32_503 = arith.constant 1 : i32
    %c0_i32_504 = arith.constant 0 : i32
    %654 = tpu.memref_slice %arg2[%649, %c0_i32_504] : memref<50x32xf32, #tpu.memory_space<any>> -> memref<1x32xf32, #tpu.memory_space<any>>
    %c53_i32 = arith.constant 53 : i32
    %c0_i32_505 = arith.constant 0 : i32
    %655 = tpu.memref_slice %arg8[%c53_i32, %c0_i32_505] : memref<64x32xf32, #tpu.memory_space<vmem>> -> memref<1x32xf32, #tpu.memory_space<vmem>>
    %656 = tpu.memref_slice %arg9[%c1_i32_503] : memref<2x!tpu.dma_semaphore, #tpu.memory_space<semaphore_mem>> -> memref<1x!tpu.dma_semaphore, #tpu.memory_space<semaphore_mem>>
    %657 = tpu.memref_squeeze %656 : memref<1x!tpu.dma_semaphore, #tpu.memory_space<semaphore_mem>> -> memref<!tpu.dma_semaphore, #tpu.memory_space<semaphore_mem>>
    tpu.enqueue_dma source(%654 : memref<1x32xf32, #tpu.memory_space<any>>) target(%655 : memref<1x32xf32, #tpu.memory_space<vmem>>) target_semaphore(%657 : memref<!tpu.dma_semaphore, #tpu.memory_space<semaphore_mem>>)
    %c8_i32_506 = arith.constant 8 : i32
    %658 = arith.muli %arg0, %c8_i32_506 : i32
    %c5_i32_507 = arith.constant 5 : i32
    %659 = arith.addi %658, %c5_i32_507 : i32
    %c8_i32_508 = arith.constant 8 : i32
    %660 = arith.muli %659, %c8_i32_508 : i32
    %c7_i32_509 = arith.constant 7 : i32
    %661 = arith.addi %660, %c7_i32_509 : i32
    %662 = arith.index_cast %661 : i32 to index
    %663 = memref.load %arg1[%662] : memref<64xi32, #tpu.memory_space<smem>>
    %c0_i32_510 = arith.constant 0 : i32
    %c0_i32_511 = arith.constant 0 : i32
    %664 = tpu.memref_slice %arg2[%663, %c0_i32_511] : memref<50x32xf32, #tpu.memory_space<any>> -> memref<1x32xf32, #tpu.memory_space<any>>
    %c47_i32 = arith.constant 47 : i32
    %c0_i32_512 = arith.constant 0 : i32
    %665 = tpu.memref_slice %arg7[%c47_i32, %c0_i32_512] : memref<64x32xf32, #tpu.memory_space<vmem>> -> memref<1x32xf32, #tpu.memory_space<vmem>>
    %666 = tpu.memref_slice %arg9[%c0_i32_510] : memref<2x!tpu.dma_semaphore, #tpu.memory_space<semaphore_mem>> -> memref<1x!tpu.dma_semaphore, #tpu.memory_space<semaphore_mem>>
    %667 = tpu.memref_squeeze %666 : memref<1x!tpu.dma_semaphore, #tpu.memory_space<semaphore_mem>> -> memref<!tpu.dma_semaphore, #tpu.memory_space<semaphore_mem>>
    tpu.enqueue_dma source(%664 : memref<1x32xf32, #tpu.memory_space<any>>) target(%665 : memref<1x32xf32, #tpu.memory_space<vmem>>) target_semaphore(%667 : memref<!tpu.dma_semaphore, #tpu.memory_space<semaphore_mem>>)
    %c1_i32_513 = arith.constant 1 : i32
    %c0_i32_514 = arith.constant 0 : i32
    %668 = tpu.memref_slice %arg2[%663, %c0_i32_514] : memref<50x32xf32, #tpu.memory_space<any>> -> memref<1x32xf32, #tpu.memory_space<any>>
    %c61_i32 = arith.constant 61 : i32
    %c0_i32_515 = arith.constant 0 : i32
    %669 = tpu.memref_slice %arg8[%c61_i32, %c0_i32_515] : memref<64x32xf32, #tpu.memory_space<vmem>> -> memref<1x32xf32, #tpu.memory_space<vmem>>
    %670 = tpu.memref_slice %arg9[%c1_i32_513] : memref<2x!tpu.dma_semaphore, #tpu.memory_space<semaphore_mem>> -> memref<1x!tpu.dma_semaphore, #tpu.memory_space<semaphore_mem>>
    %671 = tpu.memref_squeeze %670 : memref<1x!tpu.dma_semaphore, #tpu.memory_space<semaphore_mem>> -> memref<!tpu.dma_semaphore, #tpu.memory_space<semaphore_mem>>
    tpu.enqueue_dma source(%668 : memref<1x32xf32, #tpu.memory_space<any>>) target(%669 : memref<1x32xf32, #tpu.memory_space<vmem>>) target_semaphore(%671 : memref<!tpu.dma_semaphore, #tpu.memory_space<semaphore_mem>>)
    %c8_i32_516 = arith.constant 8 : i32
    %672 = arith.muli %arg0, %c8_i32_516 : i32
    %c6_i32_517 = arith.constant 6 : i32
    %673 = arith.addi %672, %c6_i32_517 : i32
    %c8_i32_518 = arith.constant 8 : i32
    %674 = arith.muli %673, %c8_i32_518 : i32
    %c0_i32_519 = arith.constant 0 : i32
    %675 = arith.addi %674, %c0_i32_519 : i32
    %676 = arith.index_cast %675 : i32 to index
    %677 = memref.load %arg1[%676] : memref<64xi32, #tpu.memory_space<smem>>
    %c0_i32_520 = arith.constant 0 : i32
    %c0_i32_521 = arith.constant 0 : i32
    %678 = tpu.memref_slice %arg2[%677, %c0_i32_521] : memref<50x32xf32, #tpu.memory_space<any>> -> memref<1x32xf32, #tpu.memory_space<any>>
    %c48_i32_522 = arith.constant 48 : i32
    %c0_i32_523 = arith.constant 0 : i32
    %679 = tpu.memref_slice %arg7[%c48_i32_522, %c0_i32_523] : memref<64x32xf32, #tpu.memory_space<vmem>> -> memref<1x32xf32, #tpu.memory_space<vmem>>
    %680 = tpu.memref_slice %arg9[%c0_i32_520] : memref<2x!tpu.dma_semaphore, #tpu.memory_space<semaphore_mem>> -> memref<1x!tpu.dma_semaphore, #tpu.memory_space<semaphore_mem>>
    %681 = tpu.memref_squeeze %680 : memref<1x!tpu.dma_semaphore, #tpu.memory_space<semaphore_mem>> -> memref<!tpu.dma_semaphore, #tpu.memory_space<semaphore_mem>>
    tpu.enqueue_dma source(%678 : memref<1x32xf32, #tpu.memory_space<any>>) target(%679 : memref<1x32xf32, #tpu.memory_space<vmem>>) target_semaphore(%681 : memref<!tpu.dma_semaphore, #tpu.memory_space<semaphore_mem>>)
    %c1_i32_524 = arith.constant 1 : i32
    %c0_i32_525 = arith.constant 0 : i32
    %682 = tpu.memref_slice %arg2[%677, %c0_i32_525] : memref<50x32xf32, #tpu.memory_space<any>> -> memref<1x32xf32, #tpu.memory_space<any>>
    %c6_i32_526 = arith.constant 6 : i32
    %c0_i32_527 = arith.constant 0 : i32
    %683 = tpu.memref_slice %arg8[%c6_i32_526, %c0_i32_527] : memref<64x32xf32, #tpu.memory_space<vmem>> -> memref<1x32xf32, #tpu.memory_space<vmem>>
    %684 = tpu.memref_slice %arg9[%c1_i32_524] : memref<2x!tpu.dma_semaphore, #tpu.memory_space<semaphore_mem>> -> memref<1x!tpu.dma_semaphore, #tpu.memory_space<semaphore_mem>>
    %685 = tpu.memref_squeeze %684 : memref<1x!tpu.dma_semaphore, #tpu.memory_space<semaphore_mem>> -> memref<!tpu.dma_semaphore, #tpu.memory_space<semaphore_mem>>
    tpu.enqueue_dma source(%682 : memref<1x32xf32, #tpu.memory_space<any>>) target(%683 : memref<1x32xf32, #tpu.memory_space<vmem>>) target_semaphore(%685 : memref<!tpu.dma_semaphore, #tpu.memory_space<semaphore_mem>>)
    %c8_i32_528 = arith.constant 8 : i32
    %686 = arith.muli %arg0, %c8_i32_528 : i32
    %c6_i32_529 = arith.constant 6 : i32
    %687 = arith.addi %686, %c6_i32_529 : i32
    %c8_i32_530 = arith.constant 8 : i32
    %688 = arith.muli %687, %c8_i32_530 : i32
    %c1_i32_531 = arith.constant 1 : i32
    %689 = arith.addi %688, %c1_i32_531 : i32
    %690 = arith.index_cast %689 : i32 to index
    %691 = memref.load %arg1[%690] : memref<64xi32, #tpu.memory_space<smem>>
    %c0_i32_532 = arith.constant 0 : i32
    %c0_i32_533 = arith.constant 0 : i32
    %692 = tpu.memref_slice %arg2[%691, %c0_i32_533] : memref<50x32xf32, #tpu.memory_space<any>> -> memref<1x32xf32, #tpu.memory_space<any>>
    %c49_i32_534 = arith.constant 49 : i32
    %c0_i32_535 = arith.constant 0 : i32
    %693 = tpu.memref_slice %arg7[%c49_i32_534, %c0_i32_535] : memref<64x32xf32, #tpu.memory_space<vmem>> -> memref<1x32xf32, #tpu.memory_space<vmem>>
    %694 = tpu.memref_slice %arg9[%c0_i32_532] : memref<2x!tpu.dma_semaphore, #tpu.memory_space<semaphore_mem>> -> memref<1x!tpu.dma_semaphore, #tpu.memory_space<semaphore_mem>>
    %695 = tpu.memref_squeeze %694 : memref<1x!tpu.dma_semaphore, #tpu.memory_space<semaphore_mem>> -> memref<!tpu.dma_semaphore, #tpu.memory_space<semaphore_mem>>
    tpu.enqueue_dma source(%692 : memref<1x32xf32, #tpu.memory_space<any>>) target(%693 : memref<1x32xf32, #tpu.memory_space<vmem>>) target_semaphore(%695 : memref<!tpu.dma_semaphore, #tpu.memory_space<semaphore_mem>>)
    %c1_i32_536 = arith.constant 1 : i32
    %c0_i32_537 = arith.constant 0 : i32
    %696 = tpu.memref_slice %arg2[%691, %c0_i32_537] : memref<50x32xf32, #tpu.memory_space<any>> -> memref<1x32xf32, #tpu.memory_space<any>>
    %c14_i32_538 = arith.constant 14 : i32
    %c0_i32_539 = arith.constant 0 : i32
    %697 = tpu.memref_slice %arg8[%c14_i32_538, %c0_i32_539] : memref<64x32xf32, #tpu.memory_space<vmem>> -> memref<1x32xf32, #tpu.memory_space<vmem>>
    %698 = tpu.memref_slice %arg9[%c1_i32_536] : memref<2x!tpu.dma_semaphore, #tpu.memory_space<semaphore_mem>> -> memref<1x!tpu.dma_semaphore, #tpu.memory_space<semaphore_mem>>
    %699 = tpu.memref_squeeze %698 : memref<1x!tpu.dma_semaphore, #tpu.memory_space<semaphore_mem>> -> memref<!tpu.dma_semaphore, #tpu.memory_space<semaphore_mem>>
    tpu.enqueue_dma source(%696 : memref<1x32xf32, #tpu.memory_space<any>>) target(%697 : memref<1x32xf32, #tpu.memory_space<vmem>>) target_semaphore(%699 : memref<!tpu.dma_semaphore, #tpu.memory_space<semaphore_mem>>)
    %c8_i32_540 = arith.constant 8 : i32
    %700 = arith.muli %arg0, %c8_i32_540 : i32
    %c6_i32_541 = arith.constant 6 : i32
    %701 = arith.addi %700, %c6_i32_541 : i32
    %c8_i32_542 = arith.constant 8 : i32
    %702 = arith.muli %701, %c8_i32_542 : i32
    %c2_i32_543 = arith.constant 2 : i32
    %703 = arith.addi %702, %c2_i32_543 : i32
    %704 = arith.index_cast %703 : i32 to index
    %705 = memref.load %arg1[%704] : memref<64xi32, #tpu.memory_space<smem>>
    %c0_i32_544 = arith.constant 0 : i32
    %c0_i32_545 = arith.constant 0 : i32
    %706 = tpu.memref_slice %arg2[%705, %c0_i32_545] : memref<50x32xf32, #tpu.memory_space<any>> -> memref<1x32xf32, #tpu.memory_space<any>>
    %c50_i32_546 = arith.constant 50 : i32
    %c0_i32_547 = arith.constant 0 : i32
    %707 = tpu.memref_slice %arg7[%c50_i32_546, %c0_i32_547] : memref<64x32xf32, #tpu.memory_space<vmem>> -> memref<1x32xf32, #tpu.memory_space<vmem>>
    %708 = tpu.memref_slice %arg9[%c0_i32_544] : memref<2x!tpu.dma_semaphore, #tpu.memory_space<semaphore_mem>> -> memref<1x!tpu.dma_semaphore, #tpu.memory_space<semaphore_mem>>
    %709 = tpu.memref_squeeze %708 : memref<1x!tpu.dma_semaphore, #tpu.memory_space<semaphore_mem>> -> memref<!tpu.dma_semaphore, #tpu.memory_space<semaphore_mem>>
    tpu.enqueue_dma source(%706 : memref<1x32xf32, #tpu.memory_space<any>>) target(%707 : memref<1x32xf32, #tpu.memory_space<vmem>>) target_semaphore(%709 : memref<!tpu.dma_semaphore, #tpu.memory_space<semaphore_mem>>)
    %c1_i32_548 = arith.constant 1 : i32
    %c0_i32_549 = arith.constant 0 : i32
    %710 = tpu.memref_slice %arg2[%705, %c0_i32_549] : memref<50x32xf32, #tpu.memory_space<any>> -> memref<1x32xf32, #tpu.memory_space<any>>
    %c22_i32_550 = arith.constant 22 : i32
    %c0_i32_551 = arith.constant 0 : i32
    %711 = tpu.memref_slice %arg8[%c22_i32_550, %c0_i32_551] : memref<64x32xf32, #tpu.memory_space<vmem>> -> memref<1x32xf32, #tpu.memory_space<vmem>>
    %712 = tpu.memref_slice %arg9[%c1_i32_548] : memref<2x!tpu.dma_semaphore, #tpu.memory_space<semaphore_mem>> -> memref<1x!tpu.dma_semaphore, #tpu.memory_space<semaphore_mem>>
    %713 = tpu.memref_squeeze %712 : memref<1x!tpu.dma_semaphore, #tpu.memory_space<semaphore_mem>> -> memref<!tpu.dma_semaphore, #tpu.memory_space<semaphore_mem>>
    tpu.enqueue_dma source(%710 : memref<1x32xf32, #tpu.memory_space<any>>) target(%711 : memref<1x32xf32, #tpu.memory_space<vmem>>) target_semaphore(%713 : memref<!tpu.dma_semaphore, #tpu.memory_space<semaphore_mem>>)
    %c8_i32_552 = arith.constant 8 : i32
    %714 = arith.muli %arg0, %c8_i32_552 : i32
    %c6_i32_553 = arith.constant 6 : i32
    %715 = arith.addi %714, %c6_i32_553 : i32
    %c8_i32_554 = arith.constant 8 : i32
    %716 = arith.muli %715, %c8_i32_554 : i32
    %c3_i32_555 = arith.constant 3 : i32
    %717 = arith.addi %716, %c3_i32_555 : i32
    %718 = arith.index_cast %717 : i32 to index
    %719 = memref.load %arg1[%718] : memref<64xi32, #tpu.memory_space<smem>>
    %c0_i32_556 = arith.constant 0 : i32
    %c0_i32_557 = arith.constant 0 : i32
    %720 = tpu.memref_slice %arg2[%719, %c0_i32_557] : memref<50x32xf32, #tpu.memory_space<any>> -> memref<1x32xf32, #tpu.memory_space<any>>
    %c51_i32_558 = arith.constant 51 : i32
    %c0_i32_559 = arith.constant 0 : i32
    %721 = tpu.memref_slice %arg7[%c51_i32_558, %c0_i32_559] : memref<64x32xf32, #tpu.memory_space<vmem>> -> memref<1x32xf32, #tpu.memory_space<vmem>>
    %722 = tpu.memref_slice %arg9[%c0_i32_556] : memref<2x!tpu.dma_semaphore, #tpu.memory_space<semaphore_mem>> -> memref<1x!tpu.dma_semaphore, #tpu.memory_space<semaphore_mem>>
    %723 = tpu.memref_squeeze %722 : memref<1x!tpu.dma_semaphore, #tpu.memory_space<semaphore_mem>> -> memref<!tpu.dma_semaphore, #tpu.memory_space<semaphore_mem>>
    tpu.enqueue_dma source(%720 : memref<1x32xf32, #tpu.memory_space<any>>) target(%721 : memref<1x32xf32, #tpu.memory_space<vmem>>) target_semaphore(%723 : memref<!tpu.dma_semaphore, #tpu.memory_space<semaphore_mem>>)
    %c1_i32_560 = arith.constant 1 : i32
    %c0_i32_561 = arith.constant 0 : i32
    %724 = tpu.memref_slice %arg2[%719, %c0_i32_561] : memref<50x32xf32, #tpu.memory_space<any>> -> memref<1x32xf32, #tpu.memory_space<any>>
    %c30_i32_562 = arith.constant 30 : i32
    %c0_i32_563 = arith.constant 0 : i32
    %725 = tpu.memref_slice %arg8[%c30_i32_562, %c0_i32_563] : memref<64x32xf32, #tpu.memory_space<vmem>> -> memref<1x32xf32, #tpu.memory_space<vmem>>
    %726 = tpu.memref_slice %arg9[%c1_i32_560] : memref<2x!tpu.dma_semaphore, #tpu.memory_space<semaphore_mem>> -> memref<1x!tpu.dma_semaphore, #tpu.memory_space<semaphore_mem>>
    %727 = tpu.memref_squeeze %726 : memref<1x!tpu.dma_semaphore, #tpu.memory_space<semaphore_mem>> -> memref<!tpu.dma_semaphore, #tpu.memory_space<semaphore_mem>>
    tpu.enqueue_dma source(%724 : memref<1x32xf32, #tpu.memory_space<any>>) target(%725 : memref<1x32xf32, #tpu.memory_space<vmem>>) target_semaphore(%727 : memref<!tpu.dma_semaphore, #tpu.memory_space<semaphore_mem>>)
    %c8_i32_564 = arith.constant 8 : i32
    %728 = arith.muli %arg0, %c8_i32_564 : i32
    %c6_i32_565 = arith.constant 6 : i32
    %729 = arith.addi %728, %c6_i32_565 : i32
    %c8_i32_566 = arith.constant 8 : i32
    %730 = arith.muli %729, %c8_i32_566 : i32
    %c4_i32_567 = arith.constant 4 : i32
    %731 = arith.addi %730, %c4_i32_567 : i32
    %732 = arith.index_cast %731 : i32 to index
    %733 = memref.load %arg1[%732] : memref<64xi32, #tpu.memory_space<smem>>
    %c0_i32_568 = arith.constant 0 : i32
    %c0_i32_569 = arith.constant 0 : i32
    %734 = tpu.memref_slice %arg2[%733, %c0_i32_569] : memref<50x32xf32, #tpu.memory_space<any>> -> memref<1x32xf32, #tpu.memory_space<any>>
    %c52_i32_570 = arith.constant 52 : i32
    %c0_i32_571 = arith.constant 0 : i32
    %735 = tpu.memref_slice %arg7[%c52_i32_570, %c0_i32_571] : memref<64x32xf32, #tpu.memory_space<vmem>> -> memref<1x32xf32, #tpu.memory_space<vmem>>
    %736 = tpu.memref_slice %arg9[%c0_i32_568] : memref<2x!tpu.dma_semaphore, #tpu.memory_space<semaphore_mem>> -> memref<1x!tpu.dma_semaphore, #tpu.memory_space<semaphore_mem>>
    %737 = tpu.memref_squeeze %736 : memref<1x!tpu.dma_semaphore, #tpu.memory_space<semaphore_mem>> -> memref<!tpu.dma_semaphore, #tpu.memory_space<semaphore_mem>>
    tpu.enqueue_dma source(%734 : memref<1x32xf32, #tpu.memory_space<any>>) target(%735 : memref<1x32xf32, #tpu.memory_space<vmem>>) target_semaphore(%737 : memref<!tpu.dma_semaphore, #tpu.memory_space<semaphore_mem>>)
    %c1_i32_572 = arith.constant 1 : i32
    %c0_i32_573 = arith.constant 0 : i32
    %738 = tpu.memref_slice %arg2[%733, %c0_i32_573] : memref<50x32xf32, #tpu.memory_space<any>> -> memref<1x32xf32, #tpu.memory_space<any>>
    %c38_i32_574 = arith.constant 38 : i32
    %c0_i32_575 = arith.constant 0 : i32
    %739 = tpu.memref_slice %arg8[%c38_i32_574, %c0_i32_575] : memref<64x32xf32, #tpu.memory_space<vmem>> -> memref<1x32xf32, #tpu.memory_space<vmem>>
    %740 = tpu.memref_slice %arg9[%c1_i32_572] : memref<2x!tpu.dma_semaphore, #tpu.memory_space<semaphore_mem>> -> memref<1x!tpu.dma_semaphore, #tpu.memory_space<semaphore_mem>>
    %741 = tpu.memref_squeeze %740 : memref<1x!tpu.dma_semaphore, #tpu.memory_space<semaphore_mem>> -> memref<!tpu.dma_semaphore, #tpu.memory_space<semaphore_mem>>
    tpu.enqueue_dma source(%738 : memref<1x32xf32, #tpu.memory_space<any>>) target(%739 : memref<1x32xf32, #tpu.memory_space<vmem>>) target_semaphore(%741 : memref<!tpu.dma_semaphore, #tpu.memory_space<semaphore_mem>>)
    %c8_i32_576 = arith.constant 8 : i32
    %742 = arith.muli %arg0, %c8_i32_576 : i32
    %c6_i32_577 = arith.constant 6 : i32
    %743 = arith.addi %742, %c6_i32_577 : i32
    %c8_i32_578 = arith.constant 8 : i32
    %744 = arith.muli %743, %c8_i32_578 : i32
    %c5_i32_579 = arith.constant 5 : i32
    %745 = arith.addi %744, %c5_i32_579 : i32
    %746 = arith.index_cast %745 : i32 to index
    %747 = memref.load %arg1[%746] : memref<64xi32, #tpu.memory_space<smem>>
    %c0_i32_580 = arith.constant 0 : i32
    %c0_i32_581 = arith.constant 0 : i32
    %748 = tpu.memref_slice %arg2[%747, %c0_i32_581] : memref<50x32xf32, #tpu.memory_space<any>> -> memref<1x32xf32, #tpu.memory_space<any>>
    %c53_i32_582 = arith.constant 53 : i32
    %c0_i32_583 = arith.constant 0 : i32
    %749 = tpu.memref_slice %arg7[%c53_i32_582, %c0_i32_583] : memref<64x32xf32, #tpu.memory_space<vmem>> -> memref<1x32xf32, #tpu.memory_space<vmem>>
    %750 = tpu.memref_slice %arg9[%c0_i32_580] : memref<2x!tpu.dma_semaphore, #tpu.memory_space<semaphore_mem>> -> memref<1x!tpu.dma_semaphore, #tpu.memory_space<semaphore_mem>>
    %751 = tpu.memref_squeeze %750 : memref<1x!tpu.dma_semaphore, #tpu.memory_space<semaphore_mem>> -> memref<!tpu.dma_semaphore, #tpu.memory_space<semaphore_mem>>
    tpu.enqueue_dma source(%748 : memref<1x32xf32, #tpu.memory_space<any>>) target(%749 : memref<1x32xf32, #tpu.memory_space<vmem>>) target_semaphore(%751 : memref<!tpu.dma_semaphore, #tpu.memory_space<semaphore_mem>>)
    %c1_i32_584 = arith.constant 1 : i32
    %c0_i32_585 = arith.constant 0 : i32
    %752 = tpu.memref_slice %arg2[%747, %c0_i32_585] : memref<50x32xf32, #tpu.memory_space<any>> -> memref<1x32xf32, #tpu.memory_space<any>>
    %c46_i32_586 = arith.constant 46 : i32
    %c0_i32_587 = arith.constant 0 : i32
    %753 = tpu.memref_slice %arg8[%c46_i32_586, %c0_i32_587] : memref<64x32xf32, #tpu.memory_space<vmem>> -> memref<1x32xf32, #tpu.memory_space<vmem>>
    %754 = tpu.memref_slice %arg9[%c1_i32_584] : memref<2x!tpu.dma_semaphore, #tpu.memory_space<semaphore_mem>> -> memref<1x!tpu.dma_semaphore, #tpu.memory_space<semaphore_mem>>
    %755 = tpu.memref_squeeze %754 : memref<1x!tpu.dma_semaphore, #tpu.memory_space<semaphore_mem>> -> memref<!tpu.dma_semaphore, #tpu.memory_space<semaphore_mem>>
    tpu.enqueue_dma source(%752 : memref<1x32xf32, #tpu.memory_space<any>>) target(%753 : memref<1x32xf32, #tpu.memory_space<vmem>>) target_semaphore(%755 : memref<!tpu.dma_semaphore, #tpu.memory_space<semaphore_mem>>)
    %c8_i32_588 = arith.constant 8 : i32
    %756 = arith.muli %arg0, %c8_i32_588 : i32
    %c6_i32_589 = arith.constant 6 : i32
    %757 = arith.addi %756, %c6_i32_589 : i32
    %c8_i32_590 = arith.constant 8 : i32
    %758 = arith.muli %757, %c8_i32_590 : i32
    %c6_i32_591 = arith.constant 6 : i32
    %759 = arith.addi %758, %c6_i32_591 : i32
    %760 = arith.index_cast %759 : i32 to index
    %761 = memref.load %arg1[%760] : memref<64xi32, #tpu.memory_space<smem>>
    %c0_i32_592 = arith.constant 0 : i32
    %c0_i32_593 = arith.constant 0 : i32
    %762 = tpu.memref_slice %arg2[%761, %c0_i32_593] : memref<50x32xf32, #tpu.memory_space<any>> -> memref<1x32xf32, #tpu.memory_space<any>>
    %c54_i32 = arith.constant 54 : i32
    %c0_i32_594 = arith.constant 0 : i32
    %763 = tpu.memref_slice %arg7[%c54_i32, %c0_i32_594] : memref<64x32xf32, #tpu.memory_space<vmem>> -> memref<1x32xf32, #tpu.memory_space<vmem>>
    %764 = tpu.memref_slice %arg9[%c0_i32_592] : memref<2x!tpu.dma_semaphore, #tpu.memory_space<semaphore_mem>> -> memref<1x!tpu.dma_semaphore, #tpu.memory_space<semaphore_mem>>
    %765 = tpu.memref_squeeze %764 : memref<1x!tpu.dma_semaphore, #tpu.memory_space<semaphore_mem>> -> memref<!tpu.dma_semaphore, #tpu.memory_space<semaphore_mem>>
    tpu.enqueue_dma source(%762 : memref<1x32xf32, #tpu.memory_space<any>>) target(%763 : memref<1x32xf32, #tpu.memory_space<vmem>>) target_semaphore(%765 : memref<!tpu.dma_semaphore, #tpu.memory_space<semaphore_mem>>)
    %c1_i32_595 = arith.constant 1 : i32
    %c0_i32_596 = arith.constant 0 : i32
    %766 = tpu.memref_slice %arg2[%761, %c0_i32_596] : memref<50x32xf32, #tpu.memory_space<any>> -> memref<1x32xf32, #tpu.memory_space<any>>
    %c54_i32_597 = arith.constant 54 : i32
    %c0_i32_598 = arith.constant 0 : i32
    %767 = tpu.memref_slice %arg8[%c54_i32_597, %c0_i32_598] : memref<64x32xf32, #tpu.memory_space<vmem>> -> memref<1x32xf32, #tpu.memory_space<vmem>>
    %768 = tpu.memref_slice %arg9[%c1_i32_595] : memref<2x!tpu.dma_semaphore, #tpu.memory_space<semaphore_mem>> -> memref<1x!tpu.dma_semaphore, #tpu.memory_space<semaphore_mem>>
    %769 = tpu.memref_squeeze %768 : memref<1x!tpu.dma_semaphore, #tpu.memory_space<semaphore_mem>> -> memref<!tpu.dma_semaphore, #tpu.memory_space<semaphore_mem>>
    tpu.enqueue_dma source(%766 : memref<1x32xf32, #tpu.memory_space<any>>) target(%767 : memref<1x32xf32, #tpu.memory_space<vmem>>) target_semaphore(%769 : memref<!tpu.dma_semaphore, #tpu.memory_space<semaphore_mem>>)
    %c8_i32_599 = arith.constant 8 : i32
    %770 = arith.muli %arg0, %c8_i32_599 : i32
    %c6_i32_600 = arith.constant 6 : i32
    %771 = arith.addi %770, %c6_i32_600 : i32
    %c8_i32_601 = arith.constant 8 : i32
    %772 = arith.muli %771, %c8_i32_601 : i32
    %c7_i32_602 = arith.constant 7 : i32
    %773 = arith.addi %772, %c7_i32_602 : i32
    %774 = arith.index_cast %773 : i32 to index
    %775 = memref.load %arg1[%774] : memref<64xi32, #tpu.memory_space<smem>>
    %c0_i32_603 = arith.constant 0 : i32
    %c0_i32_604 = arith.constant 0 : i32
    %776 = tpu.memref_slice %arg2[%775, %c0_i32_604] : memref<50x32xf32, #tpu.memory_space<any>> -> memref<1x32xf32, #tpu.memory_space<any>>
    %c55_i32 = arith.constant 55 : i32
    %c0_i32_605 = arith.constant 0 : i32
    %777 = tpu.memref_slice %arg7[%c55_i32, %c0_i32_605] : memref<64x32xf32, #tpu.memory_space<vmem>> -> memref<1x32xf32, #tpu.memory_space<vmem>>
    %778 = tpu.memref_slice %arg9[%c0_i32_603] : memref<2x!tpu.dma_semaphore, #tpu.memory_space<semaphore_mem>> -> memref<1x!tpu.dma_semaphore, #tpu.memory_space<semaphore_mem>>
    %779 = tpu.memref_squeeze %778 : memref<1x!tpu.dma_semaphore, #tpu.memory_space<semaphore_mem>> -> memref<!tpu.dma_semaphore, #tpu.memory_space<semaphore_mem>>
    tpu.enqueue_dma source(%776 : memref<1x32xf32, #tpu.memory_space<any>>) target(%777 : memref<1x32xf32, #tpu.memory_space<vmem>>) target_semaphore(%779 : memref<!tpu.dma_semaphore, #tpu.memory_space<semaphore_mem>>)
    %c1_i32_606 = arith.constant 1 : i32
    %c0_i32_607 = arith.constant 0 : i32
    %780 = tpu.memref_slice %arg2[%775, %c0_i32_607] : memref<50x32xf32, #tpu.memory_space<any>> -> memref<1x32xf32, #tpu.memory_space<any>>
    %c62_i32 = arith.constant 62 : i32
    %c0_i32_608 = arith.constant 0 : i32
    %781 = tpu.memref_slice %arg8[%c62_i32, %c0_i32_608] : memref<64x32xf32, #tpu.memory_space<vmem>> -> memref<1x32xf32, #tpu.memory_space<vmem>>
    %782 = tpu.memref_slice %arg9[%c1_i32_606] : memref<2x!tpu.dma_semaphore, #tpu.memory_space<semaphore_mem>> -> memref<1x!tpu.dma_semaphore, #tpu.memory_space<semaphore_mem>>
    %783 = tpu.memref_squeeze %782 : memref<1x!tpu.dma_semaphore, #tpu.memory_space<semaphore_mem>> -> memref<!tpu.dma_semaphore, #tpu.memory_space<semaphore_mem>>
    tpu.enqueue_dma source(%780 : memref<1x32xf32, #tpu.memory_space<any>>) target(%781 : memref<1x32xf32, #tpu.memory_space<vmem>>) target_semaphore(%783 : memref<!tpu.dma_semaphore, #tpu.memory_space<semaphore_mem>>)
    %c8_i32_609 = arith.constant 8 : i32
    %784 = arith.muli %arg0, %c8_i32_609 : i32
    %c7_i32_610 = arith.constant 7 : i32
    %785 = arith.addi %784, %c7_i32_610 : i32
    %c8_i32_611 = arith.constant 8 : i32
    %786 = arith.muli %785, %c8_i32_611 : i32
    %c0_i32_612 = arith.constant 0 : i32
    %787 = arith.addi %786, %c0_i32_612 : i32
    %788 = arith.index_cast %787 : i32 to index
    %789 = memref.load %arg1[%788] : memref<64xi32, #tpu.memory_space<smem>>
    %c0_i32_613 = arith.constant 0 : i32
    %c0_i32_614 = arith.constant 0 : i32
    %790 = tpu.memref_slice %arg2[%789, %c0_i32_614] : memref<50x32xf32, #tpu.memory_space<any>> -> memref<1x32xf32, #tpu.memory_space<any>>
    %c56_i32_615 = arith.constant 56 : i32
    %c0_i32_616 = arith.constant 0 : i32
    %791 = tpu.memref_slice %arg7[%c56_i32_615, %c0_i32_616] : memref<64x32xf32, #tpu.memory_space<vmem>> -> memref<1x32xf32, #tpu.memory_space<vmem>>
    %792 = tpu.memref_slice %arg9[%c0_i32_613] : memref<2x!tpu.dma_semaphore, #tpu.memory_space<semaphore_mem>> -> memref<1x!tpu.dma_semaphore, #tpu.memory_space<semaphore_mem>>
    %793 = tpu.memref_squeeze %792 : memref<1x!tpu.dma_semaphore, #tpu.memory_space<semaphore_mem>> -> memref<!tpu.dma_semaphore, #tpu.memory_space<semaphore_mem>>
    tpu.enqueue_dma source(%790 : memref<1x32xf32, #tpu.memory_space<any>>) target(%791 : memref<1x32xf32, #tpu.memory_space<vmem>>) target_semaphore(%793 : memref<!tpu.dma_semaphore, #tpu.memory_space<semaphore_mem>>)
    %c1_i32_617 = arith.constant 1 : i32
    %c0_i32_618 = arith.constant 0 : i32
    %794 = tpu.memref_slice %arg2[%789, %c0_i32_618] : memref<50x32xf32, #tpu.memory_space<any>> -> memref<1x32xf32, #tpu.memory_space<any>>
    %c7_i32_619 = arith.constant 7 : i32
    %c0_i32_620 = arith.constant 0 : i32
    %795 = tpu.memref_slice %arg8[%c7_i32_619, %c0_i32_620] : memref<64x32xf32, #tpu.memory_space<vmem>> -> memref<1x32xf32, #tpu.memory_space<vmem>>
    %796 = tpu.memref_slice %arg9[%c1_i32_617] : memref<2x!tpu.dma_semaphore, #tpu.memory_space<semaphore_mem>> -> memref<1x!tpu.dma_semaphore, #tpu.memory_space<semaphore_mem>>
    %797 = tpu.memref_squeeze %796 : memref<1x!tpu.dma_semaphore, #tpu.memory_space<semaphore_mem>> -> memref<!tpu.dma_semaphore, #tpu.memory_space<semaphore_mem>>
    tpu.enqueue_dma source(%794 : memref<1x32xf32, #tpu.memory_space<any>>) target(%795 : memref<1x32xf32, #tpu.memory_space<vmem>>) target_semaphore(%797 : memref<!tpu.dma_semaphore, #tpu.memory_space<semaphore_mem>>)
    %c8_i32_621 = arith.constant 8 : i32
    %798 = arith.muli %arg0, %c8_i32_621 : i32
    %c7_i32_622 = arith.constant 7 : i32
    %799 = arith.addi %798, %c7_i32_622 : i32
    %c8_i32_623 = arith.constant 8 : i32
    %800 = arith.muli %799, %c8_i32_623 : i32
    %c1_i32_624 = arith.constant 1 : i32
    %801 = arith.addi %800, %c1_i32_624 : i32
    %802 = arith.index_cast %801 : i32 to index
    %803 = memref.load %arg1[%802] : memref<64xi32, #tpu.memory_space<smem>>
    %c0_i32_625 = arith.constant 0 : i32
    %c0_i32_626 = arith.constant 0 : i32
    %804 = tpu.memref_slice %arg2[%803, %c0_i32_626] : memref<50x32xf32, #tpu.memory_space<any>> -> memref<1x32xf32, #tpu.memory_space<any>>
    %c57_i32_627 = arith.constant 57 : i32
    %c0_i32_628 = arith.constant 0 : i32
    %805 = tpu.memref_slice %arg7[%c57_i32_627, %c0_i32_628] : memref<64x32xf32, #tpu.memory_space<vmem>> -> memref<1x32xf32, #tpu.memory_space<vmem>>
    %806 = tpu.memref_slice %arg9[%c0_i32_625] : memref<2x!tpu.dma_semaphore, #tpu.memory_space<semaphore_mem>> -> memref<1x!tpu.dma_semaphore, #tpu.memory_space<semaphore_mem>>
    %807 = tpu.memref_squeeze %806 : memref<1x!tpu.dma_semaphore, #tpu.memory_space<semaphore_mem>> -> memref<!tpu.dma_semaphore, #tpu.memory_space<semaphore_mem>>
    tpu.enqueue_dma source(%804 : memref<1x32xf32, #tpu.memory_space<any>>) target(%805 : memref<1x32xf32, #tpu.memory_space<vmem>>) target_semaphore(%807 : memref<!tpu.dma_semaphore, #tpu.memory_space<semaphore_mem>>)
    %c1_i32_629 = arith.constant 1 : i32
    %c0_i32_630 = arith.constant 0 : i32
    %808 = tpu.memref_slice %arg2[%803, %c0_i32_630] : memref<50x32xf32, #tpu.memory_space<any>> -> memref<1x32xf32, #tpu.memory_space<any>>
    %c15_i32_631 = arith.constant 15 : i32
    %c0_i32_632 = arith.constant 0 : i32
    %809 = tpu.memref_slice %arg8[%c15_i32_631, %c0_i32_632] : memref<64x32xf32, #tpu.memory_space<vmem>> -> memref<1x32xf32, #tpu.memory_space<vmem>>
    %810 = tpu.memref_slice %arg9[%c1_i32_629] : memref<2x!tpu.dma_semaphore, #tpu.memory_space<semaphore_mem>> -> memref<1x!tpu.dma_semaphore, #tpu.memory_space<semaphore_mem>>
    %811 = tpu.memref_squeeze %810 : memref<1x!tpu.dma_semaphore, #tpu.memory_space<semaphore_mem>> -> memref<!tpu.dma_semaphore, #tpu.memory_space<semaphore_mem>>
    tpu.enqueue_dma source(%808 : memref<1x32xf32, #tpu.memory_space<any>>) target(%809 : memref<1x32xf32, #tpu.memory_space<vmem>>) target_semaphore(%811 : memref<!tpu.dma_semaphore, #tpu.memory_space<semaphore_mem>>)
    %c8_i32_633 = arith.constant 8 : i32
    %812 = arith.muli %arg0, %c8_i32_633 : i32
    %c7_i32_634 = arith.constant 7 : i32
    %813 = arith.addi %812, %c7_i32_634 : i32
    %c8_i32_635 = arith.constant 8 : i32
    %814 = arith.muli %813, %c8_i32_635 : i32
    %c2_i32_636 = arith.constant 2 : i32
    %815 = arith.addi %814, %c2_i32_636 : i32
    %816 = arith.index_cast %815 : i32 to index
    %817 = memref.load %arg1[%816] : memref<64xi32, #tpu.memory_space<smem>>
    %c0_i32_637 = arith.constant 0 : i32
    %c0_i32_638 = arith.constant 0 : i32
    %818 = tpu.memref_slice %arg2[%817, %c0_i32_638] : memref<50x32xf32, #tpu.memory_space<any>> -> memref<1x32xf32, #tpu.memory_space<any>>
    %c58_i32_639 = arith.constant 58 : i32
    %c0_i32_640 = arith.constant 0 : i32
    %819 = tpu.memref_slice %arg7[%c58_i32_639, %c0_i32_640] : memref<64x32xf32, #tpu.memory_space<vmem>> -> memref<1x32xf32, #tpu.memory_space<vmem>>
    %820 = tpu.memref_slice %arg9[%c0_i32_637] : memref<2x!tpu.dma_semaphore, #tpu.memory_space<semaphore_mem>> -> memref<1x!tpu.dma_semaphore, #tpu.memory_space<semaphore_mem>>
    %821 = tpu.memref_squeeze %820 : memref<1x!tpu.dma_semaphore, #tpu.memory_space<semaphore_mem>> -> memref<!tpu.dma_semaphore, #tpu.memory_space<semaphore_mem>>
    tpu.enqueue_dma source(%818 : memref<1x32xf32, #tpu.memory_space<any>>) target(%819 : memref<1x32xf32, #tpu.memory_space<vmem>>) target_semaphore(%821 : memref<!tpu.dma_semaphore, #tpu.memory_space<semaphore_mem>>)
    %c1_i32_641 = arith.constant 1 : i32
    %c0_i32_642 = arith.constant 0 : i32
    %822 = tpu.memref_slice %arg2[%817, %c0_i32_642] : memref<50x32xf32, #tpu.memory_space<any>> -> memref<1x32xf32, #tpu.memory_space<any>>
    %c23_i32_643 = arith.constant 23 : i32
    %c0_i32_644 = arith.constant 0 : i32
    %823 = tpu.memref_slice %arg8[%c23_i32_643, %c0_i32_644] : memref<64x32xf32, #tpu.memory_space<vmem>> -> memref<1x32xf32, #tpu.memory_space<vmem>>
    %824 = tpu.memref_slice %arg9[%c1_i32_641] : memref<2x!tpu.dma_semaphore, #tpu.memory_space<semaphore_mem>> -> memref<1x!tpu.dma_semaphore, #tpu.memory_space<semaphore_mem>>
    %825 = tpu.memref_squeeze %824 : memref<1x!tpu.dma_semaphore, #tpu.memory_space<semaphore_mem>> -> memref<!tpu.dma_semaphore, #tpu.memory_space<semaphore_mem>>
    tpu.enqueue_dma source(%822 : memref<1x32xf32, #tpu.memory_space<any>>) target(%823 : memref<1x32xf32, #tpu.memory_space<vmem>>) target_semaphore(%825 : memref<!tpu.dma_semaphore, #tpu.memory_space<semaphore_mem>>)
    %c8_i32_645 = arith.constant 8 : i32
    %826 = arith.muli %arg0, %c8_i32_645 : i32
    %c7_i32_646 = arith.constant 7 : i32
    %827 = arith.addi %826, %c7_i32_646 : i32
    %c8_i32_647 = arith.constant 8 : i32
    %828 = arith.muli %827, %c8_i32_647 : i32
    %c3_i32_648 = arith.constant 3 : i32
    %829 = arith.addi %828, %c3_i32_648 : i32
    %830 = arith.index_cast %829 : i32 to index
    %831 = memref.load %arg1[%830] : memref<64xi32, #tpu.memory_space<smem>>
    %c0_i32_649 = arith.constant 0 : i32
    %c0_i32_650 = arith.constant 0 : i32
    %832 = tpu.memref_slice %arg2[%831, %c0_i32_650] : memref<50x32xf32, #tpu.memory_space<any>> -> memref<1x32xf32, #tpu.memory_space<any>>
    %c59_i32_651 = arith.constant 59 : i32
    %c0_i32_652 = arith.constant 0 : i32
    %833 = tpu.memref_slice %arg7[%c59_i32_651, %c0_i32_652] : memref<64x32xf32, #tpu.memory_space<vmem>> -> memref<1x32xf32, #tpu.memory_space<vmem>>
    %834 = tpu.memref_slice %arg9[%c0_i32_649] : memref<2x!tpu.dma_semaphore, #tpu.memory_space<semaphore_mem>> -> memref<1x!tpu.dma_semaphore, #tpu.memory_space<semaphore_mem>>
    %835 = tpu.memref_squeeze %834 : memref<1x!tpu.dma_semaphore, #tpu.memory_space<semaphore_mem>> -> memref<!tpu.dma_semaphore, #tpu.memory_space<semaphore_mem>>
    tpu.enqueue_dma source(%832 : memref<1x32xf32, #tpu.memory_space<any>>) target(%833 : memref<1x32xf32, #tpu.memory_space<vmem>>) target_semaphore(%835 : memref<!tpu.dma_semaphore, #tpu.memory_space<semaphore_mem>>)
    %c1_i32_653 = arith.constant 1 : i32
    %c0_i32_654 = arith.constant 0 : i32
    %836 = tpu.memref_slice %arg2[%831, %c0_i32_654] : memref<50x32xf32, #tpu.memory_space<any>> -> memref<1x32xf32, #tpu.memory_space<any>>
    %c31_i32_655 = arith.constant 31 : i32
    %c0_i32_656 = arith.constant 0 : i32
    %837 = tpu.memref_slice %arg8[%c31_i32_655, %c0_i32_656] : memref<64x32xf32, #tpu.memory_space<vmem>> -> memref<1x32xf32, #tpu.memory_space<vmem>>
    %838 = tpu.memref_slice %arg9[%c1_i32_653] : memref<2x!tpu.dma_semaphore, #tpu.memory_space<semaphore_mem>> -> memref<1x!tpu.dma_semaphore, #tpu.memory_space<semaphore_mem>>
    %839 = tpu.memref_squeeze %838 : memref<1x!tpu.dma_semaphore, #tpu.memory_space<semaphore_mem>> -> memref<!tpu.dma_semaphore, #tpu.memory_space<semaphore_mem>>
    tpu.enqueue_dma source(%836 : memref<1x32xf32, #tpu.memory_space<any>>) target(%837 : memref<1x32xf32, #tpu.memory_space<vmem>>) target_semaphore(%839 : memref<!tpu.dma_semaphore, #tpu.memory_space<semaphore_mem>>)
    %c8_i32_657 = arith.constant 8 : i32
    %840 = arith.muli %arg0, %c8_i32_657 : i32
    %c7_i32_658 = arith.constant 7 : i32
    %841 = arith.addi %840, %c7_i32_658 : i32
    %c8_i32_659 = arith.constant 8 : i32
    %842 = arith.muli %841, %c8_i32_659 : i32
    %c4_i32_660 = arith.constant 4 : i32
    %843 = arith.addi %842, %c4_i32_660 : i32
    %844 = arith.index_cast %843 : i32 to index
    %845 = memref.load %arg1[%844] : memref<64xi32, #tpu.memory_space<smem>>
    %c0_i32_661 = arith.constant 0 : i32
    %c0_i32_662 = arith.constant 0 : i32
    %846 = tpu.memref_slice %arg2[%845, %c0_i32_662] : memref<50x32xf32, #tpu.memory_space<any>> -> memref<1x32xf32, #tpu.memory_space<any>>
    %c60_i32_663 = arith.constant 60 : i32
    %c0_i32_664 = arith.constant 0 : i32
    %847 = tpu.memref_slice %arg7[%c60_i32_663, %c0_i32_664] : memref<64x32xf32, #tpu.memory_space<vmem>> -> memref<1x32xf32, #tpu.memory_space<vmem>>
    %848 = tpu.memref_slice %arg9[%c0_i32_661] : memref<2x!tpu.dma_semaphore, #tpu.memory_space<semaphore_mem>> -> memref<1x!tpu.dma_semaphore, #tpu.memory_space<semaphore_mem>>
    %849 = tpu.memref_squeeze %848 : memref<1x!tpu.dma_semaphore, #tpu.memory_space<semaphore_mem>> -> memref<!tpu.dma_semaphore, #tpu.memory_space<semaphore_mem>>
    tpu.enqueue_dma source(%846 : memref<1x32xf32, #tpu.memory_space<any>>) target(%847 : memref<1x32xf32, #tpu.memory_space<vmem>>) target_semaphore(%849 : memref<!tpu.dma_semaphore, #tpu.memory_space<semaphore_mem>>)
    %c1_i32_665 = arith.constant 1 : i32
    %c0_i32_666 = arith.constant 0 : i32
    %850 = tpu.memref_slice %arg2[%845, %c0_i32_666] : memref<50x32xf32, #tpu.memory_space<any>> -> memref<1x32xf32, #tpu.memory_space<any>>
    %c39_i32_667 = arith.constant 39 : i32
    %c0_i32_668 = arith.constant 0 : i32
    %851 = tpu.memref_slice %arg8[%c39_i32_667, %c0_i32_668] : memref<64x32xf32, #tpu.memory_space<vmem>> -> memref<1x32xf32, #tpu.memory_space<vmem>>
    %852 = tpu.memref_slice %arg9[%c1_i32_665] : memref<2x!tpu.dma_semaphore, #tpu.memory_space<semaphore_mem>> -> memref<1x!tpu.dma_semaphore, #tpu.memory_space<semaphore_mem>>
    %853 = tpu.memref_squeeze %852 : memref<1x!tpu.dma_semaphore, #tpu.memory_space<semaphore_mem>> -> memref<!tpu.dma_semaphore, #tpu.memory_space<semaphore_mem>>
    tpu.enqueue_dma source(%850 : memref<1x32xf32, #tpu.memory_space<any>>) target(%851 : memref<1x32xf32, #tpu.memory_space<vmem>>) target_semaphore(%853 : memref<!tpu.dma_semaphore, #tpu.memory_space<semaphore_mem>>)
    %c8_i32_669 = arith.constant 8 : i32
    %854 = arith.muli %arg0, %c8_i32_669 : i32
    %c7_i32_670 = arith.constant 7 : i32
    %855 = arith.addi %854, %c7_i32_670 : i32
    %c8_i32_671 = arith.constant 8 : i32
    %856 = arith.muli %855, %c8_i32_671 : i32
    %c5_i32_672 = arith.constant 5 : i32
    %857 = arith.addi %856, %c5_i32_672 : i32
    %858 = arith.index_cast %857 : i32 to index
    %859 = memref.load %arg1[%858] : memref<64xi32, #tpu.memory_space<smem>>
    %c0_i32_673 = arith.constant 0 : i32
    %c0_i32_674 = arith.constant 0 : i32
    %860 = tpu.memref_slice %arg2[%859, %c0_i32_674] : memref<50x32xf32, #tpu.memory_space<any>> -> memref<1x32xf32, #tpu.memory_space<any>>
    %c61_i32_675 = arith.constant 61 : i32
    %c0_i32_676 = arith.constant 0 : i32
    %861 = tpu.memref_slice %arg7[%c61_i32_675, %c0_i32_676] : memref<64x32xf32, #tpu.memory_space<vmem>> -> memref<1x32xf32, #tpu.memory_space<vmem>>
    %862 = tpu.memref_slice %arg9[%c0_i32_673] : memref<2x!tpu.dma_semaphore, #tpu.memory_space<semaphore_mem>> -> memref<1x!tpu.dma_semaphore, #tpu.memory_space<semaphore_mem>>
    %863 = tpu.memref_squeeze %862 : memref<1x!tpu.dma_semaphore, #tpu.memory_space<semaphore_mem>> -> memref<!tpu.dma_semaphore, #tpu.memory_space<semaphore_mem>>
    tpu.enqueue_dma source(%860 : memref<1x32xf32, #tpu.memory_space<any>>) target(%861 : memref<1x32xf32, #tpu.memory_space<vmem>>) target_semaphore(%863 : memref<!tpu.dma_semaphore, #tpu.memory_space<semaphore_mem>>)
    %c1_i32_677 = arith.constant 1 : i32
    %c0_i32_678 = arith.constant 0 : i32
    %864 = tpu.memref_slice %arg2[%859, %c0_i32_678] : memref<50x32xf32, #tpu.memory_space<any>> -> memref<1x32xf32, #tpu.memory_space<any>>
    %c47_i32_679 = arith.constant 47 : i32
    %c0_i32_680 = arith.constant 0 : i32
    %865 = tpu.memref_slice %arg8[%c47_i32_679, %c0_i32_680] : memref<64x32xf32, #tpu.memory_space<vmem>> -> memref<1x32xf32, #tpu.memory_space<vmem>>
    %866 = tpu.memref_slice %arg9[%c1_i32_677] : memref<2x!tpu.dma_semaphore, #tpu.memory_space<semaphore_mem>> -> memref<1x!tpu.dma_semaphore, #tpu.memory_space<semaphore_mem>>
    %867 = tpu.memref_squeeze %866 : memref<1x!tpu.dma_semaphore, #tpu.memory_space<semaphore_mem>> -> memref<!tpu.dma_semaphore, #tpu.memory_space<semaphore_mem>>
    tpu.enqueue_dma source(%864 : memref<1x32xf32, #tpu.memory_space<any>>) target(%865 : memref<1x32xf32, #tpu.memory_space<vmem>>) target_semaphore(%867 : memref<!tpu.dma_semaphore, #tpu.memory_space<semaphore_mem>>)
    %c8_i32_681 = arith.constant 8 : i32
    %868 = arith.muli %arg0, %c8_i32_681 : i32
    %c7_i32_682 = arith.constant 7 : i32
    %869 = arith.addi %868, %c7_i32_682 : i32
    %c8_i32_683 = arith.constant 8 : i32
    %870 = arith.muli %869, %c8_i32_683 : i32
    %c6_i32_684 = arith.constant 6 : i32
    %871 = arith.addi %870, %c6_i32_684 : i32
    %872 = arith.index_cast %871 : i32 to index
    %873 = memref.load %arg1[%872] : memref<64xi32, #tpu.memory_space<smem>>
    %c0_i32_685 = arith.constant 0 : i32
    %c0_i32_686 = arith.constant 0 : i32
    %874 = tpu.memref_slice %arg2[%873, %c0_i32_686] : memref<50x32xf32, #tpu.memory_space<any>> -> memref<1x32xf32, #tpu.memory_space<any>>
    %c62_i32_687 = arith.constant 62 : i32
    %c0_i32_688 = arith.constant 0 : i32
    %875 = tpu.memref_slice %arg7[%c62_i32_687, %c0_i32_688] : memref<64x32xf32, #tpu.memory_space<vmem>> -> memref<1x32xf32, #tpu.memory_space<vmem>>
    %876 = tpu.memref_slice %arg9[%c0_i32_685] : memref<2x!tpu.dma_semaphore, #tpu.memory_space<semaphore_mem>> -> memref<1x!tpu.dma_semaphore, #tpu.memory_space<semaphore_mem>>
    %877 = tpu.memref_squeeze %876 : memref<1x!tpu.dma_semaphore, #tpu.memory_space<semaphore_mem>> -> memref<!tpu.dma_semaphore, #tpu.memory_space<semaphore_mem>>
    tpu.enqueue_dma source(%874 : memref<1x32xf32, #tpu.memory_space<any>>) target(%875 : memref<1x32xf32, #tpu.memory_space<vmem>>) target_semaphore(%877 : memref<!tpu.dma_semaphore, #tpu.memory_space<semaphore_mem>>)
    %c1_i32_689 = arith.constant 1 : i32
    %c0_i32_690 = arith.constant 0 : i32
    %878 = tpu.memref_slice %arg2[%873, %c0_i32_690] : memref<50x32xf32, #tpu.memory_space<any>> -> memref<1x32xf32, #tpu.memory_space<any>>
    %c55_i32_691 = arith.constant 55 : i32
    %c0_i32_692 = arith.constant 0 : i32
    %879 = tpu.memref_slice %arg8[%c55_i32_691, %c0_i32_692] : memref<64x32xf32, #tpu.memory_space<vmem>> -> memref<1x32xf32, #tpu.memory_space<vmem>>
    %880 = tpu.memref_slice %arg9[%c1_i32_689] : memref<2x!tpu.dma_semaphore, #tpu.memory_space<semaphore_mem>> -> memref<1x!tpu.dma_semaphore, #tpu.memory_space<semaphore_mem>>
    %881 = tpu.memref_squeeze %880 : memref<1x!tpu.dma_semaphore, #tpu.memory_space<semaphore_mem>> -> memref<!tpu.dma_semaphore, #tpu.memory_space<semaphore_mem>>
    tpu.enqueue_dma source(%878 : memref<1x32xf32, #tpu.memory_space<any>>) target(%879 : memref<1x32xf32, #tpu.memory_space<vmem>>) target_semaphore(%881 : memref<!tpu.dma_semaphore, #tpu.memory_space<semaphore_mem>>)
    %c8_i32_693 = arith.constant 8 : i32
    %882 = arith.muli %arg0, %c8_i32_693 : i32
    %c7_i32_694 = arith.constant 7 : i32
    %883 = arith.addi %882, %c7_i32_694 : i32
    %c8_i32_695 = arith.constant 8 : i32
    %884 = arith.muli %883, %c8_i32_695 : i32
    %c7_i32_696 = arith.constant 7 : i32
    %885 = arith.addi %884, %c7_i32_696 : i32
    %886 = arith.index_cast %885 : i32 to index
    %887 = memref.load %arg1[%886] : memref<64xi32, #tpu.memory_space<smem>>
    %c0_i32_697 = arith.constant 0 : i32
    %c0_i32_698 = arith.constant 0 : i32
    %888 = tpu.memref_slice %arg2[%887, %c0_i32_698] : memref<50x32xf32, #tpu.memory_space<any>> -> memref<1x32xf32, #tpu.memory_space<any>>
    %c63_i32 = arith.constant 63 : i32
    %c0_i32_699 = arith.constant 0 : i32
    %889 = tpu.memref_slice %arg7[%c63_i32, %c0_i32_699] : memref<64x32xf32, #tpu.memory_space<vmem>> -> memref<1x32xf32, #tpu.memory_space<vmem>>
    %890 = tpu.memref_slice %arg9[%c0_i32_697] : memref<2x!tpu.dma_semaphore, #tpu.memory_space<semaphore_mem>> -> memref<1x!tpu.dma_semaphore, #tpu.memory_space<semaphore_mem>>
    %891 = tpu.memref_squeeze %890 : memref<1x!tpu.dma_semaphore, #tpu.memory_space<semaphore_mem>> -> memref<!tpu.dma_semaphore, #tpu.memory_space<semaphore_mem>>
    tpu.enqueue_dma source(%888 : memref<1x32xf32, #tpu.memory_space<any>>) target(%889 : memref<1x32xf32, #tpu.memory_space<vmem>>) target_semaphore(%891 : memref<!tpu.dma_semaphore, #tpu.memory_space<semaphore_mem>>)
    %c1_i32_700 = arith.constant 1 : i32
    %c0_i32_701 = arith.constant 0 : i32
    %892 = tpu.memref_slice %arg2[%887, %c0_i32_701] : memref<50x32xf32, #tpu.memory_space<any>> -> memref<1x32xf32, #tpu.memory_space<any>>
    %c63_i32_702 = arith.constant 63 : i32
    %c0_i32_703 = arith.constant 0 : i32
    %893 = tpu.memref_slice %arg8[%c63_i32_702, %c0_i32_703] : memref<64x32xf32, #tpu.memory_space<vmem>> -> memref<1x32xf32, #tpu.memory_space<vmem>>
    %894 = tpu.memref_slice %arg9[%c1_i32_700] : memref<2x!tpu.dma_semaphore, #tpu.memory_space<semaphore_mem>> -> memref<1x!tpu.dma_semaphore, #tpu.memory_space<semaphore_mem>>
    %895 = tpu.memref_squeeze %894 : memref<1x!tpu.dma_semaphore, #tpu.memory_space<semaphore_mem>> -> memref<!tpu.dma_semaphore, #tpu.memory_space<semaphore_mem>>
    tpu.enqueue_dma source(%892 : memref<1x32xf32, #tpu.memory_space<any>>) target(%893 : memref<1x32xf32, #tpu.memory_space<vmem>>) target_semaphore(%895 : memref<!tpu.dma_semaphore, #tpu.memory_space<semaphore_mem>>)
    %c0_i32_704 = arith.constant 0 : i32
    %c0_i32_705 = arith.constant 0 : i32
    %896 = tpu.memref_slice %arg2[%5, %c0_i32_705] : memref<50x32xf32, #tpu.memory_space<any>> -> memref<1x32xf32, #tpu.memory_space<any>>
    %c0_i32_706 = arith.constant 0 : i32
    %c0_i32_707 = arith.constant 0 : i32
    %897 = tpu.memref_slice %arg7[%c0_i32_706, %c0_i32_707] : memref<64x32xf32, #tpu.memory_space<vmem>> -> memref<1x32xf32, #tpu.memory_space<vmem>>
    %898 = tpu.memref_slice %arg9[%c0_i32_704] : memref<2x!tpu.dma_semaphore, #tpu.memory_space<semaphore_mem>> -> memref<1x!tpu.dma_semaphore, #tpu.memory_space<semaphore_mem>>
    %899 = tpu.memref_squeeze %898 : memref<1x!tpu.dma_semaphore, #tpu.memory_space<semaphore_mem>> -> memref<!tpu.dma_semaphore, #tpu.memory_space<semaphore_mem>>
    tpu.wait_dma2 semaphore(%899 : memref<!tpu.dma_semaphore, #tpu.memory_space<semaphore_mem>>) src(%896 : memref<1x32xf32, #tpu.memory_space<any>>) dst(%897 : memref<1x32xf32, #tpu.memory_space<vmem>>)
    %c1_i32_708 = arith.constant 1 : i32
    %c0_i32_709 = arith.constant 0 : i32
    %900 = tpu.memref_slice %arg2[%5, %c0_i32_709] : memref<50x32xf32, #tpu.memory_space<any>> -> memref<1x32xf32, #tpu.memory_space<any>>
    %c0_i32_710 = arith.constant 0 : i32
    %c0_i32_711 = arith.constant 0 : i32
    %901 = tpu.memref_slice %arg8[%c0_i32_710, %c0_i32_711] : memref<64x32xf32, #tpu.memory_space<vmem>> -> memref<1x32xf32, #tpu.memory_space<vmem>>
    %902 = tpu.memref_slice %arg9[%c1_i32_708] : memref<2x!tpu.dma_semaphore, #tpu.memory_space<semaphore_mem>> -> memref<1x!tpu.dma_semaphore, #tpu.memory_space<semaphore_mem>>
    %903 = tpu.memref_squeeze %902 : memref<1x!tpu.dma_semaphore, #tpu.memory_space<semaphore_mem>> -> memref<!tpu.dma_semaphore, #tpu.memory_space<semaphore_mem>>
    tpu.wait_dma2 semaphore(%903 : memref<!tpu.dma_semaphore, #tpu.memory_space<semaphore_mem>>) src(%900 : memref<1x32xf32, #tpu.memory_space<any>>) dst(%901 : memref<1x32xf32, #tpu.memory_space<vmem>>)
    %c0_i32_712 = arith.constant 0 : i32
    %c0_i32_713 = arith.constant 0 : i32
    %904 = tpu.memref_slice %arg2[%19, %c0_i32_713] : memref<50x32xf32, #tpu.memory_space<any>> -> memref<1x32xf32, #tpu.memory_space<any>>
    %c1_i32_714 = arith.constant 1 : i32
    %c0_i32_715 = arith.constant 0 : i32
    %905 = tpu.memref_slice %arg7[%c1_i32_714, %c0_i32_715] : memref<64x32xf32, #tpu.memory_space<vmem>> -> memref<1x32xf32, #tpu.memory_space<vmem>>
    %906 = tpu.memref_slice %arg9[%c0_i32_712] : memref<2x!tpu.dma_semaphore, #tpu.memory_space<semaphore_mem>> -> memref<1x!tpu.dma_semaphore, #tpu.memory_space<semaphore_mem>>
    %907 = tpu.memref_squeeze %906 : memref<1x!tpu.dma_semaphore, #tpu.memory_space<semaphore_mem>> -> memref<!tpu.dma_semaphore, #tpu.memory_space<semaphore_mem>>
    tpu.wait_dma2 semaphore(%907 : memref<!tpu.dma_semaphore, #tpu.memory_space<semaphore_mem>>) src(%904 : memref<1x32xf32, #tpu.memory_space<any>>) dst(%905 : memref<1x32xf32, #tpu.memory_space<vmem>>)
    %c1_i32_716 = arith.constant 1 : i32
    %c0_i32_717 = arith.constant 0 : i32
    %908 = tpu.memref_slice %arg2[%19, %c0_i32_717] : memref<50x32xf32, #tpu.memory_space<any>> -> memref<1x32xf32, #tpu.memory_space<any>>
    %c8_i32_718 = arith.constant 8 : i32
    %c0_i32_719 = arith.constant 0 : i32
    %909 = tpu.memref_slice %arg8[%c8_i32_718, %c0_i32_719] : memref<64x32xf32, #tpu.memory_space<vmem>> -> memref<1x32xf32, #tpu.memory_space<vmem>>
    %910 = tpu.memref_slice %arg9[%c1_i32_716] : memref<2x!tpu.dma_semaphore, #tpu.memory_space<semaphore_mem>> -> memref<1x!tpu.dma_semaphore, #tpu.memory_space<semaphore_mem>>
    %911 = tpu.memref_squeeze %910 : memref<1x!tpu.dma_semaphore, #tpu.memory_space<semaphore_mem>> -> memref<!tpu.dma_semaphore, #tpu.memory_space<semaphore_mem>>
    tpu.wait_dma2 semaphore(%911 : memref<!tpu.dma_semaphore, #tpu.memory_space<semaphore_mem>>) src(%908 : memref<1x32xf32, #tpu.memory_space<any>>) dst(%909 : memref<1x32xf32, #tpu.memory_space<vmem>>)
    %c0_i32_720 = arith.constant 0 : i32
    %c0_i32_721 = arith.constant 0 : i32
    %912 = tpu.memref_slice %arg2[%33, %c0_i32_721] : memref<50x32xf32, #tpu.memory_space<any>> -> memref<1x32xf32, #tpu.memory_space<any>>
    %c2_i32_722 = arith.constant 2 : i32
    %c0_i32_723 = arith.constant 0 : i32
    %913 = tpu.memref_slice %arg7[%c2_i32_722, %c0_i32_723] : memref<64x32xf32, #tpu.memory_space<vmem>> -> memref<1x32xf32, #tpu.memory_space<vmem>>
    %914 = tpu.memref_slice %arg9[%c0_i32_720] : memref<2x!tpu.dma_semaphore, #tpu.memory_space<semaphore_mem>> -> memref<1x!tpu.dma_semaphore, #tpu.memory_space<semaphore_mem>>
    %915 = tpu.memref_squeeze %914 : memref<1x!tpu.dma_semaphore, #tpu.memory_space<semaphore_mem>> -> memref<!tpu.dma_semaphore, #tpu.memory_space<semaphore_mem>>
    tpu.wait_dma2 semaphore(%915 : memref<!tpu.dma_semaphore, #tpu.memory_space<semaphore_mem>>) src(%912 : memref<1x32xf32, #tpu.memory_space<any>>) dst(%913 : memref<1x32xf32, #tpu.memory_space<vmem>>)
    %c1_i32_724 = arith.constant 1 : i32
    %c0_i32_725 = arith.constant 0 : i32
    %916 = tpu.memref_slice %arg2[%33, %c0_i32_725] : memref<50x32xf32, #tpu.memory_space<any>> -> memref<1x32xf32, #tpu.memory_space<any>>
    %c16_i32_726 = arith.constant 16 : i32
    %c0_i32_727 = arith.constant 0 : i32
    %917 = tpu.memref_slice %arg8[%c16_i32_726, %c0_i32_727] : memref<64x32xf32, #tpu.memory_space<vmem>> -> memref<1x32xf32, #tpu.memory_space<vmem>>
    %918 = tpu.memref_slice %arg9[%c1_i32_724] : memref<2x!tpu.dma_semaphore, #tpu.memory_space<semaphore_mem>> -> memref<1x!tpu.dma_semaphore, #tpu.memory_space<semaphore_mem>>
    %919 = tpu.memref_squeeze %918 : memref<1x!tpu.dma_semaphore, #tpu.memory_space<semaphore_mem>> -> memref<!tpu.dma_semaphore, #tpu.memory_space<semaphore_mem>>
    tpu.wait_dma2 semaphore(%919 : memref<!tpu.dma_semaphore, #tpu.memory_space<semaphore_mem>>) src(%916 : memref<1x32xf32, #tpu.memory_space<any>>) dst(%917 : memref<1x32xf32, #tpu.memory_space<vmem>>)
    %c0_i32_728 = arith.constant 0 : i32
    %c0_i32_729 = arith.constant 0 : i32
    %920 = tpu.memref_slice %arg2[%47, %c0_i32_729] : memref<50x32xf32, #tpu.memory_space<any>> -> memref<1x32xf32, #tpu.memory_space<any>>
    %c3_i32_730 = arith.constant 3 : i32
    %c0_i32_731 = arith.constant 0 : i32
    %921 = tpu.memref_slice %arg7[%c3_i32_730, %c0_i32_731] : memref<64x32xf32, #tpu.memory_space<vmem>> -> memref<1x32xf32, #tpu.memory_space<vmem>>
    %922 = tpu.memref_slice %arg9[%c0_i32_728] : memref<2x!tpu.dma_semaphore, #tpu.memory_space<semaphore_mem>> -> memref<1x!tpu.dma_semaphore, #tpu.memory_space<semaphore_mem>>
    %923 = tpu.memref_squeeze %922 : memref<1x!tpu.dma_semaphore, #tpu.memory_space<semaphore_mem>> -> memref<!tpu.dma_semaphore, #tpu.memory_space<semaphore_mem>>
    tpu.wait_dma2 semaphore(%923 : memref<!tpu.dma_semaphore, #tpu.memory_space<semaphore_mem>>) src(%920 : memref<1x32xf32, #tpu.memory_space<any>>) dst(%921 : memref<1x32xf32, #tpu.memory_space<vmem>>)
    %c1_i32_732 = arith.constant 1 : i32
    %c0_i32_733 = arith.constant 0 : i32
    %924 = tpu.memref_slice %arg2[%47, %c0_i32_733] : memref<50x32xf32, #tpu.memory_space<any>> -> memref<1x32xf32, #tpu.memory_space<any>>
    %c24_i32_734 = arith.constant 24 : i32
    %c0_i32_735 = arith.constant 0 : i32
    %925 = tpu.memref_slice %arg8[%c24_i32_734, %c0_i32_735] : memref<64x32xf32, #tpu.memory_space<vmem>> -> memref<1x32xf32, #tpu.memory_space<vmem>>
    %926 = tpu.memref_slice %arg9[%c1_i32_732] : memref<2x!tpu.dma_semaphore, #tpu.memory_space<semaphore_mem>> -> memref<1x!tpu.dma_semaphore, #tpu.memory_space<semaphore_mem>>
    %927 = tpu.memref_squeeze %926 : memref<1x!tpu.dma_semaphore, #tpu.memory_space<semaphore_mem>> -> memref<!tpu.dma_semaphore, #tpu.memory_space<semaphore_mem>>
    tpu.wait_dma2 semaphore(%927 : memref<!tpu.dma_semaphore, #tpu.memory_space<semaphore_mem>>) src(%924 : memref<1x32xf32, #tpu.memory_space<any>>) dst(%925 : memref<1x32xf32, #tpu.memory_space<vmem>>)
    %c0_i32_736 = arith.constant 0 : i32
    %c0_i32_737 = arith.constant 0 : i32
    %928 = tpu.memref_slice %arg2[%61, %c0_i32_737] : memref<50x32xf32, #tpu.memory_space<any>> -> memref<1x32xf32, #tpu.memory_space<any>>
    %c4_i32_738 = arith.constant 4 : i32
    %c0_i32_739 = arith.constant 0 : i32
    %929 = tpu.memref_slice %arg7[%c4_i32_738, %c0_i32_739] : memref<64x32xf32, #tpu.memory_space<vmem>> -> memref<1x32xf32, #tpu.memory_space<vmem>>
    %930 = tpu.memref_slice %arg9[%c0_i32_736] : memref<2x!tpu.dma_semaphore, #tpu.memory_space<semaphore_mem>> -> memref<1x!tpu.dma_semaphore, #tpu.memory_space<semaphore_mem>>
    %931 = tpu.memref_squeeze %930 : memref<1x!tpu.dma_semaphore, #tpu.memory_space<semaphore_mem>> -> memref<!tpu.dma_semaphore, #tpu.memory_space<semaphore_mem>>
    tpu.wait_dma2 semaphore(%931 : memref<!tpu.dma_semaphore, #tpu.memory_space<semaphore_mem>>) src(%928 : memref<1x32xf32, #tpu.memory_space<any>>) dst(%929 : memref<1x32xf32, #tpu.memory_space<vmem>>)
    %c1_i32_740 = arith.constant 1 : i32
    %c0_i32_741 = arith.constant 0 : i32
    %932 = tpu.memref_slice %arg2[%61, %c0_i32_741] : memref<50x32xf32, #tpu.memory_space<any>> -> memref<1x32xf32, #tpu.memory_space<any>>
    %c32_i32_742 = arith.constant 32 : i32
    %c0_i32_743 = arith.constant 0 : i32
    %933 = tpu.memref_slice %arg8[%c32_i32_742, %c0_i32_743] : memref<64x32xf32, #tpu.memory_space<vmem>> -> memref<1x32xf32, #tpu.memory_space<vmem>>
    %934 = tpu.memref_slice %arg9[%c1_i32_740] : memref<2x!tpu.dma_semaphore, #tpu.memory_space<semaphore_mem>> -> memref<1x!tpu.dma_semaphore, #tpu.memory_space<semaphore_mem>>
    %935 = tpu.memref_squeeze %934 : memref<1x!tpu.dma_semaphore, #tpu.memory_space<semaphore_mem>> -> memref<!tpu.dma_semaphore, #tpu.memory_space<semaphore_mem>>
    tpu.wait_dma2 semaphore(%935 : memref<!tpu.dma_semaphore, #tpu.memory_space<semaphore_mem>>) src(%932 : memref<1x32xf32, #tpu.memory_space<any>>) dst(%933 : memref<1x32xf32, #tpu.memory_space<vmem>>)
    %c0_i32_744 = arith.constant 0 : i32
    %c0_i32_745 = arith.constant 0 : i32
    %936 = tpu.memref_slice %arg2[%75, %c0_i32_745] : memref<50x32xf32, #tpu.memory_space<any>> -> memref<1x32xf32, #tpu.memory_space<any>>
    %c5_i32_746 = arith.constant 5 : i32
    %c0_i32_747 = arith.constant 0 : i32
    %937 = tpu.memref_slice %arg7[%c5_i32_746, %c0_i32_747] : memref<64x32xf32, #tpu.memory_space<vmem>> -> memref<1x32xf32, #tpu.memory_space<vmem>>
    %938 = tpu.memref_slice %arg9[%c0_i32_744] : memref<2x!tpu.dma_semaphore, #tpu.memory_space<semaphore_mem>> -> memref<1x!tpu.dma_semaphore, #tpu.memory_space<semaphore_mem>>
    %939 = tpu.memref_squeeze %938 : memref<1x!tpu.dma_semaphore, #tpu.memory_space<semaphore_mem>> -> memref<!tpu.dma_semaphore, #tpu.memory_space<semaphore_mem>>
    tpu.wait_dma2 semaphore(%939 : memref<!tpu.dma_semaphore, #tpu.memory_space<semaphore_mem>>) src(%936 : memref<1x32xf32, #tpu.memory_space<any>>) dst(%937 : memref<1x32xf32, #tpu.memory_space<vmem>>)
    %c1_i32_748 = arith.constant 1 : i32
    %c0_i32_749 = arith.constant 0 : i32
    %940 = tpu.memref_slice %arg2[%75, %c0_i32_749] : memref<50x32xf32, #tpu.memory_space<any>> -> memref<1x32xf32, #tpu.memory_space<any>>
    %c40_i32_750 = arith.constant 40 : i32
    %c0_i32_751 = arith.constant 0 : i32
    %941 = tpu.memref_slice %arg8[%c40_i32_750, %c0_i32_751] : memref<64x32xf32, #tpu.memory_space<vmem>> -> memref<1x32xf32, #tpu.memory_space<vmem>>
    %942 = tpu.memref_slice %arg9[%c1_i32_748] : memref<2x!tpu.dma_semaphore, #tpu.memory_space<semaphore_mem>> -> memref<1x!tpu.dma_semaphore, #tpu.memory_space<semaphore_mem>>
    %943 = tpu.memref_squeeze %942 : memref<1x!tpu.dma_semaphore, #tpu.memory_space<semaphore_mem>> -> memref<!tpu.dma_semaphore, #tpu.memory_space<semaphore_mem>>
    tpu.wait_dma2 semaphore(%943 : memref<!tpu.dma_semaphore, #tpu.memory_space<semaphore_mem>>) src(%940 : memref<1x32xf32, #tpu.memory_space<any>>) dst(%941 : memref<1x32xf32, #tpu.memory_space<vmem>>)
    %c0_i32_752 = arith.constant 0 : i32
    %c0_i32_753 = arith.constant 0 : i32
    %944 = tpu.memref_slice %arg2[%89, %c0_i32_753] : memref<50x32xf32, #tpu.memory_space<any>> -> memref<1x32xf32, #tpu.memory_space<any>>
    %c6_i32_754 = arith.constant 6 : i32
    %c0_i32_755 = arith.constant 0 : i32
    %945 = tpu.memref_slice %arg7[%c6_i32_754, %c0_i32_755] : memref<64x32xf32, #tpu.memory_space<vmem>> -> memref<1x32xf32, #tpu.memory_space<vmem>>
    %946 = tpu.memref_slice %arg9[%c0_i32_752] : memref<2x!tpu.dma_semaphore, #tpu.memory_space<semaphore_mem>> -> memref<1x!tpu.dma_semaphore, #tpu.memory_space<semaphore_mem>>
    %947 = tpu.memref_squeeze %946 : memref<1x!tpu.dma_semaphore, #tpu.memory_space<semaphore_mem>> -> memref<!tpu.dma_semaphore, #tpu.memory_space<semaphore_mem>>
    tpu.wait_dma2 semaphore(%947 : memref<!tpu.dma_semaphore, #tpu.memory_space<semaphore_mem>>) src(%944 : memref<1x32xf32, #tpu.memory_space<any>>) dst(%945 : memref<1x32xf32, #tpu.memory_space<vmem>>)
    %c1_i32_756 = arith.constant 1 : i32
    %c0_i32_757 = arith.constant 0 : i32
    %948 = tpu.memref_slice %arg2[%89, %c0_i32_757] : memref<50x32xf32, #tpu.memory_space<any>> -> memref<1x32xf32, #tpu.memory_space<any>>
    %c48_i32_758 = arith.constant 48 : i32
    %c0_i32_759 = arith.constant 0 : i32
    %949 = tpu.memref_slice %arg8[%c48_i32_758, %c0_i32_759] : memref<64x32xf32, #tpu.memory_space<vmem>> -> memref<1x32xf32, #tpu.memory_space<vmem>>
    %950 = tpu.memref_slice %arg9[%c1_i32_756] : memref<2x!tpu.dma_semaphore, #tpu.memory_space<semaphore_mem>> -> memref<1x!tpu.dma_semaphore, #tpu.memory_space<semaphore_mem>>
    %951 = tpu.memref_squeeze %950 : memref<1x!tpu.dma_semaphore, #tpu.memory_space<semaphore_mem>> -> memref<!tpu.dma_semaphore, #tpu.memory_space<semaphore_mem>>
    tpu.wait_dma2 semaphore(%951 : memref<!tpu.dma_semaphore, #tpu.memory_space<semaphore_mem>>) src(%948 : memref<1x32xf32, #tpu.memory_space<any>>) dst(%949 : memref<1x32xf32, #tpu.memory_space<vmem>>)
    %c0_i32_760 = arith.constant 0 : i32
    %c0_i32_761 = arith.constant 0 : i32
    %952 = tpu.memref_slice %arg2[%103, %c0_i32_761] : memref<50x32xf32, #tpu.memory_space<any>> -> memref<1x32xf32, #tpu.memory_space<any>>
    %c7_i32_762 = arith.constant 7 : i32
    %c0_i32_763 = arith.constant 0 : i32
    %953 = tpu.memref_slice %arg7[%c7_i32_762, %c0_i32_763] : memref<64x32xf32, #tpu.memory_space<vmem>> -> memref<1x32xf32, #tpu.memory_space<vmem>>
    %954 = tpu.memref_slice %arg9[%c0_i32_760] : memref<2x!tpu.dma_semaphore, #tpu.memory_space<semaphore_mem>> -> memref<1x!tpu.dma_semaphore, #tpu.memory_space<semaphore_mem>>
    %955 = tpu.memref_squeeze %954 : memref<1x!tpu.dma_semaphore, #tpu.memory_space<semaphore_mem>> -> memref<!tpu.dma_semaphore, #tpu.memory_space<semaphore_mem>>
    tpu.wait_dma2 semaphore(%955 : memref<!tpu.dma_semaphore, #tpu.memory_space<semaphore_mem>>) src(%952 : memref<1x32xf32, #tpu.memory_space<any>>) dst(%953 : memref<1x32xf32, #tpu.memory_space<vmem>>)
    %c1_i32_764 = arith.constant 1 : i32
    %c0_i32_765 = arith.constant 0 : i32
    %956 = tpu.memref_slice %arg2[%103, %c0_i32_765] : memref<50x32xf32, #tpu.memory_space<any>> -> memref<1x32xf32, #tpu.memory_space<any>>
    %c56_i32_766 = arith.constant 56 : i32
    %c0_i32_767 = arith.constant 0 : i32
    %957 = tpu.memref_slice %arg8[%c56_i32_766, %c0_i32_767] : memref<64x32xf32, #tpu.memory_space<vmem>> -> memref<1x32xf32, #tpu.memory_space<vmem>>
    %958 = tpu.memref_slice %arg9[%c1_i32_764] : memref<2x!tpu.dma_semaphore, #tpu.memory_space<semaphore_mem>> -> memref<1x!tpu.dma_semaphore, #tpu.memory_space<semaphore_mem>>
    %959 = tpu.memref_squeeze %958 : memref<1x!tpu.dma_semaphore, #tpu.memory_space<semaphore_mem>> -> memref<!tpu.dma_semaphore, #tpu.memory_space<semaphore_mem>>
    tpu.wait_dma2 semaphore(%959 : memref<!tpu.dma_semaphore, #tpu.memory_space<semaphore_mem>>) src(%956 : memref<1x32xf32, #tpu.memory_space<any>>) dst(%957 : memref<1x32xf32, #tpu.memory_space<vmem>>)
    %c0_i32_768 = arith.constant 0 : i32
    %c0_i32_769 = arith.constant 0 : i32
    %960 = tpu.memref_slice %arg2[%117, %c0_i32_769] : memref<50x32xf32, #tpu.memory_space<any>> -> memref<1x32xf32, #tpu.memory_space<any>>
    %c8_i32_770 = arith.constant 8 : i32
    %c0_i32_771 = arith.constant 0 : i32
    %961 = tpu.memref_slice %arg7[%c8_i32_770, %c0_i32_771] : memref<64x32xf32, #tpu.memory_space<vmem>> -> memref<1x32xf32, #tpu.memory_space<vmem>>
    %962 = tpu.memref_slice %arg9[%c0_i32_768] : memref<2x!tpu.dma_semaphore, #tpu.memory_space<semaphore_mem>> -> memref<1x!tpu.dma_semaphore, #tpu.memory_space<semaphore_mem>>
    %963 = tpu.memref_squeeze %962 : memref<1x!tpu.dma_semaphore, #tpu.memory_space<semaphore_mem>> -> memref<!tpu.dma_semaphore, #tpu.memory_space<semaphore_mem>>
    tpu.wait_dma2 semaphore(%963 : memref<!tpu.dma_semaphore, #tpu.memory_space<semaphore_mem>>) src(%960 : memref<1x32xf32, #tpu.memory_space<any>>) dst(%961 : memref<1x32xf32, #tpu.memory_space<vmem>>)
    %c1_i32_772 = arith.constant 1 : i32
    %c0_i32_773 = arith.constant 0 : i32
    %964 = tpu.memref_slice %arg2[%117, %c0_i32_773] : memref<50x32xf32, #tpu.memory_space<any>> -> memref<1x32xf32, #tpu.memory_space<any>>
    %c1_i32_774 = arith.constant 1 : i32
    %c0_i32_775 = arith.constant 0 : i32
    %965 = tpu.memref_slice %arg8[%c1_i32_774, %c0_i32_775] : memref<64x32xf32, #tpu.memory_space<vmem>> -> memref<1x32xf32, #tpu.memory_space<vmem>>
    %966 = tpu.memref_slice %arg9[%c1_i32_772] : memref<2x!tpu.dma_semaphore, #tpu.memory_space<semaphore_mem>> -> memref<1x!tpu.dma_semaphore, #tpu.memory_space<semaphore_mem>>
    %967 = tpu.memref_squeeze %966 : memref<1x!tpu.dma_semaphore, #tpu.memory_space<semaphore_mem>> -> memref<!tpu.dma_semaphore, #tpu.memory_space<semaphore_mem>>
    tpu.wait_dma2 semaphore(%967 : memref<!tpu.dma_semaphore, #tpu.memory_space<semaphore_mem>>) src(%964 : memref<1x32xf32, #tpu.memory_space<any>>) dst(%965 : memref<1x32xf32, #tpu.memory_space<vmem>>)
    %c0_i32_776 = arith.constant 0 : i32
    %c0_i32_777 = arith.constant 0 : i32
    %968 = tpu.memref_slice %arg2[%131, %c0_i32_777] : memref<50x32xf32, #tpu.memory_space<any>> -> memref<1x32xf32, #tpu.memory_space<any>>
    %c9_i32_778 = arith.constant 9 : i32
    %c0_i32_779 = arith.constant 0 : i32
    %969 = tpu.memref_slice %arg7[%c9_i32_778, %c0_i32_779] : memref<64x32xf32, #tpu.memory_space<vmem>> -> memref<1x32xf32, #tpu.memory_space<vmem>>
    %970 = tpu.memref_slice %arg9[%c0_i32_776] : memref<2x!tpu.dma_semaphore, #tpu.memory_space<semaphore_mem>> -> memref<1x!tpu.dma_semaphore, #tpu.memory_space<semaphore_mem>>
    %971 = tpu.memref_squeeze %970 : memref<1x!tpu.dma_semaphore, #tpu.memory_space<semaphore_mem>> -> memref<!tpu.dma_semaphore, #tpu.memory_space<semaphore_mem>>
    tpu.wait_dma2 semaphore(%971 : memref<!tpu.dma_semaphore, #tpu.memory_space<semaphore_mem>>) src(%968 : memref<1x32xf32, #tpu.memory_space<any>>) dst(%969 : memref<1x32xf32, #tpu.memory_space<vmem>>)
    %c1_i32_780 = arith.constant 1 : i32
    %c0_i32_781 = arith.constant 0 : i32
    %972 = tpu.memref_slice %arg2[%131, %c0_i32_781] : memref<50x32xf32, #tpu.memory_space<any>> -> memref<1x32xf32, #tpu.memory_space<any>>
    %c9_i32_782 = arith.constant 9 : i32
    %c0_i32_783 = arith.constant 0 : i32
    %973 = tpu.memref_slice %arg8[%c9_i32_782, %c0_i32_783] : memref<64x32xf32, #tpu.memory_space<vmem>> -> memref<1x32xf32, #tpu.memory_space<vmem>>
    %974 = tpu.memref_slice %arg9[%c1_i32_780] : memref<2x!tpu.dma_semaphore, #tpu.memory_space<semaphore_mem>> -> memref<1x!tpu.dma_semaphore, #tpu.memory_space<semaphore_mem>>
    %975 = tpu.memref_squeeze %974 : memref<1x!tpu.dma_semaphore, #tpu.memory_space<semaphore_mem>> -> memref<!tpu.dma_semaphore, #tpu.memory_space<semaphore_mem>>
    tpu.wait_dma2 semaphore(%975 : memref<!tpu.dma_semaphore, #tpu.memory_space<semaphore_mem>>) src(%972 : memref<1x32xf32, #tpu.memory_space<any>>) dst(%973 : memref<1x32xf32, #tpu.memory_space<vmem>>)
    %c0_i32_784 = arith.constant 0 : i32
    %c0_i32_785 = arith.constant 0 : i32
    %976 = tpu.memref_slice %arg2[%145, %c0_i32_785] : memref<50x32xf32, #tpu.memory_space<any>> -> memref<1x32xf32, #tpu.memory_space<any>>
    %c10_i32_786 = arith.constant 10 : i32
    %c0_i32_787 = arith.constant 0 : i32
    %977 = tpu.memref_slice %arg7[%c10_i32_786, %c0_i32_787] : memref<64x32xf32, #tpu.memory_space<vmem>> -> memref<1x32xf32, #tpu.memory_space<vmem>>
    %978 = tpu.memref_slice %arg9[%c0_i32_784] : memref<2x!tpu.dma_semaphore, #tpu.memory_space<semaphore_mem>> -> memref<1x!tpu.dma_semaphore, #tpu.memory_space<semaphore_mem>>
    %979 = tpu.memref_squeeze %978 : memref<1x!tpu.dma_semaphore, #tpu.memory_space<semaphore_mem>> -> memref<!tpu.dma_semaphore, #tpu.memory_space<semaphore_mem>>
    tpu.wait_dma2 semaphore(%979 : memref<!tpu.dma_semaphore, #tpu.memory_space<semaphore_mem>>) src(%976 : memref<1x32xf32, #tpu.memory_space<any>>) dst(%977 : memref<1x32xf32, #tpu.memory_space<vmem>>)
    %c1_i32_788 = arith.constant 1 : i32
    %c0_i32_789 = arith.constant 0 : i32
    %980 = tpu.memref_slice %arg2[%145, %c0_i32_789] : memref<50x32xf32, #tpu.memory_space<any>> -> memref<1x32xf32, #tpu.memory_space<any>>
    %c17_i32_790 = arith.constant 17 : i32
    %c0_i32_791 = arith.constant 0 : i32
    %981 = tpu.memref_slice %arg8[%c17_i32_790, %c0_i32_791] : memref<64x32xf32, #tpu.memory_space<vmem>> -> memref<1x32xf32, #tpu.memory_space<vmem>>
    %982 = tpu.memref_slice %arg9[%c1_i32_788] : memref<2x!tpu.dma_semaphore, #tpu.memory_space<semaphore_mem>> -> memref<1x!tpu.dma_semaphore, #tpu.memory_space<semaphore_mem>>
    %983 = tpu.memref_squeeze %982 : memref<1x!tpu.dma_semaphore, #tpu.memory_space<semaphore_mem>> -> memref<!tpu.dma_semaphore, #tpu.memory_space<semaphore_mem>>
    tpu.wait_dma2 semaphore(%983 : memref<!tpu.dma_semaphore, #tpu.memory_space<semaphore_mem>>) src(%980 : memref<1x32xf32, #tpu.memory_space<any>>) dst(%981 : memref<1x32xf32, #tpu.memory_space<vmem>>)
    %c0_i32_792 = arith.constant 0 : i32
    %c0_i32_793 = arith.constant 0 : i32
    %984 = tpu.memref_slice %arg2[%159, %c0_i32_793] : memref<50x32xf32, #tpu.memory_space<any>> -> memref<1x32xf32, #tpu.memory_space<any>>
    %c11_i32_794 = arith.constant 11 : i32
    %c0_i32_795 = arith.constant 0 : i32
    %985 = tpu.memref_slice %arg7[%c11_i32_794, %c0_i32_795] : memref<64x32xf32, #tpu.memory_space<vmem>> -> memref<1x32xf32, #tpu.memory_space<vmem>>
    %986 = tpu.memref_slice %arg9[%c0_i32_792] : memref<2x!tpu.dma_semaphore, #tpu.memory_space<semaphore_mem>> -> memref<1x!tpu.dma_semaphore, #tpu.memory_space<semaphore_mem>>
    %987 = tpu.memref_squeeze %986 : memref<1x!tpu.dma_semaphore, #tpu.memory_space<semaphore_mem>> -> memref<!tpu.dma_semaphore, #tpu.memory_space<semaphore_mem>>
    tpu.wait_dma2 semaphore(%987 : memref<!tpu.dma_semaphore, #tpu.memory_space<semaphore_mem>>) src(%984 : memref<1x32xf32, #tpu.memory_space<any>>) dst(%985 : memref<1x32xf32, #tpu.memory_space<vmem>>)
    %c1_i32_796 = arith.constant 1 : i32
    %c0_i32_797 = arith.constant 0 : i32
    %988 = tpu.memref_slice %arg2[%159, %c0_i32_797] : memref<50x32xf32, #tpu.memory_space<any>> -> memref<1x32xf32, #tpu.memory_space<any>>
    %c25_i32_798 = arith.constant 25 : i32
    %c0_i32_799 = arith.constant 0 : i32
    %989 = tpu.memref_slice %arg8[%c25_i32_798, %c0_i32_799] : memref<64x32xf32, #tpu.memory_space<vmem>> -> memref<1x32xf32, #tpu.memory_space<vmem>>
    %990 = tpu.memref_slice %arg9[%c1_i32_796] : memref<2x!tpu.dma_semaphore, #tpu.memory_space<semaphore_mem>> -> memref<1x!tpu.dma_semaphore, #tpu.memory_space<semaphore_mem>>
    %991 = tpu.memref_squeeze %990 : memref<1x!tpu.dma_semaphore, #tpu.memory_space<semaphore_mem>> -> memref<!tpu.dma_semaphore, #tpu.memory_space<semaphore_mem>>
    tpu.wait_dma2 semaphore(%991 : memref<!tpu.dma_semaphore, #tpu.memory_space<semaphore_mem>>) src(%988 : memref<1x32xf32, #tpu.memory_space<any>>) dst(%989 : memref<1x32xf32, #tpu.memory_space<vmem>>)
    %c0_i32_800 = arith.constant 0 : i32
    %c0_i32_801 = arith.constant 0 : i32
    %992 = tpu.memref_slice %arg2[%173, %c0_i32_801] : memref<50x32xf32, #tpu.memory_space<any>> -> memref<1x32xf32, #tpu.memory_space<any>>
    %c12_i32_802 = arith.constant 12 : i32
    %c0_i32_803 = arith.constant 0 : i32
    %993 = tpu.memref_slice %arg7[%c12_i32_802, %c0_i32_803] : memref<64x32xf32, #tpu.memory_space<vmem>> -> memref<1x32xf32, #tpu.memory_space<vmem>>
    %994 = tpu.memref_slice %arg9[%c0_i32_800] : memref<2x!tpu.dma_semaphore, #tpu.memory_space<semaphore_mem>> -> memref<1x!tpu.dma_semaphore, #tpu.memory_space<semaphore_mem>>
    %995 = tpu.memref_squeeze %994 : memref<1x!tpu.dma_semaphore, #tpu.memory_space<semaphore_mem>> -> memref<!tpu.dma_semaphore, #tpu.memory_space<semaphore_mem>>
    tpu.wait_dma2 semaphore(%995 : memref<!tpu.dma_semaphore, #tpu.memory_space<semaphore_mem>>) src(%992 : memref<1x32xf32, #tpu.memory_space<any>>) dst(%993 : memref<1x32xf32, #tpu.memory_space<vmem>>)
    %c1_i32_804 = arith.constant 1 : i32
    %c0_i32_805 = arith.constant 0 : i32
    %996 = tpu.memref_slice %arg2[%173, %c0_i32_805] : memref<50x32xf32, #tpu.memory_space<any>> -> memref<1x32xf32, #tpu.memory_space<any>>
    %c33_i32_806 = arith.constant 33 : i32
    %c0_i32_807 = arith.constant 0 : i32
    %997 = tpu.memref_slice %arg8[%c33_i32_806, %c0_i32_807] : memref<64x32xf32, #tpu.memory_space<vmem>> -> memref<1x32xf32, #tpu.memory_space<vmem>>
    %998 = tpu.memref_slice %arg9[%c1_i32_804] : memref<2x!tpu.dma_semaphore, #tpu.memory_space<semaphore_mem>> -> memref<1x!tpu.dma_semaphore, #tpu.memory_space<semaphore_mem>>
    %999 = tpu.memref_squeeze %998 : memref<1x!tpu.dma_semaphore, #tpu.memory_space<semaphore_mem>> -> memref<!tpu.dma_semaphore, #tpu.memory_space<semaphore_mem>>
    tpu.wait_dma2 semaphore(%999 : memref<!tpu.dma_semaphore, #tpu.memory_space<semaphore_mem>>) src(%996 : memref<1x32xf32, #tpu.memory_space<any>>) dst(%997 : memref<1x32xf32, #tpu.memory_space<vmem>>)
    %c0_i32_808 = arith.constant 0 : i32
    %c0_i32_809 = arith.constant 0 : i32
    %1000 = tpu.memref_slice %arg2[%187, %c0_i32_809] : memref<50x32xf32, #tpu.memory_space<any>> -> memref<1x32xf32, #tpu.memory_space<any>>
    %c13_i32_810 = arith.constant 13 : i32
    %c0_i32_811 = arith.constant 0 : i32
    %1001 = tpu.memref_slice %arg7[%c13_i32_810, %c0_i32_811] : memref<64x32xf32, #tpu.memory_space<vmem>> -> memref<1x32xf32, #tpu.memory_space<vmem>>
    %1002 = tpu.memref_slice %arg9[%c0_i32_808] : memref<2x!tpu.dma_semaphore, #tpu.memory_space<semaphore_mem>> -> memref<1x!tpu.dma_semaphore, #tpu.memory_space<semaphore_mem>>
    %1003 = tpu.memref_squeeze %1002 : memref<1x!tpu.dma_semaphore, #tpu.memory_space<semaphore_mem>> -> memref<!tpu.dma_semaphore, #tpu.memory_space<semaphore_mem>>
    tpu.wait_dma2 semaphore(%1003 : memref<!tpu.dma_semaphore, #tpu.memory_space<semaphore_mem>>) src(%1000 : memref<1x32xf32, #tpu.memory_space<any>>) dst(%1001 : memref<1x32xf32, #tpu.memory_space<vmem>>)
    %c1_i32_812 = arith.constant 1 : i32
    %c0_i32_813 = arith.constant 0 : i32
    %1004 = tpu.memref_slice %arg2[%187, %c0_i32_813] : memref<50x32xf32, #tpu.memory_space<any>> -> memref<1x32xf32, #tpu.memory_space<any>>
    %c41_i32_814 = arith.constant 41 : i32
    %c0_i32_815 = arith.constant 0 : i32
    %1005 = tpu.memref_slice %arg8[%c41_i32_814, %c0_i32_815] : memref<64x32xf32, #tpu.memory_space<vmem>> -> memref<1x32xf32, #tpu.memory_space<vmem>>
    %1006 = tpu.memref_slice %arg9[%c1_i32_812] : memref<2x!tpu.dma_semaphore, #tpu.memory_space<semaphore_mem>> -> memref<1x!tpu.dma_semaphore, #tpu.memory_space<semaphore_mem>>
    %1007 = tpu.memref_squeeze %1006 : memref<1x!tpu.dma_semaphore, #tpu.memory_space<semaphore_mem>> -> memref<!tpu.dma_semaphore, #tpu.memory_space<semaphore_mem>>
    tpu.wait_dma2 semaphore(%1007 : memref<!tpu.dma_semaphore, #tpu.memory_space<semaphore_mem>>) src(%1004 : memref<1x32xf32, #tpu.memory_space<any>>) dst(%1005 : memref<1x32xf32, #tpu.memory_space<vmem>>)
    %c0_i32_816 = arith.constant 0 : i32
    %c0_i32_817 = arith.constant 0 : i32
    %1008 = tpu.memref_slice %arg2[%201, %c0_i32_817] : memref<50x32xf32, #tpu.memory_space<any>> -> memref<1x32xf32, #tpu.memory_space<any>>
    %c14_i32_818 = arith.constant 14 : i32
    %c0_i32_819 = arith.constant 0 : i32
    %1009 = tpu.memref_slice %arg7[%c14_i32_818, %c0_i32_819] : memref<64x32xf32, #tpu.memory_space<vmem>> -> memref<1x32xf32, #tpu.memory_space<vmem>>
    %1010 = tpu.memref_slice %arg9[%c0_i32_816] : memref<2x!tpu.dma_semaphore, #tpu.memory_space<semaphore_mem>> -> memref<1x!tpu.dma_semaphore, #tpu.memory_space<semaphore_mem>>
    %1011 = tpu.memref_squeeze %1010 : memref<1x!tpu.dma_semaphore, #tpu.memory_space<semaphore_mem>> -> memref<!tpu.dma_semaphore, #tpu.memory_space<semaphore_mem>>
    tpu.wait_dma2 semaphore(%1011 : memref<!tpu.dma_semaphore, #tpu.memory_space<semaphore_mem>>) src(%1008 : memref<1x32xf32, #tpu.memory_space<any>>) dst(%1009 : memref<1x32xf32, #tpu.memory_space<vmem>>)
    %c1_i32_820 = arith.constant 1 : i32
    %c0_i32_821 = arith.constant 0 : i32
    %1012 = tpu.memref_slice %arg2[%201, %c0_i32_821] : memref<50x32xf32, #tpu.memory_space<any>> -> memref<1x32xf32, #tpu.memory_space<any>>
    %c49_i32_822 = arith.constant 49 : i32
    %c0_i32_823 = arith.constant 0 : i32
    %1013 = tpu.memref_slice %arg8[%c49_i32_822, %c0_i32_823] : memref<64x32xf32, #tpu.memory_space<vmem>> -> memref<1x32xf32, #tpu.memory_space<vmem>>
    %1014 = tpu.memref_slice %arg9[%c1_i32_820] : memref<2x!tpu.dma_semaphore, #tpu.memory_space<semaphore_mem>> -> memref<1x!tpu.dma_semaphore, #tpu.memory_space<semaphore_mem>>
    %1015 = tpu.memref_squeeze %1014 : memref<1x!tpu.dma_semaphore, #tpu.memory_space<semaphore_mem>> -> memref<!tpu.dma_semaphore, #tpu.memory_space<semaphore_mem>>
    tpu.wait_dma2 semaphore(%1015 : memref<!tpu.dma_semaphore, #tpu.memory_space<semaphore_mem>>) src(%1012 : memref<1x32xf32, #tpu.memory_space<any>>) dst(%1013 : memref<1x32xf32, #tpu.memory_space<vmem>>)
    %c0_i32_824 = arith.constant 0 : i32
    %c0_i32_825 = arith.constant 0 : i32
    %1016 = tpu.memref_slice %arg2[%215, %c0_i32_825] : memref<50x32xf32, #tpu.memory_space<any>> -> memref<1x32xf32, #tpu.memory_space<any>>
    %c15_i32_826 = arith.constant 15 : i32
    %c0_i32_827 = arith.constant 0 : i32
    %1017 = tpu.memref_slice %arg7[%c15_i32_826, %c0_i32_827] : memref<64x32xf32, #tpu.memory_space<vmem>> -> memref<1x32xf32, #tpu.memory_space<vmem>>
    %1018 = tpu.memref_slice %arg9[%c0_i32_824] : memref<2x!tpu.dma_semaphore, #tpu.memory_space<semaphore_mem>> -> memref<1x!tpu.dma_semaphore, #tpu.memory_space<semaphore_mem>>
    %1019 = tpu.memref_squeeze %1018 : memref<1x!tpu.dma_semaphore, #tpu.memory_space<semaphore_mem>> -> memref<!tpu.dma_semaphore, #tpu.memory_space<semaphore_mem>>
    tpu.wait_dma2 semaphore(%1019 : memref<!tpu.dma_semaphore, #tpu.memory_space<semaphore_mem>>) src(%1016 : memref<1x32xf32, #tpu.memory_space<any>>) dst(%1017 : memref<1x32xf32, #tpu.memory_space<vmem>>)
    %c1_i32_828 = arith.constant 1 : i32
    %c0_i32_829 = arith.constant 0 : i32
    %1020 = tpu.memref_slice %arg2[%215, %c0_i32_829] : memref<50x32xf32, #tpu.memory_space<any>> -> memref<1x32xf32, #tpu.memory_space<any>>
    %c57_i32_830 = arith.constant 57 : i32
    %c0_i32_831 = arith.constant 0 : i32
    %1021 = tpu.memref_slice %arg8[%c57_i32_830, %c0_i32_831] : memref<64x32xf32, #tpu.memory_space<vmem>> -> memref<1x32xf32, #tpu.memory_space<vmem>>
    %1022 = tpu.memref_slice %arg9[%c1_i32_828] : memref<2x!tpu.dma_semaphore, #tpu.memory_space<semaphore_mem>> -> memref<1x!tpu.dma_semaphore, #tpu.memory_space<semaphore_mem>>
    %1023 = tpu.memref_squeeze %1022 : memref<1x!tpu.dma_semaphore, #tpu.memory_space<semaphore_mem>> -> memref<!tpu.dma_semaphore, #tpu.memory_space<semaphore_mem>>
    tpu.wait_dma2 semaphore(%1023 : memref<!tpu.dma_semaphore, #tpu.memory_space<semaphore_mem>>) src(%1020 : memref<1x32xf32, #tpu.memory_space<any>>) dst(%1021 : memref<1x32xf32, #tpu.memory_space<vmem>>)
    %c0_i32_832 = arith.constant 0 : i32
    %c0_i32_833 = arith.constant 0 : i32
    %1024 = tpu.memref_slice %arg2[%229, %c0_i32_833] : memref<50x32xf32, #tpu.memory_space<any>> -> memref<1x32xf32, #tpu.memory_space<any>>
    %c16_i32_834 = arith.constant 16 : i32
    %c0_i32_835 = arith.constant 0 : i32
    %1025 = tpu.memref_slice %arg7[%c16_i32_834, %c0_i32_835] : memref<64x32xf32, #tpu.memory_space<vmem>> -> memref<1x32xf32, #tpu.memory_space<vmem>>
    %1026 = tpu.memref_slice %arg9[%c0_i32_832] : memref<2x!tpu.dma_semaphore, #tpu.memory_space<semaphore_mem>> -> memref<1x!tpu.dma_semaphore, #tpu.memory_space<semaphore_mem>>
    %1027 = tpu.memref_squeeze %1026 : memref<1x!tpu.dma_semaphore, #tpu.memory_space<semaphore_mem>> -> memref<!tpu.dma_semaphore, #tpu.memory_space<semaphore_mem>>
    tpu.wait_dma2 semaphore(%1027 : memref<!tpu.dma_semaphore, #tpu.memory_space<semaphore_mem>>) src(%1024 : memref<1x32xf32, #tpu.memory_space<any>>) dst(%1025 : memref<1x32xf32, #tpu.memory_space<vmem>>)
    %c1_i32_836 = arith.constant 1 : i32
    %c0_i32_837 = arith.constant 0 : i32
    %1028 = tpu.memref_slice %arg2[%229, %c0_i32_837] : memref<50x32xf32, #tpu.memory_space<any>> -> memref<1x32xf32, #tpu.memory_space<any>>
    %c2_i32_838 = arith.constant 2 : i32
    %c0_i32_839 = arith.constant 0 : i32
    %1029 = tpu.memref_slice %arg8[%c2_i32_838, %c0_i32_839] : memref<64x32xf32, #tpu.memory_space<vmem>> -> memref<1x32xf32, #tpu.memory_space<vmem>>
    %1030 = tpu.memref_slice %arg9[%c1_i32_836] : memref<2x!tpu.dma_semaphore, #tpu.memory_space<semaphore_mem>> -> memref<1x!tpu.dma_semaphore, #tpu.memory_space<semaphore_mem>>
    %1031 = tpu.memref_squeeze %1030 : memref<1x!tpu.dma_semaphore, #tpu.memory_space<semaphore_mem>> -> memref<!tpu.dma_semaphore, #tpu.memory_space<semaphore_mem>>
    tpu.wait_dma2 semaphore(%1031 : memref<!tpu.dma_semaphore, #tpu.memory_space<semaphore_mem>>) src(%1028 : memref<1x32xf32, #tpu.memory_space<any>>) dst(%1029 : memref<1x32xf32, #tpu.memory_space<vmem>>)
    %c0_i32_840 = arith.constant 0 : i32
    %c0_i32_841 = arith.constant 0 : i32
    %1032 = tpu.memref_slice %arg2[%243, %c0_i32_841] : memref<50x32xf32, #tpu.memory_space<any>> -> memref<1x32xf32, #tpu.memory_space<any>>
    %c17_i32_842 = arith.constant 17 : i32
    %c0_i32_843 = arith.constant 0 : i32
    %1033 = tpu.memref_slice %arg7[%c17_i32_842, %c0_i32_843] : memref<64x32xf32, #tpu.memory_space<vmem>> -> memref<1x32xf32, #tpu.memory_space<vmem>>
    %1034 = tpu.memref_slice %arg9[%c0_i32_840] : memref<2x!tpu.dma_semaphore, #tpu.memory_space<semaphore_mem>> -> memref<1x!tpu.dma_semaphore, #tpu.memory_space<semaphore_mem>>
    %1035 = tpu.memref_squeeze %1034 : memref<1x!tpu.dma_semaphore, #tpu.memory_space<semaphore_mem>> -> memref<!tpu.dma_semaphore, #tpu.memory_space<semaphore_mem>>
    tpu.wait_dma2 semaphore(%1035 : memref<!tpu.dma_semaphore, #tpu.memory_space<semaphore_mem>>) src(%1032 : memref<1x32xf32, #tpu.memory_space<any>>) dst(%1033 : memref<1x32xf32, #tpu.memory_space<vmem>>)
    %c1_i32_844 = arith.constant 1 : i32
    %c0_i32_845 = arith.constant 0 : i32
    %1036 = tpu.memref_slice %arg2[%243, %c0_i32_845] : memref<50x32xf32, #tpu.memory_space<any>> -> memref<1x32xf32, #tpu.memory_space<any>>
    %c10_i32_846 = arith.constant 10 : i32
    %c0_i32_847 = arith.constant 0 : i32
    %1037 = tpu.memref_slice %arg8[%c10_i32_846, %c0_i32_847] : memref<64x32xf32, #tpu.memory_space<vmem>> -> memref<1x32xf32, #tpu.memory_space<vmem>>
    %1038 = tpu.memref_slice %arg9[%c1_i32_844] : memref<2x!tpu.dma_semaphore, #tpu.memory_space<semaphore_mem>> -> memref<1x!tpu.dma_semaphore, #tpu.memory_space<semaphore_mem>>
    %1039 = tpu.memref_squeeze %1038 : memref<1x!tpu.dma_semaphore, #tpu.memory_space<semaphore_mem>> -> memref<!tpu.dma_semaphore, #tpu.memory_space<semaphore_mem>>
    tpu.wait_dma2 semaphore(%1039 : memref<!tpu.dma_semaphore, #tpu.memory_space<semaphore_mem>>) src(%1036 : memref<1x32xf32, #tpu.memory_space<any>>) dst(%1037 : memref<1x32xf32, #tpu.memory_space<vmem>>)
    %c0_i32_848 = arith.constant 0 : i32
    %c0_i32_849 = arith.constant 0 : i32
    %1040 = tpu.memref_slice %arg2[%257, %c0_i32_849] : memref<50x32xf32, #tpu.memory_space<any>> -> memref<1x32xf32, #tpu.memory_space<any>>
    %c18_i32_850 = arith.constant 18 : i32
    %c0_i32_851 = arith.constant 0 : i32
    %1041 = tpu.memref_slice %arg7[%c18_i32_850, %c0_i32_851] : memref<64x32xf32, #tpu.memory_space<vmem>> -> memref<1x32xf32, #tpu.memory_space<vmem>>
    %1042 = tpu.memref_slice %arg9[%c0_i32_848] : memref<2x!tpu.dma_semaphore, #tpu.memory_space<semaphore_mem>> -> memref<1x!tpu.dma_semaphore, #tpu.memory_space<semaphore_mem>>
    %1043 = tpu.memref_squeeze %1042 : memref<1x!tpu.dma_semaphore, #tpu.memory_space<semaphore_mem>> -> memref<!tpu.dma_semaphore, #tpu.memory_space<semaphore_mem>>
    tpu.wait_dma2 semaphore(%1043 : memref<!tpu.dma_semaphore, #tpu.memory_space<semaphore_mem>>) src(%1040 : memref<1x32xf32, #tpu.memory_space<any>>) dst(%1041 : memref<1x32xf32, #tpu.memory_space<vmem>>)
    %c1_i32_852 = arith.constant 1 : i32
    %c0_i32_853 = arith.constant 0 : i32
    %1044 = tpu.memref_slice %arg2[%257, %c0_i32_853] : memref<50x32xf32, #tpu.memory_space<any>> -> memref<1x32xf32, #tpu.memory_space<any>>
    %c18_i32_854 = arith.constant 18 : i32
    %c0_i32_855 = arith.constant 0 : i32
    %1045 = tpu.memref_slice %arg8[%c18_i32_854, %c0_i32_855] : memref<64x32xf32, #tpu.memory_space<vmem>> -> memref<1x32xf32, #tpu.memory_space<vmem>>
    %1046 = tpu.memref_slice %arg9[%c1_i32_852] : memref<2x!tpu.dma_semaphore, #tpu.memory_space<semaphore_mem>> -> memref<1x!tpu.dma_semaphore, #tpu.memory_space<semaphore_mem>>
    %1047 = tpu.memref_squeeze %1046 : memref<1x!tpu.dma_semaphore, #tpu.memory_space<semaphore_mem>> -> memref<!tpu.dma_semaphore, #tpu.memory_space<semaphore_mem>>
    tpu.wait_dma2 semaphore(%1047 : memref<!tpu.dma_semaphore, #tpu.memory_space<semaphore_mem>>) src(%1044 : memref<1x32xf32, #tpu.memory_space<any>>) dst(%1045 : memref<1x32xf32, #tpu.memory_space<vmem>>)
    %c0_i32_856 = arith.constant 0 : i32
    %c0_i32_857 = arith.constant 0 : i32
    %1048 = tpu.memref_slice %arg2[%271, %c0_i32_857] : memref<50x32xf32, #tpu.memory_space<any>> -> memref<1x32xf32, #tpu.memory_space<any>>
    %c19_i32_858 = arith.constant 19 : i32
    %c0_i32_859 = arith.constant 0 : i32
    %1049 = tpu.memref_slice %arg7[%c19_i32_858, %c0_i32_859] : memref<64x32xf32, #tpu.memory_space<vmem>> -> memref<1x32xf32, #tpu.memory_space<vmem>>
    %1050 = tpu.memref_slice %arg9[%c0_i32_856] : memref<2x!tpu.dma_semaphore, #tpu.memory_space<semaphore_mem>> -> memref<1x!tpu.dma_semaphore, #tpu.memory_space<semaphore_mem>>
    %1051 = tpu.memref_squeeze %1050 : memref<1x!tpu.dma_semaphore, #tpu.memory_space<semaphore_mem>> -> memref<!tpu.dma_semaphore, #tpu.memory_space<semaphore_mem>>
    tpu.wait_dma2 semaphore(%1051 : memref<!tpu.dma_semaphore, #tpu.memory_space<semaphore_mem>>) src(%1048 : memref<1x32xf32, #tpu.memory_space<any>>) dst(%1049 : memref<1x32xf32, #tpu.memory_space<vmem>>)
    %c1_i32_860 = arith.constant 1 : i32
    %c0_i32_861 = arith.constant 0 : i32
    %1052 = tpu.memref_slice %arg2[%271, %c0_i32_861] : memref<50x32xf32, #tpu.memory_space<any>> -> memref<1x32xf32, #tpu.memory_space<any>>
    %c26_i32_862 = arith.constant 26 : i32
    %c0_i32_863 = arith.constant 0 : i32
    %1053 = tpu.memref_slice %arg8[%c26_i32_862, %c0_i32_863] : memref<64x32xf32, #tpu.memory_space<vmem>> -> memref<1x32xf32, #tpu.memory_space<vmem>>
    %1054 = tpu.memref_slice %arg9[%c1_i32_860] : memref<2x!tpu.dma_semaphore, #tpu.memory_space<semaphore_mem>> -> memref<1x!tpu.dma_semaphore, #tpu.memory_space<semaphore_mem>>
    %1055 = tpu.memref_squeeze %1054 : memref<1x!tpu.dma_semaphore, #tpu.memory_space<semaphore_mem>> -> memref<!tpu.dma_semaphore, #tpu.memory_space<semaphore_mem>>
    tpu.wait_dma2 semaphore(%1055 : memref<!tpu.dma_semaphore, #tpu.memory_space<semaphore_mem>>) src(%1052 : memref<1x32xf32, #tpu.memory_space<any>>) dst(%1053 : memref<1x32xf32, #tpu.memory_space<vmem>>)
    %c0_i32_864 = arith.constant 0 : i32
    %c0_i32_865 = arith.constant 0 : i32
    %1056 = tpu.memref_slice %arg2[%285, %c0_i32_865] : memref<50x32xf32, #tpu.memory_space<any>> -> memref<1x32xf32, #tpu.memory_space<any>>
    %c20_i32_866 = arith.constant 20 : i32
    %c0_i32_867 = arith.constant 0 : i32
    %1057 = tpu.memref_slice %arg7[%c20_i32_866, %c0_i32_867] : memref<64x32xf32, #tpu.memory_space<vmem>> -> memref<1x32xf32, #tpu.memory_space<vmem>>
    %1058 = tpu.memref_slice %arg9[%c0_i32_864] : memref<2x!tpu.dma_semaphore, #tpu.memory_space<semaphore_mem>> -> memref<1x!tpu.dma_semaphore, #tpu.memory_space<semaphore_mem>>
    %1059 = tpu.memref_squeeze %1058 : memref<1x!tpu.dma_semaphore, #tpu.memory_space<semaphore_mem>> -> memref<!tpu.dma_semaphore, #tpu.memory_space<semaphore_mem>>
    tpu.wait_dma2 semaphore(%1059 : memref<!tpu.dma_semaphore, #tpu.memory_space<semaphore_mem>>) src(%1056 : memref<1x32xf32, #tpu.memory_space<any>>) dst(%1057 : memref<1x32xf32, #tpu.memory_space<vmem>>)
    %c1_i32_868 = arith.constant 1 : i32
    %c0_i32_869 = arith.constant 0 : i32
    %1060 = tpu.memref_slice %arg2[%285, %c0_i32_869] : memref<50x32xf32, #tpu.memory_space<any>> -> memref<1x32xf32, #tpu.memory_space<any>>
    %c34_i32_870 = arith.constant 34 : i32
    %c0_i32_871 = arith.constant 0 : i32
    %1061 = tpu.memref_slice %arg8[%c34_i32_870, %c0_i32_871] : memref<64x32xf32, #tpu.memory_space<vmem>> -> memref<1x32xf32, #tpu.memory_space<vmem>>
    %1062 = tpu.memref_slice %arg9[%c1_i32_868] : memref<2x!tpu.dma_semaphore, #tpu.memory_space<semaphore_mem>> -> memref<1x!tpu.dma_semaphore, #tpu.memory_space<semaphore_mem>>
    %1063 = tpu.memref_squeeze %1062 : memref<1x!tpu.dma_semaphore, #tpu.memory_space<semaphore_mem>> -> memref<!tpu.dma_semaphore, #tpu.memory_space<semaphore_mem>>
    tpu.wait_dma2 semaphore(%1063 : memref<!tpu.dma_semaphore, #tpu.memory_space<semaphore_mem>>) src(%1060 : memref<1x32xf32, #tpu.memory_space<any>>) dst(%1061 : memref<1x32xf32, #tpu.memory_space<vmem>>)
    %c0_i32_872 = arith.constant 0 : i32
    %c0_i32_873 = arith.constant 0 : i32
    %1064 = tpu.memref_slice %arg2[%299, %c0_i32_873] : memref<50x32xf32, #tpu.memory_space<any>> -> memref<1x32xf32, #tpu.memory_space<any>>
    %c21_i32_874 = arith.constant 21 : i32
    %c0_i32_875 = arith.constant 0 : i32
    %1065 = tpu.memref_slice %arg7[%c21_i32_874, %c0_i32_875] : memref<64x32xf32, #tpu.memory_space<vmem>> -> memref<1x32xf32, #tpu.memory_space<vmem>>
    %1066 = tpu.memref_slice %arg9[%c0_i32_872] : memref<2x!tpu.dma_semaphore, #tpu.memory_space<semaphore_mem>> -> memref<1x!tpu.dma_semaphore, #tpu.memory_space<semaphore_mem>>
    %1067 = tpu.memref_squeeze %1066 : memref<1x!tpu.dma_semaphore, #tpu.memory_space<semaphore_mem>> -> memref<!tpu.dma_semaphore, #tpu.memory_space<semaphore_mem>>
    tpu.wait_dma2 semaphore(%1067 : memref<!tpu.dma_semaphore, #tpu.memory_space<semaphore_mem>>) src(%1064 : memref<1x32xf32, #tpu.memory_space<any>>) dst(%1065 : memref<1x32xf32, #tpu.memory_space<vmem>>)
    %c1_i32_876 = arith.constant 1 : i32
    %c0_i32_877 = arith.constant 0 : i32
    %1068 = tpu.memref_slice %arg2[%299, %c0_i32_877] : memref<50x32xf32, #tpu.memory_space<any>> -> memref<1x32xf32, #tpu.memory_space<any>>
    %c42_i32_878 = arith.constant 42 : i32
    %c0_i32_879 = arith.constant 0 : i32
    %1069 = tpu.memref_slice %arg8[%c42_i32_878, %c0_i32_879] : memref<64x32xf32, #tpu.memory_space<vmem>> -> memref<1x32xf32, #tpu.memory_space<vmem>>
    %1070 = tpu.memref_slice %arg9[%c1_i32_876] : memref<2x!tpu.dma_semaphore, #tpu.memory_space<semaphore_mem>> -> memref<1x!tpu.dma_semaphore, #tpu.memory_space<semaphore_mem>>
    %1071 = tpu.memref_squeeze %1070 : memref<1x!tpu.dma_semaphore, #tpu.memory_space<semaphore_mem>> -> memref<!tpu.dma_semaphore, #tpu.memory_space<semaphore_mem>>
    tpu.wait_dma2 semaphore(%1071 : memref<!tpu.dma_semaphore, #tpu.memory_space<semaphore_mem>>) src(%1068 : memref<1x32xf32, #tpu.memory_space<any>>) dst(%1069 : memref<1x32xf32, #tpu.memory_space<vmem>>)
    %c0_i32_880 = arith.constant 0 : i32
    %c0_i32_881 = arith.constant 0 : i32
    %1072 = tpu.memref_slice %arg2[%313, %c0_i32_881] : memref<50x32xf32, #tpu.memory_space<any>> -> memref<1x32xf32, #tpu.memory_space<any>>
    %c22_i32_882 = arith.constant 22 : i32
    %c0_i32_883 = arith.constant 0 : i32
    %1073 = tpu.memref_slice %arg7[%c22_i32_882, %c0_i32_883] : memref<64x32xf32, #tpu.memory_space<vmem>> -> memref<1x32xf32, #tpu.memory_space<vmem>>
    %1074 = tpu.memref_slice %arg9[%c0_i32_880] : memref<2x!tpu.dma_semaphore, #tpu.memory_space<semaphore_mem>> -> memref<1x!tpu.dma_semaphore, #tpu.memory_space<semaphore_mem>>
    %1075 = tpu.memref_squeeze %1074 : memref<1x!tpu.dma_semaphore, #tpu.memory_space<semaphore_mem>> -> memref<!tpu.dma_semaphore, #tpu.memory_space<semaphore_mem>>
    tpu.wait_dma2 semaphore(%1075 : memref<!tpu.dma_semaphore, #tpu.memory_space<semaphore_mem>>) src(%1072 : memref<1x32xf32, #tpu.memory_space<any>>) dst(%1073 : memref<1x32xf32, #tpu.memory_space<vmem>>)
    %c1_i32_884 = arith.constant 1 : i32
    %c0_i32_885 = arith.constant 0 : i32
    %1076 = tpu.memref_slice %arg2[%313, %c0_i32_885] : memref<50x32xf32, #tpu.memory_space<any>> -> memref<1x32xf32, #tpu.memory_space<any>>
    %c50_i32_886 = arith.constant 50 : i32
    %c0_i32_887 = arith.constant 0 : i32
    %1077 = tpu.memref_slice %arg8[%c50_i32_886, %c0_i32_887] : memref<64x32xf32, #tpu.memory_space<vmem>> -> memref<1x32xf32, #tpu.memory_space<vmem>>
    %1078 = tpu.memref_slice %arg9[%c1_i32_884] : memref<2x!tpu.dma_semaphore, #tpu.memory_space<semaphore_mem>> -> memref<1x!tpu.dma_semaphore, #tpu.memory_space<semaphore_mem>>
    %1079 = tpu.memref_squeeze %1078 : memref<1x!tpu.dma_semaphore, #tpu.memory_space<semaphore_mem>> -> memref<!tpu.dma_semaphore, #tpu.memory_space<semaphore_mem>>
    tpu.wait_dma2 semaphore(%1079 : memref<!tpu.dma_semaphore, #tpu.memory_space<semaphore_mem>>) src(%1076 : memref<1x32xf32, #tpu.memory_space<any>>) dst(%1077 : memref<1x32xf32, #tpu.memory_space<vmem>>)
    %c0_i32_888 = arith.constant 0 : i32
    %c0_i32_889 = arith.constant 0 : i32
    %1080 = tpu.memref_slice %arg2[%327, %c0_i32_889] : memref<50x32xf32, #tpu.memory_space<any>> -> memref<1x32xf32, #tpu.memory_space<any>>
    %c23_i32_890 = arith.constant 23 : i32
    %c0_i32_891 = arith.constant 0 : i32
    %1081 = tpu.memref_slice %arg7[%c23_i32_890, %c0_i32_891] : memref<64x32xf32, #tpu.memory_space<vmem>> -> memref<1x32xf32, #tpu.memory_space<vmem>>
    %1082 = tpu.memref_slice %arg9[%c0_i32_888] : memref<2x!tpu.dma_semaphore, #tpu.memory_space<semaphore_mem>> -> memref<1x!tpu.dma_semaphore, #tpu.memory_space<semaphore_mem>>
    %1083 = tpu.memref_squeeze %1082 : memref<1x!tpu.dma_semaphore, #tpu.memory_space<semaphore_mem>> -> memref<!tpu.dma_semaphore, #tpu.memory_space<semaphore_mem>>
    tpu.wait_dma2 semaphore(%1083 : memref<!tpu.dma_semaphore, #tpu.memory_space<semaphore_mem>>) src(%1080 : memref<1x32xf32, #tpu.memory_space<any>>) dst(%1081 : memref<1x32xf32, #tpu.memory_space<vmem>>)
    %c1_i32_892 = arith.constant 1 : i32
    %c0_i32_893 = arith.constant 0 : i32
    %1084 = tpu.memref_slice %arg2[%327, %c0_i32_893] : memref<50x32xf32, #tpu.memory_space<any>> -> memref<1x32xf32, #tpu.memory_space<any>>
    %c58_i32_894 = arith.constant 58 : i32
    %c0_i32_895 = arith.constant 0 : i32
    %1085 = tpu.memref_slice %arg8[%c58_i32_894, %c0_i32_895] : memref<64x32xf32, #tpu.memory_space<vmem>> -> memref<1x32xf32, #tpu.memory_space<vmem>>
    %1086 = tpu.memref_slice %arg9[%c1_i32_892] : memref<2x!tpu.dma_semaphore, #tpu.memory_space<semaphore_mem>> -> memref<1x!tpu.dma_semaphore, #tpu.memory_space<semaphore_mem>>
    %1087 = tpu.memref_squeeze %1086 : memref<1x!tpu.dma_semaphore, #tpu.memory_space<semaphore_mem>> -> memref<!tpu.dma_semaphore, #tpu.memory_space<semaphore_mem>>
    tpu.wait_dma2 semaphore(%1087 : memref<!tpu.dma_semaphore, #tpu.memory_space<semaphore_mem>>) src(%1084 : memref<1x32xf32, #tpu.memory_space<any>>) dst(%1085 : memref<1x32xf32, #tpu.memory_space<vmem>>)
    %c0_i32_896 = arith.constant 0 : i32
    %c0_i32_897 = arith.constant 0 : i32
    %1088 = tpu.memref_slice %arg2[%341, %c0_i32_897] : memref<50x32xf32, #tpu.memory_space<any>> -> memref<1x32xf32, #tpu.memory_space<any>>
    %c24_i32_898 = arith.constant 24 : i32
    %c0_i32_899 = arith.constant 0 : i32
    %1089 = tpu.memref_slice %arg7[%c24_i32_898, %c0_i32_899] : memref<64x32xf32, #tpu.memory_space<vmem>> -> memref<1x32xf32, #tpu.memory_space<vmem>>
    %1090 = tpu.memref_slice %arg9[%c0_i32_896] : memref<2x!tpu.dma_semaphore, #tpu.memory_space<semaphore_mem>> -> memref<1x!tpu.dma_semaphore, #tpu.memory_space<semaphore_mem>>
    %1091 = tpu.memref_squeeze %1090 : memref<1x!tpu.dma_semaphore, #tpu.memory_space<semaphore_mem>> -> memref<!tpu.dma_semaphore, #tpu.memory_space<semaphore_mem>>
    tpu.wait_dma2 semaphore(%1091 : memref<!tpu.dma_semaphore, #tpu.memory_space<semaphore_mem>>) src(%1088 : memref<1x32xf32, #tpu.memory_space<any>>) dst(%1089 : memref<1x32xf32, #tpu.memory_space<vmem>>)
    %c1_i32_900 = arith.constant 1 : i32
    %c0_i32_901 = arith.constant 0 : i32
    %1092 = tpu.memref_slice %arg2[%341, %c0_i32_901] : memref<50x32xf32, #tpu.memory_space<any>> -> memref<1x32xf32, #tpu.memory_space<any>>
    %c3_i32_902 = arith.constant 3 : i32
    %c0_i32_903 = arith.constant 0 : i32
    %1093 = tpu.memref_slice %arg8[%c3_i32_902, %c0_i32_903] : memref<64x32xf32, #tpu.memory_space<vmem>> -> memref<1x32xf32, #tpu.memory_space<vmem>>
    %1094 = tpu.memref_slice %arg9[%c1_i32_900] : memref<2x!tpu.dma_semaphore, #tpu.memory_space<semaphore_mem>> -> memref<1x!tpu.dma_semaphore, #tpu.memory_space<semaphore_mem>>
    %1095 = tpu.memref_squeeze %1094 : memref<1x!tpu.dma_semaphore, #tpu.memory_space<semaphore_mem>> -> memref<!tpu.dma_semaphore, #tpu.memory_space<semaphore_mem>>
    tpu.wait_dma2 semaphore(%1095 : memref<!tpu.dma_semaphore, #tpu.memory_space<semaphore_mem>>) src(%1092 : memref<1x32xf32, #tpu.memory_space<any>>) dst(%1093 : memref<1x32xf32, #tpu.memory_space<vmem>>)
    %c0_i32_904 = arith.constant 0 : i32
    %c0_i32_905 = arith.constant 0 : i32
    %1096 = tpu.memref_slice %arg2[%355, %c0_i32_905] : memref<50x32xf32, #tpu.memory_space<any>> -> memref<1x32xf32, #tpu.memory_space<any>>
    %c25_i32_906 = arith.constant 25 : i32
    %c0_i32_907 = arith.constant 0 : i32
    %1097 = tpu.memref_slice %arg7[%c25_i32_906, %c0_i32_907] : memref<64x32xf32, #tpu.memory_space<vmem>> -> memref<1x32xf32, #tpu.memory_space<vmem>>
    %1098 = tpu.memref_slice %arg9[%c0_i32_904] : memref<2x!tpu.dma_semaphore, #tpu.memory_space<semaphore_mem>> -> memref<1x!tpu.dma_semaphore, #tpu.memory_space<semaphore_mem>>
    %1099 = tpu.memref_squeeze %1098 : memref<1x!tpu.dma_semaphore, #tpu.memory_space<semaphore_mem>> -> memref<!tpu.dma_semaphore, #tpu.memory_space<semaphore_mem>>
    tpu.wait_dma2 semaphore(%1099 : memref<!tpu.dma_semaphore, #tpu.memory_space<semaphore_mem>>) src(%1096 : memref<1x32xf32, #tpu.memory_space<any>>) dst(%1097 : memref<1x32xf32, #tpu.memory_space<vmem>>)
    %c1_i32_908 = arith.constant 1 : i32
    %c0_i32_909 = arith.constant 0 : i32
    %1100 = tpu.memref_slice %arg2[%355, %c0_i32_909] : memref<50x32xf32, #tpu.memory_space<any>> -> memref<1x32xf32, #tpu.memory_space<any>>
    %c11_i32_910 = arith.constant 11 : i32
    %c0_i32_911 = arith.constant 0 : i32
    %1101 = tpu.memref_slice %arg8[%c11_i32_910, %c0_i32_911] : memref<64x32xf32, #tpu.memory_space<vmem>> -> memref<1x32xf32, #tpu.memory_space<vmem>>
    %1102 = tpu.memref_slice %arg9[%c1_i32_908] : memref<2x!tpu.dma_semaphore, #tpu.memory_space<semaphore_mem>> -> memref<1x!tpu.dma_semaphore, #tpu.memory_space<semaphore_mem>>
    %1103 = tpu.memref_squeeze %1102 : memref<1x!tpu.dma_semaphore, #tpu.memory_space<semaphore_mem>> -> memref<!tpu.dma_semaphore, #tpu.memory_space<semaphore_mem>>
    tpu.wait_dma2 semaphore(%1103 : memref<!tpu.dma_semaphore, #tpu.memory_space<semaphore_mem>>) src(%1100 : memref<1x32xf32, #tpu.memory_space<any>>) dst(%1101 : memref<1x32xf32, #tpu.memory_space<vmem>>)
    %c0_i32_912 = arith.constant 0 : i32
    %c0_i32_913 = arith.constant 0 : i32
    %1104 = tpu.memref_slice %arg2[%369, %c0_i32_913] : memref<50x32xf32, #tpu.memory_space<any>> -> memref<1x32xf32, #tpu.memory_space<any>>
    %c26_i32_914 = arith.constant 26 : i32
    %c0_i32_915 = arith.constant 0 : i32
    %1105 = tpu.memref_slice %arg7[%c26_i32_914, %c0_i32_915] : memref<64x32xf32, #tpu.memory_space<vmem>> -> memref<1x32xf32, #tpu.memory_space<vmem>>
    %1106 = tpu.memref_slice %arg9[%c0_i32_912] : memref<2x!tpu.dma_semaphore, #tpu.memory_space<semaphore_mem>> -> memref<1x!tpu.dma_semaphore, #tpu.memory_space<semaphore_mem>>
    %1107 = tpu.memref_squeeze %1106 : memref<1x!tpu.dma_semaphore, #tpu.memory_space<semaphore_mem>> -> memref<!tpu.dma_semaphore, #tpu.memory_space<semaphore_mem>>
    tpu.wait_dma2 semaphore(%1107 : memref<!tpu.dma_semaphore, #tpu.memory_space<semaphore_mem>>) src(%1104 : memref<1x32xf32, #tpu.memory_space<any>>) dst(%1105 : memref<1x32xf32, #tpu.memory_space<vmem>>)
    %c1_i32_916 = arith.constant 1 : i32
    %c0_i32_917 = arith.constant 0 : i32
    %1108 = tpu.memref_slice %arg2[%369, %c0_i32_917] : memref<50x32xf32, #tpu.memory_space<any>> -> memref<1x32xf32, #tpu.memory_space<any>>
    %c19_i32_918 = arith.constant 19 : i32
    %c0_i32_919 = arith.constant 0 : i32
    %1109 = tpu.memref_slice %arg8[%c19_i32_918, %c0_i32_919] : memref<64x32xf32, #tpu.memory_space<vmem>> -> memref<1x32xf32, #tpu.memory_space<vmem>>
    %1110 = tpu.memref_slice %arg9[%c1_i32_916] : memref<2x!tpu.dma_semaphore, #tpu.memory_space<semaphore_mem>> -> memref<1x!tpu.dma_semaphore, #tpu.memory_space<semaphore_mem>>
    %1111 = tpu.memref_squeeze %1110 : memref<1x!tpu.dma_semaphore, #tpu.memory_space<semaphore_mem>> -> memref<!tpu.dma_semaphore, #tpu.memory_space<semaphore_mem>>
    tpu.wait_dma2 semaphore(%1111 : memref<!tpu.dma_semaphore, #tpu.memory_space<semaphore_mem>>) src(%1108 : memref<1x32xf32, #tpu.memory_space<any>>) dst(%1109 : memref<1x32xf32, #tpu.memory_space<vmem>>)
    %c0_i32_920 = arith.constant 0 : i32
    %c0_i32_921 = arith.constant 0 : i32
    %1112 = tpu.memref_slice %arg2[%383, %c0_i32_921] : memref<50x32xf32, #tpu.memory_space<any>> -> memref<1x32xf32, #tpu.memory_space<any>>
    %c27_i32_922 = arith.constant 27 : i32
    %c0_i32_923 = arith.constant 0 : i32
    %1113 = tpu.memref_slice %arg7[%c27_i32_922, %c0_i32_923] : memref<64x32xf32, #tpu.memory_space<vmem>> -> memref<1x32xf32, #tpu.memory_space<vmem>>
    %1114 = tpu.memref_slice %arg9[%c0_i32_920] : memref<2x!tpu.dma_semaphore, #tpu.memory_space<semaphore_mem>> -> memref<1x!tpu.dma_semaphore, #tpu.memory_space<semaphore_mem>>
    %1115 = tpu.memref_squeeze %1114 : memref<1x!tpu.dma_semaphore, #tpu.memory_space<semaphore_mem>> -> memref<!tpu.dma_semaphore, #tpu.memory_space<semaphore_mem>>
    tpu.wait_dma2 semaphore(%1115 : memref<!tpu.dma_semaphore, #tpu.memory_space<semaphore_mem>>) src(%1112 : memref<1x32xf32, #tpu.memory_space<any>>) dst(%1113 : memref<1x32xf32, #tpu.memory_space<vmem>>)
    %c1_i32_924 = arith.constant 1 : i32
    %c0_i32_925 = arith.constant 0 : i32
    %1116 = tpu.memref_slice %arg2[%383, %c0_i32_925] : memref<50x32xf32, #tpu.memory_space<any>> -> memref<1x32xf32, #tpu.memory_space<any>>
    %c27_i32_926 = arith.constant 27 : i32
    %c0_i32_927 = arith.constant 0 : i32
    %1117 = tpu.memref_slice %arg8[%c27_i32_926, %c0_i32_927] : memref<64x32xf32, #tpu.memory_space<vmem>> -> memref<1x32xf32, #tpu.memory_space<vmem>>
    %1118 = tpu.memref_slice %arg9[%c1_i32_924] : memref<2x!tpu.dma_semaphore, #tpu.memory_space<semaphore_mem>> -> memref<1x!tpu.dma_semaphore, #tpu.memory_space<semaphore_mem>>
    %1119 = tpu.memref_squeeze %1118 : memref<1x!tpu.dma_semaphore, #tpu.memory_space<semaphore_mem>> -> memref<!tpu.dma_semaphore, #tpu.memory_space<semaphore_mem>>
    tpu.wait_dma2 semaphore(%1119 : memref<!tpu.dma_semaphore, #tpu.memory_space<semaphore_mem>>) src(%1116 : memref<1x32xf32, #tpu.memory_space<any>>) dst(%1117 : memref<1x32xf32, #tpu.memory_space<vmem>>)
    %c0_i32_928 = arith.constant 0 : i32
    %c0_i32_929 = arith.constant 0 : i32
    %1120 = tpu.memref_slice %arg2[%397, %c0_i32_929] : memref<50x32xf32, #tpu.memory_space<any>> -> memref<1x32xf32, #tpu.memory_space<any>>
    %c28_i32_930 = arith.constant 28 : i32
    %c0_i32_931 = arith.constant 0 : i32
    %1121 = tpu.memref_slice %arg7[%c28_i32_930, %c0_i32_931] : memref<64x32xf32, #tpu.memory_space<vmem>> -> memref<1x32xf32, #tpu.memory_space<vmem>>
    %1122 = tpu.memref_slice %arg9[%c0_i32_928] : memref<2x!tpu.dma_semaphore, #tpu.memory_space<semaphore_mem>> -> memref<1x!tpu.dma_semaphore, #tpu.memory_space<semaphore_mem>>
    %1123 = tpu.memref_squeeze %1122 : memref<1x!tpu.dma_semaphore, #tpu.memory_space<semaphore_mem>> -> memref<!tpu.dma_semaphore, #tpu.memory_space<semaphore_mem>>
    tpu.wait_dma2 semaphore(%1123 : memref<!tpu.dma_semaphore, #tpu.memory_space<semaphore_mem>>) src(%1120 : memref<1x32xf32, #tpu.memory_space<any>>) dst(%1121 : memref<1x32xf32, #tpu.memory_space<vmem>>)
    %c1_i32_932 = arith.constant 1 : i32
    %c0_i32_933 = arith.constant 0 : i32
    %1124 = tpu.memref_slice %arg2[%397, %c0_i32_933] : memref<50x32xf32, #tpu.memory_space<any>> -> memref<1x32xf32, #tpu.memory_space<any>>
    %c35_i32_934 = arith.constant 35 : i32
    %c0_i32_935 = arith.constant 0 : i32
    %1125 = tpu.memref_slice %arg8[%c35_i32_934, %c0_i32_935] : memref<64x32xf32, #tpu.memory_space<vmem>> -> memref<1x32xf32, #tpu.memory_space<vmem>>
    %1126 = tpu.memref_slice %arg9[%c1_i32_932] : memref<2x!tpu.dma_semaphore, #tpu.memory_space<semaphore_mem>> -> memref<1x!tpu.dma_semaphore, #tpu.memory_space<semaphore_mem>>
    %1127 = tpu.memref_squeeze %1126 : memref<1x!tpu.dma_semaphore, #tpu.memory_space<semaphore_mem>> -> memref<!tpu.dma_semaphore, #tpu.memory_space<semaphore_mem>>
    tpu.wait_dma2 semaphore(%1127 : memref<!tpu.dma_semaphore, #tpu.memory_space<semaphore_mem>>) src(%1124 : memref<1x32xf32, #tpu.memory_space<any>>) dst(%1125 : memref<1x32xf32, #tpu.memory_space<vmem>>)
    %c0_i32_936 = arith.constant 0 : i32
    %c0_i32_937 = arith.constant 0 : i32
    %1128 = tpu.memref_slice %arg2[%411, %c0_i32_937] : memref<50x32xf32, #tpu.memory_space<any>> -> memref<1x32xf32, #tpu.memory_space<any>>
    %c29_i32_938 = arith.constant 29 : i32
    %c0_i32_939 = arith.constant 0 : i32
    %1129 = tpu.memref_slice %arg7[%c29_i32_938, %c0_i32_939] : memref<64x32xf32, #tpu.memory_space<vmem>> -> memref<1x32xf32, #tpu.memory_space<vmem>>
    %1130 = tpu.memref_slice %arg9[%c0_i32_936] : memref<2x!tpu.dma_semaphore, #tpu.memory_space<semaphore_mem>> -> memref<1x!tpu.dma_semaphore, #tpu.memory_space<semaphore_mem>>
    %1131 = tpu.memref_squeeze %1130 : memref<1x!tpu.dma_semaphore, #tpu.memory_space<semaphore_mem>> -> memref<!tpu.dma_semaphore, #tpu.memory_space<semaphore_mem>>
    tpu.wait_dma2 semaphore(%1131 : memref<!tpu.dma_semaphore, #tpu.memory_space<semaphore_mem>>) src(%1128 : memref<1x32xf32, #tpu.memory_space<any>>) dst(%1129 : memref<1x32xf32, #tpu.memory_space<vmem>>)
    %c1_i32_940 = arith.constant 1 : i32
    %c0_i32_941 = arith.constant 0 : i32
    %1132 = tpu.memref_slice %arg2[%411, %c0_i32_941] : memref<50x32xf32, #tpu.memory_space<any>> -> memref<1x32xf32, #tpu.memory_space<any>>
    %c43_i32_942 = arith.constant 43 : i32
    %c0_i32_943 = arith.constant 0 : i32
    %1133 = tpu.memref_slice %arg8[%c43_i32_942, %c0_i32_943] : memref<64x32xf32, #tpu.memory_space<vmem>> -> memref<1x32xf32, #tpu.memory_space<vmem>>
    %1134 = tpu.memref_slice %arg9[%c1_i32_940] : memref<2x!tpu.dma_semaphore, #tpu.memory_space<semaphore_mem>> -> memref<1x!tpu.dma_semaphore, #tpu.memory_space<semaphore_mem>>
    %1135 = tpu.memref_squeeze %1134 : memref<1x!tpu.dma_semaphore, #tpu.memory_space<semaphore_mem>> -> memref<!tpu.dma_semaphore, #tpu.memory_space<semaphore_mem>>
    tpu.wait_dma2 semaphore(%1135 : memref<!tpu.dma_semaphore, #tpu.memory_space<semaphore_mem>>) src(%1132 : memref<1x32xf32, #tpu.memory_space<any>>) dst(%1133 : memref<1x32xf32, #tpu.memory_space<vmem>>)
    %c0_i32_944 = arith.constant 0 : i32
    %c0_i32_945 = arith.constant 0 : i32
    %1136 = tpu.memref_slice %arg2[%425, %c0_i32_945] : memref<50x32xf32, #tpu.memory_space<any>> -> memref<1x32xf32, #tpu.memory_space<any>>
    %c30_i32_946 = arith.constant 30 : i32
    %c0_i32_947 = arith.constant 0 : i32
    %1137 = tpu.memref_slice %arg7[%c30_i32_946, %c0_i32_947] : memref<64x32xf32, #tpu.memory_space<vmem>> -> memref<1x32xf32, #tpu.memory_space<vmem>>
    %1138 = tpu.memref_slice %arg9[%c0_i32_944] : memref<2x!tpu.dma_semaphore, #tpu.memory_space<semaphore_mem>> -> memref<1x!tpu.dma_semaphore, #tpu.memory_space<semaphore_mem>>
    %1139 = tpu.memref_squeeze %1138 : memref<1x!tpu.dma_semaphore, #tpu.memory_space<semaphore_mem>> -> memref<!tpu.dma_semaphore, #tpu.memory_space<semaphore_mem>>
    tpu.wait_dma2 semaphore(%1139 : memref<!tpu.dma_semaphore, #tpu.memory_space<semaphore_mem>>) src(%1136 : memref<1x32xf32, #tpu.memory_space<any>>) dst(%1137 : memref<1x32xf32, #tpu.memory_space<vmem>>)
    %c1_i32_948 = arith.constant 1 : i32
    %c0_i32_949 = arith.constant 0 : i32
    %1140 = tpu.memref_slice %arg2[%425, %c0_i32_949] : memref<50x32xf32, #tpu.memory_space<any>> -> memref<1x32xf32, #tpu.memory_space<any>>
    %c51_i32_950 = arith.constant 51 : i32
    %c0_i32_951 = arith.constant 0 : i32
    %1141 = tpu.memref_slice %arg8[%c51_i32_950, %c0_i32_951] : memref<64x32xf32, #tpu.memory_space<vmem>> -> memref<1x32xf32, #tpu.memory_space<vmem>>
    %1142 = tpu.memref_slice %arg9[%c1_i32_948] : memref<2x!tpu.dma_semaphore, #tpu.memory_space<semaphore_mem>> -> memref<1x!tpu.dma_semaphore, #tpu.memory_space<semaphore_mem>>
    %1143 = tpu.memref_squeeze %1142 : memref<1x!tpu.dma_semaphore, #tpu.memory_space<semaphore_mem>> -> memref<!tpu.dma_semaphore, #tpu.memory_space<semaphore_mem>>
    tpu.wait_dma2 semaphore(%1143 : memref<!tpu.dma_semaphore, #tpu.memory_space<semaphore_mem>>) src(%1140 : memref<1x32xf32, #tpu.memory_space<any>>) dst(%1141 : memref<1x32xf32, #tpu.memory_space<vmem>>)
    %c0_i32_952 = arith.constant 0 : i32
    %c0_i32_953 = arith.constant 0 : i32
    %1144 = tpu.memref_slice %arg2[%439, %c0_i32_953] : memref<50x32xf32, #tpu.memory_space<any>> -> memref<1x32xf32, #tpu.memory_space<any>>
    %c31_i32_954 = arith.constant 31 : i32
    %c0_i32_955 = arith.constant 0 : i32
    %1145 = tpu.memref_slice %arg7[%c31_i32_954, %c0_i32_955] : memref<64x32xf32, #tpu.memory_space<vmem>> -> memref<1x32xf32, #tpu.memory_space<vmem>>
    %1146 = tpu.memref_slice %arg9[%c0_i32_952] : memref<2x!tpu.dma_semaphore, #tpu.memory_space<semaphore_mem>> -> memref<1x!tpu.dma_semaphore, #tpu.memory_space<semaphore_mem>>
    %1147 = tpu.memref_squeeze %1146 : memref<1x!tpu.dma_semaphore, #tpu.memory_space<semaphore_mem>> -> memref<!tpu.dma_semaphore, #tpu.memory_space<semaphore_mem>>
    tpu.wait_dma2 semaphore(%1147 : memref<!tpu.dma_semaphore, #tpu.memory_space<semaphore_mem>>) src(%1144 : memref<1x32xf32, #tpu.memory_space<any>>) dst(%1145 : memref<1x32xf32, #tpu.memory_space<vmem>>)
    %c1_i32_956 = arith.constant 1 : i32
    %c0_i32_957 = arith.constant 0 : i32
    %1148 = tpu.memref_slice %arg2[%439, %c0_i32_957] : memref<50x32xf32, #tpu.memory_space<any>> -> memref<1x32xf32, #tpu.memory_space<any>>
    %c59_i32_958 = arith.constant 59 : i32
    %c0_i32_959 = arith.constant 0 : i32
    %1149 = tpu.memref_slice %arg8[%c59_i32_958, %c0_i32_959] : memref<64x32xf32, #tpu.memory_space<vmem>> -> memref<1x32xf32, #tpu.memory_space<vmem>>
    %1150 = tpu.memref_slice %arg9[%c1_i32_956] : memref<2x!tpu.dma_semaphore, #tpu.memory_space<semaphore_mem>> -> memref<1x!tpu.dma_semaphore, #tpu.memory_space<semaphore_mem>>
    %1151 = tpu.memref_squeeze %1150 : memref<1x!tpu.dma_semaphore, #tpu.memory_space<semaphore_mem>> -> memref<!tpu.dma_semaphore, #tpu.memory_space<semaphore_mem>>
    tpu.wait_dma2 semaphore(%1151 : memref<!tpu.dma_semaphore, #tpu.memory_space<semaphore_mem>>) src(%1148 : memref<1x32xf32, #tpu.memory_space<any>>) dst(%1149 : memref<1x32xf32, #tpu.memory_space<vmem>>)
    %c0_i32_960 = arith.constant 0 : i32
    %c0_i32_961 = arith.constant 0 : i32
    %1152 = tpu.memref_slice %arg2[%453, %c0_i32_961] : memref<50x32xf32, #tpu.memory_space<any>> -> memref<1x32xf32, #tpu.memory_space<any>>
    %c32_i32_962 = arith.constant 32 : i32
    %c0_i32_963 = arith.constant 0 : i32
    %1153 = tpu.memref_slice %arg7[%c32_i32_962, %c0_i32_963] : memref<64x32xf32, #tpu.memory_space<vmem>> -> memref<1x32xf32, #tpu.memory_space<vmem>>
    %1154 = tpu.memref_slice %arg9[%c0_i32_960] : memref<2x!tpu.dma_semaphore, #tpu.memory_space<semaphore_mem>> -> memref<1x!tpu.dma_semaphore, #tpu.memory_space<semaphore_mem>>
    %1155 = tpu.memref_squeeze %1154 : memref<1x!tpu.dma_semaphore, #tpu.memory_space<semaphore_mem>> -> memref<!tpu.dma_semaphore, #tpu.memory_space<semaphore_mem>>
    tpu.wait_dma2 semaphore(%1155 : memref<!tpu.dma_semaphore, #tpu.memory_space<semaphore_mem>>) src(%1152 : memref<1x32xf32, #tpu.memory_space<any>>) dst(%1153 : memref<1x32xf32, #tpu.memory_space<vmem>>)
    %c1_i32_964 = arith.constant 1 : i32
    %c0_i32_965 = arith.constant 0 : i32
    %1156 = tpu.memref_slice %arg2[%453, %c0_i32_965] : memref<50x32xf32, #tpu.memory_space<any>> -> memref<1x32xf32, #tpu.memory_space<any>>
    %c4_i32_966 = arith.constant 4 : i32
    %c0_i32_967 = arith.constant 0 : i32
    %1157 = tpu.memref_slice %arg8[%c4_i32_966, %c0_i32_967] : memref<64x32xf32, #tpu.memory_space<vmem>> -> memref<1x32xf32, #tpu.memory_space<vmem>>
    %1158 = tpu.memref_slice %arg9[%c1_i32_964] : memref<2x!tpu.dma_semaphore, #tpu.memory_space<semaphore_mem>> -> memref<1x!tpu.dma_semaphore, #tpu.memory_space<semaphore_mem>>
    %1159 = tpu.memref_squeeze %1158 : memref<1x!tpu.dma_semaphore, #tpu.memory_space<semaphore_mem>> -> memref<!tpu.dma_semaphore, #tpu.memory_space<semaphore_mem>>
    tpu.wait_dma2 semaphore(%1159 : memref<!tpu.dma_semaphore, #tpu.memory_space<semaphore_mem>>) src(%1156 : memref<1x32xf32, #tpu.memory_space<any>>) dst(%1157 : memref<1x32xf32, #tpu.memory_space<vmem>>)
    %c0_i32_968 = arith.constant 0 : i32
    %c0_i32_969 = arith.constant 0 : i32
    %1160 = tpu.memref_slice %arg2[%467, %c0_i32_969] : memref<50x32xf32, #tpu.memory_space<any>> -> memref<1x32xf32, #tpu.memory_space<any>>
    %c33_i32_970 = arith.constant 33 : i32
    %c0_i32_971 = arith.constant 0 : i32
    %1161 = tpu.memref_slice %arg7[%c33_i32_970, %c0_i32_971] : memref<64x32xf32, #tpu.memory_space<vmem>> -> memref<1x32xf32, #tpu.memory_space<vmem>>
    %1162 = tpu.memref_slice %arg9[%c0_i32_968] : memref<2x!tpu.dma_semaphore, #tpu.memory_space<semaphore_mem>> -> memref<1x!tpu.dma_semaphore, #tpu.memory_space<semaphore_mem>>
    %1163 = tpu.memref_squeeze %1162 : memref<1x!tpu.dma_semaphore, #tpu.memory_space<semaphore_mem>> -> memref<!tpu.dma_semaphore, #tpu.memory_space<semaphore_mem>>
    tpu.wait_dma2 semaphore(%1163 : memref<!tpu.dma_semaphore, #tpu.memory_space<semaphore_mem>>) src(%1160 : memref<1x32xf32, #tpu.memory_space<any>>) dst(%1161 : memref<1x32xf32, #tpu.memory_space<vmem>>)
    %c1_i32_972 = arith.constant 1 : i32
    %c0_i32_973 = arith.constant 0 : i32
    %1164 = tpu.memref_slice %arg2[%467, %c0_i32_973] : memref<50x32xf32, #tpu.memory_space<any>> -> memref<1x32xf32, #tpu.memory_space<any>>
    %c12_i32_974 = arith.constant 12 : i32
    %c0_i32_975 = arith.constant 0 : i32
    %1165 = tpu.memref_slice %arg8[%c12_i32_974, %c0_i32_975] : memref<64x32xf32, #tpu.memory_space<vmem>> -> memref<1x32xf32, #tpu.memory_space<vmem>>
    %1166 = tpu.memref_slice %arg9[%c1_i32_972] : memref<2x!tpu.dma_semaphore, #tpu.memory_space<semaphore_mem>> -> memref<1x!tpu.dma_semaphore, #tpu.memory_space<semaphore_mem>>
    %1167 = tpu.memref_squeeze %1166 : memref<1x!tpu.dma_semaphore, #tpu.memory_space<semaphore_mem>> -> memref<!tpu.dma_semaphore, #tpu.memory_space<semaphore_mem>>
    tpu.wait_dma2 semaphore(%1167 : memref<!tpu.dma_semaphore, #tpu.memory_space<semaphore_mem>>) src(%1164 : memref<1x32xf32, #tpu.memory_space<any>>) dst(%1165 : memref<1x32xf32, #tpu.memory_space<vmem>>)
    %c0_i32_976 = arith.constant 0 : i32
    %c0_i32_977 = arith.constant 0 : i32
    %1168 = tpu.memref_slice %arg2[%481, %c0_i32_977] : memref<50x32xf32, #tpu.memory_space<any>> -> memref<1x32xf32, #tpu.memory_space<any>>
    %c34_i32_978 = arith.constant 34 : i32
    %c0_i32_979 = arith.constant 0 : i32
    %1169 = tpu.memref_slice %arg7[%c34_i32_978, %c0_i32_979] : memref<64x32xf32, #tpu.memory_space<vmem>> -> memref<1x32xf32, #tpu.memory_space<vmem>>
    %1170 = tpu.memref_slice %arg9[%c0_i32_976] : memref<2x!tpu.dma_semaphore, #tpu.memory_space<semaphore_mem>> -> memref<1x!tpu.dma_semaphore, #tpu.memory_space<semaphore_mem>>
    %1171 = tpu.memref_squeeze %1170 : memref<1x!tpu.dma_semaphore, #tpu.memory_space<semaphore_mem>> -> memref<!tpu.dma_semaphore, #tpu.memory_space<semaphore_mem>>
    tpu.wait_dma2 semaphore(%1171 : memref<!tpu.dma_semaphore, #tpu.memory_space<semaphore_mem>>) src(%1168 : memref<1x32xf32, #tpu.memory_space<any>>) dst(%1169 : memref<1x32xf32, #tpu.memory_space<vmem>>)
    %c1_i32_980 = arith.constant 1 : i32
    %c0_i32_981 = arith.constant 0 : i32
    %1172 = tpu.memref_slice %arg2[%481, %c0_i32_981] : memref<50x32xf32, #tpu.memory_space<any>> -> memref<1x32xf32, #tpu.memory_space<any>>
    %c20_i32_982 = arith.constant 20 : i32
    %c0_i32_983 = arith.constant 0 : i32
    %1173 = tpu.memref_slice %arg8[%c20_i32_982, %c0_i32_983] : memref<64x32xf32, #tpu.memory_space<vmem>> -> memref<1x32xf32, #tpu.memory_space<vmem>>
    %1174 = tpu.memref_slice %arg9[%c1_i32_980] : memref<2x!tpu.dma_semaphore, #tpu.memory_space<semaphore_mem>> -> memref<1x!tpu.dma_semaphore, #tpu.memory_space<semaphore_mem>>
    %1175 = tpu.memref_squeeze %1174 : memref<1x!tpu.dma_semaphore, #tpu.memory_space<semaphore_mem>> -> memref<!tpu.dma_semaphore, #tpu.memory_space<semaphore_mem>>
    tpu.wait_dma2 semaphore(%1175 : memref<!tpu.dma_semaphore, #tpu.memory_space<semaphore_mem>>) src(%1172 : memref<1x32xf32, #tpu.memory_space<any>>) dst(%1173 : memref<1x32xf32, #tpu.memory_space<vmem>>)
    %c0_i32_984 = arith.constant 0 : i32
    %c0_i32_985 = arith.constant 0 : i32
    %1176 = tpu.memref_slice %arg2[%495, %c0_i32_985] : memref<50x32xf32, #tpu.memory_space<any>> -> memref<1x32xf32, #tpu.memory_space<any>>
    %c35_i32_986 = arith.constant 35 : i32
    %c0_i32_987 = arith.constant 0 : i32
    %1177 = tpu.memref_slice %arg7[%c35_i32_986, %c0_i32_987] : memref<64x32xf32, #tpu.memory_space<vmem>> -> memref<1x32xf32, #tpu.memory_space<vmem>>
    %1178 = tpu.memref_slice %arg9[%c0_i32_984] : memref<2x!tpu.dma_semaphore, #tpu.memory_space<semaphore_mem>> -> memref<1x!tpu.dma_semaphore, #tpu.memory_space<semaphore_mem>>
    %1179 = tpu.memref_squeeze %1178 : memref<1x!tpu.dma_semaphore, #tpu.memory_space<semaphore_mem>> -> memref<!tpu.dma_semaphore, #tpu.memory_space<semaphore_mem>>
    tpu.wait_dma2 semaphore(%1179 : memref<!tpu.dma_semaphore, #tpu.memory_space<semaphore_mem>>) src(%1176 : memref<1x32xf32, #tpu.memory_space<any>>) dst(%1177 : memref<1x32xf32, #tpu.memory_space<vmem>>)
    %c1_i32_988 = arith.constant 1 : i32
    %c0_i32_989 = arith.constant 0 : i32
    %1180 = tpu.memref_slice %arg2[%495, %c0_i32_989] : memref<50x32xf32, #tpu.memory_space<any>> -> memref<1x32xf32, #tpu.memory_space<any>>
    %c28_i32_990 = arith.constant 28 : i32
    %c0_i32_991 = arith.constant 0 : i32
    %1181 = tpu.memref_slice %arg8[%c28_i32_990, %c0_i32_991] : memref<64x32xf32, #tpu.memory_space<vmem>> -> memref<1x32xf32, #tpu.memory_space<vmem>>
    %1182 = tpu.memref_slice %arg9[%c1_i32_988] : memref<2x!tpu.dma_semaphore, #tpu.memory_space<semaphore_mem>> -> memref<1x!tpu.dma_semaphore, #tpu.memory_space<semaphore_mem>>
    %1183 = tpu.memref_squeeze %1182 : memref<1x!tpu.dma_semaphore, #tpu.memory_space<semaphore_mem>> -> memref<!tpu.dma_semaphore, #tpu.memory_space<semaphore_mem>>
    tpu.wait_dma2 semaphore(%1183 : memref<!tpu.dma_semaphore, #tpu.memory_space<semaphore_mem>>) src(%1180 : memref<1x32xf32, #tpu.memory_space<any>>) dst(%1181 : memref<1x32xf32, #tpu.memory_space<vmem>>)
    %c0_i32_992 = arith.constant 0 : i32
    %c0_i32_993 = arith.constant 0 : i32
    %1184 = tpu.memref_slice %arg2[%509, %c0_i32_993] : memref<50x32xf32, #tpu.memory_space<any>> -> memref<1x32xf32, #tpu.memory_space<any>>
    %c36_i32_994 = arith.constant 36 : i32
    %c0_i32_995 = arith.constant 0 : i32
    %1185 = tpu.memref_slice %arg7[%c36_i32_994, %c0_i32_995] : memref<64x32xf32, #tpu.memory_space<vmem>> -> memref<1x32xf32, #tpu.memory_space<vmem>>
    %1186 = tpu.memref_slice %arg9[%c0_i32_992] : memref<2x!tpu.dma_semaphore, #tpu.memory_space<semaphore_mem>> -> memref<1x!tpu.dma_semaphore, #tpu.memory_space<semaphore_mem>>
    %1187 = tpu.memref_squeeze %1186 : memref<1x!tpu.dma_semaphore, #tpu.memory_space<semaphore_mem>> -> memref<!tpu.dma_semaphore, #tpu.memory_space<semaphore_mem>>
    tpu.wait_dma2 semaphore(%1187 : memref<!tpu.dma_semaphore, #tpu.memory_space<semaphore_mem>>) src(%1184 : memref<1x32xf32, #tpu.memory_space<any>>) dst(%1185 : memref<1x32xf32, #tpu.memory_space<vmem>>)
    %c1_i32_996 = arith.constant 1 : i32
    %c0_i32_997 = arith.constant 0 : i32
    %1188 = tpu.memref_slice %arg2[%509, %c0_i32_997] : memref<50x32xf32, #tpu.memory_space<any>> -> memref<1x32xf32, #tpu.memory_space<any>>
    %c36_i32_998 = arith.constant 36 : i32
    %c0_i32_999 = arith.constant 0 : i32
    %1189 = tpu.memref_slice %arg8[%c36_i32_998, %c0_i32_999] : memref<64x32xf32, #tpu.memory_space<vmem>> -> memref<1x32xf32, #tpu.memory_space<vmem>>
    %1190 = tpu.memref_slice %arg9[%c1_i32_996] : memref<2x!tpu.dma_semaphore, #tpu.memory_space<semaphore_mem>> -> memref<1x!tpu.dma_semaphore, #tpu.memory_space<semaphore_mem>>
    %1191 = tpu.memref_squeeze %1190 : memref<1x!tpu.dma_semaphore, #tpu.memory_space<semaphore_mem>> -> memref<!tpu.dma_semaphore, #tpu.memory_space<semaphore_mem>>
    tpu.wait_dma2 semaphore(%1191 : memref<!tpu.dma_semaphore, #tpu.memory_space<semaphore_mem>>) src(%1188 : memref<1x32xf32, #tpu.memory_space<any>>) dst(%1189 : memref<1x32xf32, #tpu.memory_space<vmem>>)
    %c0_i32_1000 = arith.constant 0 : i32
    %c0_i32_1001 = arith.constant 0 : i32
    %1192 = tpu.memref_slice %arg2[%523, %c0_i32_1001] : memref<50x32xf32, #tpu.memory_space<any>> -> memref<1x32xf32, #tpu.memory_space<any>>
    %c37_i32_1002 = arith.constant 37 : i32
    %c0_i32_1003 = arith.constant 0 : i32
    %1193 = tpu.memref_slice %arg7[%c37_i32_1002, %c0_i32_1003] : memref<64x32xf32, #tpu.memory_space<vmem>> -> memref<1x32xf32, #tpu.memory_space<vmem>>
    %1194 = tpu.memref_slice %arg9[%c0_i32_1000] : memref<2x!tpu.dma_semaphore, #tpu.memory_space<semaphore_mem>> -> memref<1x!tpu.dma_semaphore, #tpu.memory_space<semaphore_mem>>
    %1195 = tpu.memref_squeeze %1194 : memref<1x!tpu.dma_semaphore, #tpu.memory_space<semaphore_mem>> -> memref<!tpu.dma_semaphore, #tpu.memory_space<semaphore_mem>>
    tpu.wait_dma2 semaphore(%1195 : memref<!tpu.dma_semaphore, #tpu.memory_space<semaphore_mem>>) src(%1192 : memref<1x32xf32, #tpu.memory_space<any>>) dst(%1193 : memref<1x32xf32, #tpu.memory_space<vmem>>)
    %c1_i32_1004 = arith.constant 1 : i32
    %c0_i32_1005 = arith.constant 0 : i32
    %1196 = tpu.memref_slice %arg2[%523, %c0_i32_1005] : memref<50x32xf32, #tpu.memory_space<any>> -> memref<1x32xf32, #tpu.memory_space<any>>
    %c44_i32_1006 = arith.constant 44 : i32
    %c0_i32_1007 = arith.constant 0 : i32
    %1197 = tpu.memref_slice %arg8[%c44_i32_1006, %c0_i32_1007] : memref<64x32xf32, #tpu.memory_space<vmem>> -> memref<1x32xf32, #tpu.memory_space<vmem>>
    %1198 = tpu.memref_slice %arg9[%c1_i32_1004] : memref<2x!tpu.dma_semaphore, #tpu.memory_space<semaphore_mem>> -> memref<1x!tpu.dma_semaphore, #tpu.memory_space<semaphore_mem>>
    %1199 = tpu.memref_squeeze %1198 : memref<1x!tpu.dma_semaphore, #tpu.memory_space<semaphore_mem>> -> memref<!tpu.dma_semaphore, #tpu.memory_space<semaphore_mem>>
    tpu.wait_dma2 semaphore(%1199 : memref<!tpu.dma_semaphore, #tpu.memory_space<semaphore_mem>>) src(%1196 : memref<1x32xf32, #tpu.memory_space<any>>) dst(%1197 : memref<1x32xf32, #tpu.memory_space<vmem>>)
    %c0_i32_1008 = arith.constant 0 : i32
    %c0_i32_1009 = arith.constant 0 : i32
    %1200 = tpu.memref_slice %arg2[%537, %c0_i32_1009] : memref<50x32xf32, #tpu.memory_space<any>> -> memref<1x32xf32, #tpu.memory_space<any>>
    %c38_i32_1010 = arith.constant 38 : i32
    %c0_i32_1011 = arith.constant 0 : i32
    %1201 = tpu.memref_slice %arg7[%c38_i32_1010, %c0_i32_1011] : memref<64x32xf32, #tpu.memory_space<vmem>> -> memref<1x32xf32, #tpu.memory_space<vmem>>
    %1202 = tpu.memref_slice %arg9[%c0_i32_1008] : memref<2x!tpu.dma_semaphore, #tpu.memory_space<semaphore_mem>> -> memref<1x!tpu.dma_semaphore, #tpu.memory_space<semaphore_mem>>
    %1203 = tpu.memref_squeeze %1202 : memref<1x!tpu.dma_semaphore, #tpu.memory_space<semaphore_mem>> -> memref<!tpu.dma_semaphore, #tpu.memory_space<semaphore_mem>>
    tpu.wait_dma2 semaphore(%1203 : memref<!tpu.dma_semaphore, #tpu.memory_space<semaphore_mem>>) src(%1200 : memref<1x32xf32, #tpu.memory_space<any>>) dst(%1201 : memref<1x32xf32, #tpu.memory_space<vmem>>)
    %c1_i32_1012 = arith.constant 1 : i32
    %c0_i32_1013 = arith.constant 0 : i32
    %1204 = tpu.memref_slice %arg2[%537, %c0_i32_1013] : memref<50x32xf32, #tpu.memory_space<any>> -> memref<1x32xf32, #tpu.memory_space<any>>
    %c52_i32_1014 = arith.constant 52 : i32
    %c0_i32_1015 = arith.constant 0 : i32
    %1205 = tpu.memref_slice %arg8[%c52_i32_1014, %c0_i32_1015] : memref<64x32xf32, #tpu.memory_space<vmem>> -> memref<1x32xf32, #tpu.memory_space<vmem>>
    %1206 = tpu.memref_slice %arg9[%c1_i32_1012] : memref<2x!tpu.dma_semaphore, #tpu.memory_space<semaphore_mem>> -> memref<1x!tpu.dma_semaphore, #tpu.memory_space<semaphore_mem>>
    %1207 = tpu.memref_squeeze %1206 : memref<1x!tpu.dma_semaphore, #tpu.memory_space<semaphore_mem>> -> memref<!tpu.dma_semaphore, #tpu.memory_space<semaphore_mem>>
    tpu.wait_dma2 semaphore(%1207 : memref<!tpu.dma_semaphore, #tpu.memory_space<semaphore_mem>>) src(%1204 : memref<1x32xf32, #tpu.memory_space<any>>) dst(%1205 : memref<1x32xf32, #tpu.memory_space<vmem>>)
    %c0_i32_1016 = arith.constant 0 : i32
    %c0_i32_1017 = arith.constant 0 : i32
    %1208 = tpu.memref_slice %arg2[%551, %c0_i32_1017] : memref<50x32xf32, #tpu.memory_space<any>> -> memref<1x32xf32, #tpu.memory_space<any>>
    %c39_i32_1018 = arith.constant 39 : i32
    %c0_i32_1019 = arith.constant 0 : i32
    %1209 = tpu.memref_slice %arg7[%c39_i32_1018, %c0_i32_1019] : memref<64x32xf32, #tpu.memory_space<vmem>> -> memref<1x32xf32, #tpu.memory_space<vmem>>
    %1210 = tpu.memref_slice %arg9[%c0_i32_1016] : memref<2x!tpu.dma_semaphore, #tpu.memory_space<semaphore_mem>> -> memref<1x!tpu.dma_semaphore, #tpu.memory_space<semaphore_mem>>
    %1211 = tpu.memref_squeeze %1210 : memref<1x!tpu.dma_semaphore, #tpu.memory_space<semaphore_mem>> -> memref<!tpu.dma_semaphore, #tpu.memory_space<semaphore_mem>>
    tpu.wait_dma2 semaphore(%1211 : memref<!tpu.dma_semaphore, #tpu.memory_space<semaphore_mem>>) src(%1208 : memref<1x32xf32, #tpu.memory_space<any>>) dst(%1209 : memref<1x32xf32, #tpu.memory_space<vmem>>)
    %c1_i32_1020 = arith.constant 1 : i32
    %c0_i32_1021 = arith.constant 0 : i32
    %1212 = tpu.memref_slice %arg2[%551, %c0_i32_1021] : memref<50x32xf32, #tpu.memory_space<any>> -> memref<1x32xf32, #tpu.memory_space<any>>
    %c60_i32_1022 = arith.constant 60 : i32
    %c0_i32_1023 = arith.constant 0 : i32
    %1213 = tpu.memref_slice %arg8[%c60_i32_1022, %c0_i32_1023] : memref<64x32xf32, #tpu.memory_space<vmem>> -> memref<1x32xf32, #tpu.memory_space<vmem>>
    %1214 = tpu.memref_slice %arg9[%c1_i32_1020] : memref<2x!tpu.dma_semaphore, #tpu.memory_space<semaphore_mem>> -> memref<1x!tpu.dma_semaphore, #tpu.memory_space<semaphore_mem>>
    %1215 = tpu.memref_squeeze %1214 : memref<1x!tpu.dma_semaphore, #tpu.memory_space<semaphore_mem>> -> memref<!tpu.dma_semaphore, #tpu.memory_space<semaphore_mem>>
    tpu.wait_dma2 semaphore(%1215 : memref<!tpu.dma_semaphore, #tpu.memory_space<semaphore_mem>>) src(%1212 : memref<1x32xf32, #tpu.memory_space<any>>) dst(%1213 : memref<1x32xf32, #tpu.memory_space<vmem>>)
    %c0_i32_1024 = arith.constant 0 : i32
    %c0_i32_1025 = arith.constant 0 : i32
    %1216 = tpu.memref_slice %arg2[%565, %c0_i32_1025] : memref<50x32xf32, #tpu.memory_space<any>> -> memref<1x32xf32, #tpu.memory_space<any>>
    %c40_i32_1026 = arith.constant 40 : i32
    %c0_i32_1027 = arith.constant 0 : i32
    %1217 = tpu.memref_slice %arg7[%c40_i32_1026, %c0_i32_1027] : memref<64x32xf32, #tpu.memory_space<vmem>> -> memref<1x32xf32, #tpu.memory_space<vmem>>
    %1218 = tpu.memref_slice %arg9[%c0_i32_1024] : memref<2x!tpu.dma_semaphore, #tpu.memory_space<semaphore_mem>> -> memref<1x!tpu.dma_semaphore, #tpu.memory_space<semaphore_mem>>
    %1219 = tpu.memref_squeeze %1218 : memref<1x!tpu.dma_semaphore, #tpu.memory_space<semaphore_mem>> -> memref<!tpu.dma_semaphore, #tpu.memory_space<semaphore_mem>>
    tpu.wait_dma2 semaphore(%1219 : memref<!tpu.dma_semaphore, #tpu.memory_space<semaphore_mem>>) src(%1216 : memref<1x32xf32, #tpu.memory_space<any>>) dst(%1217 : memref<1x32xf32, #tpu.memory_space<vmem>>)
    %c1_i32_1028 = arith.constant 1 : i32
    %c0_i32_1029 = arith.constant 0 : i32
    %1220 = tpu.memref_slice %arg2[%565, %c0_i32_1029] : memref<50x32xf32, #tpu.memory_space<any>> -> memref<1x32xf32, #tpu.memory_space<any>>
    %c5_i32_1030 = arith.constant 5 : i32
    %c0_i32_1031 = arith.constant 0 : i32
    %1221 = tpu.memref_slice %arg8[%c5_i32_1030, %c0_i32_1031] : memref<64x32xf32, #tpu.memory_space<vmem>> -> memref<1x32xf32, #tpu.memory_space<vmem>>
    %1222 = tpu.memref_slice %arg9[%c1_i32_1028] : memref<2x!tpu.dma_semaphore, #tpu.memory_space<semaphore_mem>> -> memref<1x!tpu.dma_semaphore, #tpu.memory_space<semaphore_mem>>
    %1223 = tpu.memref_squeeze %1222 : memref<1x!tpu.dma_semaphore, #tpu.memory_space<semaphore_mem>> -> memref<!tpu.dma_semaphore, #tpu.memory_space<semaphore_mem>>
    tpu.wait_dma2 semaphore(%1223 : memref<!tpu.dma_semaphore, #tpu.memory_space<semaphore_mem>>) src(%1220 : memref<1x32xf32, #tpu.memory_space<any>>) dst(%1221 : memref<1x32xf32, #tpu.memory_space<vmem>>)
    %c0_i32_1032 = arith.constant 0 : i32
    %c0_i32_1033 = arith.constant 0 : i32
    %1224 = tpu.memref_slice %arg2[%579, %c0_i32_1033] : memref<50x32xf32, #tpu.memory_space<any>> -> memref<1x32xf32, #tpu.memory_space<any>>
    %c41_i32_1034 = arith.constant 41 : i32
    %c0_i32_1035 = arith.constant 0 : i32
    %1225 = tpu.memref_slice %arg7[%c41_i32_1034, %c0_i32_1035] : memref<64x32xf32, #tpu.memory_space<vmem>> -> memref<1x32xf32, #tpu.memory_space<vmem>>
    %1226 = tpu.memref_slice %arg9[%c0_i32_1032] : memref<2x!tpu.dma_semaphore, #tpu.memory_space<semaphore_mem>> -> memref<1x!tpu.dma_semaphore, #tpu.memory_space<semaphore_mem>>
    %1227 = tpu.memref_squeeze %1226 : memref<1x!tpu.dma_semaphore, #tpu.memory_space<semaphore_mem>> -> memref<!tpu.dma_semaphore, #tpu.memory_space<semaphore_mem>>
    tpu.wait_dma2 semaphore(%1227 : memref<!tpu.dma_semaphore, #tpu.memory_space<semaphore_mem>>) src(%1224 : memref<1x32xf32, #tpu.memory_space<any>>) dst(%1225 : memref<1x32xf32, #tpu.memory_space<vmem>>)
    %c1_i32_1036 = arith.constant 1 : i32
    %c0_i32_1037 = arith.constant 0 : i32
    %1228 = tpu.memref_slice %arg2[%579, %c0_i32_1037] : memref<50x32xf32, #tpu.memory_space<any>> -> memref<1x32xf32, #tpu.memory_space<any>>
    %c13_i32_1038 = arith.constant 13 : i32
    %c0_i32_1039 = arith.constant 0 : i32
    %1229 = tpu.memref_slice %arg8[%c13_i32_1038, %c0_i32_1039] : memref<64x32xf32, #tpu.memory_space<vmem>> -> memref<1x32xf32, #tpu.memory_space<vmem>>
    %1230 = tpu.memref_slice %arg9[%c1_i32_1036] : memref<2x!tpu.dma_semaphore, #tpu.memory_space<semaphore_mem>> -> memref<1x!tpu.dma_semaphore, #tpu.memory_space<semaphore_mem>>
    %1231 = tpu.memref_squeeze %1230 : memref<1x!tpu.dma_semaphore, #tpu.memory_space<semaphore_mem>> -> memref<!tpu.dma_semaphore, #tpu.memory_space<semaphore_mem>>
    tpu.wait_dma2 semaphore(%1231 : memref<!tpu.dma_semaphore, #tpu.memory_space<semaphore_mem>>) src(%1228 : memref<1x32xf32, #tpu.memory_space<any>>) dst(%1229 : memref<1x32xf32, #tpu.memory_space<vmem>>)
    %c0_i32_1040 = arith.constant 0 : i32
    %c0_i32_1041 = arith.constant 0 : i32
    %1232 = tpu.memref_slice %arg2[%593, %c0_i32_1041] : memref<50x32xf32, #tpu.memory_space<any>> -> memref<1x32xf32, #tpu.memory_space<any>>
    %c42_i32_1042 = arith.constant 42 : i32
    %c0_i32_1043 = arith.constant 0 : i32
    %1233 = tpu.memref_slice %arg7[%c42_i32_1042, %c0_i32_1043] : memref<64x32xf32, #tpu.memory_space<vmem>> -> memref<1x32xf32, #tpu.memory_space<vmem>>
    %1234 = tpu.memref_slice %arg9[%c0_i32_1040] : memref<2x!tpu.dma_semaphore, #tpu.memory_space<semaphore_mem>> -> memref<1x!tpu.dma_semaphore, #tpu.memory_space<semaphore_mem>>
    %1235 = tpu.memref_squeeze %1234 : memref<1x!tpu.dma_semaphore, #tpu.memory_space<semaphore_mem>> -> memref<!tpu.dma_semaphore, #tpu.memory_space<semaphore_mem>>
    tpu.wait_dma2 semaphore(%1235 : memref<!tpu.dma_semaphore, #tpu.memory_space<semaphore_mem>>) src(%1232 : memref<1x32xf32, #tpu.memory_space<any>>) dst(%1233 : memref<1x32xf32, #tpu.memory_space<vmem>>)
    %c1_i32_1044 = arith.constant 1 : i32
    %c0_i32_1045 = arith.constant 0 : i32
    %1236 = tpu.memref_slice %arg2[%593, %c0_i32_1045] : memref<50x32xf32, #tpu.memory_space<any>> -> memref<1x32xf32, #tpu.memory_space<any>>
    %c21_i32_1046 = arith.constant 21 : i32
    %c0_i32_1047 = arith.constant 0 : i32
    %1237 = tpu.memref_slice %arg8[%c21_i32_1046, %c0_i32_1047] : memref<64x32xf32, #tpu.memory_space<vmem>> -> memref<1x32xf32, #tpu.memory_space<vmem>>
    %1238 = tpu.memref_slice %arg9[%c1_i32_1044] : memref<2x!tpu.dma_semaphore, #tpu.memory_space<semaphore_mem>> -> memref<1x!tpu.dma_semaphore, #tpu.memory_space<semaphore_mem>>
    %1239 = tpu.memref_squeeze %1238 : memref<1x!tpu.dma_semaphore, #tpu.memory_space<semaphore_mem>> -> memref<!tpu.dma_semaphore, #tpu.memory_space<semaphore_mem>>
    tpu.wait_dma2 semaphore(%1239 : memref<!tpu.dma_semaphore, #tpu.memory_space<semaphore_mem>>) src(%1236 : memref<1x32xf32, #tpu.memory_space<any>>) dst(%1237 : memref<1x32xf32, #tpu.memory_space<vmem>>)
    %c0_i32_1048 = arith.constant 0 : i32
    %c0_i32_1049 = arith.constant 0 : i32
    %1240 = tpu.memref_slice %arg2[%607, %c0_i32_1049] : memref<50x32xf32, #tpu.memory_space<any>> -> memref<1x32xf32, #tpu.memory_space<any>>
    %c43_i32_1050 = arith.constant 43 : i32
    %c0_i32_1051 = arith.constant 0 : i32
    %1241 = tpu.memref_slice %arg7[%c43_i32_1050, %c0_i32_1051] : memref<64x32xf32, #tpu.memory_space<vmem>> -> memref<1x32xf32, #tpu.memory_space<vmem>>
    %1242 = tpu.memref_slice %arg9[%c0_i32_1048] : memref<2x!tpu.dma_semaphore, #tpu.memory_space<semaphore_mem>> -> memref<1x!tpu.dma_semaphore, #tpu.memory_space<semaphore_mem>>
    %1243 = tpu.memref_squeeze %1242 : memref<1x!tpu.dma_semaphore, #tpu.memory_space<semaphore_mem>> -> memref<!tpu.dma_semaphore, #tpu.memory_space<semaphore_mem>>
    tpu.wait_dma2 semaphore(%1243 : memref<!tpu.dma_semaphore, #tpu.memory_space<semaphore_mem>>) src(%1240 : memref<1x32xf32, #tpu.memory_space<any>>) dst(%1241 : memref<1x32xf32, #tpu.memory_space<vmem>>)
    %c1_i32_1052 = arith.constant 1 : i32
    %c0_i32_1053 = arith.constant 0 : i32
    %1244 = tpu.memref_slice %arg2[%607, %c0_i32_1053] : memref<50x32xf32, #tpu.memory_space<any>> -> memref<1x32xf32, #tpu.memory_space<any>>
    %c29_i32_1054 = arith.constant 29 : i32
    %c0_i32_1055 = arith.constant 0 : i32
    %1245 = tpu.memref_slice %arg8[%c29_i32_1054, %c0_i32_1055] : memref<64x32xf32, #tpu.memory_space<vmem>> -> memref<1x32xf32, #tpu.memory_space<vmem>>
    %1246 = tpu.memref_slice %arg9[%c1_i32_1052] : memref<2x!tpu.dma_semaphore, #tpu.memory_space<semaphore_mem>> -> memref<1x!tpu.dma_semaphore, #tpu.memory_space<semaphore_mem>>
    %1247 = tpu.memref_squeeze %1246 : memref<1x!tpu.dma_semaphore, #tpu.memory_space<semaphore_mem>> -> memref<!tpu.dma_semaphore, #tpu.memory_space<semaphore_mem>>
    tpu.wait_dma2 semaphore(%1247 : memref<!tpu.dma_semaphore, #tpu.memory_space<semaphore_mem>>) src(%1244 : memref<1x32xf32, #tpu.memory_space<any>>) dst(%1245 : memref<1x32xf32, #tpu.memory_space<vmem>>)
    %c0_i32_1056 = arith.constant 0 : i32
    %c0_i32_1057 = arith.constant 0 : i32
    %1248 = tpu.memref_slice %arg2[%621, %c0_i32_1057] : memref<50x32xf32, #tpu.memory_space<any>> -> memref<1x32xf32, #tpu.memory_space<any>>
    %c44_i32_1058 = arith.constant 44 : i32
    %c0_i32_1059 = arith.constant 0 : i32
    %1249 = tpu.memref_slice %arg7[%c44_i32_1058, %c0_i32_1059] : memref<64x32xf32, #tpu.memory_space<vmem>> -> memref<1x32xf32, #tpu.memory_space<vmem>>
    %1250 = tpu.memref_slice %arg9[%c0_i32_1056] : memref<2x!tpu.dma_semaphore, #tpu.memory_space<semaphore_mem>> -> memref<1x!tpu.dma_semaphore, #tpu.memory_space<semaphore_mem>>
    %1251 = tpu.memref_squeeze %1250 : memref<1x!tpu.dma_semaphore, #tpu.memory_space<semaphore_mem>> -> memref<!tpu.dma_semaphore, #tpu.memory_space<semaphore_mem>>
    tpu.wait_dma2 semaphore(%1251 : memref<!tpu.dma_semaphore, #tpu.memory_space<semaphore_mem>>) src(%1248 : memref<1x32xf32, #tpu.memory_space<any>>) dst(%1249 : memref<1x32xf32, #tpu.memory_space<vmem>>)
    %c1_i32_1060 = arith.constant 1 : i32
    %c0_i32_1061 = arith.constant 0 : i32
    %1252 = tpu.memref_slice %arg2[%621, %c0_i32_1061] : memref<50x32xf32, #tpu.memory_space<any>> -> memref<1x32xf32, #tpu.memory_space<any>>
    %c37_i32_1062 = arith.constant 37 : i32
    %c0_i32_1063 = arith.constant 0 : i32
    %1253 = tpu.memref_slice %arg8[%c37_i32_1062, %c0_i32_1063] : memref<64x32xf32, #tpu.memory_space<vmem>> -> memref<1x32xf32, #tpu.memory_space<vmem>>
    %1254 = tpu.memref_slice %arg9[%c1_i32_1060] : memref<2x!tpu.dma_semaphore, #tpu.memory_space<semaphore_mem>> -> memref<1x!tpu.dma_semaphore, #tpu.memory_space<semaphore_mem>>
    %1255 = tpu.memref_squeeze %1254 : memref<1x!tpu.dma_semaphore, #tpu.memory_space<semaphore_mem>> -> memref<!tpu.dma_semaphore, #tpu.memory_space<semaphore_mem>>
    tpu.wait_dma2 semaphore(%1255 : memref<!tpu.dma_semaphore, #tpu.memory_space<semaphore_mem>>) src(%1252 : memref<1x32xf32, #tpu.memory_space<any>>) dst(%1253 : memref<1x32xf32, #tpu.memory_space<vmem>>)
    %c0_i32_1064 = arith.constant 0 : i32
    %c0_i32_1065 = arith.constant 0 : i32
    %1256 = tpu.memref_slice %arg2[%635, %c0_i32_1065] : memref<50x32xf32, #tpu.memory_space<any>> -> memref<1x32xf32, #tpu.memory_space<any>>
    %c45_i32_1066 = arith.constant 45 : i32
    %c0_i32_1067 = arith.constant 0 : i32
    %1257 = tpu.memref_slice %arg7[%c45_i32_1066, %c0_i32_1067] : memref<64x32xf32, #tpu.memory_space<vmem>> -> memref<1x32xf32, #tpu.memory_space<vmem>>
    %1258 = tpu.memref_slice %arg9[%c0_i32_1064] : memref<2x!tpu.dma_semaphore, #tpu.memory_space<semaphore_mem>> -> memref<1x!tpu.dma_semaphore, #tpu.memory_space<semaphore_mem>>
    %1259 = tpu.memref_squeeze %1258 : memref<1x!tpu.dma_semaphore, #tpu.memory_space<semaphore_mem>> -> memref<!tpu.dma_semaphore, #tpu.memory_space<semaphore_mem>>
    tpu.wait_dma2 semaphore(%1259 : memref<!tpu.dma_semaphore, #tpu.memory_space<semaphore_mem>>) src(%1256 : memref<1x32xf32, #tpu.memory_space<any>>) dst(%1257 : memref<1x32xf32, #tpu.memory_space<vmem>>)
    %c1_i32_1068 = arith.constant 1 : i32
    %c0_i32_1069 = arith.constant 0 : i32
    %1260 = tpu.memref_slice %arg2[%635, %c0_i32_1069] : memref<50x32xf32, #tpu.memory_space<any>> -> memref<1x32xf32, #tpu.memory_space<any>>
    %c45_i32_1070 = arith.constant 45 : i32
    %c0_i32_1071 = arith.constant 0 : i32
    %1261 = tpu.memref_slice %arg8[%c45_i32_1070, %c0_i32_1071] : memref<64x32xf32, #tpu.memory_space<vmem>> -> memref<1x32xf32, #tpu.memory_space<vmem>>
    %1262 = tpu.memref_slice %arg9[%c1_i32_1068] : memref<2x!tpu.dma_semaphore, #tpu.memory_space<semaphore_mem>> -> memref<1x!tpu.dma_semaphore, #tpu.memory_space<semaphore_mem>>
    %1263 = tpu.memref_squeeze %1262 : memref<1x!tpu.dma_semaphore, #tpu.memory_space<semaphore_mem>> -> memref<!tpu.dma_semaphore, #tpu.memory_space<semaphore_mem>>
    tpu.wait_dma2 semaphore(%1263 : memref<!tpu.dma_semaphore, #tpu.memory_space<semaphore_mem>>) src(%1260 : memref<1x32xf32, #tpu.memory_space<any>>) dst(%1261 : memref<1x32xf32, #tpu.memory_space<vmem>>)
    %c0_i32_1072 = arith.constant 0 : i32
    %c0_i32_1073 = arith.constant 0 : i32
    %1264 = tpu.memref_slice %arg2[%649, %c0_i32_1073] : memref<50x32xf32, #tpu.memory_space<any>> -> memref<1x32xf32, #tpu.memory_space<any>>
    %c46_i32_1074 = arith.constant 46 : i32
    %c0_i32_1075 = arith.constant 0 : i32
    %1265 = tpu.memref_slice %arg7[%c46_i32_1074, %c0_i32_1075] : memref<64x32xf32, #tpu.memory_space<vmem>> -> memref<1x32xf32, #tpu.memory_space<vmem>>
    %1266 = tpu.memref_slice %arg9[%c0_i32_1072] : memref<2x!tpu.dma_semaphore, #tpu.memory_space<semaphore_mem>> -> memref<1x!tpu.dma_semaphore, #tpu.memory_space<semaphore_mem>>
    %1267 = tpu.memref_squeeze %1266 : memref<1x!tpu.dma_semaphore, #tpu.memory_space<semaphore_mem>> -> memref<!tpu.dma_semaphore, #tpu.memory_space<semaphore_mem>>
    tpu.wait_dma2 semaphore(%1267 : memref<!tpu.dma_semaphore, #tpu.memory_space<semaphore_mem>>) src(%1264 : memref<1x32xf32, #tpu.memory_space<any>>) dst(%1265 : memref<1x32xf32, #tpu.memory_space<vmem>>)
    %c1_i32_1076 = arith.constant 1 : i32
    %c0_i32_1077 = arith.constant 0 : i32
    %1268 = tpu.memref_slice %arg2[%649, %c0_i32_1077] : memref<50x32xf32, #tpu.memory_space<any>> -> memref<1x32xf32, #tpu.memory_space<any>>
    %c53_i32_1078 = arith.constant 53 : i32
    %c0_i32_1079 = arith.constant 0 : i32
    %1269 = tpu.memref_slice %arg8[%c53_i32_1078, %c0_i32_1079] : memref<64x32xf32, #tpu.memory_space<vmem>> -> memref<1x32xf32, #tpu.memory_space<vmem>>
    %1270 = tpu.memref_slice %arg9[%c1_i32_1076] : memref<2x!tpu.dma_semaphore, #tpu.memory_space<semaphore_mem>> -> memref<1x!tpu.dma_semaphore, #tpu.memory_space<semaphore_mem>>
    %1271 = tpu.memref_squeeze %1270 : memref<1x!tpu.dma_semaphore, #tpu.memory_space<semaphore_mem>> -> memref<!tpu.dma_semaphore, #tpu.memory_space<semaphore_mem>>
    tpu.wait_dma2 semaphore(%1271 : memref<!tpu.dma_semaphore, #tpu.memory_space<semaphore_mem>>) src(%1268 : memref<1x32xf32, #tpu.memory_space<any>>) dst(%1269 : memref<1x32xf32, #tpu.memory_space<vmem>>)
    %c0_i32_1080 = arith.constant 0 : i32
    %c0_i32_1081 = arith.constant 0 : i32
    %1272 = tpu.memref_slice %arg2[%663, %c0_i32_1081] : memref<50x32xf32, #tpu.memory_space<any>> -> memref<1x32xf32, #tpu.memory_space<any>>
    %c47_i32_1082 = arith.constant 47 : i32
    %c0_i32_1083 = arith.constant 0 : i32
    %1273 = tpu.memref_slice %arg7[%c47_i32_1082, %c0_i32_1083] : memref<64x32xf32, #tpu.memory_space<vmem>> -> memref<1x32xf32, #tpu.memory_space<vmem>>
    %1274 = tpu.memref_slice %arg9[%c0_i32_1080] : memref<2x!tpu.dma_semaphore, #tpu.memory_space<semaphore_mem>> -> memref<1x!tpu.dma_semaphore, #tpu.memory_space<semaphore_mem>>
    %1275 = tpu.memref_squeeze %1274 : memref<1x!tpu.dma_semaphore, #tpu.memory_space<semaphore_mem>> -> memref<!tpu.dma_semaphore, #tpu.memory_space<semaphore_mem>>
    tpu.wait_dma2 semaphore(%1275 : memref<!tpu.dma_semaphore, #tpu.memory_space<semaphore_mem>>) src(%1272 : memref<1x32xf32, #tpu.memory_space<any>>) dst(%1273 : memref<1x32xf32, #tpu.memory_space<vmem>>)
    %c1_i32_1084 = arith.constant 1 : i32
    %c0_i32_1085 = arith.constant 0 : i32
    %1276 = tpu.memref_slice %arg2[%663, %c0_i32_1085] : memref<50x32xf32, #tpu.memory_space<any>> -> memref<1x32xf32, #tpu.memory_space<any>>
    %c61_i32_1086 = arith.constant 61 : i32
    %c0_i32_1087 = arith.constant 0 : i32
    %1277 = tpu.memref_slice %arg8[%c61_i32_1086, %c0_i32_1087] : memref<64x32xf32, #tpu.memory_space<vmem>> -> memref<1x32xf32, #tpu.memory_space<vmem>>
    %1278 = tpu.memref_slice %arg9[%c1_i32_1084] : memref<2x!tpu.dma_semaphore, #tpu.memory_space<semaphore_mem>> -> memref<1x!tpu.dma_semaphore, #tpu.memory_space<semaphore_mem>>
    %1279 = tpu.memref_squeeze %1278 : memref<1x!tpu.dma_semaphore, #tpu.memory_space<semaphore_mem>> -> memref<!tpu.dma_semaphore, #tpu.memory_space<semaphore_mem>>
    tpu.wait_dma2 semaphore(%1279 : memref<!tpu.dma_semaphore, #tpu.memory_space<semaphore_mem>>) src(%1276 : memref<1x32xf32, #tpu.memory_space<any>>) dst(%1277 : memref<1x32xf32, #tpu.memory_space<vmem>>)
    %c0_i32_1088 = arith.constant 0 : i32
    %c0_i32_1089 = arith.constant 0 : i32
    %1280 = tpu.memref_slice %arg2[%677, %c0_i32_1089] : memref<50x32xf32, #tpu.memory_space<any>> -> memref<1x32xf32, #tpu.memory_space<any>>
    %c48_i32_1090 = arith.constant 48 : i32
    %c0_i32_1091 = arith.constant 0 : i32
    %1281 = tpu.memref_slice %arg7[%c48_i32_1090, %c0_i32_1091] : memref<64x32xf32, #tpu.memory_space<vmem>> -> memref<1x32xf32, #tpu.memory_space<vmem>>
    %1282 = tpu.memref_slice %arg9[%c0_i32_1088] : memref<2x!tpu.dma_semaphore, #tpu.memory_space<semaphore_mem>> -> memref<1x!tpu.dma_semaphore, #tpu.memory_space<semaphore_mem>>
    %1283 = tpu.memref_squeeze %1282 : memref<1x!tpu.dma_semaphore, #tpu.memory_space<semaphore_mem>> -> memref<!tpu.dma_semaphore, #tpu.memory_space<semaphore_mem>>
    tpu.wait_dma2 semaphore(%1283 : memref<!tpu.dma_semaphore, #tpu.memory_space<semaphore_mem>>) src(%1280 : memref<1x32xf32, #tpu.memory_space<any>>) dst(%1281 : memref<1x32xf32, #tpu.memory_space<vmem>>)
    %c1_i32_1092 = arith.constant 1 : i32
    %c0_i32_1093 = arith.constant 0 : i32
    %1284 = tpu.memref_slice %arg2[%677, %c0_i32_1093] : memref<50x32xf32, #tpu.memory_space<any>> -> memref<1x32xf32, #tpu.memory_space<any>>
    %c6_i32_1094 = arith.constant 6 : i32
    %c0_i32_1095 = arith.constant 0 : i32
    %1285 = tpu.memref_slice %arg8[%c6_i32_1094, %c0_i32_1095] : memref<64x32xf32, #tpu.memory_space<vmem>> -> memref<1x32xf32, #tpu.memory_space<vmem>>
    %1286 = tpu.memref_slice %arg9[%c1_i32_1092] : memref<2x!tpu.dma_semaphore, #tpu.memory_space<semaphore_mem>> -> memref<1x!tpu.dma_semaphore, #tpu.memory_space<semaphore_mem>>
    %1287 = tpu.memref_squeeze %1286 : memref<1x!tpu.dma_semaphore, #tpu.memory_space<semaphore_mem>> -> memref<!tpu.dma_semaphore, #tpu.memory_space<semaphore_mem>>
    tpu.wait_dma2 semaphore(%1287 : memref<!tpu.dma_semaphore, #tpu.memory_space<semaphore_mem>>) src(%1284 : memref<1x32xf32, #tpu.memory_space<any>>) dst(%1285 : memref<1x32xf32, #tpu.memory_space<vmem>>)
    %c0_i32_1096 = arith.constant 0 : i32
    %c0_i32_1097 = arith.constant 0 : i32
    %1288 = tpu.memref_slice %arg2[%691, %c0_i32_1097] : memref<50x32xf32, #tpu.memory_space<any>> -> memref<1x32xf32, #tpu.memory_space<any>>
    %c49_i32_1098 = arith.constant 49 : i32
    %c0_i32_1099 = arith.constant 0 : i32
    %1289 = tpu.memref_slice %arg7[%c49_i32_1098, %c0_i32_1099] : memref<64x32xf32, #tpu.memory_space<vmem>> -> memref<1x32xf32, #tpu.memory_space<vmem>>
    %1290 = tpu.memref_slice %arg9[%c0_i32_1096] : memref<2x!tpu.dma_semaphore, #tpu.memory_space<semaphore_mem>> -> memref<1x!tpu.dma_semaphore, #tpu.memory_space<semaphore_mem>>
    %1291 = tpu.memref_squeeze %1290 : memref<1x!tpu.dma_semaphore, #tpu.memory_space<semaphore_mem>> -> memref<!tpu.dma_semaphore, #tpu.memory_space<semaphore_mem>>
    tpu.wait_dma2 semaphore(%1291 : memref<!tpu.dma_semaphore, #tpu.memory_space<semaphore_mem>>) src(%1288 : memref<1x32xf32, #tpu.memory_space<any>>) dst(%1289 : memref<1x32xf32, #tpu.memory_space<vmem>>)
    %c1_i32_1100 = arith.constant 1 : i32
    %c0_i32_1101 = arith.constant 0 : i32
    %1292 = tpu.memref_slice %arg2[%691, %c0_i32_1101] : memref<50x32xf32, #tpu.memory_space<any>> -> memref<1x32xf32, #tpu.memory_space<any>>
    %c14_i32_1102 = arith.constant 14 : i32
    %c0_i32_1103 = arith.constant 0 : i32
    %1293 = tpu.memref_slice %arg8[%c14_i32_1102, %c0_i32_1103] : memref<64x32xf32, #tpu.memory_space<vmem>> -> memref<1x32xf32, #tpu.memory_space<vmem>>
    %1294 = tpu.memref_slice %arg9[%c1_i32_1100] : memref<2x!tpu.dma_semaphore, #tpu.memory_space<semaphore_mem>> -> memref<1x!tpu.dma_semaphore, #tpu.memory_space<semaphore_mem>>
    %1295 = tpu.memref_squeeze %1294 : memref<1x!tpu.dma_semaphore, #tpu.memory_space<semaphore_mem>> -> memref<!tpu.dma_semaphore, #tpu.memory_space<semaphore_mem>>
    tpu.wait_dma2 semaphore(%1295 : memref<!tpu.dma_semaphore, #tpu.memory_space<semaphore_mem>>) src(%1292 : memref<1x32xf32, #tpu.memory_space<any>>) dst(%1293 : memref<1x32xf32, #tpu.memory_space<vmem>>)
    %c0_i32_1104 = arith.constant 0 : i32
    %c0_i32_1105 = arith.constant 0 : i32
    %1296 = tpu.memref_slice %arg2[%705, %c0_i32_1105] : memref<50x32xf32, #tpu.memory_space<any>> -> memref<1x32xf32, #tpu.memory_space<any>>
    %c50_i32_1106 = arith.constant 50 : i32
    %c0_i32_1107 = arith.constant 0 : i32
    %1297 = tpu.memref_slice %arg7[%c50_i32_1106, %c0_i32_1107] : memref<64x32xf32, #tpu.memory_space<vmem>> -> memref<1x32xf32, #tpu.memory_space<vmem>>
    %1298 = tpu.memref_slice %arg9[%c0_i32_1104] : memref<2x!tpu.dma_semaphore, #tpu.memory_space<semaphore_mem>> -> memref<1x!tpu.dma_semaphore, #tpu.memory_space<semaphore_mem>>
    %1299 = tpu.memref_squeeze %1298 : memref<1x!tpu.dma_semaphore, #tpu.memory_space<semaphore_mem>> -> memref<!tpu.dma_semaphore, #tpu.memory_space<semaphore_mem>>
    tpu.wait_dma2 semaphore(%1299 : memref<!tpu.dma_semaphore, #tpu.memory_space<semaphore_mem>>) src(%1296 : memref<1x32xf32, #tpu.memory_space<any>>) dst(%1297 : memref<1x32xf32, #tpu.memory_space<vmem>>)
    %c1_i32_1108 = arith.constant 1 : i32
    %c0_i32_1109 = arith.constant 0 : i32
    %1300 = tpu.memref_slice %arg2[%705, %c0_i32_1109] : memref<50x32xf32, #tpu.memory_space<any>> -> memref<1x32xf32, #tpu.memory_space<any>>
    %c22_i32_1110 = arith.constant 22 : i32
    %c0_i32_1111 = arith.constant 0 : i32
    %1301 = tpu.memref_slice %arg8[%c22_i32_1110, %c0_i32_1111] : memref<64x32xf32, #tpu.memory_space<vmem>> -> memref<1x32xf32, #tpu.memory_space<vmem>>
    %1302 = tpu.memref_slice %arg9[%c1_i32_1108] : memref<2x!tpu.dma_semaphore, #tpu.memory_space<semaphore_mem>> -> memref<1x!tpu.dma_semaphore, #tpu.memory_space<semaphore_mem>>
    %1303 = tpu.memref_squeeze %1302 : memref<1x!tpu.dma_semaphore, #tpu.memory_space<semaphore_mem>> -> memref<!tpu.dma_semaphore, #tpu.memory_space<semaphore_mem>>
    tpu.wait_dma2 semaphore(%1303 : memref<!tpu.dma_semaphore, #tpu.memory_space<semaphore_mem>>) src(%1300 : memref<1x32xf32, #tpu.memory_space<any>>) dst(%1301 : memref<1x32xf32, #tpu.memory_space<vmem>>)
    %c0_i32_1112 = arith.constant 0 : i32
    %c0_i32_1113 = arith.constant 0 : i32
    %1304 = tpu.memref_slice %arg2[%719, %c0_i32_1113] : memref<50x32xf32, #tpu.memory_space<any>> -> memref<1x32xf32, #tpu.memory_space<any>>
    %c51_i32_1114 = arith.constant 51 : i32
    %c0_i32_1115 = arith.constant 0 : i32
    %1305 = tpu.memref_slice %arg7[%c51_i32_1114, %c0_i32_1115] : memref<64x32xf32, #tpu.memory_space<vmem>> -> memref<1x32xf32, #tpu.memory_space<vmem>>
    %1306 = tpu.memref_slice %arg9[%c0_i32_1112] : memref<2x!tpu.dma_semaphore, #tpu.memory_space<semaphore_mem>> -> memref<1x!tpu.dma_semaphore, #tpu.memory_space<semaphore_mem>>
    %1307 = tpu.memref_squeeze %1306 : memref<1x!tpu.dma_semaphore, #tpu.memory_space<semaphore_mem>> -> memref<!tpu.dma_semaphore, #tpu.memory_space<semaphore_mem>>
    tpu.wait_dma2 semaphore(%1307 : memref<!tpu.dma_semaphore, #tpu.memory_space<semaphore_mem>>) src(%1304 : memref<1x32xf32, #tpu.memory_space<any>>) dst(%1305 : memref<1x32xf32, #tpu.memory_space<vmem>>)
    %c1_i32_1116 = arith.constant 1 : i32
    %c0_i32_1117 = arith.constant 0 : i32
    %1308 = tpu.memref_slice %arg2[%719, %c0_i32_1117] : memref<50x32xf32, #tpu.memory_space<any>> -> memref<1x32xf32, #tpu.memory_space<any>>
    %c30_i32_1118 = arith.constant 30 : i32
    %c0_i32_1119 = arith.constant 0 : i32
    %1309 = tpu.memref_slice %arg8[%c30_i32_1118, %c0_i32_1119] : memref<64x32xf32, #tpu.memory_space<vmem>> -> memref<1x32xf32, #tpu.memory_space<vmem>>
    %1310 = tpu.memref_slice %arg9[%c1_i32_1116] : memref<2x!tpu.dma_semaphore, #tpu.memory_space<semaphore_mem>> -> memref<1x!tpu.dma_semaphore, #tpu.memory_space<semaphore_mem>>
    %1311 = tpu.memref_squeeze %1310 : memref<1x!tpu.dma_semaphore, #tpu.memory_space<semaphore_mem>> -> memref<!tpu.dma_semaphore, #tpu.memory_space<semaphore_mem>>
    tpu.wait_dma2 semaphore(%1311 : memref<!tpu.dma_semaphore, #tpu.memory_space<semaphore_mem>>) src(%1308 : memref<1x32xf32, #tpu.memory_space<any>>) dst(%1309 : memref<1x32xf32, #tpu.memory_space<vmem>>)
    %c0_i32_1120 = arith.constant 0 : i32
    %c0_i32_1121 = arith.constant 0 : i32
    %1312 = tpu.memref_slice %arg2[%733, %c0_i32_1121] : memref<50x32xf32, #tpu.memory_space<any>> -> memref<1x32xf32, #tpu.memory_space<any>>
    %c52_i32_1122 = arith.constant 52 : i32
    %c0_i32_1123 = arith.constant 0 : i32
    %1313 = tpu.memref_slice %arg7[%c52_i32_1122, %c0_i32_1123] : memref<64x32xf32, #tpu.memory_space<vmem>> -> memref<1x32xf32, #tpu.memory_space<vmem>>
    %1314 = tpu.memref_slice %arg9[%c0_i32_1120] : memref<2x!tpu.dma_semaphore, #tpu.memory_space<semaphore_mem>> -> memref<1x!tpu.dma_semaphore, #tpu.memory_space<semaphore_mem>>
    %1315 = tpu.memref_squeeze %1314 : memref<1x!tpu.dma_semaphore, #tpu.memory_space<semaphore_mem>> -> memref<!tpu.dma_semaphore, #tpu.memory_space<semaphore_mem>>
    tpu.wait_dma2 semaphore(%1315 : memref<!tpu.dma_semaphore, #tpu.memory_space<semaphore_mem>>) src(%1312 : memref<1x32xf32, #tpu.memory_space<any>>) dst(%1313 : memref<1x32xf32, #tpu.memory_space<vmem>>)
    %c1_i32_1124 = arith.constant 1 : i32
    %c0_i32_1125 = arith.constant 0 : i32
    %1316 = tpu.memref_slice %arg2[%733, %c0_i32_1125] : memref<50x32xf32, #tpu.memory_space<any>> -> memref<1x32xf32, #tpu.memory_space<any>>
    %c38_i32_1126 = arith.constant 38 : i32
    %c0_i32_1127 = arith.constant 0 : i32
    %1317 = tpu.memref_slice %arg8[%c38_i32_1126, %c0_i32_1127] : memref<64x32xf32, #tpu.memory_space<vmem>> -> memref<1x32xf32, #tpu.memory_space<vmem>>
    %1318 = tpu.memref_slice %arg9[%c1_i32_1124] : memref<2x!tpu.dma_semaphore, #tpu.memory_space<semaphore_mem>> -> memref<1x!tpu.dma_semaphore, #tpu.memory_space<semaphore_mem>>
    %1319 = tpu.memref_squeeze %1318 : memref<1x!tpu.dma_semaphore, #tpu.memory_space<semaphore_mem>> -> memref<!tpu.dma_semaphore, #tpu.memory_space<semaphore_mem>>
    tpu.wait_dma2 semaphore(%1319 : memref<!tpu.dma_semaphore, #tpu.memory_space<semaphore_mem>>) src(%1316 : memref<1x32xf32, #tpu.memory_space<any>>) dst(%1317 : memref<1x32xf32, #tpu.memory_space<vmem>>)
    %c0_i32_1128 = arith.constant 0 : i32
    %c0_i32_1129 = arith.constant 0 : i32
    %1320 = tpu.memref_slice %arg2[%747, %c0_i32_1129] : memref<50x32xf32, #tpu.memory_space<any>> -> memref<1x32xf32, #tpu.memory_space<any>>
    %c53_i32_1130 = arith.constant 53 : i32
    %c0_i32_1131 = arith.constant 0 : i32
    %1321 = tpu.memref_slice %arg7[%c53_i32_1130, %c0_i32_1131] : memref<64x32xf32, #tpu.memory_space<vmem>> -> memref<1x32xf32, #tpu.memory_space<vmem>>
    %1322 = tpu.memref_slice %arg9[%c0_i32_1128] : memref<2x!tpu.dma_semaphore, #tpu.memory_space<semaphore_mem>> -> memref<1x!tpu.dma_semaphore, #tpu.memory_space<semaphore_mem>>
    %1323 = tpu.memref_squeeze %1322 : memref<1x!tpu.dma_semaphore, #tpu.memory_space<semaphore_mem>> -> memref<!tpu.dma_semaphore, #tpu.memory_space<semaphore_mem>>
    tpu.wait_dma2 semaphore(%1323 : memref<!tpu.dma_semaphore, #tpu.memory_space<semaphore_mem>>) src(%1320 : memref<1x32xf32, #tpu.memory_space<any>>) dst(%1321 : memref<1x32xf32, #tpu.memory_space<vmem>>)
    %c1_i32_1132 = arith.constant 1 : i32
    %c0_i32_1133 = arith.constant 0 : i32
    %1324 = tpu.memref_slice %arg2[%747, %c0_i32_1133] : memref<50x32xf32, #tpu.memory_space<any>> -> memref<1x32xf32, #tpu.memory_space<any>>
    %c46_i32_1134 = arith.constant 46 : i32
    %c0_i32_1135 = arith.constant 0 : i32
    %1325 = tpu.memref_slice %arg8[%c46_i32_1134, %c0_i32_1135] : memref<64x32xf32, #tpu.memory_space<vmem>> -> memref<1x32xf32, #tpu.memory_space<vmem>>
    %1326 = tpu.memref_slice %arg9[%c1_i32_1132] : memref<2x!tpu.dma_semaphore, #tpu.memory_space<semaphore_mem>> -> memref<1x!tpu.dma_semaphore, #tpu.memory_space<semaphore_mem>>
    %1327 = tpu.memref_squeeze %1326 : memref<1x!tpu.dma_semaphore, #tpu.memory_space<semaphore_mem>> -> memref<!tpu.dma_semaphore, #tpu.memory_space<semaphore_mem>>
    tpu.wait_dma2 semaphore(%1327 : memref<!tpu.dma_semaphore, #tpu.memory_space<semaphore_mem>>) src(%1324 : memref<1x32xf32, #tpu.memory_space<any>>) dst(%1325 : memref<1x32xf32, #tpu.memory_space<vmem>>)
    %c0_i32_1136 = arith.constant 0 : i32
    %c0_i32_1137 = arith.constant 0 : i32
    %1328 = tpu.memref_slice %arg2[%761, %c0_i32_1137] : memref<50x32xf32, #tpu.memory_space<any>> -> memref<1x32xf32, #tpu.memory_space<any>>
    %c54_i32_1138 = arith.constant 54 : i32
    %c0_i32_1139 = arith.constant 0 : i32
    %1329 = tpu.memref_slice %arg7[%c54_i32_1138, %c0_i32_1139] : memref<64x32xf32, #tpu.memory_space<vmem>> -> memref<1x32xf32, #tpu.memory_space<vmem>>
    %1330 = tpu.memref_slice %arg9[%c0_i32_1136] : memref<2x!tpu.dma_semaphore, #tpu.memory_space<semaphore_mem>> -> memref<1x!tpu.dma_semaphore, #tpu.memory_space<semaphore_mem>>
    %1331 = tpu.memref_squeeze %1330 : memref<1x!tpu.dma_semaphore, #tpu.memory_space<semaphore_mem>> -> memref<!tpu.dma_semaphore, #tpu.memory_space<semaphore_mem>>
    tpu.wait_dma2 semaphore(%1331 : memref<!tpu.dma_semaphore, #tpu.memory_space<semaphore_mem>>) src(%1328 : memref<1x32xf32, #tpu.memory_space<any>>) dst(%1329 : memref<1x32xf32, #tpu.memory_space<vmem>>)
    %c1_i32_1140 = arith.constant 1 : i32
    %c0_i32_1141 = arith.constant 0 : i32
    %1332 = tpu.memref_slice %arg2[%761, %c0_i32_1141] : memref<50x32xf32, #tpu.memory_space<any>> -> memref<1x32xf32, #tpu.memory_space<any>>
    %c54_i32_1142 = arith.constant 54 : i32
    %c0_i32_1143 = arith.constant 0 : i32
    %1333 = tpu.memref_slice %arg8[%c54_i32_1142, %c0_i32_1143] : memref<64x32xf32, #tpu.memory_space<vmem>> -> memref<1x32xf32, #tpu.memory_space<vmem>>
    %1334 = tpu.memref_slice %arg9[%c1_i32_1140] : memref<2x!tpu.dma_semaphore, #tpu.memory_space<semaphore_mem>> -> memref<1x!tpu.dma_semaphore, #tpu.memory_space<semaphore_mem>>
    %1335 = tpu.memref_squeeze %1334 : memref<1x!tpu.dma_semaphore, #tpu.memory_space<semaphore_mem>> -> memref<!tpu.dma_semaphore, #tpu.memory_space<semaphore_mem>>
    tpu.wait_dma2 semaphore(%1335 : memref<!tpu.dma_semaphore, #tpu.memory_space<semaphore_mem>>) src(%1332 : memref<1x32xf32, #tpu.memory_space<any>>) dst(%1333 : memref<1x32xf32, #tpu.memory_space<vmem>>)
    %c0_i32_1144 = arith.constant 0 : i32
    %c0_i32_1145 = arith.constant 0 : i32
    %1336 = tpu.memref_slice %arg2[%775, %c0_i32_1145] : memref<50x32xf32, #tpu.memory_space<any>> -> memref<1x32xf32, #tpu.memory_space<any>>
    %c55_i32_1146 = arith.constant 55 : i32
    %c0_i32_1147 = arith.constant 0 : i32
    %1337 = tpu.memref_slice %arg7[%c55_i32_1146, %c0_i32_1147] : memref<64x32xf32, #tpu.memory_space<vmem>> -> memref<1x32xf32, #tpu.memory_space<vmem>>
    %1338 = tpu.memref_slice %arg9[%c0_i32_1144] : memref<2x!tpu.dma_semaphore, #tpu.memory_space<semaphore_mem>> -> memref<1x!tpu.dma_semaphore, #tpu.memory_space<semaphore_mem>>
    %1339 = tpu.memref_squeeze %1338 : memref<1x!tpu.dma_semaphore, #tpu.memory_space<semaphore_mem>> -> memref<!tpu.dma_semaphore, #tpu.memory_space<semaphore_mem>>
    tpu.wait_dma2 semaphore(%1339 : memref<!tpu.dma_semaphore, #tpu.memory_space<semaphore_mem>>) src(%1336 : memref<1x32xf32, #tpu.memory_space<any>>) dst(%1337 : memref<1x32xf32, #tpu.memory_space<vmem>>)
    %c1_i32_1148 = arith.constant 1 : i32
    %c0_i32_1149 = arith.constant 0 : i32
    %1340 = tpu.memref_slice %arg2[%775, %c0_i32_1149] : memref<50x32xf32, #tpu.memory_space<any>> -> memref<1x32xf32, #tpu.memory_space<any>>
    %c62_i32_1150 = arith.constant 62 : i32
    %c0_i32_1151 = arith.constant 0 : i32
    %1341 = tpu.memref_slice %arg8[%c62_i32_1150, %c0_i32_1151] : memref<64x32xf32, #tpu.memory_space<vmem>> -> memref<1x32xf32, #tpu.memory_space<vmem>>
    %1342 = tpu.memref_slice %arg9[%c1_i32_1148] : memref<2x!tpu.dma_semaphore, #tpu.memory_space<semaphore_mem>> -> memref<1x!tpu.dma_semaphore, #tpu.memory_space<semaphore_mem>>
    %1343 = tpu.memref_squeeze %1342 : memref<1x!tpu.dma_semaphore, #tpu.memory_space<semaphore_mem>> -> memref<!tpu.dma_semaphore, #tpu.memory_space<semaphore_mem>>
    tpu.wait_dma2 semaphore(%1343 : memref<!tpu.dma_semaphore, #tpu.memory_space<semaphore_mem>>) src(%1340 : memref<1x32xf32, #tpu.memory_space<any>>) dst(%1341 : memref<1x32xf32, #tpu.memory_space<vmem>>)
    %c0_i32_1152 = arith.constant 0 : i32
    %c0_i32_1153 = arith.constant 0 : i32
    %1344 = tpu.memref_slice %arg2[%789, %c0_i32_1153] : memref<50x32xf32, #tpu.memory_space<any>> -> memref<1x32xf32, #tpu.memory_space<any>>
    %c56_i32_1154 = arith.constant 56 : i32
    %c0_i32_1155 = arith.constant 0 : i32
    %1345 = tpu.memref_slice %arg7[%c56_i32_1154, %c0_i32_1155] : memref<64x32xf32, #tpu.memory_space<vmem>> -> memref<1x32xf32, #tpu.memory_space<vmem>>
    %1346 = tpu.memref_slice %arg9[%c0_i32_1152] : memref<2x!tpu.dma_semaphore, #tpu.memory_space<semaphore_mem>> -> memref<1x!tpu.dma_semaphore, #tpu.memory_space<semaphore_mem>>
    %1347 = tpu.memref_squeeze %1346 : memref<1x!tpu.dma_semaphore, #tpu.memory_space<semaphore_mem>> -> memref<!tpu.dma_semaphore, #tpu.memory_space<semaphore_mem>>
    tpu.wait_dma2 semaphore(%1347 : memref<!tpu.dma_semaphore, #tpu.memory_space<semaphore_mem>>) src(%1344 : memref<1x32xf32, #tpu.memory_space<any>>) dst(%1345 : memref<1x32xf32, #tpu.memory_space<vmem>>)
    %c1_i32_1156 = arith.constant 1 : i32
    %c0_i32_1157 = arith.constant 0 : i32
    %1348 = tpu.memref_slice %arg2[%789, %c0_i32_1157] : memref<50x32xf32, #tpu.memory_space<any>> -> memref<1x32xf32, #tpu.memory_space<any>>
    %c7_i32_1158 = arith.constant 7 : i32
    %c0_i32_1159 = arith.constant 0 : i32
    %1349 = tpu.memref_slice %arg8[%c7_i32_1158, %c0_i32_1159] : memref<64x32xf32, #tpu.memory_space<vmem>> -> memref<1x32xf32, #tpu.memory_space<vmem>>
    %1350 = tpu.memref_slice %arg9[%c1_i32_1156] : memref<2x!tpu.dma_semaphore, #tpu.memory_space<semaphore_mem>> -> memref<1x!tpu.dma_semaphore, #tpu.memory_space<semaphore_mem>>
    %1351 = tpu.memref_squeeze %1350 : memref<1x!tpu.dma_semaphore, #tpu.memory_space<semaphore_mem>> -> memref<!tpu.dma_semaphore, #tpu.memory_space<semaphore_mem>>
    tpu.wait_dma2 semaphore(%1351 : memref<!tpu.dma_semaphore, #tpu.memory_space<semaphore_mem>>) src(%1348 : memref<1x32xf32, #tpu.memory_space<any>>) dst(%1349 : memref<1x32xf32, #tpu.memory_space<vmem>>)
    %c0_i32_1160 = arith.constant 0 : i32
    %c0_i32_1161 = arith.constant 0 : i32
    %1352 = tpu.memref_slice %arg2[%803, %c0_i32_1161] : memref<50x32xf32, #tpu.memory_space<any>> -> memref<1x32xf32, #tpu.memory_space<any>>
    %c57_i32_1162 = arith.constant 57 : i32
    %c0_i32_1163 = arith.constant 0 : i32
    %1353 = tpu.memref_slice %arg7[%c57_i32_1162, %c0_i32_1163] : memref<64x32xf32, #tpu.memory_space<vmem>> -> memref<1x32xf32, #tpu.memory_space<vmem>>
    %1354 = tpu.memref_slice %arg9[%c0_i32_1160] : memref<2x!tpu.dma_semaphore, #tpu.memory_space<semaphore_mem>> -> memref<1x!tpu.dma_semaphore, #tpu.memory_space<semaphore_mem>>
    %1355 = tpu.memref_squeeze %1354 : memref<1x!tpu.dma_semaphore, #tpu.memory_space<semaphore_mem>> -> memref<!tpu.dma_semaphore, #tpu.memory_space<semaphore_mem>>
    tpu.wait_dma2 semaphore(%1355 : memref<!tpu.dma_semaphore, #tpu.memory_space<semaphore_mem>>) src(%1352 : memref<1x32xf32, #tpu.memory_space<any>>) dst(%1353 : memref<1x32xf32, #tpu.memory_space<vmem>>)
    %c1_i32_1164 = arith.constant 1 : i32
    %c0_i32_1165 = arith.constant 0 : i32
    %1356 = tpu.memref_slice %arg2[%803, %c0_i32_1165] : memref<50x32xf32, #tpu.memory_space<any>> -> memref<1x32xf32, #tpu.memory_space<any>>
    %c15_i32_1166 = arith.constant 15 : i32
    %c0_i32_1167 = arith.constant 0 : i32
    %1357 = tpu.memref_slice %arg8[%c15_i32_1166, %c0_i32_1167] : memref<64x32xf32, #tpu.memory_space<vmem>> -> memref<1x32xf32, #tpu.memory_space<vmem>>
    %1358 = tpu.memref_slice %arg9[%c1_i32_1164] : memref<2x!tpu.dma_semaphore, #tpu.memory_space<semaphore_mem>> -> memref<1x!tpu.dma_semaphore, #tpu.memory_space<semaphore_mem>>
    %1359 = tpu.memref_squeeze %1358 : memref<1x!tpu.dma_semaphore, #tpu.memory_space<semaphore_mem>> -> memref<!tpu.dma_semaphore, #tpu.memory_space<semaphore_mem>>
    tpu.wait_dma2 semaphore(%1359 : memref<!tpu.dma_semaphore, #tpu.memory_space<semaphore_mem>>) src(%1356 : memref<1x32xf32, #tpu.memory_space<any>>) dst(%1357 : memref<1x32xf32, #tpu.memory_space<vmem>>)
    %c0_i32_1168 = arith.constant 0 : i32
    %c0_i32_1169 = arith.constant 0 : i32
    %1360 = tpu.memref_slice %arg2[%817, %c0_i32_1169] : memref<50x32xf32, #tpu.memory_space<any>> -> memref<1x32xf32, #tpu.memory_space<any>>
    %c58_i32_1170 = arith.constant 58 : i32
    %c0_i32_1171 = arith.constant 0 : i32
    %1361 = tpu.memref_slice %arg7[%c58_i32_1170, %c0_i32_1171] : memref<64x32xf32, #tpu.memory_space<vmem>> -> memref<1x32xf32, #tpu.memory_space<vmem>>
    %1362 = tpu.memref_slice %arg9[%c0_i32_1168] : memref<2x!tpu.dma_semaphore, #tpu.memory_space<semaphore_mem>> -> memref<1x!tpu.dma_semaphore, #tpu.memory_space<semaphore_mem>>
    %1363 = tpu.memref_squeeze %1362 : memref<1x!tpu.dma_semaphore, #tpu.memory_space<semaphore_mem>> -> memref<!tpu.dma_semaphore, #tpu.memory_space<semaphore_mem>>
    tpu.wait_dma2 semaphore(%1363 : memref<!tpu.dma_semaphore, #tpu.memory_space<semaphore_mem>>) src(%1360 : memref<1x32xf32, #tpu.memory_space<any>>) dst(%1361 : memref<1x32xf32, #tpu.memory_space<vmem>>)
    %c1_i32_1172 = arith.constant 1 : i32
    %c0_i32_1173 = arith.constant 0 : i32
    %1364 = tpu.memref_slice %arg2[%817, %c0_i32_1173] : memref<50x32xf32, #tpu.memory_space<any>> -> memref<1x32xf32, #tpu.memory_space<any>>
    %c23_i32_1174 = arith.constant 23 : i32
    %c0_i32_1175 = arith.constant 0 : i32
    %1365 = tpu.memref_slice %arg8[%c23_i32_1174, %c0_i32_1175] : memref<64x32xf32, #tpu.memory_space<vmem>> -> memref<1x32xf32, #tpu.memory_space<vmem>>
    %1366 = tpu.memref_slice %arg9[%c1_i32_1172] : memref<2x!tpu.dma_semaphore, #tpu.memory_space<semaphore_mem>> -> memref<1x!tpu.dma_semaphore, #tpu.memory_space<semaphore_mem>>
    %1367 = tpu.memref_squeeze %1366 : memref<1x!tpu.dma_semaphore, #tpu.memory_space<semaphore_mem>> -> memref<!tpu.dma_semaphore, #tpu.memory_space<semaphore_mem>>
    tpu.wait_dma2 semaphore(%1367 : memref<!tpu.dma_semaphore, #tpu.memory_space<semaphore_mem>>) src(%1364 : memref<1x32xf32, #tpu.memory_space<any>>) dst(%1365 : memref<1x32xf32, #tpu.memory_space<vmem>>)
    %c0_i32_1176 = arith.constant 0 : i32
    %c0_i32_1177 = arith.constant 0 : i32
    %1368 = tpu.memref_slice %arg2[%831, %c0_i32_1177] : memref<50x32xf32, #tpu.memory_space<any>> -> memref<1x32xf32, #tpu.memory_space<any>>
    %c59_i32_1178 = arith.constant 59 : i32
    %c0_i32_1179 = arith.constant 0 : i32
    %1369 = tpu.memref_slice %arg7[%c59_i32_1178, %c0_i32_1179] : memref<64x32xf32, #tpu.memory_space<vmem>> -> memref<1x32xf32, #tpu.memory_space<vmem>>
    %1370 = tpu.memref_slice %arg9[%c0_i32_1176] : memref<2x!tpu.dma_semaphore, #tpu.memory_space<semaphore_mem>> -> memref<1x!tpu.dma_semaphore, #tpu.memory_space<semaphore_mem>>
    %1371 = tpu.memref_squeeze %1370 : memref<1x!tpu.dma_semaphore, #tpu.memory_space<semaphore_mem>> -> memref<!tpu.dma_semaphore, #tpu.memory_space<semaphore_mem>>
    tpu.wait_dma2 semaphore(%1371 : memref<!tpu.dma_semaphore, #tpu.memory_space<semaphore_mem>>) src(%1368 : memref<1x32xf32, #tpu.memory_space<any>>) dst(%1369 : memref<1x32xf32, #tpu.memory_space<vmem>>)
    %c1_i32_1180 = arith.constant 1 : i32
    %c0_i32_1181 = arith.constant 0 : i32
    %1372 = tpu.memref_slice %arg2[%831, %c0_i32_1181] : memref<50x32xf32, #tpu.memory_space<any>> -> memref<1x32xf32, #tpu.memory_space<any>>
    %c31_i32_1182 = arith.constant 31 : i32
    %c0_i32_1183 = arith.constant 0 : i32
    %1373 = tpu.memref_slice %arg8[%c31_i32_1182, %c0_i32_1183] : memref<64x32xf32, #tpu.memory_space<vmem>> -> memref<1x32xf32, #tpu.memory_space<vmem>>
    %1374 = tpu.memref_slice %arg9[%c1_i32_1180] : memref<2x!tpu.dma_semaphore, #tpu.memory_space<semaphore_mem>> -> memref<1x!tpu.dma_semaphore, #tpu.memory_space<semaphore_mem>>
    %1375 = tpu.memref_squeeze %1374 : memref<1x!tpu.dma_semaphore, #tpu.memory_space<semaphore_mem>> -> memref<!tpu.dma_semaphore, #tpu.memory_space<semaphore_mem>>
    tpu.wait_dma2 semaphore(%1375 : memref<!tpu.dma_semaphore, #tpu.memory_space<semaphore_mem>>) src(%1372 : memref<1x32xf32, #tpu.memory_space<any>>) dst(%1373 : memref<1x32xf32, #tpu.memory_space<vmem>>)
    %c0_i32_1184 = arith.constant 0 : i32
    %c0_i32_1185 = arith.constant 0 : i32
    %1376 = tpu.memref_slice %arg2[%845, %c0_i32_1185] : memref<50x32xf32, #tpu.memory_space<any>> -> memref<1x32xf32, #tpu.memory_space<any>>
    %c60_i32_1186 = arith.constant 60 : i32
    %c0_i32_1187 = arith.constant 0 : i32
    %1377 = tpu.memref_slice %arg7[%c60_i32_1186, %c0_i32_1187] : memref<64x32xf32, #tpu.memory_space<vmem>> -> memref<1x32xf32, #tpu.memory_space<vmem>>
    %1378 = tpu.memref_slice %arg9[%c0_i32_1184] : memref<2x!tpu.dma_semaphore, #tpu.memory_space<semaphore_mem>> -> memref<1x!tpu.dma_semaphore, #tpu.memory_space<semaphore_mem>>
    %1379 = tpu.memref_squeeze %1378 : memref<1x!tpu.dma_semaphore, #tpu.memory_space<semaphore_mem>> -> memref<!tpu.dma_semaphore, #tpu.memory_space<semaphore_mem>>
    tpu.wait_dma2 semaphore(%1379 : memref<!tpu.dma_semaphore, #tpu.memory_space<semaphore_mem>>) src(%1376 : memref<1x32xf32, #tpu.memory_space<any>>) dst(%1377 : memref<1x32xf32, #tpu.memory_space<vmem>>)
    %c1_i32_1188 = arith.constant 1 : i32
    %c0_i32_1189 = arith.constant 0 : i32
    %1380 = tpu.memref_slice %arg2[%845, %c0_i32_1189] : memref<50x32xf32, #tpu.memory_space<any>> -> memref<1x32xf32, #tpu.memory_space<any>>
    %c39_i32_1190 = arith.constant 39 : i32
    %c0_i32_1191 = arith.constant 0 : i32
    %1381 = tpu.memref_slice %arg8[%c39_i32_1190, %c0_i32_1191] : memref<64x32xf32, #tpu.memory_space<vmem>> -> memref<1x32xf32, #tpu.memory_space<vmem>>
    %1382 = tpu.memref_slice %arg9[%c1_i32_1188] : memref<2x!tpu.dma_semaphore, #tpu.memory_space<semaphore_mem>> -> memref<1x!tpu.dma_semaphore, #tpu.memory_space<semaphore_mem>>
    %1383 = tpu.memref_squeeze %1382 : memref<1x!tpu.dma_semaphore, #tpu.memory_space<semaphore_mem>> -> memref<!tpu.dma_semaphore, #tpu.memory_space<semaphore_mem>>
    tpu.wait_dma2 semaphore(%1383 : memref<!tpu.dma_semaphore, #tpu.memory_space<semaphore_mem>>) src(%1380 : memref<1x32xf32, #tpu.memory_space<any>>) dst(%1381 : memref<1x32xf32, #tpu.memory_space<vmem>>)
    %c0_i32_1192 = arith.constant 0 : i32
    %c0_i32_1193 = arith.constant 0 : i32
    %1384 = tpu.memref_slice %arg2[%859, %c0_i32_1193] : memref<50x32xf32, #tpu.memory_space<any>> -> memref<1x32xf32, #tpu.memory_space<any>>
    %c61_i32_1194 = arith.constant 61 : i32
    %c0_i32_1195 = arith.constant 0 : i32
    %1385 = tpu.memref_slice %arg7[%c61_i32_1194, %c0_i32_1195] : memref<64x32xf32, #tpu.memory_space<vmem>> -> memref<1x32xf32, #tpu.memory_space<vmem>>
    %1386 = tpu.memref_slice %arg9[%c0_i32_1192] : memref<2x!tpu.dma_semaphore, #tpu.memory_space<semaphore_mem>> -> memref<1x!tpu.dma_semaphore, #tpu.memory_space<semaphore_mem>>
    %1387 = tpu.memref_squeeze %1386 : memref<1x!tpu.dma_semaphore, #tpu.memory_space<semaphore_mem>> -> memref<!tpu.dma_semaphore, #tpu.memory_space<semaphore_mem>>
    tpu.wait_dma2 semaphore(%1387 : memref<!tpu.dma_semaphore, #tpu.memory_space<semaphore_mem>>) src(%1384 : memref<1x32xf32, #tpu.memory_space<any>>) dst(%1385 : memref<1x32xf32, #tpu.memory_space<vmem>>)
    %c1_i32_1196 = arith.constant 1 : i32
    %c0_i32_1197 = arith.constant 0 : i32
    %1388 = tpu.memref_slice %arg2[%859, %c0_i32_1197] : memref<50x32xf32, #tpu.memory_space<any>> -> memref<1x32xf32, #tpu.memory_space<any>>
    %c47_i32_1198 = arith.constant 47 : i32
    %c0_i32_1199 = arith.constant 0 : i32
    %1389 = tpu.memref_slice %arg8[%c47_i32_1198, %c0_i32_1199] : memref<64x32xf32, #tpu.memory_space<vmem>> -> memref<1x32xf32, #tpu.memory_space<vmem>>
    %1390 = tpu.memref_slice %arg9[%c1_i32_1196] : memref<2x!tpu.dma_semaphore, #tpu.memory_space<semaphore_mem>> -> memref<1x!tpu.dma_semaphore, #tpu.memory_space<semaphore_mem>>
    %1391 = tpu.memref_squeeze %1390 : memref<1x!tpu.dma_semaphore, #tpu.memory_space<semaphore_mem>> -> memref<!tpu.dma_semaphore, #tpu.memory_space<semaphore_mem>>
    tpu.wait_dma2 semaphore(%1391 : memref<!tpu.dma_semaphore, #tpu.memory_space<semaphore_mem>>) src(%1388 : memref<1x32xf32, #tpu.memory_space<any>>) dst(%1389 : memref<1x32xf32, #tpu.memory_space<vmem>>)
    %c0_i32_1200 = arith.constant 0 : i32
    %c0_i32_1201 = arith.constant 0 : i32
    %1392 = tpu.memref_slice %arg2[%873, %c0_i32_1201] : memref<50x32xf32, #tpu.memory_space<any>> -> memref<1x32xf32, #tpu.memory_space<any>>
    %c62_i32_1202 = arith.constant 62 : i32
    %c0_i32_1203 = arith.constant 0 : i32
    %1393 = tpu.memref_slice %arg7[%c62_i32_1202, %c0_i32_1203] : memref<64x32xf32, #tpu.memory_space<vmem>> -> memref<1x32xf32, #tpu.memory_space<vmem>>
    %1394 = tpu.memref_slice %arg9[%c0_i32_1200] : memref<2x!tpu.dma_semaphore, #tpu.memory_space<semaphore_mem>> -> memref<1x!tpu.dma_semaphore, #tpu.memory_space<semaphore_mem>>
    %1395 = tpu.memref_squeeze %1394 : memref<1x!tpu.dma_semaphore, #tpu.memory_space<semaphore_mem>> -> memref<!tpu.dma_semaphore, #tpu.memory_space<semaphore_mem>>
    tpu.wait_dma2 semaphore(%1395 : memref<!tpu.dma_semaphore, #tpu.memory_space<semaphore_mem>>) src(%1392 : memref<1x32xf32, #tpu.memory_space<any>>) dst(%1393 : memref<1x32xf32, #tpu.memory_space<vmem>>)
    %c1_i32_1204 = arith.constant 1 : i32
    %c0_i32_1205 = arith.constant 0 : i32
    %1396 = tpu.memref_slice %arg2[%873, %c0_i32_1205] : memref<50x32xf32, #tpu.memory_space<any>> -> memref<1x32xf32, #tpu.memory_space<any>>
    %c55_i32_1206 = arith.constant 55 : i32
    %c0_i32_1207 = arith.constant 0 : i32
    %1397 = tpu.memref_slice %arg8[%c55_i32_1206, %c0_i32_1207] : memref<64x32xf32, #tpu.memory_space<vmem>> -> memref<1x32xf32, #tpu.memory_space<vmem>>
    %1398 = tpu.memref_slice %arg9[%c1_i32_1204] : memref<2x!tpu.dma_semaphore, #tpu.memory_space<semaphore_mem>> -> memref<1x!tpu.dma_semaphore, #tpu.memory_space<semaphore_mem>>
    %1399 = tpu.memref_squeeze %1398 : memref<1x!tpu.dma_semaphore, #tpu.memory_space<semaphore_mem>> -> memref<!tpu.dma_semaphore, #tpu.memory_space<semaphore_mem>>
    tpu.wait_dma2 semaphore(%1399 : memref<!tpu.dma_semaphore, #tpu.memory_space<semaphore_mem>>) src(%1396 : memref<1x32xf32, #tpu.memory_space<any>>) dst(%1397 : memref<1x32xf32, #tpu.memory_space<vmem>>)
    %c0_i32_1208 = arith.constant 0 : i32
    %c0_i32_1209 = arith.constant 0 : i32
    %1400 = tpu.memref_slice %arg2[%887, %c0_i32_1209] : memref<50x32xf32, #tpu.memory_space<any>> -> memref<1x32xf32, #tpu.memory_space<any>>
    %c63_i32_1210 = arith.constant 63 : i32
    %c0_i32_1211 = arith.constant 0 : i32
    %1401 = tpu.memref_slice %arg7[%c63_i32_1210, %c0_i32_1211] : memref<64x32xf32, #tpu.memory_space<vmem>> -> memref<1x32xf32, #tpu.memory_space<vmem>>
    %1402 = tpu.memref_slice %arg9[%c0_i32_1208] : memref<2x!tpu.dma_semaphore, #tpu.memory_space<semaphore_mem>> -> memref<1x!tpu.dma_semaphore, #tpu.memory_space<semaphore_mem>>
    %1403 = tpu.memref_squeeze %1402 : memref<1x!tpu.dma_semaphore, #tpu.memory_space<semaphore_mem>> -> memref<!tpu.dma_semaphore, #tpu.memory_space<semaphore_mem>>
    tpu.wait_dma2 semaphore(%1403 : memref<!tpu.dma_semaphore, #tpu.memory_space<semaphore_mem>>) src(%1400 : memref<1x32xf32, #tpu.memory_space<any>>) dst(%1401 : memref<1x32xf32, #tpu.memory_space<vmem>>)
    %c1_i32_1212 = arith.constant 1 : i32
    %c0_i32_1213 = arith.constant 0 : i32
    %1404 = tpu.memref_slice %arg2[%887, %c0_i32_1213] : memref<50x32xf32, #tpu.memory_space<any>> -> memref<1x32xf32, #tpu.memory_space<any>>
    %c63_i32_1214 = arith.constant 63 : i32
    %c0_i32_1215 = arith.constant 0 : i32
    %1405 = tpu.memref_slice %arg8[%c63_i32_1214, %c0_i32_1215] : memref<64x32xf32, #tpu.memory_space<vmem>> -> memref<1x32xf32, #tpu.memory_space<vmem>>
    %1406 = tpu.memref_slice %arg9[%c1_i32_1212] : memref<2x!tpu.dma_semaphore, #tpu.memory_space<semaphore_mem>> -> memref<1x!tpu.dma_semaphore, #tpu.memory_space<semaphore_mem>>
    %1407 = tpu.memref_squeeze %1406 : memref<1x!tpu.dma_semaphore, #tpu.memory_space<semaphore_mem>> -> memref<!tpu.dma_semaphore, #tpu.memory_space<semaphore_mem>>
    tpu.wait_dma2 semaphore(%1407 : memref<!tpu.dma_semaphore, #tpu.memory_space<semaphore_mem>>) src(%1404 : memref<1x32xf32, #tpu.memory_space<any>>) dst(%1405 : memref<1x32xf32, #tpu.memory_space<vmem>>)
    %c0 = arith.constant 0 : index
    %c0_1216 = arith.constant 0 : index
    %1408 = vector.load %arg8[%c0, %c0_1216] : memref<64x32xf32, #tpu.memory_space<vmem>>, vector<64x32xf32>
    %1409 = vector.shape_cast %1408 : vector<64x32xf32> to vector<8x8x32xf32>
    %c0_1217 = arith.constant 0 : index
    %c0_1218 = arith.constant 0 : index
    %c0_1219 = arith.constant 0 : index
    %1410 = vector.load %arg5[%c0_1217, %c0_1218, %c0_1219] : memref<8x8x32xf32, #tpu.memory_space<vmem>>, vector<8x8x32xf32>
    tpu.vector_store %arg5[%c0_1217, %c0_1218, %c0_1219], %1409 {strides = array<i32>} : memref<8x8x32xf32, #tpu.memory_space<vmem>>, vector<8x8x32xf32>,
    %c0_1220 = arith.constant 0 : index
    %c0_1221 = arith.constant 0 : index
    %1411 = vector.load %arg7[%c0_1220, %c0_1221] : memref<64x32xf32, #tpu.memory_space<vmem>>, vector<64x32xf32>
    %1412 = arith.truncf %1411 : vector<64x32xf32> to vector<64x32xbf16>
    %c0_1222 = arith.constant 0 : index
    %c0_1223 = arith.constant 0 : index
    %1413 = vector.load %arg3[%c0_1222, %c0_1223] : memref<32x512xbf16, #tpu.memory_space<vmem>>, vector<32x512xbf16>
    %cst = arith.constant dense<0.000000e+00> : vector<64x512xf32>
    %1414 = tpu.matmul %1412, %1413, %cst {dimension_numbers = #tpu.dot_dimension_numbers<[1], [0], [0], [1], [0, 0, 1, 1], [], []>} : vector<64x32xbf16>, vector<32x512xbf16>, vector<64x512xf32> -> vector<64x512xf32>
    %c0_1224 = arith.constant 0 : index
    %c0_1225 = arith.constant 0 : index
    %1415 = vector.load %arg4[%c0_1224, %c0_1225] : memref<1x512xf32, #tpu.memory_space<vmem>>, vector<1x512xf32>
    %1416 = vector.broadcast %1415 : vector<1x512xf32> to vector<64x512xf32>
    %1417 = arith.addf %1414, %1416 : vector<64x512xf32>
    %1418 = vector.shape_cast %1417 : vector<64x512xf32> to vector<8x8x512xf32>
    %1419 = arith.truncf %1418 : vector<8x8x512xf32> to vector<8x8x512xbf16>
    %c0_1226 = arith.constant 0 : index
    %c0_1227 = arith.constant 0 : index
    %c0_1228 = arith.constant 0 : index
    %1420 = vector.load %arg6[%c0_1226, %c0_1227, %c0_1228] : memref<8x8x512xbf16, #tpu.memory_space<vmem>>, vector<8x8x512xbf16>
    tpu.vector_store %arg6[%c0_1226, %c0_1227, %c0_1228], %1419 {strides = array<i32>} : memref<8x8x512xbf16, #tpu.memory_space<vmem>>, vector<8x8x512xbf16>,
    return
  }
  func.func @transform_1(%arg0: i32, %arg1: memref<64xi32, #tpu.memory_space<smem>>) -> (i32, i32) {
    %c0_i32 = arith.constant 0 : i32
    %c0_i32_0 = arith.constant 0 : i32
    %c0_i32_1 = arith.constant 0 : i32
    return %c0_i32, %c0_i32_0 : i32, i32
  }
  func.func @transform_2(%arg0: i32, %arg1: memref<64xi32, #tpu.memory_space<smem>>) -> (i32, i32) {
    %c0_i32 = arith.constant 0 : i32
    %c0_i32_0 = arith.constant 0 : i32
    %c0_i32_1 = arith.constant 0 : i32
    return %c0_i32, %c0_i32_0 : i32, i32
  }
  func.func @transform_3(%arg0: i32, %arg1: memref<64xi32, #tpu.memory_space<smem>>) -> (i32, i32, i32) {
    %c0_i32 = arith.constant 0 : i32
    %c0_i32_0 = arith.constant 0 : i32
    %c0_i32_1 = arith.constant 0 : i32
    return %c0_i32, %arg0, %c0_i32_0 : i32, i32, i32
  }
  func.func @transform_4(%arg0: i32, %arg1: memref<64xi32, #tpu.memory_space<smem>>) -> (i32, i32, i32) {
    %c0_i32 = arith.constant 0 : i32
    %c0_i32_0 = arith.constant 0 : i32
    %c0_i32_1 = arith.constant 0 : i32
    return %arg0, %c0_i32, %c0_i32_0 : i32, i32, i32
  }
}

</mosaic_0001>

<bundles_post_ra>
// kernel: tpu_custom_call.1
= control target key start
LH: loop header
LB: loop body
LE: loop exit
PB: predicated region body
PF: predicated region fallthrough
CT: control target
= control target key end

     0   :  { %s8947_s0 = inlined_call_operand.vmem [shape: s32[64], index: 0, kind: input, shape index: {}]   ;;  %s8948_s1 = inlined_call_operand.vmem [shape: f32[50,32], index: 1, kind: input, shape index: {}]   ;;  %s8949_s2 = inlined_call_operand.vmem [shape: bf16[32,512], index: 2, kind: input, shape index: {}]   ;;  %s8950_s3 = inlined_call_operand.vmem [shape: f32[1,512], index: 3, kind: input, shape index: {}]   ;;  %s8951_s4 = inlined_call_operand.hbm [shape: f32[8,8,32], index: 4, kind: output, shape index: {0}]   ;;  %s8952_s5 = inlined_call_operand.hbm [shape: bf16[8,8,512], index: 5, kind: output, shape index: {1}]  }
   0x1   :  { %s11_s20 = sshll.u32 %s8947_s0, 4  ;;  %s12_s20 = int_to_ptr.vmem [resolvable:$true] %s11_s20 }
   0x2   :  { %s8289_s21 = scalar_lea.vmem %s12_s20, 16  ;;  %p8294_p1 = scmp.lt.s32.totalorder %s12_s20, %s12_s20 }
   0x3   :  { %p8290_p0 = scmp.ne.s32.totalorder %s12_s20, %s8289_s21  ;;  %p8295_p2 = scmp.lt.s32.totalorder %s8289_s21, %s8289_s21 }
   0x5   :  { %p8296_p3 = por %p8295_p2, %p8294_p1 }
   0x7   :  { %p8297_p4 = pnand %p8296_p3, %p8290_p0 }
   0x9   :  { %8300 = shalt.err (!%p8297_p4)  }
   0xa   :  { %s8607_s22 = smov [#allocation6]  }
   0xb   :  { %14 = dma.vmem_to_smem %s12_s20, 16, %s8607_s22, [#allocation5] }
   0xc   :  { %8345 = dma.done.wait [#allocation5], 16 }
   0xd   :  { %8346 = vsyncadd [#allocation5], 4294967280 }
   0xe   :  { %16 = sfence }
   0xf   :  { %17 = vsyncpa [#allocation8], 0 }
  0x10   :  { %18 = vsyncpa [#allocation10], 0  ;;  %s25_s23 = sld [smem:[#allocation6]] }
  0x16   :  { %s26_s0 = scalar_lea.vmem %s8948_s1, %s25_s23 }
  0x17   :  { %v44_v0 = vld [vmem:[%s26_s0] sm:$0x1] }
  0x18   :  { %45 = vst [vmem:[#allocation2] sm:$0x1] %v44_v0 }
  0x19   :  { %70 = vsyncadd [#allocation4], 16  ;;  %v89_v1 = vld [vmem:[%s26_s0] sm:$0x1] }
  0x1a   :  { %90 = vst [vmem:[#allocation3] sm:$0x1] %v89_v1 }
  0x1b   :  { %115 = vsyncadd [#allocation4 + $0x1], 16  ;;  %s8156_s26 = sld [smem:[#allocation6 + $0x1]] }
  0x21   :  { %s118_s29 = scalar_lea.vmem %s8948_s1, %s8156_s26 }
  0x22   :  { %v137_v2 = vld [vmem:[%s118_s29] sm:$0x1] }
  0x23   :  { %138 = vst [vmem:[#allocation2 + $0x1] sm:$0x1] %v137_v2 }
  0x24   :  { %163 = vsyncadd [#allocation4], 16  ;;  %v182_v3 = vld [vmem:[%s118_s29] sm:$0x1] }
  0x25   :  { %183 = vst [vmem:[#allocation3 + $0x8] sm:$0x1] %v182_v3 }
  0x26   :  { %208 = vsyncadd [#allocation4 + $0x1], 16  ;;  %s8157_s30 = sld [smem:[#allocation6 + $0x2]] }
  0x2c   :  { %s211_s8 = scalar_lea.vmem %s8948_s1, %s8157_s30 }
  0x2d   :  { %v230_v4 = vld [vmem:[%s211_s8] sm:$0x1] }
  0x2e   :  { %231 = vst [vmem:[#allocation2 + $0x2] sm:$0x1] %v230_v4 }
  0x2f   :  { %256 = vsyncadd [#allocation4], 16  ;;  %v275_v5 = vld [vmem:[%s211_s8] sm:$0x1] }
  0x30   :  { %276 = vst [vmem:[#allocation3 + $0x10] sm:$0x1] %v275_v5 }
  0x31   :  { %301 = vsyncadd [#allocation4 + $0x1], 16  ;;  %s8158_s9 = sld [smem:[#allocation6 + $0x3]] }
  0x37   :  { %s304_s12 = scalar_lea.vmem %s8948_s1, %s8158_s9 }
  0x38   :  { %v323_v6 = vld [vmem:[%s304_s12] sm:$0x1] }
  0x39   :  { %324 = vst [vmem:[#allocation2 + $0x3] sm:$0x1] %v323_v6 }
  0x3a   :  { %349 = vsyncadd [#allocation4], 16  ;;  %v368_v7 = vld [vmem:[%s304_s12] sm:$0x1] }
  0x3b   :  { %369 = vst [vmem:[#allocation3 + $0x18] sm:$0x1] %v368_v7 }
  0x3c   :  { %394 = vsyncadd [#allocation4 + $0x1], 16  ;;  %s8159_s13 = sld [smem:[#allocation6 + $0x4]] }
  0x42   :  { %s397_s16 = scalar_lea.vmem %s8948_s1, %s8159_s13 }
  0x43   :  { %v416_v8 = vld [vmem:[%s397_s16] sm:$0x1] }
  0x44   :  { %417 = vst [vmem:[#allocation2 + $0x4] sm:$0x1] %v416_v8 }
  0x45   :  { %442 = vsyncadd [#allocation4], 16  ;;  %v461_v9 = vld [vmem:[%s397_s16] sm:$0x1] }
  0x46   :  { %462 = vst [vmem:[#allocation3 + $0x20] sm:$0x1] %v461_v9 }
  0x47   :  { %487 = vsyncadd [#allocation4 + $0x1], 16  ;;  %s8160_s17 = sld [smem:[#allocation6 + $0x5]] }
  0x4d   :  { %s490_s20 = scalar_lea.vmem %s8948_s1, %s8160_s17 }
  0x4e   :  { %v509_v10 = vld [vmem:[%s490_s20] sm:$0x1] }
  0x4f   :  { %510 = vst [vmem:[#allocation2 + $0x5] sm:$0x1] %v509_v10 }
  0x50   :  { %535 = vsyncadd [#allocation4], 16  ;;  %v554_v11 = vld [vmem:[%s490_s20] sm:$0x1] }
  0x51   :  { %555 = vst [vmem:[#allocation3 + $0x28] sm:$0x1] %v554_v11 }
  0x52   :  { %580 = vsyncadd [#allocation4 + $0x1], 16  ;;  %s8161_s21 = sld [smem:[#allocation6 + $0x6]] }
  0x58   :  { %s583_s24 = scalar_lea.vmem %s8948_s1, %s8161_s21 }
  0x59   :  { %v602_v12 = vld [vmem:[%s583_s24] sm:$0x1] }
  0x5a   :  { %603 = vst [vmem:[#allocation2 + $0x6] sm:$0x1] %v602_v12 }
  0x5b   :  { %628 = vsyncadd [#allocation4], 16  ;;  %v647_v13 = vld [vmem:[%s583_s24] sm:$0x1] }
  0x5c   :  { %648 = vst [vmem:[#allocation3 + $0x30] sm:$0x1] %v647_v13 }
  0x5d   :  { %673 = vsyncadd [#allocation4 + $0x1], 16  ;;  %s8162_s25 = sld [smem:[#allocation6 + $0x7]] }
  0x63   :  { %s676_s27 = scalar_lea.vmem %s8948_s1, %s8162_s25 }
  0x64   :  { %v695_v14 = vld [vmem:[%s676_s27] sm:$0x1] }
  0x65   :  { %696 = vst [vmem:[#allocation2 + $0x7] sm:$0x1] %v695_v14 }
  0x66   :  { %721 = vsyncadd [#allocation4], 16  ;;  %v740_v15 = vld [vmem:[%s676_s27] sm:$0x1] }
  0x67   :  { %741 = vst [vmem:[#allocation3 + $0x38] sm:$0x1] %v740_v15 }
  0x68   :  { %766 = vsyncadd [#allocation4 + $0x1], 16  ;;  %s8163_s28 = sld [smem:[#allocation6 + $0x8]] }
  0x6e   :  { %s771_s6 = scalar_lea.vmem %s8948_s1, %s8163_s28 }
  0x6f   :  { %v790_v16 = vld [vmem:[%s771_s6] sm:$0x1] }
  0x70   :  { %791 = vst [vmem:[#allocation2 + $0x8] sm:$0x1] %v790_v16 }
  0x71   :  { %816 = vsyncadd [#allocation4], 16  ;;  %v835_v17 = vld [vmem:[%s771_s6] sm:$0x1] }
  0x72   :  { %836 = vst [vmem:[#allocation3 + $0x1] sm:$0x1] %v835_v17 }
  0x73   :  { %861 = vsyncadd [#allocation4 + $0x1], 16  ;;  %s8164_s7 = sld [smem:[#allocation6 + $0x9]] }
  0x79   :  { %s864_s10 = scalar_lea.vmem %s8948_s1, %s8164_s7 }
  0x7a   :  { %v883_v18 = vld [vmem:[%s864_s10] sm:$0x1] }
  0x7b   :  { %884 = vst [vmem:[#allocation2 + $0x9] sm:$0x1] %v883_v18 }
  0x7c   :  { %909 = vsyncadd [#allocation4], 16  ;;  %v928_v19 = vld [vmem:[%s864_s10] sm:$0x1] }
  0x7d   :  { %929 = vst [vmem:[#allocation3 + $0x9] sm:$0x1] %v928_v19 }
  0x7e   :  { %954 = vsyncadd [#allocation4 + $0x1], 16  ;;  %s8165_s11 = sld [smem:[#allocation6 + $0xa]] }
  0x84   :  { %s957_s14 = scalar_lea.vmem %s8948_s1, %s8165_s11 }
  0x85   :  { %v976_v20 = vld [vmem:[%s957_s14] sm:$0x1] }
  0x86   :  { %977 = vst [vmem:[#allocation2 + $0xa] sm:$0x1] %v976_v20 }
  0x87   :  { %1002 = vsyncadd [#allocation4], 16  ;;  %v1021_v21 = vld [vmem:[%s957_s14] sm:$0x1] }
  0x88   :  { %1022 = vst [vmem:[#allocation3 + $0x11] sm:$0x1] %v1021_v21 }
  0x89   :  { %1047 = vsyncadd [#allocation4 + $0x1], 16  ;;  %s8166_s15 = sld [smem:[#allocation6 + $0xb]] }
  0x8f   :  { %s1050_s18 = scalar_lea.vmem %s8948_s1, %s8166_s15 }
  0x90   :  { %v1069_v22 = vld [vmem:[%s1050_s18] sm:$0x1] }
  0x91   :  { %1070 = vst [vmem:[#allocation2 + $0xb] sm:$0x1] %v1069_v22 }
  0x92   :  { %1095 = vsyncadd [#allocation4], 16  ;;  %v1114_v23 = vld [vmem:[%s1050_s18] sm:$0x1] }
  0x93   :  { %1115 = vst [vmem:[#allocation3 + $0x19] sm:$0x1] %v1114_v23 }
  0x94   :  { %1140 = vsyncadd [#allocation4 + $0x1], 16  ;;  %s8167_s19 = sld [smem:[#allocation6 + $0xc]] }
  0x9a   :  { %s1143_s22 = scalar_lea.vmem %s8948_s1, %s8167_s19 }
  0x9b   :  { %v1162_v24 = vld [vmem:[%s1143_s22] sm:$0x1] }
  0x9c   :  { %1163 = vst [vmem:[#allocation2 + $0xc] sm:$0x1] %v1162_v24 }
  0x9d   :  { %1188 = vsyncadd [#allocation4], 16  ;;  %v1207_v25 = vld [vmem:[%s1143_s22] sm:$0x1] }
  0x9e   :  { %1208 = vst [vmem:[#allocation3 + $0x21] sm:$0x1] %v1207_v25 }
  0x9f   :  { %1233 = vsyncadd [#allocation4 + $0x1], 16  ;;  %s8168_s23 = sld [smem:[#allocation6 + $0xd]] }
  0xa5   :  { %s1236_s0 = scalar_lea.vmem %s8948_s1, %s8168_s23 }
  0xa6   :  { %v1255_v26 = vld [vmem:[%s1236_s0] sm:$0x1] }
  0xa7   :  { %1256 = vst [vmem:[#allocation2 + $0xd] sm:$0x1] %v1255_v26 }
  0xa8   :  { %1281 = vsyncadd [#allocation4], 16  ;;  %v1300_v27 = vld [vmem:[%s1236_s0] sm:$0x1] }
  0xa9   :  { %1301 = vst [vmem:[#allocation3 + $0x29] sm:$0x1] %v1300_v27 }
  0xaa   :  { %1326 = vsyncadd [#allocation4 + $0x1], 16  ;;  %s8169_s26 = sld [smem:[#allocation6 + $0xe]] }
  0xb0   :  { %s1329_s29 = scalar_lea.vmem %s8948_s1, %s8169_s26 }
  0xb1   :  { %v1348_v28 = vld [vmem:[%s1329_s29] sm:$0x1] }
  0xb2   :  { %1349 = vst [vmem:[#allocation2 + $0xe] sm:$0x1] %v1348_v28 }
  0xb3   :  { %1374 = vsyncadd [#allocation4], 16  ;;  %v1393_v29 = vld [vmem:[%s1329_s29] sm:$0x1] }
  0xb4   :  { %1394 = vst [vmem:[#allocation3 + $0x31] sm:$0x1] %v1393_v29 }
  0xb5   :  { %1419 = vsyncadd [#allocation4 + $0x1], 16  ;;  %s8170_s30 = sld [smem:[#allocation6 + $0xf]] }
  0xbb   :  { %s1422_s8 = scalar_lea.vmem %s8948_s1, %s8170_s30 }
  0xbc   :  { %v1441_v30 = vld [vmem:[%s1422_s8] sm:$0x1] }
  0xbd   :  { %1442 = vst [vmem:[#allocation2 + $0xf] sm:$0x1] %v1441_v30 }
  0xbe   :  { %1467 = vsyncadd [#allocation4], 16  ;;  %v1486_v31 = vld [vmem:[%s1422_s8] sm:$0x1] }
  0xbf   :  { %1487 = vst [vmem:[#allocation3 + $0x39] sm:$0x1] %v1486_v31 }
  0xc0   :  { %1512 = vsyncadd [#allocation4 + $0x1], 16  ;;  %s8171_s9 = sld [smem:[#allocation6 + $0x10]] }
  0xc6   :  { %s1516_s12 = scalar_lea.vmem %s8948_s1, %s8171_s9 }
  0xc7   :  { %v1535_v32 = vld [vmem:[%s1516_s12] sm:$0x1] }
  0xc8   :  { %1536 = vst [vmem:[#allocation2 + $0x10] sm:$0x1] %v1535_v32 }
  0xc9   :  { %1561 = vsyncadd [#allocation4], 16  ;;  %v1580_v33 = vld [vmem:[%s1516_s12] sm:$0x1] }
  0xca   :  { %1581 = vst [vmem:[#allocation3 + $0x2] sm:$0x1] %v1580_v33 }
  0xcb   :  { %1606 = vsyncadd [#allocation4 + $0x1], 16  ;;  %s8172_s13 = sld [smem:[#allocation6 + $0x11]] }
  0xd1   :  { %s1609_s16 = scalar_lea.vmem %s8948_s1, %s8172_s13 }
  0xd2   :  { %v1628_v34 = vld [vmem:[%s1609_s16] sm:$0x1] }
  0xd3   :  { %1629 = vst [vmem:[#allocation2 + $0x11] sm:$0x1] %v1628_v34 }
  0xd4   :  { %1654 = vsyncadd [#allocation4], 16  ;;  %v1673_v35 = vld [vmem:[%s1609_s16] sm:$0x1] }
  0xd5   :  { %1674 = vst [vmem:[#allocation3 + $0xa] sm:$0x1] %v1673_v35 }
  0xd6   :  { %1699 = vsyncadd [#allocation4 + $0x1], 16  ;;  %s8173_s17 = sld [smem:[#allocation6 + $0x12]] }
  0xdc   :  { %s1702_s20 = scalar_lea.vmem %s8948_s1, %s8173_s17 }
  0xdd   :  { %v1721_v36 = vld [vmem:[%s1702_s20] sm:$0x1] }
  0xde   :  { %1722 = vst [vmem:[#allocation2 + $0x12] sm:$0x1] %v1721_v36 }
  0xdf   :  { %1747 = vsyncadd [#allocation4], 16  ;;  %v1766_v37 = vld [vmem:[%s1702_s20] sm:$0x1] }
  0xe0   :  { %1767 = vst [vmem:[#allocation3 + $0x12] sm:$0x1] %v1766_v37 }
  0xe1   :  { %1792 = vsyncadd [#allocation4 + $0x1], 16  ;;  %s8174_s21 = sld [smem:[#allocation6 + $0x13]] }
  0xe7   :  { %s1795_s24 = scalar_lea.vmem %s8948_s1, %s8174_s21 }
  0xe8   :  { %v1814_v38 = vld [vmem:[%s1795_s24] sm:$0x1] }
  0xe9   :  { %1815 = vst [vmem:[#allocation2 + $0x13] sm:$0x1] %v1814_v38 }
  0xea   :  { %1840 = vsyncadd [#allocation4], 16  ;;  %v1859_v39 = vld [vmem:[%s1795_s24] sm:$0x1] }
  0xeb   :  { %1860 = vst [vmem:[#allocation3 + $0x1a] sm:$0x1] %v1859_v39 }
  0xec   :  { %1885 = vsyncadd [#allocation4 + $0x1], 16  ;;  %s8175_s25 = sld [smem:[#allocation6 + $0x14]] }
  0xf2   :  { %s1888_s27 = scalar_lea.vmem %s8948_s1, %s8175_s25 }
  0xf3   :  { %v1907_v40 = vld [vmem:[%s1888_s27] sm:$0x1] }
  0xf4   :  { %1908 = vst [vmem:[#allocation2 + $0x14] sm:$0x1] %v1907_v40 }
  0xf5   :  { %1933 = vsyncadd [#allocation4], 16  ;;  %v1952_v41 = vld [vmem:[%s1888_s27] sm:$0x1] }
  0xf6   :  { %1953 = vst [vmem:[#allocation3 + $0x22] sm:$0x1] %v1952_v41 }
  0xf7   :  { %1978 = vsyncadd [#allocation4 + $0x1], 16  ;;  %s8176_s28 = sld [smem:[#allocation6 + $0x15]] }
  0xfd   :  { %s1981_s6 = scalar_lea.vmem %s8948_s1, %s8176_s28 }
  0xfe   :  { %v2000_v42 = vld [vmem:[%s1981_s6] sm:$0x1] }
  0xff   :  { %2001 = vst [vmem:[#allocation2 + $0x15] sm:$0x1] %v2000_v42 }
 0x100   :  { %2026 = vsyncadd [#allocation4], 16  ;;  %v2045_v43 = vld [vmem:[%s1981_s6] sm:$0x1] }
 0x101   :  { %2046 = vst [vmem:[#allocation3 + $0x2a] sm:$0x1] %v2045_v43 }
 0x102   :  { %2071 = vsyncadd [#allocation4 + $0x1], 16  ;;  %s8177_s7 = sld [smem:[#allocation6 + $0x16]] }
 0x108   :  { %s2074_s10 = scalar_lea.vmem %s8948_s1, %s8177_s7 }
 0x109   :  { %v2093_v44 = vld [vmem:[%s2074_s10] sm:$0x1] }
 0x10a   :  { %2094 = vst [vmem:[#allocation2 + $0x16] sm:$0x1] %v2093_v44 }
 0x10b   :  { %2119 = vsyncadd [#allocation4], 16  ;;  %v2138_v45 = vld [vmem:[%s2074_s10] sm:$0x1] }
 0x10c   :  { %2139 = vst [vmem:[#allocation3 + $0x32] sm:$0x1] %v2138_v45 }
 0x10d   :  { %2164 = vsyncadd [#allocation4 + $0x1], 16  ;;  %s8178_s11 = sld [smem:[#allocation6 + $0x17]] }
 0x113   :  { %s2167_s14 = scalar_lea.vmem %s8948_s1, %s8178_s11 }
 0x114   :  { %v2186_v46 = vld [vmem:[%s2167_s14] sm:$0x1] }
 0x115   :  { %2187 = vst [vmem:[#allocation2 + $0x17] sm:$0x1] %v2186_v46 }
 0x116   :  { %2212 = vsyncadd [#allocation4], 16  ;;  %v2231_v47 = vld [vmem:[%s2167_s14] sm:$0x1] }
 0x117   :  { %2232 = vst [vmem:[#allocation3 + $0x3a] sm:$0x1] %v2231_v47 }
 0x118   :  { %2257 = vsyncadd [#allocation4 + $0x1], 16  ;;  %s8179_s15 = sld [smem:[#allocation6 + $0x18]] }
 0x11e   :  { %s2261_s18 = scalar_lea.vmem %s8948_s1, %s8179_s15 }
 0x11f   :  { %v2280_v48 = vld [vmem:[%s2261_s18] sm:$0x1] }
 0x120   :  { %2281 = vst [vmem:[#allocation2 + $0x18] sm:$0x1] %v2280_v48 }
 0x121   :  { %2306 = vsyncadd [#allocation4], 16  ;;  %v2325_v49 = vld [vmem:[%s2261_s18] sm:$0x1] }
 0x122   :  { %2326 = vst [vmem:[#allocation3 + $0x3] sm:$0x1] %v2325_v49 }
 0x123   :  { %2351 = vsyncadd [#allocation4 + $0x1], 16  ;;  %s8180_s19 = sld [smem:[#allocation6 + $0x19]] }
 0x129   :  { %s2354_s22 = scalar_lea.vmem %s8948_s1, %s8180_s19 }
 0x12a   :  { %v2373_v50 = vld [vmem:[%s2354_s22] sm:$0x1] }
 0x12b   :  { %2374 = vst [vmem:[#allocation2 + $0x19] sm:$0x1] %v2373_v50 }
 0x12c   :  { %2399 = vsyncadd [#allocation4], 16  ;;  %v2418_v51 = vld [vmem:[%s2354_s22] sm:$0x1] }
 0x12d   :  { %2419 = vst [vmem:[#allocation3 + $0xb] sm:$0x1] %v2418_v51 }
 0x12e   :  { %2444 = vsyncadd [#allocation4 + $0x1], 16  ;;  %s8181_s23 = sld [smem:[#allocation6 + $0x1a]] }
 0x134   :  { %s2447_s0 = scalar_lea.vmem %s8948_s1, %s8181_s23 }
 0x135   :  { %v2466_v52 = vld [vmem:[%s2447_s0] sm:$0x1] }
 0x136   :  { %2467 = vst [vmem:[#allocation2 + $0x1a] sm:$0x1] %v2466_v52 }
 0x137   :  { %2492 = vsyncadd [#allocation4], 16  ;;  %v2511_v53 = vld [vmem:[%s2447_s0] sm:$0x1] }
 0x138   :  { %2512 = vst [vmem:[#allocation3 + $0x13] sm:$0x1] %v2511_v53 }
 0x139   :  { %2537 = vsyncadd [#allocation4 + $0x1], 16  ;;  %s8182_s26 = sld [smem:[#allocation6 + $0x1b]] }
 0x13f   :  { %s2540_s29 = scalar_lea.vmem %s8948_s1, %s8182_s26 }
 0x140   :  { %v2559_v54 = vld [vmem:[%s2540_s29] sm:$0x1] }
 0x141   :  { %2560 = vst [vmem:[#allocation2 + $0x1b] sm:$0x1] %v2559_v54 }
 0x142   :  { %2585 = vsyncadd [#allocation4], 16  ;;  %v2604_v55 = vld [vmem:[%s2540_s29] sm:$0x1] }
 0x143   :  { %2605 = vst [vmem:[#allocation3 + $0x1b] sm:$0x1] %v2604_v55 }
 0x144   :  { %2630 = vsyncadd [#allocation4 + $0x1], 16  ;;  %s8183_s30 = sld [smem:[#allocation6 + $0x1c]] }
 0x14a   :  { %s2633_s8 = scalar_lea.vmem %s8948_s1, %s8183_s30 }
 0x14b   :  { %v2652_v56 = vld [vmem:[%s2633_s8] sm:$0x1] }
 0x14c   :  { %2653 = vst [vmem:[#allocation2 + $0x1c] sm:$0x1] %v2652_v56 }
 0x14d   :  { %2678 = vsyncadd [#allocation4], 16  ;;  %v2697_v57 = vld [vmem:[%s2633_s8] sm:$0x1] }
 0x14e   :  { %2698 = vst [vmem:[#allocation3 + $0x23] sm:$0x1] %v2697_v57 }
 0x14f   :  { %2723 = vsyncadd [#allocation4 + $0x1], 16  ;;  %s8184_s9 = sld [smem:[#allocation6 + $0x1d]] }
 0x155   :  { %s2726_s12 = scalar_lea.vmem %s8948_s1, %s8184_s9 }
 0x156   :  { %v2745_v58 = vld [vmem:[%s2726_s12] sm:$0x1] }
 0x157   :  { %2746 = vst [vmem:[#allocation2 + $0x1d] sm:$0x1] %v2745_v58 }
 0x158   :  { %2771 = vsyncadd [#allocation4], 16  ;;  %v2790_v59 = vld [vmem:[%s2726_s12] sm:$0x1] }
 0x159   :  { %2791 = vst [vmem:[#allocation3 + $0x2b] sm:$0x1] %v2790_v59 }
 0x15a   :  { %2816 = vsyncadd [#allocation4 + $0x1], 16  ;;  %s8185_s13 = sld [smem:[#allocation6 + $0x1e]] }
 0x160   :  { %s2819_s16 = scalar_lea.vmem %s8948_s1, %s8185_s13 }
 0x161   :  { %v2838_v60 = vld [vmem:[%s2819_s16] sm:$0x1] }
 0x162   :  { %2839 = vst [vmem:[#allocation2 + $0x1e] sm:$0x1] %v2838_v60 }
 0x163   :  { %2864 = vsyncadd [#allocation4], 16  ;;  %v2883_v61 = vld [vmem:[%s2819_s16] sm:$0x1] }
 0x164   :  { %2884 = vst [vmem:[#allocation3 + $0x33] sm:$0x1] %v2883_v61 }
 0x165   :  { %2909 = vsyncadd [#allocation4 + $0x1], 16  ;;  %s8186_s17 = sld [smem:[#allocation6 + $0x1f]] }
 0x16b   :  { %s2912_s20 = scalar_lea.vmem %s8948_s1, %s8186_s17 }
 0x16c   :  { %v2931_v62 = vld [vmem:[%s2912_s20] sm:$0x1] }
 0x16d   :  { %2932 = vst [vmem:[#allocation2 + $0x1f] sm:$0x1] %v2931_v62 }
 0x16e   :  { %2957 = vsyncadd [#allocation4], 16  ;;  %v2976_v63 = vld [vmem:[%s2912_s20] sm:$0x1] }
 0x16f   :  { %2977 = vst [vmem:[#allocation3 + $0x3b] sm:$0x1] %v2976_v63 }
 0x170   :  { %3002 = vsyncadd [#allocation4 + $0x1], 16  ;;  %s8187_s21 = sld [smem:[#allocation6 + $0x20]] }
 0x176   :  { %s3006_s24 = scalar_lea.vmem %s8948_s1, %s8187_s21 }
 0x177   :  { %v3025_v0 = vld [vmem:[%s3006_s24] sm:$0x1] }
 0x178   :  { %3026 = vst [vmem:[#allocation2 + $0x20] sm:$0x1] %v3025_v0 }
 0x179   :  { %3051 = vsyncadd [#allocation4], 16  ;;  %v3070_v1 = vld [vmem:[%s3006_s24] sm:$0x1] }
 0x17a   :  { %3071 = vst [vmem:[#allocation3 + $0x4] sm:$0x1] %v3070_v1 }
 0x17b   :  { %3096 = vsyncadd [#allocation4 + $0x1], 16  ;;  %s8188_s25 = sld [smem:[#allocation6 + $0x21]] }
 0x181   :  { %s3099_s27 = scalar_lea.vmem %s8948_s1, %s8188_s25 }
 0x182   :  { %v3118_v2 = vld [vmem:[%s3099_s27] sm:$0x1] }
 0x183   :  { %3119 = vst [vmem:[#allocation2 + $0x21] sm:$0x1] %v3118_v2 }
 0x184   :  { %3144 = vsyncadd [#allocation4], 16  ;;  %v3163_v3 = vld [vmem:[%s3099_s27] sm:$0x1] }
 0x185   :  { %3164 = vst [vmem:[#allocation3 + $0xc] sm:$0x1] %v3163_v3 }
 0x186   :  { %3189 = vsyncadd [#allocation4 + $0x1], 16  ;;  %s8189_s28 = sld [smem:[#allocation6 + $0x22]] }
 0x18c   :  { %s3192_s6 = scalar_lea.vmem %s8948_s1, %s8189_s28 }
 0x18d   :  { %v3211_v4 = vld [vmem:[%s3192_s6] sm:$0x1] }
 0x18e   :  { %3212 = vst [vmem:[#allocation2 + $0x22] sm:$0x1] %v3211_v4 }
 0x18f   :  { %3237 = vsyncadd [#allocation4], 16  ;;  %v3256_v5 = vld [vmem:[%s3192_s6] sm:$0x1] }
 0x190   :  { %3257 = vst [vmem:[#allocation3 + $0x14] sm:$0x1] %v3256_v5 }
 0x191   :  { %3282 = vsyncadd [#allocation4 + $0x1], 16  ;;  %s8190_s7 = sld [smem:[#allocation6 + $0x23]] }
 0x197   :  { %s3285_s10 = scalar_lea.vmem %s8948_s1, %s8190_s7 }
 0x198   :  { %v3304_v6 = vld [vmem:[%s3285_s10] sm:$0x1] }
 0x199   :  { %3305 = vst [vmem:[#allocation2 + $0x23] sm:$0x1] %v3304_v6 }
 0x19a   :  { %3330 = vsyncadd [#allocation4], 16  ;;  %v3349_v7 = vld [vmem:[%s3285_s10] sm:$0x1] }
 0x19b   :  { %3350 = vst [vmem:[#allocation3 + $0x1c] sm:$0x1] %v3349_v7 }
 0x19c   :  { %3375 = vsyncadd [#allocation4 + $0x1], 16  ;;  %s8191_s11 = sld [smem:[#allocation6 + $0x24]] }
 0x1a2   :  { %s3378_s14 = scalar_lea.vmem %s8948_s1, %s8191_s11 }
 0x1a3   :  { %v3397_v8 = vld [vmem:[%s3378_s14] sm:$0x1] }
 0x1a4   :  { %3398 = vst [vmem:[#allocation2 + $0x24] sm:$0x1] %v3397_v8 }
 0x1a5   :  { %3423 = vsyncadd [#allocation4], 16  ;;  %v3442_v9 = vld [vmem:[%s3378_s14] sm:$0x1] }
 0x1a6   :  { %3443 = vst [vmem:[#allocation3 + $0x24] sm:$0x1] %v3442_v9 }
 0x1a7   :  { %3468 = vsyncadd [#allocation4 + $0x1], 16  ;;  %s8192_s15 = sld [smem:[#allocation6 + $0x25]] }
 0x1ad   :  { %s3471_s18 = scalar_lea.vmem %s8948_s1, %s8192_s15 }
 0x1ae   :  { %v3490_v10 = vld [vmem:[%s3471_s18] sm:$0x1] }
 0x1af   :  { %3491 = vst [vmem:[#allocation2 + $0x25] sm:$0x1] %v3490_v10 }
 0x1b0   :  { %3516 = vsyncadd [#allocation4], 16  ;;  %v3535_v11 = vld [vmem:[%s3471_s18] sm:$0x1] }
 0x1b1   :  { %3536 = vst [vmem:[#allocation3 + $0x2c] sm:$0x1] %v3535_v11 }
 0x1b2   :  { %3561 = vsyncadd [#allocation4 + $0x1], 16  ;;  %s8193_s19 = sld [smem:[#allocation6 + $0x26]] }
 0x1b8   :  { %s3564_s22 = scalar_lea.vmem %s8948_s1, %s8193_s19 }
 0x1b9   :  { %v3583_v12 = vld [vmem:[%s3564_s22] sm:$0x1] }
 0x1ba   :  { %3584 = vst [vmem:[#allocation2 + $0x26] sm:$0x1] %v3583_v12 }
 0x1bb   :  { %3609 = vsyncadd [#allocation4], 16  ;;  %v3628_v13 = vld [vmem:[%s3564_s22] sm:$0x1] }
 0x1bc   :  { %3629 = vst [vmem:[#allocation3 + $0x34] sm:$0x1] %v3628_v13 }
 0x1bd   :  { %3654 = vsyncadd [#allocation4 + $0x1], 16  ;;  %s8194_s23 = sld [smem:[#allocation6 + $0x27]] }
 0x1c3   :  { %s3657_s0 = scalar_lea.vmem %s8948_s1, %s8194_s23 }
 0x1c4   :  { %v3676_v14 = vld [vmem:[%s3657_s0] sm:$0x1] }
 0x1c5   :  { %3677 = vst [vmem:[#allocation2 + $0x27] sm:$0x1] %v3676_v14 }
 0x1c6   :  { %3702 = vsyncadd [#allocation4], 16  ;;  %v3721_v15 = vld [vmem:[%s3657_s0] sm:$0x1] }
 0x1c7   :  { %3722 = vst [vmem:[#allocation3 + $0x3c] sm:$0x1] %v3721_v15 }
 0x1c8   :  { %3747 = vsyncadd [#allocation4 + $0x1], 16  ;;  %s8195_s26 = sld [smem:[#allocation6 + $0x28]] }
 0x1ce   :  { %s3751_s29 = scalar_lea.vmem %s8948_s1, %s8195_s26 }
 0x1cf   :  { %v3770_v16 = vld [vmem:[%s3751_s29] sm:$0x1] }
 0x1d0   :  { %3771 = vst [vmem:[#allocation2 + $0x28] sm:$0x1] %v3770_v16 }
 0x1d1   :  { %3796 = vsyncadd [#allocation4], 16  ;;  %v3815_v17 = vld [vmem:[%s3751_s29] sm:$0x1] }
 0x1d2   :  { %3816 = vst [vmem:[#allocation3 + $0x5] sm:$0x1] %v3815_v17 }
 0x1d3   :  { %3841 = vsyncadd [#allocation4 + $0x1], 16  ;;  %s8196_s30 = sld [smem:[#allocation6 + $0x29]] }
 0x1d9   :  { %s3844_s8 = scalar_lea.vmem %s8948_s1, %s8196_s30 }
 0x1da   :  { %v3863_v18 = vld [vmem:[%s3844_s8] sm:$0x1] }
 0x1db   :  { %3864 = vst [vmem:[#allocation2 + $0x29] sm:$0x1] %v3863_v18 }
 0x1dc   :  { %3889 = vsyncadd [#allocation4], 16  ;;  %v3908_v19 = vld [vmem:[%s3844_s8] sm:$0x1] }
 0x1dd   :  { %3909 = vst [vmem:[#allocation3 + $0xd] sm:$0x1] %v3908_v19 }
 0x1de   :  { %3934 = vsyncadd [#allocation4 + $0x1], 16  ;;  %s8197_s9 = sld [smem:[#allocation6 + $0x2a]] }
 0x1e4   :  { %s3937_s12 = scalar_lea.vmem %s8948_s1, %s8197_s9 }
 0x1e5   :  { %v3956_v20 = vld [vmem:[%s3937_s12] sm:$0x1] }
 0x1e6   :  { %3957 = vst [vmem:[#allocation2 + $0x2a] sm:$0x1] %v3956_v20 }
 0x1e7   :  { %3982 = vsyncadd [#allocation4], 16  ;;  %v4001_v21 = vld [vmem:[%s3937_s12] sm:$0x1] }
 0x1e8   :  { %4002 = vst [vmem:[#allocation3 + $0x15] sm:$0x1] %v4001_v21 }
 0x1e9   :  { %4027 = vsyncadd [#allocation4 + $0x1], 16  ;;  %s8198_s13 = sld [smem:[#allocation6 + $0x2b]] }
 0x1ef   :  { %s4030_s16 = scalar_lea.vmem %s8948_s1, %s8198_s13 }
 0x1f0   :  { %v4049_v22 = vld [vmem:[%s4030_s16] sm:$0x1] }
 0x1f1   :  { %4050 = vst [vmem:[#allocation2 + $0x2b] sm:$0x1] %v4049_v22 }
 0x1f2   :  { %4075 = vsyncadd [#allocation4], 16  ;;  %v4094_v23 = vld [vmem:[%s4030_s16] sm:$0x1] }
 0x1f3   :  { %4095 = vst [vmem:[#allocation3 + $0x1d] sm:$0x1] %v4094_v23 }
 0x1f4   :  { %4120 = vsyncadd [#allocation4 + $0x1], 16  ;;  %s8199_s17 = sld [smem:[#allocation6 + $0x2c]] }
 0x1fa   :  { %s4123_s20 = scalar_lea.vmem %s8948_s1, %s8199_s17 }
 0x1fb   :  { %v4142_v24 = vld [vmem:[%s4123_s20] sm:$0x1] }
 0x1fc   :  { %4143 = vst [vmem:[#allocation2 + $0x2c] sm:$0x1] %v4142_v24 }
 0x1fd   :  { %4168 = vsyncadd [#allocation4], 16  ;;  %v4187_v25 = vld [vmem:[%s4123_s20] sm:$0x1] }
 0x1fe   :  { %4188 = vst [vmem:[#allocation3 + $0x25] sm:$0x1] %v4187_v25 }
 0x1ff   :  { %4213 = vsyncadd [#allocation4 + $0x1], 16  ;;  %s8200_s21 = sld [smem:[#allocation6 + $0x2d]] }
 0x205   :  { %s4216_s24 = scalar_lea.vmem %s8948_s1, %s8200_s21 }
 0x206   :  { %v4235_v26 = vld [vmem:[%s4216_s24] sm:$0x1] }
 0x207   :  { %4236 = vst [vmem:[#allocation2 + $0x2d] sm:$0x1] %v4235_v26 }
 0x208   :  { %4261 = vsyncadd [#allocation4], 16  ;;  %v4280_v27 = vld [vmem:[%s4216_s24] sm:$0x1] }
 0x209   :  { %4281 = vst [vmem:[#allocation3 + $0x2d] sm:$0x1] %v4280_v27 }
 0x20a   :  { %4306 = vsyncadd [#allocation4 + $0x1], 16  ;;  %s8201_s25 = sld [smem:[#allocation6 + $0x2e]] }
 0x210   :  { %s4309_s27 = scalar_lea.vmem %s8948_s1, %s8201_s25 }
 0x211   :  { %v4328_v28 = vld [vmem:[%s4309_s27] sm:$0x1] }
 0x212   :  { %4329 = vst [vmem:[#allocation2 + $0x2e] sm:$0x1] %v4328_v28 }
 0x213   :  { %4354 = vsyncadd [#allocation4], 16  ;;  %v4373_v29 = vld [vmem:[%s4309_s27] sm:$0x1] }
 0x214   :  { %4374 = vst [vmem:[#allocation3 + $0x35] sm:$0x1] %v4373_v29 }
 0x215   :  { %4399 = vsyncadd [#allocation4 + $0x1], 16  ;;  %s8202_s28 = sld [smem:[#allocation6 + $0x2f]] }
 0x21b   :  { %s4402_s6 = scalar_lea.vmem %s8948_s1, %s8202_s28 }
 0x21c   :  { %v4421_v30 = vld [vmem:[%s4402_s6] sm:$0x1] }
 0x21d   :  { %4422 = vst [vmem:[#allocation2 + $0x2f] sm:$0x1] %v4421_v30 }
 0x21e   :  { %4447 = vsyncadd [#allocation4], 16  ;;  %v4466_v31 = vld [vmem:[%s4402_s6] sm:$0x1] }
 0x21f   :  { %4467 = vst [vmem:[#allocation3 + $0x3d] sm:$0x1] %v4466_v31 }
 0x220   :  { %4492 = vsyncadd [#allocation4 + $0x1], 16  ;;  %s8203_s7 = sld [smem:[#allocation6 + $0x30]] }
 0x226   :  { %s4496_s10 = scalar_lea.vmem %s8948_s1, %s8203_s7 }
 0x227   :  { %v4515_v32 = vld [vmem:[%s4496_s10] sm:$0x1] }
 0x228   :  { %4516 = vst [vmem:[#allocation2 + $0x30] sm:$0x1] %v4515_v32 }
 0x229   :  { %4541 = vsyncadd [#allocation4], 16  ;;  %v4560_v33 = vld [vmem:[%s4496_s10] sm:$0x1] }
 0x22a   :  { %4561 = vst [vmem:[#allocation3 + $0x6] sm:$0x1] %v4560_v33 }
 0x22b   :  { %4586 = vsyncadd [#allocation4 + $0x1], 16  ;;  %s8204_s11 = sld [smem:[#allocation6 + $0x31]] }
 0x231   :  { %s4589_s14 = scalar_lea.vmem %s8948_s1, %s8204_s11 }
 0x232   :  { %v4608_v34 = vld [vmem:[%s4589_s14] sm:$0x1] }
 0x233   :  { %4609 = vst [vmem:[#allocation2 + $0x31] sm:$0x1] %v4608_v34 }
 0x234   :  { %4634 = vsyncadd [#allocation4], 16  ;;  %v4653_v35 = vld [vmem:[%s4589_s14] sm:$0x1] }
 0x235   :  { %4654 = vst [vmem:[#allocation3 + $0xe] sm:$0x1] %v4653_v35 }
 0x236   :  { %4679 = vsyncadd [#allocation4 + $0x1], 16  ;;  %s8205_s15 = sld [smem:[#allocation6 + $0x32]] }
 0x23c   :  { %s4682_s18 = scalar_lea.vmem %s8948_s1, %s8205_s15 }
 0x23d   :  { %v4701_v36 = vld [vmem:[%s4682_s18] sm:$0x1] }
 0x23e   :  { %4702 = vst [vmem:[#allocation2 + $0x32] sm:$0x1] %v4701_v36 }
 0x23f   :  { %4727 = vsyncadd [#allocation4], 16  ;;  %v4746_v37 = vld [vmem:[%s4682_s18] sm:$0x1] }
 0x240   :  { %4747 = vst [vmem:[#allocation3 + $0x16] sm:$0x1] %v4746_v37 }
 0x241   :  { %4772 = vsyncadd [#allocation4 + $0x1], 16  ;;  %s8206_s19 = sld [smem:[#allocation6 + $0x33]] }
 0x247   :  { %s4775_s22 = scalar_lea.vmem %s8948_s1, %s8206_s19 }
 0x248   :  { %v4794_v38 = vld [vmem:[%s4775_s22] sm:$0x1] }
 0x249   :  { %4795 = vst [vmem:[#allocation2 + $0x33] sm:$0x1] %v4794_v38 }
 0x24a   :  { %4820 = vsyncadd [#allocation4], 16  ;;  %v4839_v39 = vld [vmem:[%s4775_s22] sm:$0x1] }
 0x24b   :  { %4840 = vst [vmem:[#allocation3 + $0x1e] sm:$0x1] %v4839_v39 }
 0x24c   :  { %4865 = vsyncadd [#allocation4 + $0x1], 16  ;;  %s8207_s23 = sld [smem:[#allocation6 + $0x34]] }
 0x252   :  { %s4868_s0 = scalar_lea.vmem %s8948_s1, %s8207_s23 }
 0x253   :  { %v4887_v40 = vld [vmem:[%s4868_s0] sm:$0x1] }
 0x254   :  { %4888 = vst [vmem:[#allocation2 + $0x34] sm:$0x1] %v4887_v40 }
 0x255   :  { %4913 = vsyncadd [#allocation4], 16  ;;  %v4932_v41 = vld [vmem:[%s4868_s0] sm:$0x1] }
 0x256   :  { %4933 = vst [vmem:[#allocation3 + $0x26] sm:$0x1] %v4932_v41 }
 0x257   :  { %4958 = vsyncadd [#allocation4 + $0x1], 16  ;;  %s8208_s26 = sld [smem:[#allocation6 + $0x35]] }
 0x25d   :  { %s4961_s29 = scalar_lea.vmem %s8948_s1, %s8208_s26 }
 0x25e   :  { %v4980_v42 = vld [vmem:[%s4961_s29] sm:$0x1] }
 0x25f   :  { %4981 = vst [vmem:[#allocation2 + $0x35] sm:$0x1] %v4980_v42 }
 0x260   :  { %5006 = vsyncadd [#allocation4], 16  ;;  %v5025_v43 = vld [vmem:[%s4961_s29] sm:$0x1] }
 0x261   :  { %5026 = vst [vmem:[#allocation3 + $0x2e] sm:$0x1] %v5025_v43 }
 0x262   :  { %5051 = vsyncadd [#allocation4 + $0x1], 16  ;;  %s8209_s30 = sld [smem:[#allocation6 + $0x36]] }
 0x268   :  { %s5054_s8 = scalar_lea.vmem %s8948_s1, %s8209_s30 }
 0x269   :  { %v5073_v44 = vld [vmem:[%s5054_s8] sm:$0x1] }
 0x26a   :  { %5074 = vst [vmem:[#allocation2 + $0x36] sm:$0x1] %v5073_v44 }
 0x26b   :  { %5099 = vsyncadd [#allocation4], 16  ;;  %v5118_v45 = vld [vmem:[%s5054_s8] sm:$0x1] }
 0x26c   :  { %5119 = vst [vmem:[#allocation3 + $0x36] sm:$0x1] %v5118_v45 }
 0x26d   :  { %5144 = vsyncadd [#allocation4 + $0x1], 16  ;;  %s8210_s9 = sld [smem:[#allocation6 + $0x37]] }
 0x273   :  { %s5147_s12 = scalar_lea.vmem %s8948_s1, %s8210_s9 }
 0x274   :  { %v5166_v46 = vld [vmem:[%s5147_s12] sm:$0x1] }
 0x275   :  { %5167 = vst [vmem:[#allocation2 + $0x37] sm:$0x1] %v5166_v46 }
 0x276   :  { %5192 = vsyncadd [#allocation4], 16  ;;  %v5211_v47 = vld [vmem:[%s5147_s12] sm:$0x1] }
 0x277   :  { %5212 = vst [vmem:[#allocation3 + $0x3e] sm:$0x1] %v5211_v47 }
 0x278   :  { %5237 = vsyncadd [#allocation4 + $0x1], 16  ;;  %s8211_s13 = sld [smem:[#allocation6 + $0x38]] }
 0x27e   :  { %s5241_s16 = scalar_lea.vmem %s8948_s1, %s8211_s13 }
 0x27f   :  { %v5260_v48 = vld [vmem:[%s5241_s16] sm:$0x1] }
 0x280   :  { %5261 = vst [vmem:[#allocation2 + $0x38] sm:$0x1] %v5260_v48 }
 0x281   :  { %5286 = vsyncadd [#allocation4], 16  ;;  %v5305_v49 = vld [vmem:[%s5241_s16] sm:$0x1] }
 0x282   :  { %5306 = vst [vmem:[#allocation3 + $0x7] sm:$0x1] %v5305_v49 }
 0x283   :  { %5331 = vsyncadd [#allocation4 + $0x1], 16  ;;  %s8212_s17 = sld [smem:[#allocation6 + $0x39]] }
 0x289   :  { %s5334_s20 = scalar_lea.vmem %s8948_s1, %s8212_s17 }
 0x28a   :  { %v5353_v50 = vld [vmem:[%s5334_s20] sm:$0x1] }
 0x28b   :  { %5354 = vst [vmem:[#allocation2 + $0x39] sm:$0x1] %v5353_v50 }
 0x28c   :  { %5379 = vsyncadd [#allocation4], 16  ;;  %v5398_v51 = vld [vmem:[%s5334_s20] sm:$0x1] }
 0x28d   :  { %5399 = vst [vmem:[#allocation3 + $0xf] sm:$0x1] %v5398_v51 }
 0x28e   :  { %5424 = vsyncadd [#allocation4 + $0x1], 16  ;;  %s8213_s21 = sld [smem:[#allocation6 + $0x3a]] }
 0x294   :  { %s5427_s24 = scalar_lea.vmem %s8948_s1, %s8213_s21 }
 0x295   :  { %v5446_v52 = vld [vmem:[%s5427_s24] sm:$0x1] }
 0x296   :  { %5447 = vst [vmem:[#allocation2 + $0x3a] sm:$0x1] %v5446_v52 }
 0x297   :  { %5472 = vsyncadd [#allocation4], 16  ;;  %v5491_v53 = vld [vmem:[%s5427_s24] sm:$0x1] }
 0x298   :  { %5492 = vst [vmem:[#allocation3 + $0x17] sm:$0x1] %v5491_v53 }
 0x299   :  { %5517 = vsyncadd [#allocation4 + $0x1], 16  ;;  %s8214_s25 = sld [smem:[#allocation6 + $0x3b]] }
 0x29f   :  { %s5520_s27 = scalar_lea.vmem %s8948_s1, %s8214_s25 }
 0x2a0   :  { %v5539_v54 = vld [vmem:[%s5520_s27] sm:$0x1] }
 0x2a1   :  { %5540 = vst [vmem:[#allocation2 + $0x3b] sm:$0x1] %v5539_v54 }
 0x2a2   :  { %5565 = vsyncadd [#allocation4], 16  ;;  %v5584_v55 = vld [vmem:[%s5520_s27] sm:$0x1] }
 0x2a3   :  { %5585 = vst [vmem:[#allocation3 + $0x1f] sm:$0x1] %v5584_v55 }
 0x2a4   :  { %5610 = vsyncadd [#allocation4 + $0x1], 16  ;;  %s8215_s28 = sld [smem:[#allocation6 + $0x3c]] }
 0x2aa   :  { %s5613_s6 = scalar_lea.vmem %s8948_s1, %s8215_s28 }
 0x2ab   :  { %v5632_v56 = vld [vmem:[%s5613_s6] sm:$0x1] }
 0x2ac   :  { %5633 = vst [vmem:[#allocation2 + $0x3c] sm:$0x1] %v5632_v56 }
 0x2ad   :  { %5658 = vsyncadd [#allocation4], 16  ;;  %v5677_v57 = vld [vmem:[%s5613_s6] sm:$0x1] }
 0x2ae   :  { %5678 = vst [vmem:[#allocation3 + $0x27] sm:$0x1] %v5677_v57 }
 0x2af   :  { %5703 = vsyncadd [#allocation4 + $0x1], 16  ;;  %s8216_s7 = sld [smem:[#allocation6 + $0x3d]] }
 0x2b5   :  { %s5706_s10 = scalar_lea.vmem %s8948_s1, %s8216_s7 }
 0x2b6   :  { %v5725_v58 = vld [vmem:[%s5706_s10] sm:$0x1] }
 0x2b7   :  { %5726 = vst [vmem:[#allocation2 + $0x3d] sm:$0x1] %v5725_v58 }
 0x2b8   :  { %5751 = vsyncadd [#allocation4], 16  ;;  %v5770_v59 = vld [vmem:[%s5706_s10] sm:$0x1] }
 0x2b9   :  { %5771 = vst [vmem:[#allocation3 + $0x2f] sm:$0x1] %v5770_v59 }
 0x2ba   :  { %5796 = vsyncadd [#allocation4 + $0x1], 16  ;;  %s8217_s11 = sld [smem:[#allocation6 + $0x3e]] }
 0x2c0   :  { %s5799_s14 = scalar_lea.vmem %s8948_s1, %s8217_s11 }
 0x2c1   :  { %v5818_v60 = vld [vmem:[%s5799_s14] sm:$0x1] }
 0x2c2   :  { %5819 = vst [vmem:[#allocation2 + $0x3e] sm:$0x1] %v5818_v60 }
 0x2c3   :  { %5844 = vsyncadd [#allocation4], 16  ;;  %v5863_v61 = vld [vmem:[%s5799_s14] sm:$0x1] }
 0x2c4   :  { %5864 = vst [vmem:[#allocation3 + $0x37] sm:$0x1] %v5863_v61 }
 0x2c5   :  { %5889 = vsyncadd [#allocation4 + $0x1], 16  ;;  %s8218_s15 = sld [smem:[#allocation6 + $0x3f]] }
 0x2cb   :  { %s5892_s18 = scalar_lea.vmem %s8948_s1, %s8218_s15 }
 0x2cc   :  { %v5911_v62 = vld [vmem:[%s5892_s18] sm:$0x1] }
 0x2cd   :  { %5912 = vst [vmem:[#allocation2 + $0x3f] sm:$0x1] %v5911_v62 }
 0x2ce   :  { %5937 = vsyncadd [#allocation4], 16  ;;  %v5956_v63 = vld [vmem:[%s5892_s18] sm:$0x1] }
 0x2cf   :  { %5957 = vst [vmem:[#allocation3 + $0x3f] sm:$0x1] %v5956_v63 }
 0x2d0   :  { %5982 = vsyncadd [#allocation4 + $0x1], 16 }
 0x2d1   :  { %8347 = dma.done.wait [#allocation4], 16 }
 0x2d2   :  { %8348 = vsyncadd [#allocation4], 4294967280 }
 0x2d3   :  { %8349 = dma.done.wait [#allocation4 + $0x1], 16 }
 0x2d4   :  { %8350 = vsyncadd [#allocation4 + $0x1], 4294967280 }
 0x2d5   :  { %8351 = dma.done.wait [#allocation4], 16 }
 0x2d6   :  { %8352 = vsyncadd [#allocation4], 4294967280 }
 0x2d7   :  { %8353 = dma.done.wait [#allocation4 + $0x1], 16 }
 0x2d8   :  { %8354 = vsyncadd [#allocation4 + $0x1], 4294967280 }
 0x2d9   :  { %8355 = dma.done.wait [#allocation4], 16 }
 0x2da   :  { %8356 = vsyncadd [#allocation4], 4294967280 }
 0x2db   :  { %8357 = dma.done.wait [#allocation4 + $0x1], 16 }
 0x2dc   :  { %8358 = vsyncadd [#allocation4 + $0x1], 4294967280 }
 0x2dd   :  { %8359 = dma.done.wait [#allocation4], 16 }
 0x2de   :  { %8360 = vsyncadd [#allocation4], 4294967280 }
 0x2df   :  { %8361 = dma.done.wait [#allocation4 + $0x1], 16 }
 0x2e0   :  { %8362 = vsyncadd [#allocation4 + $0x1], 4294967280 }
 0x2e1   :  { %8363 = dma.done.wait [#allocation4], 16 }
 0x2e2   :  { %8364 = vsyncadd [#allocation4], 4294967280 }
 0x2e3   :  { %8365 = dma.done.wait [#allocation4 + $0x1], 16 }
 0x2e4   :  { %8366 = vsyncadd [#allocation4 + $0x1], 4294967280 }
 0x2e5   :  { %8367 = dma.done.wait [#allocation4], 16 }
 0x2e6   :  { %8368 = vsyncadd [#allocation4], 4294967280 }
 0x2e7   :  { %8369 = dma.done.wait [#allocation4 + $0x1], 16 }
 0x2e8   :  { %8370 = vsyncadd [#allocation4 + $0x1], 4294967280 }
 0x2e9   :  { %8371 = dma.done.wait [#allocation4], 16 }
 0x2ea   :  { %8372 = vsyncadd [#allocation4], 4294967280 }
 0x2eb   :  { %8373 = dma.done.wait [#allocation4 + $0x1], 16 }
 0x2ec   :  { %8374 = vsyncadd [#allocation4 + $0x1], 4294967280 }
 0x2ed   :  { %8375 = dma.done.wait [#allocation4], 16 }
 0x2ee   :  { %8376 = vsyncadd [#allocation4], 4294967280 }
 0x2ef   :  { %8377 = dma.done.wait [#allocation4 + $0x1], 16 }
 0x2f0   :  { %8378 = vsyncadd [#allocation4 + $0x1], 4294967280 }
 0x2f1   :  { %8379 = dma.done.wait [#allocation4], 16 }
 0x2f2   :  { %8380 = vsyncadd [#allocation4], 4294967280 }
 0x2f3   :  { %8381 = dma.done.wait [#allocation4 + $0x1], 16 }
 0x2f4   :  { %8382 = vsyncadd [#allocation4 + $0x1], 4294967280 }
 0x2f5   :  { %8383 = dma.done.wait [#allocation4], 16 }
 0x2f6   :  { %8384 = vsyncadd [#allocation4], 4294967280 }
 0x2f7   :  { %8385 = dma.done.wait [#allocation4 + $0x1], 16 }
 0x2f8   :  { %8386 = vsyncadd [#allocation4 + $0x1], 4294967280 }
 0x2f9   :  { %8387 = dma.done.wait [#allocation4], 16 }
 0x2fa   :  { %8388 = vsyncadd [#allocation4], 4294967280 }
 0x2fb   :  { %8389 = dma.done.wait [#allocation4 + $0x1], 16 }
 0x2fc   :  { %8390 = vsyncadd [#allocation4 + $0x1], 4294967280 }
 0x2fd   :  { %8391 = dma.done.wait [#allocation4], 16 }
 0x2fe   :  { %8392 = vsyncadd [#allocation4], 4294967280 }
 0x2ff   :  { %8393 = dma.done.wait [#allocation4 + $0x1], 16 }
 0x300   :  { %8394 = vsyncadd [#allocation4 + $0x1], 4294967280 }
 0x301   :  { %8395 = dma.done.wait [#allocation4], 16 }
 0x302   :  { %8396 = vsyncadd [#allocation4], 4294967280 }
 0x303   :  { %8397 = dma.done.wait [#allocation4 + $0x1], 16 }
 0x304   :  { %8398 = vsyncadd [#allocation4 + $0x1], 4294967280 }
 0x305   :  { %8399 = dma.done.wait [#allocation4], 16 }
 0x306   :  { %8400 = vsyncadd [#allocation4], 4294967280 }
 0x307   :  { %8401 = dma.done.wait [#allocation4 + $0x1], 16 }
 0x308   :  { %8402 = vsyncadd [#allocation4 + $0x1], 4294967280 }
 0x309   :  { %8403 = dma.done.wait [#allocation4], 16 }
 0x30a   :  { %8404 = vsyncadd [#allocation4], 4294967280 }
 0x30b   :  { %8405 = dma.done.wait [#allocation4 + $0x1], 16 }
 0x30c   :  { %8406 = vsyncadd [#allocation4 + $0x1], 4294967280 }
 0x30d   :  { %8407 = dma.done.wait [#allocation4], 16 }
 0x30e   :  { %8408 = vsyncadd [#allocation4], 4294967280 }
 0x30f   :  { %8409 = dma.done.wait [#allocation4 + $0x1], 16 }
 0x310   :  { %8410 = vsyncadd [#allocation4 + $0x1], 4294967280 }
 0x311   :  { %8411 = dma.done.wait [#allocation4], 16 }
 0x312   :  { %8412 = vsyncadd [#allocation4], 4294967280 }
 0x313   :  { %8413 = dma.done.wait [#allocation4 + $0x1], 16 }
 0x314   :  { %8414 = vsyncadd [#allocation4 + $0x1], 4294967280 }
 0x315   :  { %8415 = dma.done.wait [#allocation4], 16 }
 0x316   :  { %8416 = vsyncadd [#allocation4], 4294967280 }
 0x317   :  { %8417 = dma.done.wait [#allocation4 + $0x1], 16 }
 0x318   :  { %8418 = vsyncadd [#allocation4 + $0x1], 4294967280 }
 0x319   :  { %8419 = dma.done.wait [#allocation4], 16 }
 0x31a   :  { %8420 = vsyncadd [#allocation4], 4294967280 }
 0x31b   :  { %8421 = dma.done.wait [#allocation4 + $0x1], 16 }
 0x31c   :  { %8422 = vsyncadd [#allocation4 + $0x1], 4294967280 }
 0x31d   :  { %8423 = dma.done.wait [#allocation4], 16 }
 0x31e   :  { %8424 = vsyncadd [#allocation4], 4294967280 }
 0x31f   :  { %8425 = dma.done.wait [#allocation4 + $0x1], 16 }
 0x320   :  { %8426 = vsyncadd [#allocation4 + $0x1], 4294967280 }
 0x321   :  { %8427 = dma.done.wait [#allocation4], 16 }
 0x322   :  { %8428 = vsyncadd [#allocation4], 4294967280 }
 0x323   :  { %8429 = dma.done.wait [#allocation4 + $0x1], 16 }
 0x324   :  { %8430 = vsyncadd [#allocation4 + $0x1], 4294967280 }
 0x325   :  { %8431 = dma.done.wait [#allocation4], 16 }
 0x326   :  { %8432 = vsyncadd [#allocation4], 4294967280 }
 0x327   :  { %8433 = dma.done.wait [#allocation4 + $0x1], 16 }
 0x328   :  { %8434 = vsyncadd [#allocation4 + $0x1], 4294967280 }
 0x329   :  { %8435 = dma.done.wait [#allocation4], 16 }
 0x32a   :  { %8436 = vsyncadd [#allocation4], 4294967280 }
 0x32b   :  { %8437 = dma.done.wait [#allocation4 + $0x1], 16 }
 0x32c   :  { %8438 = vsyncadd [#allocation4 + $0x1], 4294967280 }
 0x32d   :  { %8439 = dma.done.wait [#allocation4], 16 }
 0x32e   :  { %8440 = vsyncadd [#allocation4], 4294967280 }
 0x32f   :  { %8441 = dma.done.wait [#allocation4 + $0x1], 16 }
 0x330   :  { %8442 = vsyncadd [#allocation4 + $0x1], 4294967280 }
 0x331   :  { %8443 = dma.done.wait [#allocation4], 16 }
 0x332   :  { %8444 = vsyncadd [#allocation4], 4294967280 }
 0x333   :  { %8445 = dma.done.wait [#allocation4 + $0x1], 16 }
 0x334   :  { %8446 = vsyncadd [#allocation4 + $0x1], 4294967280 }
 0x335   :  { %8447 = dma.done.wait [#allocation4], 16 }
 0x336   :  { %8448 = vsyncadd [#allocation4], 4294967280 }
 0x337   :  { %8449 = dma.done.wait [#allocation4 + $0x1], 16 }
 0x338   :  { %8450 = vsyncadd [#allocation4 + $0x1], 4294967280 }
 0x339   :  { %8451 = dma.done.wait [#allocation4], 16 }
 0x33a   :  { %8452 = vsyncadd [#allocation4], 4294967280 }
 0x33b   :  { %8453 = dma.done.wait [#allocation4 + $0x1], 16 }
 0x33c   :  { %8454 = vsyncadd [#allocation4 + $0x1], 4294967280 }
 0x33d   :  { %8455 = dma.done.wait [#allocation4], 16 }
 0x33e   :  { %8456 = vsyncadd [#allocation4], 4294967280 }
 0x33f   :  { %8457 = dma.done.wait [#allocation4 + $0x1], 16 }
 0x340   :  { %8458 = vsyncadd [#allocation4 + $0x1], 4294967280 }
 0x341   :  { %8459 = dma.done.wait [#allocation4], 16 }
 0x342   :  { %8460 = vsyncadd [#allocation4], 4294967280 }
 0x343   :  { %8461 = dma.done.wait [#allocation4 + $0x1], 16 }
 0x344   :  { %8462 = vsyncadd [#allocation4 + $0x1], 4294967280 }
 0x345   :  { %8463 = dma.done.wait [#allocation4], 16 }
 0x346   :  { %8464 = vsyncadd [#allocation4], 4294967280 }
 0x347   :  { %8465 = dma.done.wait [#allocation4 + $0x1], 16 }
 0x348   :  { %8466 = vsyncadd [#allocation4 + $0x1], 4294967280 }
 0x349   :  { %8467 = dma.done.wait [#allocation4], 16 }
 0x34a   :  { %8468 = vsyncadd [#allocation4], 4294967280 }
 0x34b   :  { %8469 = dma.done.wait [#allocation4 + $0x1], 16 }
 0x34c   :  { %8470 = vsyncadd [#allocation4 + $0x1], 4294967280 }
 0x34d   :  { %8471 = dma.done.wait [#allocation4], 16 }
 0x34e   :  { %8472 = vsyncadd [#allocation4], 4294967280 }
 0x34f   :  { %8473 = dma.done.wait [#allocation4 + $0x1], 16 }
 0x350   :  { %8474 = vsyncadd [#allocation4 + $0x1], 4294967280 }
 0x351   :  { %8475 = dma.done.wait [#allocation4], 16 }
 0x352   :  { %8476 = vsyncadd [#allocation4], 4294967280 }
 0x353   :  { %8477 = dma.done.wait [#allocation4 + $0x1], 16 }
 0x354   :  { %8478 = vsyncadd [#allocation4 + $0x1], 4294967280 }
 0x355   :  { %8479 = dma.done.wait [#allocation4], 16 }
 0x356   :  { %8480 = vsyncadd [#allocation4], 4294967280 }
 0x357   :  { %8481 = dma.done.wait [#allocation4 + $0x1], 16 }
 0x358   :  { %8482 = vsyncadd [#allocation4 + $0x1], 4294967280 }
 0x359   :  { %8483 = dma.done.wait [#allocation4], 16 }
 0x35a   :  { %8484 = vsyncadd [#allocation4], 4294967280 }
 0x35b   :  { %8485 = dma.done.wait [#allocation4 + $0x1], 16 }
 0x35c   :  { %8486 = vsyncadd [#allocation4 + $0x1], 4294967280 }
 0x35d   :  { %8487 = dma.done.wait [#allocation4], 16 }
 0x35e   :  { %8488 = vsyncadd [#allocation4], 4294967280 }
 0x35f   :  { %8489 = dma.done.wait [#allocation4 + $0x1], 16 }
 0x360   :  { %8490 = vsyncadd [#allocation4 + $0x1], 4294967280 }
 0x361   :  { %8491 = dma.done.wait [#allocation4], 16 }
 0x362   :  { %8492 = vsyncadd [#allocation4], 4294967280 }
 0x363   :  { %8493 = dma.done.wait [#allocation4 + $0x1], 16 }
 0x364   :  { %8494 = vsyncadd [#allocation4 + $0x1], 4294967280 }
 0x365   :  { %8495 = dma.done.wait [#allocation4], 16 }
 0x366   :  { %8496 = vsyncadd [#allocation4], 4294967280 }
 0x367   :  { %8497 = dma.done.wait [#allocation4 + $0x1], 16 }
 0x368   :  { %8498 = vsyncadd [#allocation4 + $0x1], 4294967280 }
 0x369   :  { %8499 = dma.done.wait [#allocation4], 16 }
 0x36a   :  { %8500 = vsyncadd [#allocation4], 4294967280 }
 0x36b   :  { %8501 = dma.done.wait [#allocation4 + $0x1], 16 }
 0x36c   :  { %8502 = vsyncadd [#allocation4 + $0x1], 4294967280 }
 0x36d   :  { %8503 = dma.done.wait [#allocation4], 16 }
 0x36e   :  { %8504 = vsyncadd [#allocation4], 4294967280 }
 0x36f   :  { %8505 = dma.done.wait [#allocation4 + $0x1], 16 }
 0x370   :  { %8506 = vsyncadd [#allocation4 + $0x1], 4294967280 }
 0x371   :  { %8507 = dma.done.wait [#allocation4], 16 }
 0x372   :  { %8508 = vsyncadd [#allocation4], 4294967280 }
 0x373   :  { %8509 = dma.done.wait [#allocation4 + $0x1], 16 }
 0x374   :  { %8510 = vsyncadd [#allocation4 + $0x1], 4294967280 }
 0x375   :  { %8511 = dma.done.wait [#allocation4], 16 }
 0x376   :  { %8512 = vsyncadd [#allocation4], 4294967280 }
 0x377   :  { %8513 = dma.done.wait [#allocation4 + $0x1], 16 }
 0x378   :  { %8514 = vsyncadd [#allocation4 + $0x1], 4294967280 }
 0x379   :  { %8515 = dma.done.wait [#allocation4], 16 }
 0x37a   :  { %8516 = vsyncadd [#allocation4], 4294967280 }
 0x37b   :  { %8517 = dma.done.wait [#allocation4 + $0x1], 16 }
 0x37c   :  { %8518 = vsyncadd [#allocation4 + $0x1], 4294967280 }
 0x37d   :  { %8519 = dma.done.wait [#allocation4], 16 }
 0x37e   :  { %8520 = vsyncadd [#allocation4], 4294967280 }
 0x37f   :  { %8521 = dma.done.wait [#allocation4 + $0x1], 16 }
 0x380   :  { %8522 = vsyncadd [#allocation4 + $0x1], 4294967280 }
 0x381   :  { %8523 = dma.done.wait [#allocation4], 16 }
 0x382   :  { %8524 = vsyncadd [#allocation4], 4294967280 }
 0x383   :  { %8525 = dma.done.wait [#allocation4 + $0x1], 16 }
 0x384   :  { %8526 = vsyncadd [#allocation4 + $0x1], 4294967280 }
 0x385   :  { %8527 = dma.done.wait [#allocation4], 16 }
 0x386   :  { %8528 = vsyncadd [#allocation4], 4294967280 }
 0x387   :  { %8529 = dma.done.wait [#allocation4 + $0x1], 16 }
 0x388   :  { %8530 = vsyncadd [#allocation4 + $0x1], 4294967280 }
 0x389   :  { %8531 = dma.done.wait [#allocation4], 16 }
 0x38a   :  { %8532 = vsyncadd [#allocation4], 4294967280 }
 0x38b   :  { %8533 = dma.done.wait [#allocation4 + $0x1], 16 }
 0x38c   :  { %8534 = vsyncadd [#allocation4 + $0x1], 4294967280 }
 0x38d   :  { %8535 = dma.done.wait [#allocation4], 16 }
 0x38e   :  { %8536 = vsyncadd [#allocation4], 4294967280 }
 0x38f   :  { %8537 = dma.done.wait [#allocation4 + $0x1], 16 }
 0x390   :  { %8538 = vsyncadd [#allocation4 + $0x1], 4294967280 }
 0x391   :  { %8539 = dma.done.wait [#allocation4], 16 }
 0x392   :  { %8540 = vsyncadd [#allocation4], 4294967280 }
 0x393   :  { %8541 = dma.done.wait [#allocation4 + $0x1], 16 }
 0x394   :  { %8542 = vsyncadd [#allocation4 + $0x1], 4294967280 }
 0x395   :  { %8543 = dma.done.wait [#allocation4], 16 }
 0x396   :  { %8544 = vsyncadd [#allocation4], 4294967280 }
 0x397   :  { %8545 = dma.done.wait [#allocation4 + $0x1], 16 }
 0x398   :  { %8546 = vsyncadd [#allocation4 + $0x1], 4294967280 }
 0x399   :  { %8547 = dma.done.wait [#allocation4], 16 }
 0x39a   :  { %8548 = vsyncadd [#allocation4], 4294967280 }
 0x39b   :  { %8549 = dma.done.wait [#allocation4 + $0x1], 16 }
 0x39c   :  { %8550 = vsyncadd [#allocation4 + $0x1], 4294967280 }
 0x39d   :  { %8551 = dma.done.wait [#allocation4], 16 }
 0x39e   :  { %8552 = vsyncadd [#allocation4], 4294967280 }
 0x39f   :  { %8553 = dma.done.wait [#allocation4 + $0x1], 16 }
 0x3a0   :  { %8554 = vsyncadd [#allocation4 + $0x1], 4294967280 }
 0x3a1   :  { %8555 = dma.done.wait [#allocation4], 16 }
 0x3a2   :  { %8556 = vsyncadd [#allocation4], 4294967280 }
 0x3a3   :  { %8557 = dma.done.wait [#allocation4 + $0x1], 16 }
 0x3a4   :  { %8558 = vsyncadd [#allocation4 + $0x1], 4294967280 }
 0x3a5   :  { %8559 = dma.done.wait [#allocation4], 16 }
 0x3a6   :  { %8560 = vsyncadd [#allocation4], 4294967280 }
 0x3a7   :  { %8561 = dma.done.wait [#allocation4 + $0x1], 16 }
 0x3a8   :  { %8562 = vsyncadd [#allocation4 + $0x1], 4294967280 }
 0x3a9   :  { %8563 = dma.done.wait [#allocation4], 16 }
 0x3aa   :  { %8564 = vsyncadd [#allocation4], 4294967280 }
 0x3ab   :  { %8565 = dma.done.wait [#allocation4 + $0x1], 16 }
 0x3ac   :  { %8566 = vsyncadd [#allocation4 + $0x1], 4294967280 }
 0x3ad   :  { %8567 = dma.done.wait [#allocation4], 16 }
 0x3ae   :  { %8568 = vsyncadd [#allocation4], 4294967280 }
 0x3af   :  { %8569 = dma.done.wait [#allocation4 + $0x1], 16 }
 0x3b0   :  { %8570 = vsyncadd [#allocation4 + $0x1], 4294967280 }
 0x3b1   :  { %8571 = dma.done.wait [#allocation4], 16 }
 0x3b2   :  { %8572 = vsyncadd [#allocation4], 4294967280 }
 0x3b3   :  { %8573 = dma.done.wait [#allocation4 + $0x1], 16 }
 0x3b4   :  { %8574 = vsyncadd [#allocation4 + $0x1], 4294967280 }
 0x3b5   :  { %8575 = dma.done.wait [#allocation4], 16 }
 0x3b6   :  { %8576 = vsyncadd [#allocation4], 4294967280 }
 0x3b7   :  { %8577 = dma.done.wait [#allocation4 + $0x1], 16 }
 0x3b8   :  { %8578 = vsyncadd [#allocation4 + $0x1], 4294967280 }
 0x3b9   :  { %8579 = dma.done.wait [#allocation4], 16 }
 0x3ba   :  { %8580 = vsyncadd [#allocation4], 4294967280 }
 0x3bb   :  { %8581 = dma.done.wait [#allocation4 + $0x1], 16 }
 0x3bc   :  { %8582 = vsyncadd [#allocation4 + $0x1], 4294967280 }
 0x3bd   :  { %8583 = dma.done.wait [#allocation4], 16 }
 0x3be   :  { %8584 = vsyncadd [#allocation4], 4294967280 }
 0x3bf   :  { %8585 = dma.done.wait [#allocation4 + $0x1], 16 }
 0x3c0   :  { %8586 = vsyncadd [#allocation4 + $0x1], 4294967280 }
 0x3c1   :  { %8587 = dma.done.wait [#allocation4], 16 }
 0x3c2   :  { %8588 = vsyncadd [#allocation4], 4294967280 }
 0x3c3   :  { %8589 = dma.done.wait [#allocation4 + $0x1], 16 }
 0x3c4   :  { %8590 = vsyncadd [#allocation4 + $0x1], 4294967280 }
 0x3c5   :  { %8591 = dma.done.wait [#allocation4], 16 }
 0x3c6   :  { %8592 = vsyncadd [#allocation4], 4294967280 }
 0x3c7   :  { %8593 = dma.done.wait [#allocation4 + $0x1], 16 }
 0x3c8   :  { %8594 = vsyncadd [#allocation4 + $0x1], 4294967280 }
 0x3c9   :  { %8595 = dma.done.wait [#allocation4], 16 }
 0x3ca   :  { %8596 = vsyncadd [#allocation4], 4294967280 }
 0x3cb   :  { %8597 = dma.done.wait [#allocation4 + $0x1], 16 }
 0x3cc   :  { %8598 = vsyncadd [#allocation4 + $0x1], 4294967280 }
 0x3cd   :  { %8599 = dma.done.wait [#allocation4], 16 }
 0x3ce   :  { %8600 = vsyncadd [#allocation4], 4294967280 }
 0x3cf   :  { %8601 = dma.done.wait [#allocation4 + $0x1], 16 }
 0x3d0   :  { %8602 = vsyncadd [#allocation4 + $0x1], 4294967280  ;;  %v8608_v0 = vmov 0   ;;  %v8277_v1 = vld [vmem:[%s8949_s2 + $0x4] ss:$16 sps:$4 sm:$0xff]   ;;  %v6258_v10 = vld [vmem:[#allocation2 + $0x8] sm:$0xff] }
 0x3d1   :  { %6383 = vmatprep.mubr.bf16.mxu0 %v8608_v0  ;;  %6456 = vmatprep.mubr.bf16.mxu1 %v8608_v0  ;;  %v8279_v2 = vld [vmem:[%s8949_s2 + $0xc] ss:$16 sps:$4 sm:$0xff]   ;;  %v8281_v3 = vld [vmem:[%s8949_s2] ss:$16 sps:$4 sm:$0xff]   ;;  %v8282_v4 = vld [vmem:[%s8949_s2 + $0x8] ss:$16 sps:$4 sm:$0xff]  }
 0x3d2   :  { %6351 = vmatprep.subr.bf16.mxu0 %v8277_v1  ;;  %6424 = vmatprep.subr.bf16.mxu1 %v8279_v2  ;;  %v8283_v5 = vld [vmem:[%s8949_s2 + $0x24] ss:$16 sps:$4 sm:$0xff]   ;;  %v8285_v6 = vld [vmem:[%s8949_s2 + $0x2c] ss:$16 sps:$4 sm:$0xff]   ;;  %v8287_v7 = vld [vmem:[%s8949_s2 + $0x20] ss:$16 sps:$4 sm:$0xff]  }
 0x3d3   :  { %6352 = vmatpush1.bf16.msra.mxu0 %v8281_v3  ;;  %6425 = vmatpush1.bf16.msra.mxu1 %v8282_v4  ;;  %v8288_v8 = vld [vmem:[%s8949_s2 + $0x28] ss:$16 sps:$4 sm:$0xff]   ;;  %v6257_v9 = vld [vmem:[#allocation2] sm:$0xff]  ;;  %vm6248_vm0 = vcmask 261120   ;;  %v6259_v12 = vld [vmem:[#allocation2 + $0x10] sm:$0xff]  ;;  %s8609_s2 = smov [#allocation7]  }
 0x3d4   :  { %6353 = vmatprep.subr.bf16.mxu0 %v8283_v5  ;;  %6426 = vmatprep.subr.bf16.mxu1 %v8285_v6  ;;  %v6265_v11 = vpack.c.bf16 %v6258_v10, %v6257_v9  ;;  %v6260_v13 = vld [vmem:[#allocation2 + $0x18] sm:$0xff]  ;;  %v6261_v15 = vld [vmem:[#allocation2 + $0x20] sm:$0xff]  ;;  %v6262_v16 = vld [vmem:[#allocation2 + $0x28] sm:$0xff]  ;;  %s6646_s8 = sshll.u32 %s8609_s2, 4  ;;  %s6647_s8 = int_to_ptr.vmem [resolvable:$true] %s6646_s8 }
 0x3d5   :  { %v6266_v14 = vpack.c.bf16 %v6260_v13, %v6259_v12  ;;  %v6267_v17 = vpack.c.bf16 %v6262_v16, %v6261_v15  ;;  %v6263_v18 = vld [vmem:[#allocation2 + $0x30] sm:$0xff]  ;;  %v6264_v19 = vld [vmem:[#allocation2 + $0x38] sm:$0xff]  ;;  %v6240_v21 = vld [vmem:[#allocation3] sm:$0xff]  ;;  %s8301_s9 = scalar_lea.vmem %s6647_s8, 1024  ;;  %p8306_p6 = scmp.lt.s32.totalorder %s6647_s8, %s6647_s8 }
 0x3d6   :  { %v6268_v20 = vpack.c.bf16 %v6264_v19, %v6263_v18  ;;  %v6241_v22 = vld [vmem:[#allocation3 + $0x8] sm:$0xff]  ;;  %v6242_v23 = vld [vmem:[#allocation3 + $0x10] sm:$0xff]  ;;  %v6243_v24 = vld [vmem:[#allocation3 + $0x18] sm:$0xff]  ;;  %6249 = vst.msk [vmem:[#allocation7] sm:$0xff] %vm6248_vm0, %v6240_v21  ;;  %p8302_p5 = scmp.ne.s32.totalorder %s6647_s8, %s8301_s9  ;;  %p8307_p7 = scmp.lt.s32.totalorder %s8301_s9, %s8301_s9 }
 0x3d7   :  { %6354 = vmatpush1.bf16.msra.mxu0 %v8287_v7  ;;  %6427 = vmatpush1.bf16.msra.mxu1 %v8288_v8  ;;  %v6244_v25 = vld [vmem:[#allocation3 + $0x20] sm:$0xff]  ;;  %v6245_v26 = vld [vmem:[#allocation3 + $0x28] sm:$0xff]  ;;  %6250 = vst.msk [vmem:[#allocation7 + $0x8] sm:$0xff] %vm6248_vm0, %v6241_v22  ;;  %6251 = vst.msk [vmem:[#allocation7 + $0x10] sm:$0xff] %vm6248_vm0, %v6242_v23 }
 0x3d8   :  { %v6246_v27 = vld [vmem:[#allocation3 + $0x30] sm:$0xff]  ;;  %v6247_v28 = vld [vmem:[#allocation3 + $0x38] sm:$0xff]  ;;  %6252 = vst.msk [vmem:[#allocation7 + $0x18] sm:$0xff] %vm6248_vm0, %v6243_v24  ;;  %6253 = vst.msk [vmem:[#allocation7 + $0x20] sm:$0xff] %vm6248_vm0, %v6244_v25  ;;  %p8308_p8 = por %p8307_p7, %p8306_p6 }
 0x3d9   :  { %6254 = vst.msk [vmem:[#allocation7 + $0x28] sm:$0xff] %vm6248_vm0, %v6245_v26  ;;  %6255 = vst.msk [vmem:[#allocation7 + $0x30] sm:$0xff] %vm6248_vm0, %v6246_v27 }
 0x3da   :  { %8227 = vmatmul.mubr.msk.bf16.vlgmr.msra.gmra.mrb[0].mxu0 %vm6248_vm0, %v6265_v11  ;;  %8231 = vmatmul.mubr.msk.bf16.vlgmr.msra.gmra.mrb[0].mxu1 %vm6248_vm0, %v6265_v11  ;;  %6256 = vst.msk [vmem:[#allocation7 + $0x38] sm:$0xff] %vm6248_vm0, %v6247_v28  ;;  %p8309_p9 = pnand %p8308_p8, %p8302_p5 }
 0x3db   :  { %6393 = vmatprep.mubr.bf16.mxu0 %v8608_v0  ;;  %6466 = vmatprep.mubr.bf16.mxu1 %v8608_v0 }
 0x3e2   :  { %8228 = vmatmul.mubr.msk.bf16.gmra.mrb[4].mxu0 %vm6248_vm0, %v6266_v14  ;;  %8232 = vmatmul.mubr.msk.bf16.gmra.mrb[4].mxu1 %vm6248_vm0, %v6266_v14 }
 0x3e3   :  { %6403 = vmatprep.mubr.bf16.mxu0 %v8608_v0  ;;  %6476 = vmatprep.mubr.bf16.mxu1 %v8608_v0 }
 0x3ea   :  { %8229 = vmatmul.mubr.msk.bf16.gmra.mrb[8].mxu0 %vm6248_vm0, %v6267_v17  ;;  %8233 = vmatmul.mubr.msk.bf16.gmra.mrb[8].mxu1 %vm6248_vm0, %v6267_v17 }
 0x3eb   :  { %6413 = vmatprep.mubr.bf16.mxu0 %v8608_v0  ;;  %6486 = vmatprep.mubr.bf16.mxu1 %v8608_v0 }
 0x3f2   :  { %8230 = vmatmul.mubr.msk.bf16.gmra.mrb[12].mxu0 %vm6248_vm0, %v6268_v20  ;;  %8234 = vmatmul.mubr.msk.bf16.gmra.mrb[12].mxu1 %vm6248_vm0, %v6268_v20 }
 0x3f3   :  { %8312 = shalt.err (!%p8309_p9)
}
 0x3f4   :  { %s8313_s12 = scalar_lea.hbm %s8951_s4, 1024 }
 0x3f5   :  { %p8314_p10 = scmp.ne.s32.totalorder %s8951_s4, %s8313_s12  ;;  %p8317_p11 = scmp.lt.u32.totalorder %s8313_s12, %s8951_s4 }
 0x3f7   :  { %p8319_p12 = pnand %p8317_p11, %p8314_p10 }
 0x3f9   :  { %8322 = shalt.err (!%p8319_p12)
}
 0x3fa   :  { %s8610_s17 = smov 128   ;;  %s8611_s18 = smov 8   ;;  %v6279_v29 = vlaneseq  ;;  %v6277_v33 = vld [vmem:[%s8950_s3] sm:$0xf] }
 0x3fb   :  { %6652 = dma.vmem_to_hbm [thread:$0]  %s6647_s8, 1024, %s8951_s4, [#allocation8], %s8610_s17, %s8610_s17, %s8611_s18  }
 0x3fc   :  { %v6280_v30 = vshrl.u32 %v6279_v29, 7  ;;  %s8612_s3 = smov [#allocation9]  }
 0x3fd   :  { %s6658_s4 = sshll.u32 %s8612_s3, 4  ;;  %s6659_s4 = int_to_ptr.vmem [resolvable:$true] %s6658_s4 }
 0x3fe   :  { %v6281_v31 = vsub.s32 0, %v6280_v30  ;;  %v6289_v32 = vsub.s32 2, %v6280_v30  ;;  %v6285_v34 = vsub.s32 1, %v6280_v30  ;;  %v6293_v35 = vsub.s32 3, %v6280_v30  ;;  %s8323_s22 = scalar_lea.vmem %s6659_s4, 2048  ;;  %p8328_p0 = scmp.lt.s32.totalorder %s6659_s4, %s6659_s4 }
 0x3ff   :  { %p8324_p13 = scmp.ne.s32.totalorder %s6659_s4, %s8323_s22  ;;  %p8329_p1 = scmp.lt.s32.totalorder %s8323_s22, %s8323_s22 }
 0x400   :  { %v8895_v36 = vrot.slane %v6277_v33, %v6281_v31  ;;  %v8897_v37 = vrot.slane %v6277_v33, %v6289_v32  ;;  %v8899_v38 = vrot.slane %v6277_v33, %v6285_v34  ;;  %v8901_v39 = vrot.slane %v6277_v33, %v6293_v35 }
 0x401   :  { %p8330_p2 = por %p8329_p1, %p8328_p0 }
 0x403   :  { %p8331_p3 = pnand %p8330_p2, %p8324_p13 }
 0x4ad   :  { %v6385_v40 = vpop.f32.mrb[0].mxu0  ;;  %v6458_v41 = vpop.f32.mrb[0].mxu1 }
 0x4ae   :  { %v6386_v42 = vadd.f32 %v6385_v40, %v8895_v36  ;;  %v6459_v43 = vadd.f32 %v6458_v41, %v8897_v37  ;;  %v6387_v44 = vpop.f32.mrb[1].mxu0  ;;  %v6460_v45 = vpop.f32.mrb[1].mxu1 }
 0x4af   :  { %v6388_v46 = vadd.f32 %v6387_v44, %v8899_v38  ;;  %v6461_v47 = vadd.f32 %v6460_v45, %v8901_v39  ;;  %v6389_v48 = vpop.f32.mrb[2].mxu0  ;;  %v6462_v49 = vpop.f32.mrb[2].mxu1 }
 0x4b0   :  { %v6390_v50 = vadd.f32 %v6389_v48, %v8895_v36  ;;  %v6463_v51 = vadd.f32 %v6462_v49, %v8897_v37  ;;  %v6391_v52 = vpop.f32.mrb[3].mxu0  ;;  %v6464_v53 = vpop.f32.mrb[3].mxu1 }
 0x4b1   :  { %v8253_v54 = vpack.c.bf16 %v6388_v46, %v6386_v42  ;;  %v8254_v55 = vpack.c.bf16 %v6461_v47, %v6459_v43  ;;  %v6392_v56 = vadd.f32 %v6391_v52, %v8899_v38  ;;  %v6465_v57 = vadd.f32 %v6464_v53, %v8901_v39 }
 0x4b3   :  { %6625 = vst [vmem:[#allocation9] sm:$0xff] %v8253_v54  ;;  %6626 = vst [vmem:[#allocation9 + $0x8] sm:$0xff] %v8254_v55  ;;  %v8255_v58 = vpack.c.bf16 %v6392_v56, %v6390_v50  ;;  %v8256_v59 = vpack.c.bf16 %v6465_v57, %v6463_v51 }
 0x4b5   :  { %6627 = vst [vmem:[#allocation9 + $0x10] sm:$0xff] %v8255_v58  ;;  %6628 = vst [vmem:[#allocation9 + $0x18] sm:$0xff] %v8256_v59  ;;  %v6395_v60 = vpop.f32.mrb[4].mxu0  ;;  %v6468_v61 = vpop.f32.mrb[4].mxu1 }
 0x4b6   :  { %v6396_v62 = vadd.f32 %v6395_v60, %v8895_v36  ;;  %v6469_v63 = vadd.f32 %v6468_v61, %v8897_v37  ;;  %v6397_v0 = vpop.f32.mrb[5].mxu0  ;;  %v6470_v1 = vpop.f32.mrb[5].mxu1 }
 0x4b7   :  { %v6398_v2 = vadd.f32 %v6397_v0, %v8899_v38  ;;  %v6471_v3 = vadd.f32 %v6470_v1, %v8901_v39  ;;  %v6399_v4 = vpop.f32.mrb[6].mxu0  ;;  %v6472_v5 = vpop.f32.mrb[6].mxu1 }
 0x4b8   :  { %v6400_v6 = vadd.f32 %v6399_v4, %v8895_v36  ;;  %v6473_v7 = vadd.f32 %v6472_v5, %v8897_v37  ;;  %v6401_v8 = vpop.f32.mrb[7].mxu0  ;;  %v6474_v9 = vpop.f32.mrb[7].mxu1 }
 0x4b9   :  { %v8257_v10 = vpack.c.bf16 %v6398_v2, %v6396_v62  ;;  %v8258_v11 = vpack.c.bf16 %v6471_v3, %v6469_v63  ;;  %v6402_v12 = vadd.f32 %v6401_v8, %v8899_v38  ;;  %v6475_v13 = vadd.f32 %v6474_v9, %v8901_v39 }
 0x4bb   :  { %6629 = vst [vmem:[#allocation9 + $0x20] sm:$0xff] %v8257_v10  ;;  %6630 = vst [vmem:[#allocation9 + $0x28] sm:$0xff] %v8258_v11  ;;  %v8259_v14 = vpack.c.bf16 %v6402_v12, %v6400_v6  ;;  %v8260_v15 = vpack.c.bf16 %v6475_v13, %v6473_v7 }
 0x4bd   :  { %6631 = vst [vmem:[#allocation9 + $0x30] sm:$0xff] %v8259_v14  ;;  %6632 = vst [vmem:[#allocation9 + $0x38] sm:$0xff] %v8260_v15  ;;  %v6405_v16 = vpop.f32.mrb[8].mxu0  ;;  %v6478_v17 = vpop.f32.mrb[8].mxu1 }
 0x4be   :  { %v6406_v18 = vadd.f32 %v6405_v16, %v8895_v36  ;;  %v6479_v19 = vadd.f32 %v6478_v17, %v8897_v37  ;;  %v6407_v20 = vpop.f32.mrb[9].mxu0  ;;  %v6480_v21 = vpop.f32.mrb[9].mxu1 }
 0x4bf   :  { %v6408_v22 = vadd.f32 %v6407_v20, %v8899_v38  ;;  %v6481_v23 = vadd.f32 %v6480_v21, %v8901_v39  ;;  %v6409_v24 = vpop.f32.mrb[10].mxu0  ;;  %v6482_v25 = vpop.f32.mrb[10].mxu1 }
 0x4c0   :  { %v6410_v26 = vadd.f32 %v6409_v24, %v8895_v36  ;;  %v6483_v27 = vadd.f32 %v6482_v25, %v8897_v37  ;;  %v6411_v28 = vpop.f32.mrb[11].mxu0  ;;  %v6484_v29 = vpop.f32.mrb[11].mxu1 }
 0x4c1   :  { %v8261_v30 = vpack.c.bf16 %v6408_v22, %v6406_v18  ;;  %v8262_v31 = vpack.c.bf16 %v6481_v23, %v6479_v19  ;;  %v6412_v32 = vadd.f32 %v6411_v28, %v8899_v38  ;;  %v6485_v33 = vadd.f32 %v6484_v29, %v8901_v39 }
 0x4c3   :  { %6633 = vst [vmem:[#allocation9 + $0x40] sm:$0xff] %v8261_v30  ;;  %6634 = vst [vmem:[#allocation9 + $0x48] sm:$0xff] %v8262_v31  ;;  %v8263_v34 = vpack.c.bf16 %v6412_v32, %v6410_v26  ;;  %v8264_v35 = vpack.c.bf16 %v6485_v33, %v6483_v27 }
 0x4c5   :  { %6635 = vst [vmem:[#allocation9 + $0x50] sm:$0xff] %v8263_v34  ;;  %6636 = vst [vmem:[#allocation9 + $0x58] sm:$0xff] %v8264_v35  ;;  %v6415_v40 = vpop.f32.mrb[12].mxu0  ;;  %v6488_v41 = vpop.f32.mrb[12].mxu1 }
 0x4c6   :  { %v6416_v42 = vadd.f32 %v6415_v40, %v8895_v36  ;;  %v6489_v43 = vadd.f32 %v6488_v41, %v8897_v37  ;;  %v6417_v44 = vpop.f32.mrb[13].mxu0  ;;  %v6490_v45 = vpop.f32.mrb[13].mxu1 }
 0x4c7   :  { %v6418_v46 = vadd.f32 %v6417_v44, %v8899_v38  ;;  %v6491_v47 = vadd.f32 %v6490_v45, %v8901_v39  ;;  %v6419_v48 = vpop.f32.mrb[14].mxu0  ;;  %v6492_v49 = vpop.f32.mrb[14].mxu1 }
 0x4c8   :  { %v6420_v50 = vadd.f32 %v6419_v48, %v8895_v36  ;;  %v6493_v51 = vadd.f32 %v6492_v49, %v8897_v37  ;;  %v6421_v52 = vpop.f32.mrb[15].mxu0  ;;  %v6494_v53 = vpop.f32.mrb[15].mxu1 }
 0x4c9   :  { %v8265_v54 = vpack.c.bf16 %v6418_v46, %v6416_v42  ;;  %v8266_v55 = vpack.c.bf16 %v6491_v47, %v6489_v43  ;;  %v6422_v56 = vadd.f32 %v6421_v52, %v8899_v38  ;;  %v6495_v57 = vadd.f32 %v6494_v53, %v8901_v39 }
 0x4cb   :  { %6637 = vst [vmem:[#allocation9 + $0x60] sm:$0xff] %v8265_v54  ;;  %6638 = vst [vmem:[#allocation9 + $0x68] sm:$0xff] %v8266_v55  ;;  %v8267_v58 = vpack.c.bf16 %v6422_v56, %v6420_v50  ;;  %v8268_v59 = vpack.c.bf16 %v6495_v57, %v6493_v51 }
 0x4cd   :  { %6639 = vst [vmem:[#allocation9 + $0x70] sm:$0xff] %v8267_v58  ;;  %6640 = vst [vmem:[#allocation9 + $0x78] sm:$0xff] %v8268_v59 }
 0x4ce   :  { %8334 = shalt.err (!%p8331_p3)
}
 0x4cf   :  { %s8335_s25 = scalar_lea.hbm %s8952_s5, 2048 }
 0x4d0   :  { %p8336_p4 = scmp.ne.s32.totalorder %s8952_s5, %s8335_s25  ;;  %p8339_p5 = scmp.lt.u32.totalorder %s8335_s25, %s8952_s5 }
 0x4d2   :  { %p8341_p6 = pnand %p8339_p5, %p8336_p4 }
 0x4d4   :  { %8344 = shalt.err (!%p8341_p6)
}
 0x4d5   :  { %s8613_s29 = smov 256   ;;  %s8614_s30 = smov 16  }
 0x4d6   :  { %6664 = dma.vmem_to_hbm [thread:$0]  %s6659_s4, 2048, %s8952_s5, [#allocation10], %s8613_s29, %s8613_s29, %s8614_s30  }
 0x4d7   :  { %8603 = dma.done.wait [#allocation8], 1024  }
 0x4d8   :  { %8604 = vsyncadd [#allocation8], 4294966272 }
 0x4d9   :  { %8605 = dma.done.wait [#allocation10], 2048  }
 0x4da   :  { %8606 = vsyncadd [#allocation10], 4294965248 }
 0x4db   :  { %6671 = vsyncpa [#allocation8], 1 }
 0x4dc   :  { %6672 = vsyncpa [#allocation10], 1 }
 0x4dd   :  { %6673 = vsyncmov [#allocation4] }
 0x4e0   :  { %s6674_s2 = vpop.sfrf %6673 }
 0x4e1   :  { %p8251_p7 = scmp.ne.s32.totalorder %s6674_s2, 0 }
 0x4e3   :  { %6678 = shalt.err (%p8251_p7)  }
 0x4e4   :  { %6680 = vsyncmov [#allocation4 + $0x1] }
 0x4e7   :  { %s6681_s8 = vpop.sfrf %6680 }
 0x4e8   :  { %p8252_p8 = scmp.ne.s32.totalorder %s6681_s8, 0 }
 0x4ea   :  { %6685 = shalt.err (%p8252_p8)  }

</bundles_post_ra>
